<compile_context>
chip_gen: v7x
topology: tpu7x:2x2x1
jax: 0.10.0
libtpu: 0.0.40
codegen_flags: <defaults>
</compile_context>

<pallas_src>
import functools

import jax
import jax.numpy as jnp
from jax import lax
from jax.experimental import pallas as pl
from jax.experimental.pallas import tpu as pltpu

EPS = 1e-5


def residual_block_kernel(xpad_ref, xres_ref, w1_ref, g1_ref, be1_ref,
                          w2_ref, g2_ref, be2_ref, out_ref,
                          col_ref, hpad_ref, *, matmul_dtype):
    N, Hp, Wp, Cin = xpad_ref.shape
    H, W = Hp - 2, Wp - 2
    Chid = w1_ref.shape[1]
    Cout = w2_ref.shape[1]
    M = N * H * W
    inv_m = jnp.float32(1.0 / M)

    # ---- conv1: build im2col once (ref-sliced taps -> shared VMEM scratch),
    #      then a single matmul with K = 9*Cin (bias dropped under BN). ----
    for t in range(9):
        dy, dx = t // 3, t % 3
        col_ref[:, t * Cin:(t + 1) * Cin] = (
            xpad_ref[:, dy:dy + H, dx:dx + W, :].reshape(M, Cin))
    acc1 = jnp.dot(col_ref[:, 0:9 * Cin].astype(matmul_dtype),
                   w1_ref[...].astype(matmul_dtype),
                   preferred_element_type=jnp.float32)          # (M, Chid)

    # ---- BN1: single-pass stats, folded per-channel scale/shift, ReLU ----
    s1 = jnp.sum(acc1, axis=0, keepdims=True)
    q1 = jnp.sum(acc1 * acc1, axis=0, keepdims=True)
    mu1 = s1 * inv_m
    var1 = q1 * inv_m - mu1 * mu1
    scale1 = g1_ref[...] * lax.rsqrt(var1 + EPS)                # (1, Chid)
    shift1 = be1_ref[...] - mu1 * scale1
    h1 = jnp.maximum(acc1 * scale1 + shift1, 0.0)               # (M, Chid)

    # ---- padded hidden buffer: zero only the 1-wide halo, write interior
    #      exactly once (no full re-zero + rewrite). ----
    hpad_ref[:, 0:1, :, :] = jnp.zeros((N, 1, Wp, Chid), jnp.float32)
    hpad_ref[:, Hp - 1:Hp, :, :] = jnp.zeros((N, 1, Wp, Chid), jnp.float32)
    hpad_ref[:, :, 0:1, :] = jnp.zeros((N, Hp, 1, Chid), jnp.float32)
    hpad_ref[:, :, Wp - 1:Wp, :] = jnp.zeros((N, Hp, 1, Chid), jnp.float32)
    hpad_ref[:, 1:H + 1, 1:W + 1, :] = h1.reshape(N, H, W, Chid)

    # ---- conv2: im2col from the padded hidden ref (conv1's columns are dead,
    #      so the same scratch is reused), one K = 9*Chid matmul. ----
    for t in range(9):
        dy, dx = t // 3, t % 3
        col_ref[:, t * Chid:(t + 1) * Chid] = (
            hpad_ref[:, dy:dy + H, dx:dx + W, :].reshape(M, Chid))
    acc2 = jnp.dot(col_ref[:, 0:9 * Chid].astype(matmul_dtype),
                   w2_ref[...].astype(matmul_dtype),
                   preferred_element_type=jnp.float32)          # (M, Cout)

    # ---- BN2 (single pass, folded scale/shift) + residual + ReLU ----
    s2 = jnp.sum(acc2, axis=0, keepdims=True)
    q2 = jnp.sum(acc2 * acc2, axis=0, keepdims=True)
    mu2 = s2 * inv_m
    var2 = q2 * inv_m - mu2 * mu2
    scale2 = g2_ref[...] * lax.rsqrt(var2 + EPS)                # (1, Cout)
    shift2 = be2_ref[...] - mu2 * scale2
    y = jnp.maximum(acc2 * scale2 + shift2 + xres_ref[...], 0.0)
    out_ref[...] = y.reshape(N, H, W, Cout)


def residual_block(x_nchw, params, *, matmul_dtype=jnp.float32):
    """x_nchw: (N, Cin, H, W).  params: torch-layout weights (Cout,Cin,3,3) etc."""
    w1, _b1, g1, be1, w2, _b2, g2, be2 = params  # conv biases cancel under BN
    N, Cin, H, W = x_nchw.shape
    Chid = w1.shape[0]
    Cout = w2.shape[0]
    assert Cin == Cout, "residual add requires nin == nout"
    M = N * H * W
    Kmax = 9 * max(Cin, Chid)

    # NCHW -> NHWC, zero-pad spatial dims by 1 (layout plumbing).
    x = jnp.transpose(x_nchw, (0, 2, 3, 1)).astype(jnp.float32)
    xpad = jnp.pad(x, ((0, 0), (1, 1), (1, 1), (0, 0)))
    xres = x.reshape(M, Cin)                      # residual, fed separately

    # torch (Cout, Cin, kh, kw) -> (kh*kw*Cin, Cout) to match im2col layout.
    w1_k = jnp.transpose(w1, (2, 3, 1, 0)).reshape(9 * Cin, Chid)
    w2_k = jnp.transpose(w2, (2, 3, 1, 0)).reshape(9 * Chid, Cout)

    # VMEM budget: scratch + I/O, with headroom (explicit limit).
    scratch_bytes = 4 * (M * Kmax + N * (H + 2) * (W + 2) * Chid)
    io_bytes = 4 * (xpad.size + xres.size + w1_k.size + w2_k.size
                    + 2 * Chid + 2 * Cout + M * Cout)
    vmem_limit = int(min(48 * 1024 * 1024,
                         max(16 * 1024 * 1024,
                             4 * (scratch_bytes + io_bytes))))

    vmem = pl.BlockSpec(memory_space=pltpu.MemorySpace.VMEM)
    kernel = functools.partial(residual_block_kernel, matmul_dtype=matmul_dtype)
    out_nhwc = pl.pallas_call(
        kernel,
        out_shape=jax.ShapeDtypeStruct((N, H, W, Cout), jnp.float32),
        in_specs=[vmem] * 8,
        out_specs=vmem,
        scratch_shapes=[
            pltpu.VMEM((M, Kmax), jnp.float32),                  # shared im2col
            pltpu.VMEM((N, H + 2, W + 2, Chid), jnp.float32),    # padded hidden
        ],
        compiler_params=pltpu.CompilerParams(vmem_limit_bytes=vmem_limit),
    )(xpad, xres, w1_k,
      g1.reshape(1, Chid), be1.reshape(1, Chid),
      w2_k,
      g2.reshape(1, Cout), be2.reshape(1, Cout))
    return jnp.transpose(out_nhwc, (0, 3, 1, 2))


def residual_block_reference(x_nchw, params):
    """Pure-JAX reference of the PyTorch forward (training-mode BN)."""
    w1, b1, g1, be1, w2, b2, g2, be2 = params

    def conv(x, w, b):
        y = lax.conv_general_dilated(
            x, w, window_strides=(1, 1), padding=((1, 1), (1, 1)),
            dimension_numbers=('NCHW', 'OIHW', 'NCHW'),
            precision=lax.Precision.HIGHEST)
        return y + b[None, :, None, None]

    def bn(x, g, be):
        mu = jnp.mean(x, axis=(0, 2, 3), keepdims=True)
        var = jnp.mean((x - mu) ** 2, axis=(0, 2, 3), keepdims=True)
        return ((x - mu) * lax.rsqrt(var + EPS)
                * g[None, :, None, None] + be[None, :, None, None])

    h = jax.nn.relu(bn(conv(x_nchw, w1, b1), g1, be1))
    h2 = bn(conv(h, w2, b2), g2, be2)
    return jax.nn.relu(h2 + x_nchw)


if __name__ == "__main__":
    # ResidualBlock(nin=4, nhid=8, nout=4); x: (2, 4, 16, 16) NCHW
    nin, nhid, nout = 4, 8, 4
    N, H, W = 2, 16, 16

    key = jax.random.PRNGKey(0)
    ks = jax.random.split(key, 9)
    x = jax.random.normal(ks[0], (N, nin, H, W), jnp.float32)

    # Deterministic parameter init (shapes match torch Conv2d / BatchNorm2d).
    w1 = jax.random.normal(ks[1], (nhid, nin, 3, 3), jnp.float32) * 0.2
    b1 = jax.random.normal(ks[2], (nhid,), jnp.float32) * 0.1
    g1 = 1.0 + 0.1 * jax.random.normal(ks[3], (nhid,), jnp.float32)
    be1 = 0.1 * jax.random.normal(ks[4], (nhid,), jnp.float32)
    w2 = jax.random.normal(ks[5], (nout, nhid, 3, 3), jnp.float32) * 0.2
    b2 = jax.random.normal(ks[6], (nout,), jnp.float32) * 0.1
    g2 = 1.0 + 0.1 * jax.random.normal(ks[7], (nout,), jnp.float32)
    be2 = 0.1 * jax.random.normal(ks[8], (nout,), jnp.float32)
    params = (w1, b1, g1, be1, w2, b2, g2, be2)

    out = jax.block_until_ready(residual_block(x, params))
    ref = jax.block_until_ready(residual_block_reference(x, params))

    assert out.shape == (N, nout, H, W)
    assert bool(jnp.all(jnp.isfinite(out)))
    assert bool(jnp.allclose(out, ref, atol=1e-2, rtol=1e-2)), (
        float(jnp.max(jnp.abs(out - ref))))
    print("KERNEL_OK")
</pallas_src>

<mosaic_0001>
module attributes {stable_mosaic.version = 11 : i64} {
  func.func @residual_block_kernel(%arg0: memref<2x18x18x4xf32, #tpu.memory_space<vmem>>, %arg1: memref<512x4xf32, #tpu.memory_space<vmem>>, %arg2: memref<36x8xf32, #tpu.memory_space<vmem>>, %arg3: memref<1x8xf32, #tpu.memory_space<vmem>>, %arg4: memref<1x8xf32, #tpu.memory_space<vmem>>, %arg5: memref<72x4xf32, #tpu.memory_space<vmem>>, %arg6: memref<1x4xf32, #tpu.memory_space<vmem>>, %arg7: memref<1x4xf32, #tpu.memory_space<vmem>>, %arg8: memref<2x16x16x4xf32, #tpu.memory_space<vmem>>, %arg9: memref<512x72xf32, #tpu.memory_space<vmem>>, %arg10: memref<2x18x18x8xf32, #tpu.memory_space<vmem>>) attributes {dimension_semantics = [], scalar_prefetch = 0 : i64, scratch_operands = 2 : i64, tpu.core_type = #tpu.core_type<tc>} {
    %c0 = arith.constant 0 : index
    %c0_0 = arith.constant 0 : index
    %c0_1 = arith.constant 0 : index
    %c0_2 = arith.constant 0 : index
    %0 = vector.load %arg0[%c0, %c0_0, %c0_1, %c0_2] : memref<2x18x18x4xf32, #tpu.memory_space<vmem>>, vector<2x16x16x4xf32>
    %1 = vector.shape_cast %0 : vector<2x16x16x4xf32> to vector<512x4xf32>
    %c0_3 = arith.constant 0 : index
    %c0_4 = arith.constant 0 : index
    %2 = vector.load %arg9[%c0_3, %c0_4] : memref<512x72xf32, #tpu.memory_space<vmem>>, vector<512x4xf32>
    tpu.vector_store %arg9[%c0_3, %c0_4], %1 {strides = array<i32>} : memref<512x72xf32, #tpu.memory_space<vmem>>, vector<512x4xf32>,
    %c0_5 = arith.constant 0 : index
    %c0_6 = arith.constant 0 : index
    %c1 = arith.constant 1 : index
    %c0_7 = arith.constant 0 : index
    %3 = vector.load %arg0[%c0_5, %c0_6, %c1, %c0_7] : memref<2x18x18x4xf32, #tpu.memory_space<vmem>>, vector<2x16x16x4xf32>
    %4 = vector.shape_cast %3 : vector<2x16x16x4xf32> to vector<512x4xf32>
    %c0_8 = arith.constant 0 : index
    %c4 = arith.constant 4 : index
    %5 = vector.load %arg9[%c0_8, %c4] : memref<512x72xf32, #tpu.memory_space<vmem>>, vector<512x4xf32>
    tpu.vector_store %arg9[%c0_8, %c4], %4 {strides = array<i32>} : memref<512x72xf32, #tpu.memory_space<vmem>>, vector<512x4xf32>,
    %c0_9 = arith.constant 0 : index
    %c0_10 = arith.constant 0 : index
    %c2 = arith.constant 2 : index
    %c0_11 = arith.constant 0 : index
    %6 = vector.load %arg0[%c0_9, %c0_10, %c2, %c0_11] : memref<2x18x18x4xf32, #tpu.memory_space<vmem>>, vector<2x16x16x4xf32>
    %7 = vector.shape_cast %6 : vector<2x16x16x4xf32> to vector<512x4xf32>
    %c0_12 = arith.constant 0 : index
    %c8 = arith.constant 8 : index
    %8 = vector.load %arg9[%c0_12, %c8] : memref<512x72xf32, #tpu.memory_space<vmem>>, vector<512x4xf32>
    tpu.vector_store %arg9[%c0_12, %c8], %7 {strides = array<i32>} : memref<512x72xf32, #tpu.memory_space<vmem>>, vector<512x4xf32>,
    %c0_13 = arith.constant 0 : index
    %c1_14 = arith.constant 1 : index
    %c0_15 = arith.constant 0 : index
    %c0_16 = arith.constant 0 : index
    %9 = vector.load %arg0[%c0_13, %c1_14, %c0_15, %c0_16] : memref<2x18x18x4xf32, #tpu.memory_space<vmem>>, vector<2x16x16x4xf32>
    %10 = vector.shape_cast %9 : vector<2x16x16x4xf32> to vector<512x4xf32>
    %c0_17 = arith.constant 0 : index
    %c12 = arith.constant 12 : index
    %11 = vector.load %arg9[%c0_17, %c12] : memref<512x72xf32, #tpu.memory_space<vmem>>, vector<512x4xf32>
    tpu.vector_store %arg9[%c0_17, %c12], %10 {strides = array<i32>} : memref<512x72xf32, #tpu.memory_space<vmem>>, vector<512x4xf32>,
    %c0_18 = arith.constant 0 : index
    %c1_19 = arith.constant 1 : index
    %c1_20 = arith.constant 1 : index
    %c0_21 = arith.constant 0 : index
    %12 = vector.load %arg0[%c0_18, %c1_19, %c1_20, %c0_21] : memref<2x18x18x4xf32, #tpu.memory_space<vmem>>, vector<2x16x16x4xf32>
    %13 = vector.shape_cast %12 : vector<2x16x16x4xf32> to vector<512x4xf32>
    %c0_22 = arith.constant 0 : index
    %c16 = arith.constant 16 : index
    %14 = vector.load %arg9[%c0_22, %c16] : memref<512x72xf32, #tpu.memory_space<vmem>>, vector<512x4xf32>
    tpu.vector_store %arg9[%c0_22, %c16], %13 {strides = array<i32>} : memref<512x72xf32, #tpu.memory_space<vmem>>, vector<512x4xf32>,
    %c0_23 = arith.constant 0 : index
    %c1_24 = arith.constant 1 : index
    %c2_25 = arith.constant 2 : index
    %c0_26 = arith.constant 0 : index
    %15 = vector.load %arg0[%c0_23, %c1_24, %c2_25, %c0_26] : memref<2x18x18x4xf32, #tpu.memory_space<vmem>>, vector<2x16x16x4xf32>
    %16 = vector.shape_cast %15 : vector<2x16x16x4xf32> to vector<512x4xf32>
    %c0_27 = arith.constant 0 : index
    %c20 = arith.constant 20 : index
    %17 = vector.load %arg9[%c0_27, %c20] : memref<512x72xf32, #tpu.memory_space<vmem>>, vector<512x4xf32>
    tpu.vector_store %arg9[%c0_27, %c20], %16 {strides = array<i32>} : memref<512x72xf32, #tpu.memory_space<vmem>>, vector<512x4xf32>,
    %c0_28 = arith.constant 0 : index
    %c2_29 = arith.constant 2 : index
    %c0_30 = arith.constant 0 : index
    %c0_31 = arith.constant 0 : index
    %18 = vector.load %arg0[%c0_28, %c2_29, %c0_30, %c0_31] : memref<2x18x18x4xf32, #tpu.memory_space<vmem>>, vector<2x16x16x4xf32>
    %19 = vector.shape_cast %18 : vector<2x16x16x4xf32> to vector<512x4xf32>
    %c0_32 = arith.constant 0 : index
    %c24 = arith.constant 24 : index
    %20 = vector.load %arg9[%c0_32, %c24] : memref<512x72xf32, #tpu.memory_space<vmem>>, vector<512x4xf32>
    tpu.vector_store %arg9[%c0_32, %c24], %19 {strides = array<i32>} : memref<512x72xf32, #tpu.memory_space<vmem>>, vector<512x4xf32>,
    %c0_33 = arith.constant 0 : index
    %c2_34 = arith.constant 2 : index
    %c1_35 = arith.constant 1 : index
    %c0_36 = arith.constant 0 : index
    %21 = vector.load %arg0[%c0_33, %c2_34, %c1_35, %c0_36] : memref<2x18x18x4xf32, #tpu.memory_space<vmem>>, vector<2x16x16x4xf32>
    %22 = vector.shape_cast %21 : vector<2x16x16x4xf32> to vector<512x4xf32>
    %c0_37 = arith.constant 0 : index
    %c28 = arith.constant 28 : index
    %23 = vector.load %arg9[%c0_37, %c28] : memref<512x72xf32, #tpu.memory_space<vmem>>, vector<512x4xf32>
    tpu.vector_store %arg9[%c0_37, %c28], %22 {strides = array<i32>} : memref<512x72xf32, #tpu.memory_space<vmem>>, vector<512x4xf32>,
    %c0_38 = arith.constant 0 : index
    %c2_39 = arith.constant 2 : index
    %c2_40 = arith.constant 2 : index
    %c0_41 = arith.constant 0 : index
    %24 = vector.load %arg0[%c0_38, %c2_39, %c2_40, %c0_41] : memref<2x18x18x4xf32, #tpu.memory_space<vmem>>, vector<2x16x16x4xf32>
    %25 = vector.shape_cast %24 : vector<2x16x16x4xf32> to vector<512x4xf32>
    %c0_42 = arith.constant 0 : index
    %c32 = arith.constant 32 : index
    %26 = vector.load %arg9[%c0_42, %c32] : memref<512x72xf32, #tpu.memory_space<vmem>>, vector<512x4xf32>
    tpu.vector_store %arg9[%c0_42, %c32], %25 {strides = array<i32>} : memref<512x72xf32, #tpu.memory_space<vmem>>, vector<512x4xf32>,
    %c0_43 = arith.constant 0 : index
    %c0_44 = arith.constant 0 : index
    %27 = vector.load %arg9[%c0_43, %c0_44] : memref<512x72xf32, #tpu.memory_space<vmem>>, vector<512x36xf32>
    %c0_45 = arith.constant 0 : index
    %c0_46 = arith.constant 0 : index
    %28 = vector.load %arg2[%c0_45, %c0_46] : memref<36x8xf32, #tpu.memory_space<vmem>>, vector<36x8xf32>
    %cst = arith.constant dense<0.000000e+00> : vector<512x8xf32>
    %29 = tpu.matmul %27, %28, %cst {dimension_numbers = #tpu.dot_dimension_numbers<[1], [0], [0], [1], [0, 0, 1, 1], [], []>} : vector<512x36xf32>, vector<36x8xf32>, vector<512x8xf32> -> vector<512x8xf32>
    %cst_47 = arith.constant dense<0.000000e+00> : vector<8xf32>
    %30 = vector.multi_reduction <add>, %29, %cst_47 [0] : vector<512x8xf32> to vector<8xf32>
    %31 = vector.shape_cast %30 : vector<8xf32> to vector<1x8xf32>
    %32 = arith.mulf %29, %29 : vector<512x8xf32>
    %cst_48 = arith.constant dense<0.000000e+00> : vector<8xf32>
    %33 = vector.multi_reduction <add>, %32, %cst_48 [0] : vector<512x8xf32> to vector<8xf32>
    %34 = vector.shape_cast %33 : vector<8xf32> to vector<1x8xf32>
    %cst_49 = arith.constant 0.001953125 : f32
    %35 = vector.broadcast %cst_49 : f32 to vector<1x8xf32>
    %36 = arith.mulf %31, %35 : vector<1x8xf32>
    %cst_50 = arith.constant 0.001953125 : f32
    %37 = vector.broadcast %cst_50 : f32 to vector<1x8xf32>
    %38 = arith.mulf %34, %37 : vector<1x8xf32>
    %39 = arith.mulf %36, %36 : vector<1x8xf32>
    %40 = arith.subf %38, %39 : vector<1x8xf32>
    %c0_51 = arith.constant 0 : index
    %c0_52 = arith.constant 0 : index
    %41 = vector.load %arg3[%c0_51, %c0_52] : memref<1x8xf32, #tpu.memory_space<vmem>>, vector<1x8xf32>
    %cst_53 = arith.constant 9.99999974E-6 : f32
    %42 = vector.broadcast %cst_53 : f32 to vector<1x8xf32>
    %43 = arith.addf %40, %42 : vector<1x8xf32>
    %44 = math.rsqrt %43 : vector<1x8xf32>
    %45 = arith.mulf %41, %44 : vector<1x8xf32>
    %c0_54 = arith.constant 0 : index
    %c0_55 = arith.constant 0 : index
    %46 = vector.load %arg4[%c0_54, %c0_55] : memref<1x8xf32, #tpu.memory_space<vmem>>, vector<1x8xf32>
    %47 = arith.mulf %36, %45 : vector<1x8xf32>
    %48 = arith.subf %46, %47 : vector<1x8xf32>
    %49 = vector.broadcast %45 : vector<1x8xf32> to vector<512x8xf32>
    %50 = arith.mulf %29, %49 : vector<512x8xf32>
    %51 = vector.broadcast %48 : vector<1x8xf32> to vector<512x8xf32>
    %52 = arith.addf %50, %51 : vector<512x8xf32>
    %cst_56 = arith.constant 0.000000e+00 : f32
    %53 = vector.broadcast %cst_56 : f32 to vector<512x8xf32>
    %54 = arith.maximumf %52, %53 : vector<512x8xf32>
    %cst_57 = arith.constant 0.000000e+00 : f32
    %55 = vector.broadcast %cst_57 : f32 to vector<2x1x18x8xf32>
    %c0_58 = arith.constant 0 : index
    %c0_59 = arith.constant 0 : index
    %c0_60 = arith.constant 0 : index
    %c0_61 = arith.constant 0 : index
    %56 = vector.load %arg10[%c0_58, %c0_59, %c0_60, %c0_61] : memref<2x18x18x8xf32, #tpu.memory_space<vmem>>, vector<2x1x18x8xf32>
    tpu.vector_store %arg10[%c0_58, %c0_59, %c0_60, %c0_61], %55 {strides = array<i32>} : memref<2x18x18x8xf32, #tpu.memory_space<vmem>>, vector<2x1x18x8xf32>,
    %cst_62 = arith.constant 0.000000e+00 : f32
    %57 = vector.broadcast %cst_62 : f32 to vector<2x1x18x8xf32>
    %c0_63 = arith.constant 0 : index
    %c17 = arith.constant 17 : index
    %c0_64 = arith.constant 0 : index
    %c0_65 = arith.constant 0 : index
    %58 = vector.load %arg10[%c0_63, %c17, %c0_64, %c0_65] : memref<2x18x18x8xf32, #tpu.memory_space<vmem>>, vector<2x1x18x8xf32>
    tpu.vector_store %arg10[%c0_63, %c17, %c0_64, %c0_65], %57 {strides = array<i32>} : memref<2x18x18x8xf32, #tpu.memory_space<vmem>>, vector<2x1x18x8xf32>,
    %cst_66 = arith.constant 0.000000e+00 : f32
    %59 = vector.broadcast %cst_66 : f32 to vector<2x18x1x8xf32>
    %c0_67 = arith.constant 0 : index
    %c0_68 = arith.constant 0 : index
    %c0_69 = arith.constant 0 : index
    %c0_70 = arith.constant 0 : index
    %60 = vector.load %arg10[%c0_67, %c0_68, %c0_69, %c0_70] : memref<2x18x18x8xf32, #tpu.memory_space<vmem>>, vector<2x18x1x8xf32>
    tpu.vector_store %arg10[%c0_67, %c0_68, %c0_69, %c0_70], %59 {strides = array<i32>} : memref<2x18x18x8xf32, #tpu.memory_space<vmem>>, vector<2x18x1x8xf32>,
    %cst_71 = arith.constant 0.000000e+00 : f32
    %61 = vector.broadcast %cst_71 : f32 to vector<2x18x1x8xf32>
    %c0_72 = arith.constant 0 : index
    %c0_73 = arith.constant 0 : index
    %c17_74 = arith.constant 17 : index
    %c0_75 = arith.constant 0 : index
    %62 = vector.load %arg10[%c0_72, %c0_73, %c17_74, %c0_75] : memref<2x18x18x8xf32, #tpu.memory_space<vmem>>, vector<2x18x1x8xf32>
    tpu.vector_store %arg10[%c0_72, %c0_73, %c17_74, %c0_75], %61 {strides = array<i32>} : memref<2x18x18x8xf32, #tpu.memory_space<vmem>>, vector<2x18x1x8xf32>,
    %63 = vector.shape_cast %54 : vector<512x8xf32> to vector<2x16x16x8xf32>
    %c0_76 = arith.constant 0 : index
    %c1_77 = arith.constant 1 : index
    %c1_78 = arith.constant 1 : index
    %c0_79 = arith.constant 0 : index
    %64 = vector.load %arg10[%c0_76, %c1_77, %c1_78, %c0_79] : memref<2x18x18x8xf32, #tpu.memory_space<vmem>>, vector<2x16x16x8xf32>
    tpu.vector_store %arg10[%c0_76, %c1_77, %c1_78, %c0_79], %63 {strides = array<i32>} : memref<2x18x18x8xf32, #tpu.memory_space<vmem>>, vector<2x16x16x8xf32>,
    %c0_80 = arith.constant 0 : index
    %c0_81 = arith.constant 0 : index
    %c0_82 = arith.constant 0 : index
    %c0_83 = arith.constant 0 : index
    %65 = vector.load %arg10[%c0_80, %c0_81, %c0_82, %c0_83] : memref<2x18x18x8xf32, #tpu.memory_space<vmem>>, vector<2x16x16x8xf32>
    %66 = vector.shape_cast %65 : vector<2x16x16x8xf32> to vector<512x8xf32>
    %c0_84 = arith.constant 0 : index
    %c0_85 = arith.constant 0 : index
    %67 = vector.load %arg9[%c0_84, %c0_85] : memref<512x72xf32, #tpu.memory_space<vmem>>, vector<512x8xf32>
    tpu.vector_store %arg9[%c0_84, %c0_85], %66 {strides = array<i32>} : memref<512x72xf32, #tpu.memory_space<vmem>>, vector<512x8xf32>,
    %c0_86 = arith.constant 0 : index
    %c0_87 = arith.constant 0 : index
    %c1_88 = arith.constant 1 : index
    %c0_89 = arith.constant 0 : index
    %68 = vector.load %arg10[%c0_86, %c0_87, %c1_88, %c0_89] : memref<2x18x18x8xf32, #tpu.memory_space<vmem>>, vector<2x16x16x8xf32>
    %69 = vector.shape_cast %68 : vector<2x16x16x8xf32> to vector<512x8xf32>
    %c0_90 = arith.constant 0 : index
    %c8_91 = arith.constant 8 : index
    %70 = vector.load %arg9[%c0_90, %c8_91] : memref<512x72xf32, #tpu.memory_space<vmem>>, vector<512x8xf32>
    tpu.vector_store %arg9[%c0_90, %c8_91], %69 {strides = array<i32>} : memref<512x72xf32, #tpu.memory_space<vmem>>, vector<512x8xf32>,
    %c0_92 = arith.constant 0 : index
    %c0_93 = arith.constant 0 : index
    %c2_94 = arith.constant 2 : index
    %c0_95 = arith.constant 0 : index
    %71 = vector.load %arg10[%c0_92, %c0_93, %c2_94, %c0_95] : memref<2x18x18x8xf32, #tpu.memory_space<vmem>>, vector<2x16x16x8xf32>
    %72 = vector.shape_cast %71 : vector<2x16x16x8xf32> to vector<512x8xf32>
    %c0_96 = arith.constant 0 : index
    %c16_97 = arith.constant 16 : index
    %73 = vector.load %arg9[%c0_96, %c16_97] : memref<512x72xf32, #tpu.memory_space<vmem>>, vector<512x8xf32>
    tpu.vector_store %arg9[%c0_96, %c16_97], %72 {strides = array<i32>} : memref<512x72xf32, #tpu.memory_space<vmem>>, vector<512x8xf32>,
    %c0_98 = arith.constant 0 : index
    %c1_99 = arith.constant 1 : index
    %c0_100 = arith.constant 0 : index
    %c0_101 = arith.constant 0 : index
    %74 = vector.load %arg10[%c0_98, %c1_99, %c0_100, %c0_101] : memref<2x18x18x8xf32, #tpu.memory_space<vmem>>, vector<2x16x16x8xf32>
    %75 = vector.shape_cast %74 : vector<2x16x16x8xf32> to vector<512x8xf32>
    %c0_102 = arith.constant 0 : index
    %c24_103 = arith.constant 24 : index
    %76 = vector.load %arg9[%c0_102, %c24_103] : memref<512x72xf32, #tpu.memory_space<vmem>>, vector<512x8xf32>
    tpu.vector_store %arg9[%c0_102, %c24_103], %75 {strides = array<i32>} : memref<512x72xf32, #tpu.memory_space<vmem>>, vector<512x8xf32>,
    %c0_104 = arith.constant 0 : index
    %c1_105 = arith.constant 1 : index
    %c1_106 = arith.constant 1 : index
    %c0_107 = arith.constant 0 : index
    %77 = vector.load %arg10[%c0_104, %c1_105, %c1_106, %c0_107] : memref<2x18x18x8xf32, #tpu.memory_space<vmem>>, vector<2x16x16x8xf32>
    %78 = vector.shape_cast %77 : vector<2x16x16x8xf32> to vector<512x8xf32>
    %c0_108 = arith.constant 0 : index
    %c32_109 = arith.constant 32 : index
    %79 = vector.load %arg9[%c0_108, %c32_109] : memref<512x72xf32, #tpu.memory_space<vmem>>, vector<512x8xf32>
    tpu.vector_store %arg9[%c0_108, %c32_109], %78 {strides = array<i32>} : memref<512x72xf32, #tpu.memory_space<vmem>>, vector<512x8xf32>,
    %c0_110 = arith.constant 0 : index
    %c1_111 = arith.constant 1 : index
    %c2_112 = arith.constant 2 : index
    %c0_113 = arith.constant 0 : index
    %80 = vector.load %arg10[%c0_110, %c1_111, %c2_112, %c0_113] : memref<2x18x18x8xf32, #tpu.memory_space<vmem>>, vector<2x16x16x8xf32>
    %81 = vector.shape_cast %80 : vector<2x16x16x8xf32> to vector<512x8xf32>
    %c0_114 = arith.constant 0 : index
    %c40 = arith.constant 40 : index
    %82 = vector.load %arg9[%c0_114, %c40] : memref<512x72xf32, #tpu.memory_space<vmem>>, vector<512x8xf32>
    tpu.vector_store %arg9[%c0_114, %c40], %81 {strides = array<i32>} : memref<512x72xf32, #tpu.memory_space<vmem>>, vector<512x8xf32>,
    %c0_115 = arith.constant 0 : index
    %c2_116 = arith.constant 2 : index
    %c0_117 = arith.constant 0 : index
    %c0_118 = arith.constant 0 : index
    %83 = vector.load %arg10[%c0_115, %c2_116, %c0_117, %c0_118] : memref<2x18x18x8xf32, #tpu.memory_space<vmem>>, vector<2x16x16x8xf32>
    %84 = vector.shape_cast %83 : vector<2x16x16x8xf32> to vector<512x8xf32>
    %c0_119 = arith.constant 0 : index
    %c48 = arith.constant 48 : index
    %85 = vector.load %arg9[%c0_119, %c48] : memref<512x72xf32, #tpu.memory_space<vmem>>, vector<512x8xf32>
    tpu.vector_store %arg9[%c0_119, %c48], %84 {strides = array<i32>} : memref<512x72xf32, #tpu.memory_space<vmem>>, vector<512x8xf32>,
    %c0_120 = arith.constant 0 : index
    %c2_121 = arith.constant 2 : index
    %c1_122 = arith.constant 1 : index
    %c0_123 = arith.constant 0 : index
    %86 = vector.load %arg10[%c0_120, %c2_121, %c1_122, %c0_123] : memref<2x18x18x8xf32, #tpu.memory_space<vmem>>, vector<2x16x16x8xf32>
    %87 = vector.shape_cast %86 : vector<2x16x16x8xf32> to vector<512x8xf32>
    %c0_124 = arith.constant 0 : index
    %c56 = arith.constant 56 : index
    %88 = vector.load %arg9[%c0_124, %c56] : memref<512x72xf32, #tpu.memory_space<vmem>>, vector<512x8xf32>
    tpu.vector_store %arg9[%c0_124, %c56], %87 {strides = array<i32>} : memref<512x72xf32, #tpu.memory_space<vmem>>, vector<512x8xf32>,
    %c0_125 = arith.constant 0 : index
    %c2_126 = arith.constant 2 : index
    %c2_127 = arith.constant 2 : index
    %c0_128 = arith.constant 0 : index
    %89 = vector.load %arg10[%c0_125, %c2_126, %c2_127, %c0_128] : memref<2x18x18x8xf32, #tpu.memory_space<vmem>>, vector<2x16x16x8xf32>
    %90 = vector.shape_cast %89 : vector<2x16x16x8xf32> to vector<512x8xf32>
    %c0_129 = arith.constant 0 : index
    %c64 = arith.constant 64 : index
    %91 = vector.load %arg9[%c0_129, %c64] : memref<512x72xf32, #tpu.memory_space<vmem>>, vector<512x8xf32>
    tpu.vector_store %arg9[%c0_129, %c64], %90 {strides = array<i32>} : memref<512x72xf32, #tpu.memory_space<vmem>>, vector<512x8xf32>,
    %c0_130 = arith.constant 0 : index
    %c0_131 = arith.constant 0 : index
    %92 = vector.load %arg9[%c0_130, %c0_131] : memref<512x72xf32, #tpu.memory_space<vmem>>, vector<512x72xf32>
    %c0_132 = arith.constant 0 : index
    %c0_133 = arith.constant 0 : index
    %93 = vector.load %arg5[%c0_132, %c0_133] : memref<72x4xf32, #tpu.memory_space<vmem>>, vector<72x4xf32>
    %cst_134 = arith.constant dense<0.000000e+00> : vector<512x4xf32>
    %94 = tpu.matmul %92, %93, %cst_134 {dimension_numbers = #tpu.dot_dimension_numbers<[1], [0], [0], [1], [0, 0, 1, 1], [], []>} : vector<512x72xf32>, vector<72x4xf32>, vector<512x4xf32> -> vector<512x4xf32>
    %cst_135 = arith.constant dense<0.000000e+00> : vector<4xf32>
    %95 = vector.multi_reduction <add>, %94, %cst_135 [0] : vector<512x4xf32> to vector<4xf32>
    %96 = vector.shape_cast %95 : vector<4xf32> to vector<1x4xf32>
    %97 = arith.mulf %94, %94 : vector<512x4xf32>
    %cst_136 = arith.constant dense<0.000000e+00> : vector<4xf32>
    %98 = vector.multi_reduction <add>, %97, %cst_136 [0] : vector<512x4xf32> to vector<4xf32>
    %99 = vector.shape_cast %98 : vector<4xf32> to vector<1x4xf32>
    %cst_137 = arith.constant 0.001953125 : f32
    %100 = vector.broadcast %cst_137 : f32 to vector<1x4xf32>
    %101 = arith.mulf %96, %100 : vector<1x4xf32>
    %cst_138 = arith.constant 0.001953125 : f32
    %102 = vector.broadcast %cst_138 : f32 to vector<1x4xf32>
    %103 = arith.mulf %99, %102 : vector<1x4xf32>
    %104 = arith.mulf %101, %101 : vector<1x4xf32>
    %105 = arith.subf %103, %104 : vector<1x4xf32>
    %c0_139 = arith.constant 0 : index
    %c0_140 = arith.constant 0 : index
    %106 = vector.load %arg6[%c0_139, %c0_140] : memref<1x4xf32, #tpu.memory_space<vmem>>, vector<1x4xf32>
    %cst_141 = arith.constant 9.99999974E-6 : f32
    %107 = vector.broadcast %cst_141 : f32 to vector<1x4xf32>
    %108 = arith.addf %105, %107 : vector<1x4xf32>
    %109 = math.rsqrt %108 : vector<1x4xf32>
    %110 = arith.mulf %106, %109 : vector<1x4xf32>
    %c0_142 = arith.constant 0 : index
    %c0_143 = arith.constant 0 : index
    %111 = vector.load %arg7[%c0_142, %c0_143] : memref<1x4xf32, #tpu.memory_space<vmem>>, vector<1x4xf32>
    %112 = arith.mulf %101, %110 : vector<1x4xf32>
    %113 = arith.subf %111, %112 : vector<1x4xf32>
    %114 = vector.broadcast %110 : vector<1x4xf32> to vector<512x4xf32>
    %115 = arith.mulf %94, %114 : vector<512x4xf32>
    %116 = vector.broadcast %113 : vector<1x4xf32> to vector<512x4xf32>
    %117 = arith.addf %115, %116 : vector<512x4xf32>
    %c0_144 = arith.constant 0 : index
    %c0_145 = arith.constant 0 : index
    %118 = vector.load %arg1[%c0_144, %c0_145] : memref<512x4xf32, #tpu.memory_space<vmem>>, vector<512x4xf32>
    %119 = arith.addf %117, %118 : vector<512x4xf32>
    %cst_146 = arith.constant 0.000000e+00 : f32
    %120 = vector.broadcast %cst_146 : f32 to vector<512x4xf32>
    %121 = arith.maximumf %119, %120 : vector<512x4xf32>
    %122 = vector.shape_cast %121 : vector<512x4xf32> to vector<2x16x16x4xf32>
    %c0_147 = arith.constant 0 : index
    %c0_148 = arith.constant 0 : index
    %c0_149 = arith.constant 0 : index
    %c0_150 = arith.constant 0 : index
    %123 = vector.load %arg8[%c0_147, %c0_148, %c0_149, %c0_150] : memref<2x16x16x4xf32, #tpu.memory_space<vmem>>, vector<2x16x16x4xf32>
    tpu.vector_store %arg8[%c0_147, %c0_148, %c0_149, %c0_150], %122 {strides = array<i32>} : memref<2x16x16x4xf32, #tpu.memory_space<vmem>>, vector<2x16x16x4xf32>,
    return
  }
}

</mosaic_0001>

<bundles_post_ra>
// kernel: tpu_custom_call.1
= control target key start
LH: loop header
LB: loop body
LE: loop exit
PB: predicated region body
PF: predicated region fallthrough
CT: control target
= control target key end

     0   :  { %s10116_s9 = smov 4   ;;  %vm93_vm0 = vcmask 31744   ;;  %vm478_vm1 = vcmask 64544   ;;  %s10117_s14 = smov 8   ;;  %vm863_vm2 = vcmask 97344   ;;  %vm1249_vm3 = vcmask 130144   ;;  %s17679_s0 = inlined_call_operand.vmem [shape: f32[2,18,18,4], index: 0, kind: input, shape index: {}]   ;;  %s17680_s2 = inlined_call_operand.vmem [shape: f32[36,8], index: 2, kind: input, shape index: {}]   ;;  %s17681_s3 = inlined_call_operand.vmem [shape: f32[1,8], index: 3, kind: input, shape index: {}]   ;;  %s17682_s4 = inlined_call_operand.vmem [shape: f32[1,8], index: 4, kind: input, shape index: {}]   ;;  %s17683_s5 = inlined_call_operand.vmem [shape: f32[72,4], index: 5, kind: input, shape index: {}]   ;;  %s17684_s6 = inlined_call_operand.vmem [shape: f32[1,4], index: 6, kind: input, shape index: {}]   ;;  %s17685_s7 = inlined_call_operand.vmem [shape: f32[1,4], index: 7, kind: input, shape index: {}]   ;;  %s17686_s1 = inlined_call_operand.vmem [shape: f32[512,4], index: 1, kind: input, shape index: {}]   ;;  %s17687_s8 = inlined_call_operand.vmem [shape: f32[2,16,16,4], index: 8, kind: output, shape index: {}]  }
   0x1   :  { %v158_v0 = vld [vmem:[%s17679_s0 + $0x1] sm:$0xff]  ;;  %v160_v1 = vld [vmem:[%s17679_s0 + $0x19] sm:$0xff]  ;;  %v159_v2 = vld [vmem:[%s17679_s0 + $0x9] sm:$0xff]  ;;  %s10118_s12 = smov 12   ;;  %s10119_s25 = smov 16   ;;  %vm1634_vm4 = vcmask 162944  }
   0x2   :  { %286 = vrot.lane.b32.xlu0 %v158_v0, %s10116_s9  ;;  %290 = vrot.lane.b32.xlu1 %v160_v1, %s10116_s9  ;;  %v161_v3 = vld [vmem:[%s17679_s0 + $0x21] sm:$0xff]  ;;  %v162_v4 = vld [vmem:[%s17679_s0 + $0x31] sm:$0xff]  ;;  %s10120_s13 = smov 20   ;;  %vm2019_vm5 = vcmask 195744   ;;  %s10121_s29 = smov 24   ;;  %vm2405_vm6 = vcmask 228544  }
   0x3   :  { %v163_v5 = vld [vmem:[%s17679_s0 + $0x39] sm:$0xff]  ;;  %v164_v6 = vld [vmem:[%s17679_s0 + $0x49] sm:$0xff]  ;;  %v165_v7 = vld [vmem:[%s17679_s0 + $0x51] sm:$0xff]  ;;  %s10122_s23 = smov 28   ;;  %vm2790_vm7 = vcmask 261344   ;;  %vm3502_vm8 = vcmask 1043456  }
   0x4   :  { %v166_v8 = vld [vmem:[%s17679_s0 + $0x61] sm:$0xff]  ;;  %v167_v9 = vld [vmem:[%s17679_s0 + $0x69] sm:$0xff]  ;;  %v168_v10 = vld [vmem:[%s17679_s0 + $0x79] sm:$0xff]  ;;  %s10123_s16 = smov 32   ;;  %vm3175_vm9 = vcmask 294144   ;;  %vm3309_vm10 = vcmask 293888  }
   0x5   :  { %v169_v11 = vld [vmem:[%s17679_s0 + $0x81] sm:$0xff]  ;;  %v10228_v13 = vld [vmem:[%s17679_s0 + $0x18] sm:$0xff]  ;;  %v10253_v18 = vld [vmem:[%s17679_s0 + $0x30] sm:$0xff]  ;;  %vm3891_vm11 = vcmask 64512   ;;  %vm4439_vm12 = vcmask 58368   ;;  %vm4451_vm13 = vcmask 57344  }
   0x6   :  { %288 = vrot.lane.b32.xlu0 %v159_v2, %s10116_s9  ;;  %292 = vrot.lane.b32.xlu1 %v161_v3, %s10116_s9  ;;  %v29_v12 = vld [vmem:[%s17679_s0] sm:$0xff]  ;;  %v170_v14 = vld [vmem:[%s17679_s0 + $0x91] sm:$0xff]  ;;  %96 = vst.msk [vmem:[#allocation2 + $0x10] sm:$0xff] %vm93_vm0, %v10228_v13  ;;  %98 = vst.msk [vmem:[#allocation2 + $0x20] sm:$0xff] %vm93_vm0, %v10253_v18  ;;  %vm5037_vm14 = vcmask 130112   ;;  %vm5422_vm15 = vcmask 195712  }
   0x7   :  { %v171_v15 = vld [vmem:[%s17679_s0 + $0x99] sm:$0xff]  ;;  %94 = vst.msk [vmem:[#allocation2] sm:$0xff] %vm93_vm0, %v29_v12  ;;  %v30_v16 = vld [vmem:[%s17679_s0 + $0x8] sm:$0xff]  ;;  %v173_v22 = vld [vmem:[%s17679_s0 + $0xb1] sm:$0xff]  ;;  %s10127_s18 = smov 56   ;;  %s10128_s27 = smov 64  }
   0x8   :  { %95 = vst.msk [vmem:[#allocation2 + $0x8] sm:$0xff] %vm93_vm0, %v30_v16  ;;  %v10246_v17 = vld [vmem:[%s17679_s0 + $0x20] sm:$0xff]  ;;  %v10258_v19 = vld [vmem:[%s17679_s0 + $0x38] sm:$0xff]  ;;  %v10269_v20 = vld [vmem:[%s17679_s0 + $0x48] sm:$0xff] }
   0x9   :  { %97 = vst.msk [vmem:[#allocation2 + $0x18] sm:$0xff] %vm93_vm0, %v10246_v17  ;;  %99 = vst.msk [vmem:[#allocation2 + $0x28] sm:$0xff] %vm93_vm0, %v10258_v19  ;;  %v172_v21 = vld [vmem:[%s17679_s0 + $0xa9] sm:$0xff]  ;;  %v10289_v24 = vld [vmem:[%s17679_s0 + $0x60] sm:$0xff] }
   0xa   :  { %294 = vrot.lane.b32.xlu0 %v162_v4, %s10116_s9  ;;  %296 = vrot.lane.b32.xlu1 %v163_v5, %s10116_s9  ;;  %100 = vst.msk [vmem:[#allocation2 + $0x30] sm:$0xff] %vm93_vm0, %v10269_v20  ;;  %v10282_v23 = vld [vmem:[%s17679_s0 + $0x50] sm:$0xff]  ;;  %v10294_v25 = vld [vmem:[%s17679_s0 + $0x68] sm:$0xff]  ;;  %102 = vst.msk [vmem:[#allocation2 + $0x40] sm:$0xff] %vm93_vm0, %v10289_v24 }
   0xb   :  { %101 = vst.msk [vmem:[#allocation2 + $0x38] sm:$0xff] %vm93_vm0, %v10282_v23  ;;  %103 = vst.msk [vmem:[#allocation2 + $0x48] sm:$0xff] %vm93_vm0, %v10294_v25  ;;  %v10303_v26 = vld [vmem:[%s17679_s0 + $0x78] sm:$0xff]  ;;  %v10308_v27 = vld [vmem:[%s17679_s0 + $0x80] sm:$0xff] }
   0xc   :  { %v174_v28 = vld [vmem:[%s17679_s0 + $0xc1] sm:$0xff]  ;;  %104 = vst.msk [vmem:[#allocation2 + $0x50] sm:$0xff] %vm93_vm0, %v10303_v26  ;;  %105 = vst.msk [vmem:[#allocation2 + $0x58] sm:$0xff] %vm93_vm0, %v10308_v27  ;;  %v175_v29 = vld [vmem:[%s17679_s0 + $0xc9] sm:$0xff] }
   0xd   :  { %v10325_v30 = vld [vmem:[%s17679_s0 + $0x90] sm:$0xff]  ;;  %v10330_v31 = vld [vmem:[%s17679_s0 + $0x98] sm:$0xff]  ;;  %v10339_v32 = vld [vmem:[%s17679_s0 + $0xa8] sm:$0xff] }
   0xe   :  { %298 = vrot.lane.b32.xlu0 %v164_v6, %s10116_s9  ;;  %300 = vrot.lane.b32.xlu1 %v165_v7, %s10116_s9  ;;  %106 = vst.msk [vmem:[#allocation2 + $0x60] sm:$0xff] %vm93_vm0, %v10325_v30  ;;  %107 = vst.msk [vmem:[#allocation2 + $0x68] sm:$0xff] %vm93_vm0, %v10330_v31  ;;  %v10344_v33 = vld [vmem:[%s17679_s0 + $0xb0] sm:$0xff]  ;;  %v10353_v34 = vld [vmem:[%s17679_s0 + $0xc0] sm:$0xff] }
   0xf   :  { %108 = vst.msk [vmem:[#allocation2 + $0x70] sm:$0xff] %vm93_vm0, %v10339_v32  ;;  %109 = vst.msk [vmem:[#allocation2 + $0x78] sm:$0xff] %vm93_vm0, %v10344_v33  ;;  %v176_v35 = vld [vmem:[%s17679_s0 + $0xd9] sm:$0xff]  ;;  %v10365_v36 = vld [vmem:[%s17679_s0 + $0xc8] sm:$0xff] }
  0x10   :  { %110 = vst.msk [vmem:[#allocation2 + $0x80] sm:$0xff] %vm93_vm0, %v10353_v34  ;;  %v177_v37 = vld [vmem:[%s17679_s0 + $0xe1] sm:$0xff]  ;;  %111 = vst.msk [vmem:[#allocation2 + $0x88] sm:$0xff] %vm93_vm0, %v10365_v36  ;;  %v10375_v38 = vld [vmem:[%s17679_s0 + $0xd8] sm:$0xff] }
  0x11   :  { %v10380_v39 = vld [vmem:[%s17679_s0 + $0xe0] sm:$0xff]  ;;  %112 = vst.msk [vmem:[#allocation2 + $0x90] sm:$0xff] %vm93_vm0, %v10375_v38  ;;  %v10389_v40 = vld [vmem:[%s17679_s0 + $0xf0] sm:$0xff]  ;;  %v10396_v41 = vld [vmem:[%s17679_s0 + $0xf8] sm:$0xff] }
  0x12   :  { %302 = vrot.lane.b32.xlu0 %v166_v8, %s10116_s9  ;;  %304 = vrot.lane.b32.xlu1 %v167_v9, %s10116_s9  ;;  %113 = vst.msk [vmem:[#allocation2 + $0x98] sm:$0xff] %vm93_vm0, %v10380_v39  ;;  %114 = vst.msk [vmem:[#allocation2 + $0xa0] sm:$0xff] %vm93_vm0, %v10389_v40  ;;  %v10405_v42 = vld [vmem:[%s17679_s0 + $0x108] sm:$0xff]  ;;  %v10410_v43 = vld [vmem:[%s17679_s0 + $0x110] sm:$0xff] }
  0x13   :  { %115 = vst.msk [vmem:[#allocation2 + $0xa8] sm:$0xff] %vm93_vm0, %v10396_v41  ;;  %v178_v44 = vld [vmem:[%s17679_s0 + $0xf1] sm:$0xff]  ;;  %v179_v45 = vld [vmem:[%s17679_s0 + $0xf9] sm:$0xff]  ;;  %116 = vst.msk [vmem:[#allocation2 + $0xb0] sm:$0xff] %vm93_vm0, %v10405_v42 }
  0x14   :  { %117 = vst.msk [vmem:[#allocation2 + $0xb8] sm:$0xff] %vm93_vm0, %v10410_v43  ;;  %v10425_v46 = vld [vmem:[%s17679_s0 + $0x120] sm:$0xff]  ;;  %v10432_v47 = vld [vmem:[%s17679_s0 + $0x128] sm:$0xff]  ;;  %v10439_v48 = vld [vmem:[%s17679_s0 + $0x138] sm:$0xff] }
  0x15   :  { %118 = vst.msk [vmem:[#allocation2 + $0xc0] sm:$0xff] %vm93_vm0, %v10425_v46  ;;  %119 = vst.msk [vmem:[#allocation2 + $0xc8] sm:$0xff] %vm93_vm0, %v10432_v47  ;;  %v10444_v49 = vld [vmem:[%s17679_s0 + $0x140] sm:$0xff]  ;;  %v180_v50 = vld [vmem:[%s17679_s0 + $0x109] sm:$0xff] }
  0x16   :  { %306 = vrot.lane.b32.xlu0 %v168_v10, %s10116_s9  ;;  %308 = vrot.lane.b32.xlu1 %v169_v11, %s10116_s9  ;;  %120 = vst.msk [vmem:[#allocation2 + $0xd0] sm:$0xff] %vm93_vm0, %v10439_v48  ;;  %121 = vst.msk [vmem:[#allocation2 + $0xd8] sm:$0xff] %vm93_vm0, %v10444_v49  ;;  %v181_v51 = vld [vmem:[%s17679_s0 + $0x111] sm:$0xff]  ;;  %v182_v54 = vld [vmem:[%s17679_s0 + $0x121] sm:$0xff] }
  0x17   :  { %v10461_v52 = vld [vmem:[%s17679_s0 + $0x150] sm:$0xff]  ;;  %v10468_v53 = vld [vmem:[%s17679_s0 + $0x158] sm:$0xff]  ;;  %v10483_v56 = vld [vmem:[%s17679_s0 + $0x168] sm:$0xff] }
  0x18   :  { %122 = vst.msk [vmem:[#allocation2 + $0xe0] sm:$0xff] %vm93_vm0, %v10461_v52  ;;  %123 = vst.msk [vmem:[#allocation2 + $0xe8] sm:$0xff] %vm93_vm0, %v10468_v53  ;;  %v183_v55 = vld [vmem:[%s17679_s0 + $0x129] sm:$0xff]  ;;  %v184_v58 = vld [vmem:[%s17679_s0 + $0x139] sm:$0xff] }
  0x19   :  { %124 = vst.msk [vmem:[#allocation2 + $0xf0] sm:$0xff] %vm93_vm0, %v10483_v56  ;;  %v10490_v57 = vld [vmem:[%s17679_s0 + $0x170] sm:$0xff]  ;;  %v185_v59 = vld [vmem:[%s17679_s0 + $0x141] sm:$0xff]  ;;  %v62_v61 = vld [vmem:[%s17679_s0 + $0x1b8] sm:$0xff] }
  0x1a   :  { %310 = vrot.lane.b32.xlu0 %v170_v14, %s10116_s9  ;;  %312 = vrot.lane.b32.xlu1 %v171_v15, %s10116_s9  ;;  %125 = vst.msk [vmem:[#allocation2 + $0xf8] sm:$0xff] %vm93_vm0, %v10490_v57  ;;  %v61_v60 = vld [vmem:[%s17679_s0 + $0x1b0] sm:$0xff]  ;;  %127 = vst.msk [vmem:[#allocation2 + $0x108] sm:$0xff] %vm93_vm0, %v62_v61  ;;  %v187_v63 = vld [vmem:[%s17679_s0 + $0x159] sm:$0xff] }
  0x1b   :  { %126 = vst.msk [vmem:[#allocation2 + $0x100] sm:$0xff] %vm93_vm0, %v61_v60  ;;  %v186_v62 = vld [vmem:[%s17679_s0 + $0x151] sm:$0xff]  ;;  %v10521_v0 = vld [vmem:[%s17679_s0 + $0x1c8] sm:$0xff]  ;;  %v10543_v4 = vld [vmem:[%s17679_s0 + $0x1e0] sm:$0xff] }
  0x1c   :  { %128 = vst.msk [vmem:[#allocation2 + $0x110] sm:$0xff] %vm93_vm0, %v10521_v0  ;;  %v10528_v1 = vld [vmem:[%s17679_s0 + $0x1d0] sm:$0xff]  ;;  %130 = vst.msk [vmem:[#allocation2 + $0x120] sm:$0xff] %vm93_vm0, %v10543_v4  ;;  %v10550_v5 = vld [vmem:[%s17679_s0 + $0x1e8] sm:$0xff] }
  0x1d   :  { %129 = vst.msk [vmem:[#allocation2 + $0x118] sm:$0xff] %vm93_vm0, %v10528_v1  ;;  %v188_v2 = vld [vmem:[%s17679_s0 + $0x169] sm:$0xff]  ;;  %v189_v3 = vld [vmem:[%s17679_s0 + $0x171] sm:$0xff]  ;;  %131 = vst.msk [vmem:[#allocation2 + $0x128] sm:$0xff] %vm93_vm0, %v10550_v5 }
  0x1e   :  { %314 = vrot.lane.b32.xlu0 %v172_v21, %s10116_s9  ;;  %316 = vrot.lane.b32.xlu1 %v173_v22, %s10116_s9  ;;  %v190_v6 = vld [vmem:[%s17679_s0 + $0x1b1] sm:$0xff]  ;;  %v191_v7 = vld [vmem:[%s17679_s0 + $0x1b9] sm:$0xff] }
  0x1f   :  { %v10565_v8 = vld [vmem:[%s17679_s0 + $0x1f8] sm:$0xff]  ;;  %v10572_v9 = vld [vmem:[%s17679_s0 + $0x200] sm:$0xff]  ;;  %v192_v10 = vld [vmem:[%s17679_s0 + $0x1c9] sm:$0xff] }
  0x20   :  { %132 = vst.msk [vmem:[#allocation2 + $0x130] sm:$0xff] %vm93_vm0, %v10565_v8  ;;  %133 = vst.msk [vmem:[#allocation2 + $0x138] sm:$0xff] %vm93_vm0, %v10572_v9  ;;  %v193_v11 = vld [vmem:[%s17679_s0 + $0x1d1] sm:$0xff]  ;;  %v194_v15 = vld [vmem:[%s17679_s0 + $0x1e1] sm:$0xff] }
  0x21   :  { %v10587_v12 = vld [vmem:[%s17679_s0 + $0x210] sm:$0xff]  ;;  %v10594_v14 = vld [vmem:[%s17679_s0 + $0x218] sm:$0xff]  ;;  %v10609_v21 = vld [vmem:[%s17679_s0 + $0x228] sm:$0xff] }
  0x22   :  { %318 = vrot.lane.b32.xlu0 %v174_v28, %s10116_s9  ;;  %320 = vrot.lane.b32.xlu1 %v175_v29, %s10116_s9  ;;  %134 = vst.msk [vmem:[#allocation2 + $0x140] sm:$0xff] %vm93_vm0, %v10587_v12  ;;  %135 = vst.msk [vmem:[#allocation2 + $0x148] sm:$0xff] %vm93_vm0, %v10594_v14  ;;  %v195_v16 = vld [vmem:[%s17679_s0 + $0x1e9] sm:$0xff]  ;;  %v196_v28 = vld [vmem:[%s17679_s0 + $0x1f9] sm:$0xff] }
  0x23   :  { %136 = vst.msk [vmem:[#allocation2 + $0x150] sm:$0xff] %vm93_vm0, %v10609_v21  ;;  %v10616_v22 = vld [vmem:[%s17679_s0 + $0x230] sm:$0xff]  ;;  %v197_v29 = vld [vmem:[%s17679_s0 + $0x201] sm:$0xff] }
  0x24   :  { %137 = vst.msk [vmem:[#allocation2 + $0x158] sm:$0xff] %vm93_vm0, %v10616_v22  ;;  %v202_v60 = vld [vmem:[%s17679_s0 + $0x241] sm:$0xff]  ;;  %v203_v61 = vld [vmem:[%s17679_s0 + $0x249] sm:$0xff] }
  0x26   :  { %322 = vrot.lane.b32.xlu0 %v176_v35, %s10116_s9  ;;  %324 = vrot.lane.b32.xlu1 %v177_v37, %s10116_s9  ;;  %v10631_v35 = vld [vmem:[%s17679_s0 + $0x240] sm:$0xff]  ;;  %v10638_v37 = vld [vmem:[%s17679_s0 + $0x248] sm:$0xff] }
  0x27   :  { %138 = vst.msk [vmem:[#allocation2 + $0x160] sm:$0xff] %vm93_vm0, %v10631_v35  ;;  %139 = vst.msk [vmem:[#allocation2 + $0x168] sm:$0xff] %vm93_vm0, %v10638_v37 }
  0x2a   :  { %326 = vrot.lane.b32.xlu0 %v178_v44, %s10116_s9  ;;  %328 = vrot.lane.b32.xlu1 %v179_v45, %s10116_s9  ;;  %v198_v44 = vld [vmem:[%s17679_s0 + $0x211] sm:$0xff]  ;;  %v199_v45 = vld [vmem:[%s17679_s0 + $0x219] sm:$0xff] }
  0x2e   :  { %330 = vrot.lane.b32.xlu0 %v180_v50, %s10116_s9  ;;  %332 = vrot.lane.b32.xlu1 %v181_v51, %s10116_s9  ;;  %v10653_v50 = vld [vmem:[%s17679_s0 + $0x258] sm:$0xff]  ;;  %v10660_v51 = vld [vmem:[%s17679_s0 + $0x260] sm:$0xff] }
  0x2f   :  { %140 = vst.msk [vmem:[#allocation2 + $0x170] sm:$0xff] %vm93_vm0, %v10653_v50  ;;  %141 = vst.msk [vmem:[#allocation2 + $0x178] sm:$0xff] %vm93_vm0, %v10660_v51 }
  0x32   :  { %334 = vrot.lane.b32.xlu0 %v182_v54, %s10116_s9  ;;  %336 = vrot.lane.b32.xlu1 %v183_v55, %s10116_s9  ;;  %v200_v54 = vld [vmem:[%s17679_s0 + $0x229] sm:$0xff]  ;;  %v201_v55 = vld [vmem:[%s17679_s0 + $0x231] sm:$0xff] }
  0x36   :  { %338 = vrot.lane.b32.xlu0 %v184_v58, %s10116_s9  ;;  %340 = vrot.lane.b32.xlu1 %v185_v59, %s10116_s9  ;;  %v10675_v58 = vld [vmem:[%s17679_s0 + $0x270] sm:$0xff]  ;;  %v10682_v59 = vld [vmem:[%s17679_s0 + $0x278] sm:$0xff] }
  0x37   :  { %142 = vst.msk [vmem:[#allocation2 + $0x180] sm:$0xff] %vm93_vm0, %v10675_v58  ;;  %143 = vst.msk [vmem:[#allocation2 + $0x188] sm:$0xff] %vm93_vm0, %v10682_v59 }
  0x3a   :  { %342 = vrot.lane.b32.xlu0 %v186_v62, %s10116_s9  ;;  %344 = vrot.lane.b32.xlu1 %v187_v63, %s10116_s9  ;;  %v10697_v62 = vld [vmem:[%s17679_s0 + $0x288] sm:$0xff]  ;;  %v10704_v63 = vld [vmem:[%s17679_s0 + $0x290] sm:$0xff] }
  0x3b   :  { %144 = vst.msk [vmem:[#allocation2 + $0x190] sm:$0xff] %vm93_vm0, %v10697_v62  ;;  %145 = vst.msk [vmem:[#allocation2 + $0x198] sm:$0xff] %vm93_vm0, %v10704_v63 }
  0x3e   :  { %346 = vrot.lane.b32.xlu0 %v188_v2, %s10116_s9  ;;  %348 = vrot.lane.b32.xlu1 %v189_v3, %s10116_s9  ;;  %v204_v2 = vld [vmem:[%s17679_s0 + $0x259] sm:$0xff]  ;;  %v205_v3 = vld [vmem:[%s17679_s0 + $0x261] sm:$0xff] }
  0x42   :  { %350 = vrot.lane.b32.xlu0 %v190_v6, %s10116_s9  ;;  %352 = vrot.lane.b32.xlu1 %v191_v7, %s10116_s9  ;;  %v10719_v6 = vld [vmem:[%s17679_s0 + $0x2a0] sm:$0xff]  ;;  %v10726_v7 = vld [vmem:[%s17679_s0 + $0x2a8] sm:$0xff] }
  0x43   :  { %146 = vst.msk [vmem:[#allocation2 + $0x1a0] sm:$0xff] %vm93_vm0, %v10719_v6  ;;  %147 = vst.msk [vmem:[#allocation2 + $0x1a8] sm:$0xff] %vm93_vm0, %v10726_v7 }
  0x46   :  { %354 = vrot.lane.b32.xlu0 %v192_v10, %s10116_s9  ;;  %356 = vrot.lane.b32.xlu1 %v193_v11, %s10116_s9  ;;  %v206_v10 = vld [vmem:[%s17679_s0 + $0x271] sm:$0xff]  ;;  %v207_v11 = vld [vmem:[%s17679_s0 + $0x279] sm:$0xff] }
  0x4a   :  { %358 = vrot.lane.b32.xlu0 %v194_v15, %s10116_s9  ;;  %360 = vrot.lane.b32.xlu1 %v195_v16, %s10116_s9  ;;  %v10741_v15 = vld [vmem:[%s17679_s0 + $0x2b8] sm:$0xff]  ;;  %v10748_v16 = vld [vmem:[%s17679_s0 + $0x2c0] sm:$0xff] }
  0x4b   :  { %148 = vst.msk [vmem:[#allocation2 + $0x1b0] sm:$0xff] %vm93_vm0, %v10741_v15  ;;  %149 = vst.msk [vmem:[#allocation2 + $0x1b8] sm:$0xff] %vm93_vm0, %v10748_v16 }
  0x4e   :  { %362 = vrot.lane.b32.xlu0 %v196_v28, %s10116_s9  ;;  %364 = vrot.lane.b32.xlu1 %v197_v29, %s10116_s9  ;;  %v208_v28 = vld [vmem:[%s17679_s0 + $0x289] sm:$0xff]  ;;  %v209_v29 = vld [vmem:[%s17679_s0 + $0x291] sm:$0xff] }
  0x52   :  { %366 = vrot.lane.b32.xlu0 %v198_v44, %s10116_s9  ;;  %368 = vrot.lane.b32.xlu1 %v199_v45, %s10116_s9  ;;  %v10763_v44 = vld [vmem:[%s17679_s0 + $0x2d0] sm:$0xff]  ;;  %v10770_v45 = vld [vmem:[%s17679_s0 + $0x2d8] sm:$0xff] }
  0x53   :  { %150 = vst.msk [vmem:[#allocation2 + $0x1c0] sm:$0xff] %vm93_vm0, %v10763_v44  ;;  %151 = vst.msk [vmem:[#allocation2 + $0x1c8] sm:$0xff] %vm93_vm0, %v10770_v45 }
  0x56   :  { %370 = vrot.lane.b32.xlu0 %v200_v54, %s10116_s9  ;;  %372 = vrot.lane.b32.xlu1 %v201_v55, %s10116_s9  ;;  %v210_v54 = vld [vmem:[%s17679_s0 + $0x2a1] sm:$0xff]  ;;  %v211_v55 = vld [vmem:[%s17679_s0 + $0x2a9] sm:$0xff] }
  0x5a   :  { %374 = vrot.lane.b32.xlu0 %v202_v60, %s10116_s9  ;;  %376 = vrot.lane.b32.xlu1 %v203_v61, %s10116_s9  ;;  %v10785_v60 = vld [vmem:[%s17679_s0 + $0x2e8] sm:$0xff]  ;;  %v10792_v61 = vld [vmem:[%s17679_s0 + $0x2f0] sm:$0xff] }
  0x5b   :  { %152 = vst.msk [vmem:[#allocation2 + $0x1d0] sm:$0xff] %vm93_vm0, %v10785_v60  ;;  %153 = vst.msk [vmem:[#allocation2 + $0x1d8] sm:$0xff] %vm93_vm0, %v10792_v61 }
  0x5e   :  { %378 = vrot.lane.b32.xlu0 %v204_v2, %s10116_s9  ;;  %380 = vrot.lane.b32.xlu1 %v205_v3, %s10116_s9  ;;  %v212_v2 = vld [vmem:[%s17679_s0 + $0x2b9] sm:$0xff]  ;;  %v213_v3 = vld [vmem:[%s17679_s0 + $0x2c1] sm:$0xff] }
  0x62   :  { %382 = vrot.lane.b32.xlu0 %v206_v10, %s10116_s9  ;;  %384 = vrot.lane.b32.xlu1 %v207_v11, %s10116_s9  ;;  %v10807_v10 = vld [vmem:[%s17679_s0 + $0x300] sm:$0xff]  ;;  %v10814_v11 = vld [vmem:[%s17679_s0 + $0x308] sm:$0xff] }
  0x63   :  { %17748 = vst [vmem:[#allocation4_spill] sm:$0xff] %v10807_v10  ;;  %154 = vst.msk [vmem:[#allocation2 + $0x1e0] sm:$0xff] %vm93_vm0, %v10807_v10 }
  0x64   :  { %17749 = vst [vmem:[#allocation5_spill] sm:$0xff] %v10814_v11  ;;  %155 = vst.msk [vmem:[#allocation2 + $0x1e8] sm:$0xff] %vm93_vm0, %v10814_v11 }
  0x66   :  { %386 = vrot.lane.b32.xlu0 %v208_v28, %s10116_s9  ;;  %388 = vrot.lane.b32.xlu1 %v209_v29, %s10116_s9  ;;  %v214_v28 = vld [vmem:[%s17679_s0 + $0x2d1] sm:$0xff]  ;;  %v215_v29 = vld [vmem:[%s17679_s0 + $0x2d9] sm:$0xff] }
  0x6a   :  { %390 = vrot.lane.b32.xlu0 %v210_v54, %s10116_s9  ;;  %392 = vrot.lane.b32.xlu1 %v211_v55, %s10116_s9  ;;  %v10829_v54 = vld [vmem:[%s17679_s0 + $0x318] sm:$0xff]  ;;  %v10836_v55 = vld [vmem:[%s17679_s0 + $0x320] sm:$0xff] }
  0x6b   :  { %17750 = vst [vmem:[#allocation6_spill] sm:$0xff] %v10829_v54  ;;  %156 = vst.msk [vmem:[#allocation2 + $0x1f0] sm:$0xff] %vm93_vm0, %v10829_v54 }
  0x6c   :  { %17751 = vst [vmem:[#allocation7_spill] sm:$0xff] %v10836_v55  ;;  %157 = vst.msk [vmem:[#allocation2 + $0x1f8] sm:$0xff] %vm93_vm0, %v10836_v55 }
  0x6e   :  { %394 = vrot.lane.b32.xlu0 %v212_v2, %s10116_s9  ;;  %396 = vrot.lane.b32.xlu1 %v213_v3, %s10116_s9  ;;  %v216_v2 = vld [vmem:[%s17679_s0 + $0x2e9] sm:$0xff]  ;;  %v217_v3 = vld [vmem:[%s17679_s0 + $0x2f1] sm:$0xff] }
  0x72   :  { %398 = vrot.lane.b32.xlu0 %v214_v28, %s10116_s9  ;;  %400 = vrot.lane.b32.xlu1 %v215_v29, %s10116_s9  ;;  %v218_v28 = vld [vmem:[%s17679_s0 + $0x301] sm:$0xff]  ;;  %v219_v29 = vld [vmem:[%s17679_s0 + $0x309] sm:$0xff] }
  0x74   :  { %v287_v54 = vpop.permute.xlu0 %286  ;;  %v291_v11 = vpop.permute.xlu1 %290 }
  0x75   :  { %479 = vst.msk [vmem:[#allocation2] sm:$0xff] %vm478_vm1, %v287_v54  ;;  %481 = vst.msk [vmem:[#allocation2 + $0x10] sm:$0xff] %vm478_vm1, %v291_v11  ;;  %v220_v11 = vld [vmem:[%s17679_s0 + $0x319] sm:$0xff]  ;;  %v221_v54 = vld [vmem:[%s17679_s0 + $0x321] sm:$0xff] }
  0x76   :  { %402 = vrot.lane.b32.xlu0 %v216_v2, %s10116_s9  ;;  %404 = vrot.lane.b32.xlu1 %v217_v3, %s10116_s9 }
  0x78   :  { %v289_v55 = vpop.permute.xlu0 %288  ;;  %v293_v10 = vpop.permute.xlu1 %292 }
  0x79   :  { %480 = vst.msk [vmem:[#allocation2 + $0x8] sm:$0xff] %vm478_vm1, %v289_v55  ;;  %482 = vst.msk [vmem:[#allocation2 + $0x18] sm:$0xff] %vm478_vm1, %v293_v10  ;;  %v543_v10 = vld [vmem:[%s17679_s0 + $0x2] sm:$0xff]  ;;  %v544_v55 = vld [vmem:[%s17679_s0 + $0xa] sm:$0xff] }
  0x7a   :  { %406 = vrot.lane.b32.xlu0 %v218_v28, %s10116_s9  ;;  %408 = vrot.lane.b32.xlu1 %v219_v29, %s10116_s9 }
  0x7c   :  { %v295_v2 = vpop.permute.xlu0 %294  ;;  %v297_v3 = vpop.permute.xlu1 %296 }
  0x7d   :  { %483 = vst.msk [vmem:[#allocation2 + $0x20] sm:$0xff] %vm478_vm1, %v295_v2  ;;  %484 = vst.msk [vmem:[#allocation2 + $0x28] sm:$0xff] %vm478_vm1, %v297_v3 }
  0x7e   :  { %410 = vrot.lane.b32.xlu0 %v220_v11, %s10116_s9  ;;  %412 = vrot.lane.b32.xlu1 %v221_v54, %s10116_s9  ;;  %v545_v11 = vld [vmem:[%s17679_s0 + $0x1a] sm:$0xff]  ;;  %v546_v54 = vld [vmem:[%s17679_s0 + $0x22] sm:$0xff] }
  0x80   :  { %v299_v28 = vpop.permute.xlu0 %298  ;;  %v301_v29 = vpop.permute.xlu1 %300 }
  0x81   :  { %485 = vst.msk [vmem:[#allocation2 + $0x30] sm:$0xff] %vm478_vm1, %v299_v28  ;;  %486 = vst.msk [vmem:[#allocation2 + $0x38] sm:$0xff] %vm478_vm1, %v301_v29 }
  0x82   :  { %671 = vrot.lane.b32.xlu0 %v543_v10, %s10117_s14  ;;  %673 = vrot.lane.b32.xlu1 %v544_v55, %s10117_s14  ;;  %v547_v10 = vld [vmem:[%s17679_s0 + $0x32] sm:$0xff]  ;;  %v548_v55 = vld [vmem:[%s17679_s0 + $0x3a] sm:$0xff] }
  0x84   :  { %v303_v2 = vpop.permute.xlu0 %302  ;;  %v305_v3 = vpop.permute.xlu1 %304 }
  0x85   :  { %487 = vst.msk [vmem:[#allocation2 + $0x40] sm:$0xff] %vm478_vm1, %v303_v2  ;;  %488 = vst.msk [vmem:[#allocation2 + $0x48] sm:$0xff] %vm478_vm1, %v305_v3 }
  0x86   :  { %675 = vrot.lane.b32.xlu0 %v545_v11, %s10117_s14  ;;  %677 = vrot.lane.b32.xlu1 %v546_v54, %s10117_s14  ;;  %v549_v11 = vld [vmem:[%s17679_s0 + $0x4a] sm:$0xff]  ;;  %v550_v54 = vld [vmem:[%s17679_s0 + $0x52] sm:$0xff] }
  0x88   :  { %v307_v28 = vpop.permute.xlu0 %306  ;;  %v309_v29 = vpop.permute.xlu1 %308 }
  0x89   :  { %489 = vst.msk [vmem:[#allocation2 + $0x50] sm:$0xff] %vm478_vm1, %v307_v28  ;;  %490 = vst.msk [vmem:[#allocation2 + $0x58] sm:$0xff] %vm478_vm1, %v309_v29 }
  0x8a   :  { %679 = vrot.lane.b32.xlu0 %v547_v10, %s10117_s14  ;;  %681 = vrot.lane.b32.xlu1 %v548_v55, %s10117_s14  ;;  %v551_v10 = vld [vmem:[%s17679_s0 + $0x62] sm:$0xff]  ;;  %v552_v55 = vld [vmem:[%s17679_s0 + $0x6a] sm:$0xff] }
  0x8c   :  { %v311_v2 = vpop.permute.xlu0 %310  ;;  %v313_v3 = vpop.permute.xlu1 %312 }
  0x8d   :  { %491 = vst.msk [vmem:[#allocation2 + $0x60] sm:$0xff] %vm478_vm1, %v311_v2  ;;  %492 = vst.msk [vmem:[#allocation2 + $0x68] sm:$0xff] %vm478_vm1, %v313_v3 }
  0x8e   :  { %683 = vrot.lane.b32.xlu0 %v549_v11, %s10117_s14  ;;  %685 = vrot.lane.b32.xlu1 %v550_v54, %s10117_s14  ;;  %v553_v11 = vld [vmem:[%s17679_s0 + $0x7a] sm:$0xff]  ;;  %v554_v54 = vld [vmem:[%s17679_s0 + $0x82] sm:$0xff] }
  0x90   :  { %v315_v28 = vpop.permute.xlu0 %314  ;;  %v317_v29 = vpop.permute.xlu1 %316 }
  0x91   :  { %493 = vst.msk [vmem:[#allocation2 + $0x70] sm:$0xff] %vm478_vm1, %v315_v28  ;;  %494 = vst.msk [vmem:[#allocation2 + $0x78] sm:$0xff] %vm478_vm1, %v317_v29 }
  0x92   :  { %687 = vrot.lane.b32.xlu0 %v551_v10, %s10117_s14  ;;  %689 = vrot.lane.b32.xlu1 %v552_v55, %s10117_s14  ;;  %v555_v10 = vld [vmem:[%s17679_s0 + $0x92] sm:$0xff]  ;;  %v556_v55 = vld [vmem:[%s17679_s0 + $0x9a] sm:$0xff] }
  0x94   :  { %v319_v2 = vpop.permute.xlu0 %318  ;;  %v321_v3 = vpop.permute.xlu1 %320 }
  0x95   :  { %495 = vst.msk [vmem:[#allocation2 + $0x80] sm:$0xff] %vm478_vm1, %v319_v2  ;;  %496 = vst.msk [vmem:[#allocation2 + $0x88] sm:$0xff] %vm478_vm1, %v321_v3 }
  0x96   :  { %691 = vrot.lane.b32.xlu0 %v553_v11, %s10117_s14  ;;  %693 = vrot.lane.b32.xlu1 %v554_v54, %s10117_s14  ;;  %v557_v11 = vld [vmem:[%s17679_s0 + $0xaa] sm:$0xff]  ;;  %v558_v54 = vld [vmem:[%s17679_s0 + $0xb2] sm:$0xff] }
  0x98   :  { %v323_v28 = vpop.permute.xlu0 %322  ;;  %v325_v29 = vpop.permute.xlu1 %324 }
  0x99   :  { %497 = vst.msk [vmem:[#allocation2 + $0x90] sm:$0xff] %vm478_vm1, %v323_v28  ;;  %498 = vst.msk [vmem:[#allocation2 + $0x98] sm:$0xff] %vm478_vm1, %v325_v29 }
  0x9a   :  { %695 = vrot.lane.b32.xlu0 %v555_v10, %s10117_s14  ;;  %697 = vrot.lane.b32.xlu1 %v556_v55, %s10117_s14  ;;  %v559_v10 = vld [vmem:[%s17679_s0 + $0xc2] sm:$0xff]  ;;  %v560_v55 = vld [vmem:[%s17679_s0 + $0xca] sm:$0xff] }
  0x9c   :  { %v327_v2 = vpop.permute.xlu0 %326  ;;  %v329_v3 = vpop.permute.xlu1 %328 }
  0x9d   :  { %499 = vst.msk [vmem:[#allocation2 + $0xa0] sm:$0xff] %vm478_vm1, %v327_v2  ;;  %500 = vst.msk [vmem:[#allocation2 + $0xa8] sm:$0xff] %vm478_vm1, %v329_v3 }
  0x9e   :  { %699 = vrot.lane.b32.xlu0 %v557_v11, %s10117_s14  ;;  %701 = vrot.lane.b32.xlu1 %v558_v54, %s10117_s14  ;;  %v561_v11 = vld [vmem:[%s17679_s0 + $0xda] sm:$0xff]  ;;  %v562_v54 = vld [vmem:[%s17679_s0 + $0xe2] sm:$0xff] }
  0xa0   :  { %v331_v28 = vpop.permute.xlu0 %330  ;;  %v333_v29 = vpop.permute.xlu1 %332 }
  0xa1   :  { %501 = vst.msk [vmem:[#allocation2 + $0xb0] sm:$0xff] %vm478_vm1, %v331_v28  ;;  %502 = vst.msk [vmem:[#allocation2 + $0xb8] sm:$0xff] %vm478_vm1, %v333_v29 }
  0xa2   :  { %703 = vrot.lane.b32.xlu0 %v559_v10, %s10117_s14  ;;  %705 = vrot.lane.b32.xlu1 %v560_v55, %s10117_s14  ;;  %v563_v10 = vld [vmem:[%s17679_s0 + $0xf2] sm:$0xff]  ;;  %v564_v55 = vld [vmem:[%s17679_s0 + $0xfa] sm:$0xff] }
  0xa4   :  { %v335_v2 = vpop.permute.xlu0 %334  ;;  %v337_v3 = vpop.permute.xlu1 %336 }
  0xa5   :  { %503 = vst.msk [vmem:[#allocation2 + $0xc0] sm:$0xff] %vm478_vm1, %v335_v2  ;;  %504 = vst.msk [vmem:[#allocation2 + $0xc8] sm:$0xff] %vm478_vm1, %v337_v3 }
  0xa6   :  { %707 = vrot.lane.b32.xlu0 %v561_v11, %s10117_s14  ;;  %709 = vrot.lane.b32.xlu1 %v562_v54, %s10117_s14  ;;  %v565_v11 = vld [vmem:[%s17679_s0 + $0x10a] sm:$0xff]  ;;  %v566_v54 = vld [vmem:[%s17679_s0 + $0x112] sm:$0xff] }
  0xa8   :  { %v339_v28 = vpop.permute.xlu0 %338  ;;  %v341_v29 = vpop.permute.xlu1 %340 }
  0xa9   :  { %505 = vst.msk [vmem:[#allocation2 + $0xd0] sm:$0xff] %vm478_vm1, %v339_v28  ;;  %506 = vst.msk [vmem:[#allocation2 + $0xd8] sm:$0xff] %vm478_vm1, %v341_v29 }
  0xaa   :  { %711 = vrot.lane.b32.xlu0 %v563_v10, %s10117_s14  ;;  %713 = vrot.lane.b32.xlu1 %v564_v55, %s10117_s14  ;;  %v567_v10 = vld [vmem:[%s17679_s0 + $0x122] sm:$0xff]  ;;  %v568_v55 = vld [vmem:[%s17679_s0 + $0x12a] sm:$0xff] }
  0xac   :  { %v343_v2 = vpop.permute.xlu0 %342  ;;  %v345_v3 = vpop.permute.xlu1 %344 }
  0xad   :  { %507 = vst.msk [vmem:[#allocation2 + $0xe0] sm:$0xff] %vm478_vm1, %v343_v2  ;;  %508 = vst.msk [vmem:[#allocation2 + $0xe8] sm:$0xff] %vm478_vm1, %v345_v3 }
  0xae   :  { %715 = vrot.lane.b32.xlu0 %v565_v11, %s10117_s14  ;;  %717 = vrot.lane.b32.xlu1 %v566_v54, %s10117_s14  ;;  %v569_v11 = vld [vmem:[%s17679_s0 + $0x13a] sm:$0xff]  ;;  %v570_v54 = vld [vmem:[%s17679_s0 + $0x142] sm:$0xff] }
  0xb0   :  { %v347_v28 = vpop.permute.xlu0 %346  ;;  %v349_v29 = vpop.permute.xlu1 %348 }
  0xb1   :  { %509 = vst.msk [vmem:[#allocation2 + $0xf0] sm:$0xff] %vm478_vm1, %v347_v28  ;;  %510 = vst.msk [vmem:[#allocation2 + $0xf8] sm:$0xff] %vm478_vm1, %v349_v29 }
  0xb2   :  { %719 = vrot.lane.b32.xlu0 %v567_v10, %s10117_s14  ;;  %721 = vrot.lane.b32.xlu1 %v568_v55, %s10117_s14  ;;  %v571_v10 = vld [vmem:[%s17679_s0 + $0x152] sm:$0xff]  ;;  %v572_v55 = vld [vmem:[%s17679_s0 + $0x15a] sm:$0xff] }
  0xb4   :  { %v351_v2 = vpop.permute.xlu0 %350  ;;  %v353_v3 = vpop.permute.xlu1 %352 }
  0xb5   :  { %511 = vst.msk [vmem:[#allocation2 + $0x100] sm:$0xff] %vm478_vm1, %v351_v2  ;;  %512 = vst.msk [vmem:[#allocation2 + $0x108] sm:$0xff] %vm478_vm1, %v353_v3 }
  0xb6   :  { %723 = vrot.lane.b32.xlu0 %v569_v11, %s10117_s14  ;;  %725 = vrot.lane.b32.xlu1 %v570_v54, %s10117_s14  ;;  %v573_v11 = vld [vmem:[%s17679_s0 + $0x16a] sm:$0xff]  ;;  %v574_v54 = vld [vmem:[%s17679_s0 + $0x172] sm:$0xff] }
  0xb8   :  { %v355_v28 = vpop.permute.xlu0 %354  ;;  %v357_v29 = vpop.permute.xlu1 %356 }
  0xb9   :  { %513 = vst.msk [vmem:[#allocation2 + $0x110] sm:$0xff] %vm478_vm1, %v355_v28  ;;  %514 = vst.msk [vmem:[#allocation2 + $0x118] sm:$0xff] %vm478_vm1, %v357_v29 }
  0xba   :  { %727 = vrot.lane.b32.xlu0 %v571_v10, %s10117_s14  ;;  %729 = vrot.lane.b32.xlu1 %v572_v55, %s10117_s14  ;;  %v575_v10 = vld [vmem:[%s17679_s0 + $0x1b2] sm:$0xff]  ;;  %v576_v55 = vld [vmem:[%s17679_s0 + $0x1ba] sm:$0xff] }
  0xbc   :  { %v359_v2 = vpop.permute.xlu0 %358  ;;  %v361_v3 = vpop.permute.xlu1 %360 }
  0xbd   :  { %515 = vst.msk [vmem:[#allocation2 + $0x120] sm:$0xff] %vm478_vm1, %v359_v2  ;;  %516 = vst.msk [vmem:[#allocation2 + $0x128] sm:$0xff] %vm478_vm1, %v361_v3 }
  0xbe   :  { %731 = vrot.lane.b32.xlu0 %v573_v11, %s10117_s14  ;;  %733 = vrot.lane.b32.xlu1 %v574_v54, %s10117_s14  ;;  %v577_v11 = vld [vmem:[%s17679_s0 + $0x1ca] sm:$0xff]  ;;  %v578_v54 = vld [vmem:[%s17679_s0 + $0x1d2] sm:$0xff] }
  0xc0   :  { %v363_v28 = vpop.permute.xlu0 %362  ;;  %v365_v29 = vpop.permute.xlu1 %364 }
  0xc1   :  { %517 = vst.msk [vmem:[#allocation2 + $0x130] sm:$0xff] %vm478_vm1, %v363_v28  ;;  %518 = vst.msk [vmem:[#allocation2 + $0x138] sm:$0xff] %vm478_vm1, %v365_v29 }
  0xc2   :  { %735 = vrot.lane.b32.xlu0 %v575_v10, %s10117_s14  ;;  %737 = vrot.lane.b32.xlu1 %v576_v55, %s10117_s14  ;;  %v579_v10 = vld [vmem:[%s17679_s0 + $0x1e2] sm:$0xff]  ;;  %v580_v55 = vld [vmem:[%s17679_s0 + $0x1ea] sm:$0xff] }
  0xc4   :  { %v367_v2 = vpop.permute.xlu0 %366  ;;  %v369_v3 = vpop.permute.xlu1 %368 }
  0xc5   :  { %519 = vst.msk [vmem:[#allocation2 + $0x140] sm:$0xff] %vm478_vm1, %v367_v2  ;;  %520 = vst.msk [vmem:[#allocation2 + $0x148] sm:$0xff] %vm478_vm1, %v369_v3 }
  0xc6   :  { %739 = vrot.lane.b32.xlu0 %v577_v11, %s10117_s14  ;;  %741 = vrot.lane.b32.xlu1 %v578_v54, %s10117_s14  ;;  %v581_v11 = vld [vmem:[%s17679_s0 + $0x1fa] sm:$0xff]  ;;  %v582_v54 = vld [vmem:[%s17679_s0 + $0x202] sm:$0xff] }
  0xc8   :  { %v371_v28 = vpop.permute.xlu0 %370  ;;  %v373_v29 = vpop.permute.xlu1 %372 }
  0xc9   :  { %521 = vst.msk [vmem:[#allocation2 + $0x150] sm:$0xff] %vm478_vm1, %v371_v28  ;;  %522 = vst.msk [vmem:[#allocation2 + $0x158] sm:$0xff] %vm478_vm1, %v373_v29 }
  0xca   :  { %743 = vrot.lane.b32.xlu0 %v579_v10, %s10117_s14  ;;  %745 = vrot.lane.b32.xlu1 %v580_v55, %s10117_s14  ;;  %v583_v10 = vld [vmem:[%s17679_s0 + $0x212] sm:$0xff]  ;;  %v584_v55 = vld [vmem:[%s17679_s0 + $0x21a] sm:$0xff] }
  0xcc   :  { %v375_v2 = vpop.permute.xlu0 %374  ;;  %v377_v3 = vpop.permute.xlu1 %376 }
  0xcd   :  { %523 = vst.msk [vmem:[#allocation2 + $0x160] sm:$0xff] %vm478_vm1, %v375_v2  ;;  %524 = vst.msk [vmem:[#allocation2 + $0x168] sm:$0xff] %vm478_vm1, %v377_v3 }
  0xce   :  { %747 = vrot.lane.b32.xlu0 %v581_v11, %s10117_s14  ;;  %749 = vrot.lane.b32.xlu1 %v582_v54, %s10117_s14  ;;  %v585_v11 = vld [vmem:[%s17679_s0 + $0x22a] sm:$0xff]  ;;  %v586_v54 = vld [vmem:[%s17679_s0 + $0x232] sm:$0xff] }
  0xd0   :  { %v379_v28 = vpop.permute.xlu0 %378  ;;  %v381_v29 = vpop.permute.xlu1 %380 }
  0xd1   :  { %525 = vst.msk [vmem:[#allocation2 + $0x170] sm:$0xff] %vm478_vm1, %v379_v28  ;;  %526 = vst.msk [vmem:[#allocation2 + $0x178] sm:$0xff] %vm478_vm1, %v381_v29 }
  0xd2   :  { %751 = vrot.lane.b32.xlu0 %v583_v10, %s10117_s14  ;;  %753 = vrot.lane.b32.xlu1 %v584_v55, %s10117_s14  ;;  %v587_v10 = vld [vmem:[%s17679_s0 + $0x242] sm:$0xff]  ;;  %v588_v55 = vld [vmem:[%s17679_s0 + $0x24a] sm:$0xff] }
  0xd4   :  { %v383_v2 = vpop.permute.xlu0 %382  ;;  %v385_v3 = vpop.permute.xlu1 %384 }
  0xd5   :  { %527 = vst.msk [vmem:[#allocation2 + $0x180] sm:$0xff] %vm478_vm1, %v383_v2  ;;  %528 = vst.msk [vmem:[#allocation2 + $0x188] sm:$0xff] %vm478_vm1, %v385_v3 }
  0xd6   :  { %755 = vrot.lane.b32.xlu0 %v585_v11, %s10117_s14  ;;  %757 = vrot.lane.b32.xlu1 %v586_v54, %s10117_s14  ;;  %v589_v11 = vld [vmem:[%s17679_s0 + $0x25a] sm:$0xff]  ;;  %v590_v54 = vld [vmem:[%s17679_s0 + $0x262] sm:$0xff] }
  0xd8   :  { %v387_v28 = vpop.permute.xlu0 %386  ;;  %v389_v29 = vpop.permute.xlu1 %388 }
  0xd9   :  { %529 = vst.msk [vmem:[#allocation2 + $0x190] sm:$0xff] %vm478_vm1, %v387_v28  ;;  %530 = vst.msk [vmem:[#allocation2 + $0x198] sm:$0xff] %vm478_vm1, %v389_v29 }
  0xda   :  { %759 = vrot.lane.b32.xlu0 %v587_v10, %s10117_s14  ;;  %761 = vrot.lane.b32.xlu1 %v588_v55, %s10117_s14  ;;  %v591_v10 = vld [vmem:[%s17679_s0 + $0x272] sm:$0xff]  ;;  %v592_v55 = vld [vmem:[%s17679_s0 + $0x27a] sm:$0xff] }
  0xdc   :  { %v391_v2 = vpop.permute.xlu0 %390  ;;  %v393_v3 = vpop.permute.xlu1 %392 }
  0xdd   :  { %531 = vst.msk [vmem:[#allocation2 + $0x1a0] sm:$0xff] %vm478_vm1, %v391_v2  ;;  %532 = vst.msk [vmem:[#allocation2 + $0x1a8] sm:$0xff] %vm478_vm1, %v393_v3 }
  0xde   :  { %763 = vrot.lane.b32.xlu0 %v589_v11, %s10117_s14  ;;  %765 = vrot.lane.b32.xlu1 %v590_v54, %s10117_s14  ;;  %v593_v11 = vld [vmem:[%s17679_s0 + $0x28a] sm:$0xff]  ;;  %v594_v54 = vld [vmem:[%s17679_s0 + $0x292] sm:$0xff] }
  0xe0   :  { %v395_v28 = vpop.permute.xlu0 %394  ;;  %v397_v29 = vpop.permute.xlu1 %396 }
  0xe1   :  { %533 = vst.msk [vmem:[#allocation2 + $0x1b0] sm:$0xff] %vm478_vm1, %v395_v28  ;;  %534 = vst.msk [vmem:[#allocation2 + $0x1b8] sm:$0xff] %vm478_vm1, %v397_v29 }
  0xe2   :  { %767 = vrot.lane.b32.xlu0 %v591_v10, %s10117_s14  ;;  %769 = vrot.lane.b32.xlu1 %v592_v55, %s10117_s14  ;;  %v595_v10 = vld [vmem:[%s17679_s0 + $0x2a2] sm:$0xff]  ;;  %v596_v55 = vld [vmem:[%s17679_s0 + $0x2aa] sm:$0xff] }
  0xe4   :  { %v399_v2 = vpop.permute.xlu0 %398  ;;  %v401_v3 = vpop.permute.xlu1 %400 }
  0xe5   :  { %535 = vst.msk [vmem:[#allocation2 + $0x1c0] sm:$0xff] %vm478_vm1, %v399_v2  ;;  %536 = vst.msk [vmem:[#allocation2 + $0x1c8] sm:$0xff] %vm478_vm1, %v401_v3 }
  0xe6   :  { %771 = vrot.lane.b32.xlu0 %v593_v11, %s10117_s14  ;;  %773 = vrot.lane.b32.xlu1 %v594_v54, %s10117_s14  ;;  %v597_v11 = vld [vmem:[%s17679_s0 + $0x2ba] sm:$0xff]  ;;  %v598_v54 = vld [vmem:[%s17679_s0 + $0x2c2] sm:$0xff] }
  0xe8   :  { %v403_v28 = vpop.permute.xlu0 %402  ;;  %v405_v29 = vpop.permute.xlu1 %404 }
  0xe9   :  { %537 = vst.msk [vmem:[#allocation2 + $0x1d0] sm:$0xff] %vm478_vm1, %v403_v28  ;;  %538 = vst.msk [vmem:[#allocation2 + $0x1d8] sm:$0xff] %vm478_vm1, %v405_v29 }
  0xea   :  { %775 = vrot.lane.b32.xlu0 %v595_v10, %s10117_s14  ;;  %777 = vrot.lane.b32.xlu1 %v596_v55, %s10117_s14  ;;  %v599_v10 = vld [vmem:[%s17679_s0 + $0x2d2] sm:$0xff]  ;;  %v600_v55 = vld [vmem:[%s17679_s0 + $0x2da] sm:$0xff] }
  0xec   :  { %v407_v2 = vpop.permute.xlu0 %406  ;;  %v409_v3 = vpop.permute.xlu1 %408 }
  0xed   :  { %539 = vst.msk [vmem:[#allocation2 + $0x1e0] sm:$0xff] %vm478_vm1, %v407_v2  ;;  %540 = vst.msk [vmem:[#allocation2 + $0x1e8] sm:$0xff] %vm478_vm1, %v409_v3 }
  0xee   :  { %779 = vrot.lane.b32.xlu0 %v597_v11, %s10117_s14  ;;  %781 = vrot.lane.b32.xlu1 %v598_v54, %s10117_s14  ;;  %v601_v11 = vld [vmem:[%s17679_s0 + $0x2ea] sm:$0xff]  ;;  %v602_v54 = vld [vmem:[%s17679_s0 + $0x2f2] sm:$0xff] }
  0xf0   :  { %v411_v28 = vpop.permute.xlu0 %410  ;;  %v413_v29 = vpop.permute.xlu1 %412 }
  0xf1   :  { %541 = vst.msk [vmem:[#allocation2 + $0x1f0] sm:$0xff] %vm478_vm1, %v411_v28  ;;  %542 = vst.msk [vmem:[#allocation2 + $0x1f8] sm:$0xff] %vm478_vm1, %v413_v29  ;;  %vm5807_vm1 = vcmask 261312  }
  0xf2   :  { %783 = vrot.lane.b32.xlu0 %v599_v10, %s10117_s14  ;;  %785 = vrot.lane.b32.xlu1 %v600_v55, %s10117_s14  ;;  %v603_v10 = vld [vmem:[%s17679_s0 + $0x302] sm:$0xff]  ;;  %v604_v55 = vld [vmem:[%s17679_s0 + $0x30a] sm:$0xff] }
  0xf4   :  { %v672_v2 = vpop.permute.xlu0 %671  ;;  %v674_v3 = vpop.permute.xlu1 %673 }
  0xf5   :  { %864 = vst.msk [vmem:[#allocation2] sm:$0xff] %vm863_vm2, %v672_v2  ;;  %865 = vst.msk [vmem:[#allocation2 + $0x8] sm:$0xff] %vm863_vm2, %v674_v3 }
  0xf6   :  { %787 = vrot.lane.b32.xlu0 %v601_v11, %s10117_s14  ;;  %789 = vrot.lane.b32.xlu1 %v602_v54, %s10117_s14  ;;  %v605_v11 = vld [vmem:[%s17679_s0 + $0x31a] sm:$0xff]  ;;  %v606_v54 = vld [vmem:[%s17679_s0 + $0x322] sm:$0xff] }
  0xf8   :  { %v676_v28 = vpop.permute.xlu0 %675  ;;  %v678_v29 = vpop.permute.xlu1 %677 }
  0xf9   :  { %866 = vst.msk [vmem:[#allocation2 + $0x10] sm:$0xff] %vm863_vm2, %v676_v28  ;;  %867 = vst.msk [vmem:[#allocation2 + $0x18] sm:$0xff] %vm863_vm2, %v678_v29 }
  0xfa   :  { %791 = vrot.lane.b32.xlu0 %v603_v10, %s10117_s14  ;;  %793 = vrot.lane.b32.xlu1 %v604_v55, %s10117_s14 }
  0xfc   :  { %v680_v2 = vpop.permute.xlu0 %679  ;;  %v682_v3 = vpop.permute.xlu1 %681 }
  0xfd   :  { %868 = vst.msk [vmem:[#allocation2 + $0x20] sm:$0xff] %vm863_vm2, %v680_v2  ;;  %869 = vst.msk [vmem:[#allocation2 + $0x28] sm:$0xff] %vm863_vm2, %v682_v3 }
  0xfe   :  { %795 = vrot.lane.b32.xlu0 %v605_v11, %s10117_s14  ;;  %797 = vrot.lane.b32.xlu1 %v606_v54, %s10117_s14 }
 0x100   :  { %v684_v10 = vpop.permute.xlu0 %683  ;;  %v686_v55 = vpop.permute.xlu1 %685 }
 0x101   :  { %870 = vst.msk [vmem:[#allocation2 + $0x30] sm:$0xff] %vm863_vm2, %v684_v10  ;;  %871 = vst.msk [vmem:[#allocation2 + $0x38] sm:$0xff] %vm863_vm2, %v686_v55 }
 0x102   :  { %1057 = vrot.lane.b32.xlu0 %v10228_v13, %s10118_s12  ;;  %1059 = vrot.lane.b32.xlu1 %v10246_v17, %s10118_s12 }
 0x104   :  { %v688_v28 = vpop.permute.xlu0 %687  ;;  %v690_v29 = vpop.permute.xlu1 %689 }
 0x105   :  { %872 = vst.msk [vmem:[#allocation2 + $0x40] sm:$0xff] %vm863_vm2, %v688_v28  ;;  %873 = vst.msk [vmem:[#allocation2 + $0x48] sm:$0xff] %vm863_vm2, %v690_v29 }
 0x106   :  { %1061 = vrot.lane.b32.xlu0 %v10253_v18, %s10118_s12  ;;  %1063 = vrot.lane.b32.xlu1 %v10258_v19, %s10118_s12 }
 0x108   :  { %v692_v11 = vpop.permute.xlu0 %691  ;;  %v694_v54 = vpop.permute.xlu1 %693 }
 0x109   :  { %874 = vst.msk [vmem:[#allocation2 + $0x50] sm:$0xff] %vm863_vm2, %v692_v11  ;;  %875 = vst.msk [vmem:[#allocation2 + $0x58] sm:$0xff] %vm863_vm2, %v694_v54  ;;  %v9252_v11 = vld [vmem:[%s17679_s0 + $0x330] sm:$0xff]  ;;  %v9253_v54 = vld [vmem:[%s17679_s0 + $0x338] sm:$0xff] }
 0x10a   :  { %1065 = vrot.lane.b32.xlu0 %v10269_v20, %s10118_s12  ;;  %1067 = vrot.lane.b32.xlu1 %v10282_v23, %s10118_s12 }
 0x10c   :  { %v696_v13 = vpop.permute.xlu0 %695  ;;  %v698_v17 = vpop.permute.xlu1 %697 }
 0x10d   :  { %876 = vst.msk [vmem:[#allocation2 + $0x60] sm:$0xff] %vm863_vm2, %v696_v13  ;;  %877 = vst.msk [vmem:[#allocation2 + $0x68] sm:$0xff] %vm863_vm2, %v698_v17 }
 0x10e   :  { %1069 = vrot.lane.b32.xlu0 %v10289_v24, %s10118_s12  ;;  %1071 = vrot.lane.b32.xlu1 %v10294_v25, %s10118_s12 }
 0x110   :  { %v700_v18 = vpop.permute.xlu0 %699  ;;  %v702_v19 = vpop.permute.xlu1 %701 }
 0x111   :  { %878 = vst.msk [vmem:[#allocation2 + $0x70] sm:$0xff] %vm863_vm2, %v700_v18  ;;  %879 = vst.msk [vmem:[#allocation2 + $0x78] sm:$0xff] %vm863_vm2, %v702_v19  ;;  %v9254_v18 = vld [vmem:[%s17679_s0 + $0x19] sm:$0xff]  ;;  %v9255_v19 = vld [vmem:[%s17679_s0 + $0x21] sm:$0xff] }
 0x112   :  { %1073 = vrot.lane.b32.xlu0 %v10303_v26, %s10118_s12  ;;  %1075 = vrot.lane.b32.xlu1 %v10308_v27, %s10118_s12 }
 0x114   :  { %v704_v20 = vpop.permute.xlu0 %703  ;;  %v706_v23 = vpop.permute.xlu1 %705 }
 0x115   :  { %880 = vst.msk [vmem:[#allocation2 + $0x80] sm:$0xff] %vm863_vm2, %v704_v20  ;;  %881 = vst.msk [vmem:[#allocation2 + $0x88] sm:$0xff] %vm863_vm2, %v706_v23 }
 0x116   :  { %1077 = vrot.lane.b32.xlu0 %v10325_v30, %s10118_s12  ;;  %1079 = vrot.lane.b32.xlu1 %v10330_v31, %s10118_s12 }
 0x118   :  { %v708_v24 = vpop.permute.xlu0 %707  ;;  %v710_v25 = vpop.permute.xlu1 %709 }
 0x119   :  { %882 = vst.msk [vmem:[#allocation2 + $0x90] sm:$0xff] %vm863_vm2, %v708_v24  ;;  %883 = vst.msk [vmem:[#allocation2 + $0x98] sm:$0xff] %vm863_vm2, %v710_v25  ;;  %v9256_v24 = vld [vmem:[%s17679_s0 + $0x31] sm:$0xff]  ;;  %v9257_v25 = vld [vmem:[%s17679_s0 + $0x39] sm:$0xff] }
 0x11a   :  { %1081 = vrot.lane.b32.xlu0 %v10339_v32, %s10118_s12  ;;  %1083 = vrot.lane.b32.xlu1 %v10344_v33, %s10118_s12 }
 0x11c   :  { %v712_v26 = vpop.permute.xlu0 %711  ;;  %v714_v27 = vpop.permute.xlu1 %713 }
 0x11d   :  { %884 = vst.msk [vmem:[#allocation2 + $0xa0] sm:$0xff] %vm863_vm2, %v712_v26  ;;  %885 = vst.msk [vmem:[#allocation2 + $0xa8] sm:$0xff] %vm863_vm2, %v714_v27 }
 0x11e   :  { %1085 = vrot.lane.b32.xlu0 %v10353_v34, %s10118_s12  ;;  %1087 = vrot.lane.b32.xlu1 %v10365_v36, %s10118_s12 }
 0x120   :  { %v716_v30 = vpop.permute.xlu0 %715  ;;  %v718_v31 = vpop.permute.xlu1 %717 }
 0x121   :  { %886 = vst.msk [vmem:[#allocation2 + $0xb0] sm:$0xff] %vm863_vm2, %v716_v30  ;;  %887 = vst.msk [vmem:[#allocation2 + $0xb8] sm:$0xff] %vm863_vm2, %v718_v31  ;;  %v9258_v30 = vld [vmem:[%s17679_s0 + $0x49] sm:$0xff]  ;;  %v9259_v31 = vld [vmem:[%s17679_s0 + $0x51] sm:$0xff] }
 0x122   :  { %1089 = vrot.lane.b32.xlu0 %v10375_v38, %s10118_s12  ;;  %1091 = vrot.lane.b32.xlu1 %v10380_v39, %s10118_s12 }
 0x124   :  { %v720_v32 = vpop.permute.xlu0 %719  ;;  %v722_v33 = vpop.permute.xlu1 %721 }
 0x125   :  { %888 = vst.msk [vmem:[#allocation2 + $0xc0] sm:$0xff] %vm863_vm2, %v720_v32  ;;  %889 = vst.msk [vmem:[#allocation2 + $0xc8] sm:$0xff] %vm863_vm2, %v722_v33 }
 0x126   :  { %1093 = vrot.lane.b32.xlu0 %v10389_v40, %s10118_s12  ;;  %1095 = vrot.lane.b32.xlu1 %v10396_v41, %s10118_s12 }
 0x128   :  { %v724_v34 = vpop.permute.xlu0 %723  ;;  %v726_v36 = vpop.permute.xlu1 %725 }
 0x129   :  { %890 = vst.msk [vmem:[#allocation2 + $0xd0] sm:$0xff] %vm863_vm2, %v724_v34  ;;  %891 = vst.msk [vmem:[#allocation2 + $0xd8] sm:$0xff] %vm863_vm2, %v726_v36  ;;  %v9260_v34 = vld [vmem:[%s17679_s0 + $0x61] sm:$0xff]  ;;  %v9261_v36 = vld [vmem:[%s17679_s0 + $0x69] sm:$0xff] }
 0x12a   :  { %1097 = vrot.lane.b32.xlu0 %v10405_v42, %s10118_s12  ;;  %1099 = vrot.lane.b32.xlu1 %v10410_v43, %s10118_s12 }
 0x12c   :  { %v728_v38 = vpop.permute.xlu0 %727  ;;  %v730_v39 = vpop.permute.xlu1 %729 }
 0x12d   :  { %892 = vst.msk [vmem:[#allocation2 + $0xe0] sm:$0xff] %vm863_vm2, %v728_v38  ;;  %893 = vst.msk [vmem:[#allocation2 + $0xe8] sm:$0xff] %vm863_vm2, %v730_v39 }
 0x12e   :  { %1101 = vrot.lane.b32.xlu0 %v10425_v46, %s10118_s12  ;;  %1103 = vrot.lane.b32.xlu1 %v10432_v47, %s10118_s12 }
 0x130   :  { %v732_v40 = vpop.permute.xlu0 %731  ;;  %v734_v41 = vpop.permute.xlu1 %733 }
 0x131   :  { %894 = vst.msk [vmem:[#allocation2 + $0xf0] sm:$0xff] %vm863_vm2, %v732_v40  ;;  %895 = vst.msk [vmem:[#allocation2 + $0xf8] sm:$0xff] %vm863_vm2, %v734_v41  ;;  %v9262_v40 = vld [vmem:[%s17679_s0 + $0x79] sm:$0xff]  ;;  %v9263_v41 = vld [vmem:[%s17679_s0 + $0x81] sm:$0xff] }
 0x132   :  { %1105 = vrot.lane.b32.xlu0 %v10439_v48, %s10118_s12  ;;  %1107 = vrot.lane.b32.xlu1 %v10444_v49, %s10118_s12  ;;  %v9220_v48 = vld [vmem:[%s17679_s0 + $0x180] sm:$0xff]  ;;  %v9221_v49 = vld [vmem:[%s17679_s0 + $0x188] sm:$0xff] }
 0x134   :  { %v736_v42 = vpop.permute.xlu0 %735  ;;  %v738_v43 = vpop.permute.xlu1 %737 }
 0x135   :  { %896 = vst.msk [vmem:[#allocation2 + $0x100] sm:$0xff] %vm863_vm2, %v736_v42  ;;  %897 = vst.msk [vmem:[#allocation2 + $0x108] sm:$0xff] %vm863_vm2, %v738_v43 }
 0x136   :  { %1109 = vrot.lane.b32.xlu0 %v10461_v52, %s10118_s12  ;;  %1111 = vrot.lane.b32.xlu1 %v10468_v53, %s10118_s12 }
 0x138   :  { %v740_v46 = vpop.permute.xlu0 %739  ;;  %v742_v47 = vpop.permute.xlu1 %741 }
 0x139   :  { %898 = vst.msk [vmem:[#allocation2 + $0x110] sm:$0xff] %vm863_vm2, %v740_v46  ;;  %899 = vst.msk [vmem:[#allocation2 + $0x118] sm:$0xff] %vm863_vm2, %v742_v47  ;;  %v9264_v46 = vld [vmem:[%s17679_s0 + $0x91] sm:$0xff]  ;;  %v9265_v47 = vld [vmem:[%s17679_s0 + $0x99] sm:$0xff] }
 0x13a   :  { %1113 = vrot.lane.b32.xlu0 %v10483_v56, %s10118_s12  ;;  %1115 = vrot.lane.b32.xlu1 %v10490_v57, %s10118_s12 }
 0x13c   :  { %v744_v52 = vpop.permute.xlu0 %743  ;;  %v746_v53 = vpop.permute.xlu1 %745 }
 0x13d   :  { %900 = vst.msk [vmem:[#allocation2 + $0x120] sm:$0xff] %vm863_vm2, %v744_v52  ;;  %901 = vst.msk [vmem:[#allocation2 + $0x128] sm:$0xff] %vm863_vm2, %v746_v53  ;;  %v9266_v52 = vld [vmem:[%s17679_s0 + $0xa9] sm:$0xff]  ;;  %v9267_v53 = vld [vmem:[%s17679_s0 + $0xb1] sm:$0xff] }
 0x13e   :  { %1117 = vrot.lane.b32.xlu0 %v9220_v48, %s10118_s12  ;;  %1119 = vrot.lane.b32.xlu1 %v9221_v49, %s10118_s12 }
 0x140   :  { %v748_v56 = vpop.permute.xlu0 %747  ;;  %v750_v57 = vpop.permute.xlu1 %749 }
 0x141   :  { %902 = vst.msk [vmem:[#allocation2 + $0x130] sm:$0xff] %vm863_vm2, %v748_v56  ;;  %903 = vst.msk [vmem:[#allocation2 + $0x138] sm:$0xff] %vm863_vm2, %v750_v57 }
 0x142   :  { %1121 = vrot.lane.b32.xlu0 %v10521_v0, %s10118_s12  ;;  %1123 = vrot.lane.b32.xlu1 %v10528_v1, %s10118_s12 }
 0x144   :  { %v752_v2 = vpop.permute.xlu0 %751  ;;  %v754_v3 = vpop.permute.xlu1 %753 }
 0x145   :  { %904 = vst.msk [vmem:[#allocation2 + $0x140] sm:$0xff] %vm863_vm2, %v752_v2  ;;  %905 = vst.msk [vmem:[#allocation2 + $0x148] sm:$0xff] %vm863_vm2, %v754_v3  ;;  %v9268_v2 = vld [vmem:[%s17679_s0 + $0xc1] sm:$0xff]  ;;  %v9269_v3 = vld [vmem:[%s17679_s0 + $0xc9] sm:$0xff] }
 0x146   :  { %1125 = vrot.lane.b32.xlu0 %v10543_v4, %s10118_s12  ;;  %1127 = vrot.lane.b32.xlu1 %v10550_v5, %s10118_s12 }
 0x148   :  { %v756_v10 = vpop.permute.xlu0 %755  ;;  %v758_v55 = vpop.permute.xlu1 %757 }
 0x149   :  { %906 = vst.msk [vmem:[#allocation2 + $0x150] sm:$0xff] %vm863_vm2, %v756_v10  ;;  %907 = vst.msk [vmem:[#allocation2 + $0x158] sm:$0xff] %vm863_vm2, %v758_v55 }
 0x14a   :  { %1129 = vrot.lane.b32.xlu0 %v10565_v8, %s10118_s12  ;;  %1131 = vrot.lane.b32.xlu1 %v10572_v9, %s10118_s12 }
 0x14c   :  { %v760_v0 = vpop.permute.xlu0 %759  ;;  %v762_v1 = vpop.permute.xlu1 %761 }
 0x14d   :  { %908 = vst.msk [vmem:[#allocation2 + $0x160] sm:$0xff] %vm863_vm2, %v760_v0  ;;  %909 = vst.msk [vmem:[#allocation2 + $0x168] sm:$0xff] %vm863_vm2, %v762_v1  ;;  %v9270_v0 = vld [vmem:[%s17679_s0 + $0xd9] sm:$0xff]  ;;  %v9271_v1 = vld [vmem:[%s17679_s0 + $0xe1] sm:$0xff] }
 0x14e   :  { %1133 = vrot.lane.b32.xlu0 %v10587_v12, %s10118_s12  ;;  %1135 = vrot.lane.b32.xlu1 %v10594_v14, %s10118_s12 }
 0x150   :  { %v764_v4 = vpop.permute.xlu0 %763  ;;  %v766_v5 = vpop.permute.xlu1 %765 }
 0x151   :  { %910 = vst.msk [vmem:[#allocation2 + $0x170] sm:$0xff] %vm863_vm2, %v764_v4  ;;  %911 = vst.msk [vmem:[#allocation2 + $0x178] sm:$0xff] %vm863_vm2, %v766_v5 }
 0x152   :  { %1137 = vrot.lane.b32.xlu0 %v10609_v21, %s10118_s12  ;;  %1139 = vrot.lane.b32.xlu1 %v10616_v22, %s10118_s12 }
 0x154   :  { %v768_v8 = vpop.permute.xlu0 %767  ;;  %v770_v9 = vpop.permute.xlu1 %769 }
 0x155   :  { %912 = vst.msk [vmem:[#allocation2 + $0x180] sm:$0xff] %vm863_vm2, %v768_v8  ;;  %913 = vst.msk [vmem:[#allocation2 + $0x188] sm:$0xff] %vm863_vm2, %v770_v9  ;;  %v9272_v8 = vld [vmem:[%s17679_s0 + $0xf1] sm:$0xff]  ;;  %v9273_v9 = vld [vmem:[%s17679_s0 + $0xf9] sm:$0xff] }
 0x156   :  { %1141 = vrot.lane.b32.xlu0 %v10631_v35, %s10118_s12  ;;  %1143 = vrot.lane.b32.xlu1 %v10638_v37, %s10118_s12 }
 0x158   :  { %v772_v12 = vpop.permute.xlu0 %771  ;;  %v774_v14 = vpop.permute.xlu1 %773 }
 0x159   :  { %914 = vst.msk [vmem:[#allocation2 + $0x190] sm:$0xff] %vm863_vm2, %v772_v12  ;;  %915 = vst.msk [vmem:[#allocation2 + $0x198] sm:$0xff] %vm863_vm2, %v774_v14 }
 0x15a   :  { %1145 = vrot.lane.b32.xlu0 %v10653_v50, %s10118_s12  ;;  %1147 = vrot.lane.b32.xlu1 %v10660_v51, %s10118_s12 }
 0x15c   :  { %v776_v21 = vpop.permute.xlu0 %775  ;;  %v778_v22 = vpop.permute.xlu1 %777 }
 0x15d   :  { %916 = vst.msk [vmem:[#allocation2 + $0x1a0] sm:$0xff] %vm863_vm2, %v776_v21  ;;  %917 = vst.msk [vmem:[#allocation2 + $0x1a8] sm:$0xff] %vm863_vm2, %v778_v22  ;;  %v9274_v21 = vld [vmem:[%s17679_s0 + $0x109] sm:$0xff]  ;;  %v9275_v22 = vld [vmem:[%s17679_s0 + $0x111] sm:$0xff] }
 0x15e   :  { %1149 = vrot.lane.b32.xlu0 %v10675_v58, %s10118_s12  ;;  %1151 = vrot.lane.b32.xlu1 %v10682_v59, %s10118_s12 }
 0x160   :  { %v780_v35 = vpop.permute.xlu0 %779  ;;  %v782_v37 = vpop.permute.xlu1 %781 }
 0x161   :  { %918 = vst.msk [vmem:[#allocation2 + $0x1b0] sm:$0xff] %vm863_vm2, %v780_v35  ;;  %919 = vst.msk [vmem:[#allocation2 + $0x1b8] sm:$0xff] %vm863_vm2, %v782_v37 }
 0x162   :  { %1153 = vrot.lane.b32.xlu0 %v10697_v62, %s10118_s12  ;;  %1155 = vrot.lane.b32.xlu1 %v10704_v63, %s10118_s12 }
 0x164   :  { %v784_v50 = vpop.permute.xlu0 %783  ;;  %v786_v51 = vpop.permute.xlu1 %785 }
 0x165   :  { %920 = vst.msk [vmem:[#allocation2 + $0x1c0] sm:$0xff] %vm863_vm2, %v784_v50  ;;  %921 = vst.msk [vmem:[#allocation2 + $0x1c8] sm:$0xff] %vm863_vm2, %v786_v51  ;;  %v9276_v50 = vld [vmem:[%s17679_s0 + $0x121] sm:$0xff]  ;;  %v9277_v51 = vld [vmem:[%s17679_s0 + $0x129] sm:$0xff] }
 0x166   :  { %1157 = vrot.lane.b32.xlu0 %v10719_v6, %s10118_s12  ;;  %1159 = vrot.lane.b32.xlu1 %v10726_v7, %s10118_s12 }
 0x168   :  { %v788_v58 = vpop.permute.xlu0 %787  ;;  %v790_v59 = vpop.permute.xlu1 %789 }
 0x169   :  { %922 = vst.msk [vmem:[#allocation2 + $0x1d0] sm:$0xff] %vm863_vm2, %v788_v58  ;;  %923 = vst.msk [vmem:[#allocation2 + $0x1d8] sm:$0xff] %vm863_vm2, %v790_v59 }
 0x16a   :  { %1161 = vrot.lane.b32.xlu0 %v10741_v15, %s10118_s12  ;;  %1163 = vrot.lane.b32.xlu1 %v10748_v16, %s10118_s12 }
 0x16c   :  { %v792_v62 = vpop.permute.xlu0 %791  ;;  %v794_v63 = vpop.permute.xlu1 %793 }
 0x16d   :  { %924 = vst.msk [vmem:[#allocation2 + $0x1e0] sm:$0xff] %vm863_vm2, %v792_v62  ;;  %925 = vst.msk [vmem:[#allocation2 + $0x1e8] sm:$0xff] %vm863_vm2, %v794_v63  ;;  %v9278_v62 = vld [vmem:[%s17679_s0 + $0x139] sm:$0xff]  ;;  %v9279_v63 = vld [vmem:[%s17679_s0 + $0x141] sm:$0xff] }
 0x16e   :  { %1165 = vrot.lane.b32.xlu0 %v10763_v44, %s10118_s12  ;;  %1167 = vrot.lane.b32.xlu1 %v10770_v45, %s10118_s12  ;;  %v17752_v44 = vld [vmem:[#allocation4_spill] sm:$0xff]  ;;  %v17753_v45 = vld [vmem:[#allocation5_spill] sm:$0xff] }
 0x170   :  { %v796_v6 = vpop.permute.xlu0 %795  ;;  %v798_v7 = vpop.permute.xlu1 %797 }
 0x171   :  { %926 = vst.msk [vmem:[#allocation2 + $0x1f0] sm:$0xff] %vm863_vm2, %v796_v6  ;;  %927 = vst.msk [vmem:[#allocation2 + $0x1f8] sm:$0xff] %vm863_vm2, %v798_v7  ;;  %vm6192_vm2 = vcmask 326912  }
 0x172   :  { %1169 = vrot.lane.b32.xlu0 %v10785_v60, %s10118_s12  ;;  %1171 = vrot.lane.b32.xlu1 %v10792_v61, %s10118_s12  ;;  %v17754_v60 = vld [vmem:[#allocation6_spill] sm:$0xff]  ;;  %v17755_v61 = vld [vmem:[#allocation7_spill] sm:$0xff] }
 0x174   :  { %v1058_v15 = vpop.permute.xlu0 %1057  ;;  %v1060_v16 = vpop.permute.xlu1 %1059 }
 0x175   :  { %1250 = vst.msk [vmem:[#allocation2] sm:$0xff] %vm1249_vm3, %v1058_v15  ;;  %1251 = vst.msk [vmem:[#allocation2 + $0x8] sm:$0xff] %vm1249_vm3, %v1060_v16  ;;  %v9280_v15 = vld [vmem:[%s17679_s0 + $0x151] sm:$0xff]  ;;  %v9281_v16 = vld [vmem:[%s17679_s0 + $0x159] sm:$0xff] }
 0x176   :  { %1173 = vrot.lane.b32.xlu0 %v17752_v44, %s10118_s12  ;;  %1175 = vrot.lane.b32.xlu1 %v17753_v45, %s10118_s12 }
 0x178   :  { %v1062_v28 = vpop.permute.xlu0 %1061  ;;  %v1064_v29 = vpop.permute.xlu1 %1063 }
 0x179   :  { %1252 = vst.msk [vmem:[#allocation2 + $0x10] sm:$0xff] %vm1249_vm3, %v1062_v28  ;;  %1253 = vst.msk [vmem:[#allocation2 + $0x18] sm:$0xff] %vm1249_vm3, %v1064_v29  ;;  %v9282_v28 = vld [vmem:[%s17679_s0 + $0x169] sm:$0xff]  ;;  %v9283_v29 = vld [vmem:[%s17679_s0 + $0x171] sm:$0xff] }
 0x17a   :  { %1177 = vrot.lane.b32.xlu0 %v17754_v60, %s10118_s12  ;;  %1179 = vrot.lane.b32.xlu1 %v17755_v61, %s10118_s12 }
 0x17c   :  { %v1066_v13 = vpop.permute.xlu0 %1065  ;;  %v1068_v17 = vpop.permute.xlu1 %1067 }
 0x17d   :  { %1254 = vst.msk [vmem:[#allocation2 + $0x20] sm:$0xff] %vm1249_vm3, %v1066_v13  ;;  %1255 = vst.msk [vmem:[#allocation2 + $0x28] sm:$0xff] %vm1249_vm3, %v1068_v17 }
 0x17e   :  { %1181 = vrot.lane.b32.xlu0 %v9252_v11, %s10118_s12  ;;  %1183 = vrot.lane.b32.xlu1 %v9253_v54, %s10118_s12  ;;  %v9284_v11 = vld [vmem:[%s17679_s0 + $0x181] sm:$0xff]  ;;  %v9285_v54 = vld [vmem:[%s17679_s0 + $0x189] sm:$0xff]  ;;  %s10126_s12 = smov 48  }
 0x180   :  { %v1070_v20 = vpop.permute.xlu0 %1069  ;;  %v1072_v23 = vpop.permute.xlu1 %1071 }
 0x181   :  { %1256 = vst.msk [vmem:[#allocation2 + $0x30] sm:$0xff] %vm1249_vm3, %v1070_v20  ;;  %1257 = vst.msk [vmem:[#allocation2 + $0x38] sm:$0xff] %vm1249_vm3, %v1072_v23 }
 0x182   :  { %1442 = vrot.lane.b32.xlu0 %v9254_v18, %s10119_s25  ;;  %1444 = vrot.lane.b32.xlu1 %v9255_v19, %s10119_s25  ;;  %v9286_v18 = vld [vmem:[%s17679_s0 + $0x1c9] sm:$0xff]  ;;  %v9287_v19 = vld [vmem:[%s17679_s0 + $0x1d1] sm:$0xff] }
 0x184   :  { %v1074_v26 = vpop.permute.xlu0 %1073  ;;  %v1076_v27 = vpop.permute.xlu1 %1075 }
 0x185   :  { %1258 = vst.msk [vmem:[#allocation2 + $0x40] sm:$0xff] %vm1249_vm3, %v1074_v26  ;;  %1259 = vst.msk [vmem:[#allocation2 + $0x48] sm:$0xff] %vm1249_vm3, %v1076_v27 }
 0x186   :  { %1446 = vrot.lane.b32.xlu0 %v9256_v24, %s10119_s25  ;;  %1448 = vrot.lane.b32.xlu1 %v9257_v25, %s10119_s25  ;;  %v9288_v24 = vld [vmem:[%s17679_s0 + $0x1e1] sm:$0xff]  ;;  %v9289_v25 = vld [vmem:[%s17679_s0 + $0x1e9] sm:$0xff] }
 0x188   :  { %v1078_v32 = vpop.permute.xlu0 %1077  ;;  %v1080_v33 = vpop.permute.xlu1 %1079 }
 0x189   :  { %1260 = vst.msk [vmem:[#allocation2 + $0x50] sm:$0xff] %vm1249_vm3, %v1078_v32  ;;  %1261 = vst.msk [vmem:[#allocation2 + $0x58] sm:$0xff] %vm1249_vm3, %v1080_v33 }
 0x18a   :  { %1450 = vrot.lane.b32.xlu0 %v9258_v30, %s10119_s25  ;;  %1452 = vrot.lane.b32.xlu1 %v9259_v31, %s10119_s25  ;;  %v9290_v30 = vld [vmem:[%s17679_s0 + $0x1f9] sm:$0xff]  ;;  %v9291_v31 = vld [vmem:[%s17679_s0 + $0x201] sm:$0xff] }
 0x18c   :  { %v1082_v38 = vpop.permute.xlu0 %1081  ;;  %v1084_v39 = vpop.permute.xlu1 %1083 }
 0x18d   :  { %1262 = vst.msk [vmem:[#allocation2 + $0x60] sm:$0xff] %vm1249_vm3, %v1082_v38  ;;  %1263 = vst.msk [vmem:[#allocation2 + $0x68] sm:$0xff] %vm1249_vm3, %v1084_v39 }
 0x18e   :  { %1454 = vrot.lane.b32.xlu0 %v9260_v34, %s10119_s25  ;;  %1456 = vrot.lane.b32.xlu1 %v9261_v36, %s10119_s25  ;;  %v9292_v34 = vld [vmem:[%s17679_s0 + $0x211] sm:$0xff]  ;;  %v9293_v36 = vld [vmem:[%s17679_s0 + $0x219] sm:$0xff] }
 0x190   :  { %v1086_v42 = vpop.permute.xlu0 %1085  ;;  %v1088_v43 = vpop.permute.xlu1 %1087 }
 0x191   :  { %1264 = vst.msk [vmem:[#allocation2 + $0x70] sm:$0xff] %vm1249_vm3, %v1086_v42  ;;  %1265 = vst.msk [vmem:[#allocation2 + $0x78] sm:$0xff] %vm1249_vm3, %v1088_v43 }
 0x192   :  { %1458 = vrot.lane.b32.xlu0 %v9262_v40, %s10119_s25  ;;  %1460 = vrot.lane.b32.xlu1 %v9263_v41, %s10119_s25  ;;  %v9294_v40 = vld [vmem:[%s17679_s0 + $0x229] sm:$0xff]  ;;  %v9295_v41 = vld [vmem:[%s17679_s0 + $0x231] sm:$0xff] }
 0x194   :  { %v1090_v48 = vpop.permute.xlu0 %1089  ;;  %v1092_v49 = vpop.permute.xlu1 %1091 }
 0x195   :  { %1266 = vst.msk [vmem:[#allocation2 + $0x80] sm:$0xff] %vm1249_vm3, %v1090_v48  ;;  %1267 = vst.msk [vmem:[#allocation2 + $0x88] sm:$0xff] %vm1249_vm3, %v1092_v49 }
 0x196   :  { %1462 = vrot.lane.b32.xlu0 %v9264_v46, %s10119_s25  ;;  %1464 = vrot.lane.b32.xlu1 %v9265_v47, %s10119_s25  ;;  %v9296_v46 = vld [vmem:[%s17679_s0 + $0x241] sm:$0xff]  ;;  %v9297_v47 = vld [vmem:[%s17679_s0 + $0x249] sm:$0xff] }
 0x198   :  { %v1094_v56 = vpop.permute.xlu0 %1093  ;;  %v1096_v57 = vpop.permute.xlu1 %1095 }
 0x199   :  { %1268 = vst.msk [vmem:[#allocation2 + $0x90] sm:$0xff] %vm1249_vm3, %v1094_v56  ;;  %1269 = vst.msk [vmem:[#allocation2 + $0x98] sm:$0xff] %vm1249_vm3, %v1096_v57 }
 0x19a   :  { %1466 = vrot.lane.b32.xlu0 %v9266_v52, %s10119_s25  ;;  %1468 = vrot.lane.b32.xlu1 %v9267_v53, %s10119_s25  ;;  %v9298_v52 = vld [vmem:[%s17679_s0 + $0x259] sm:$0xff]  ;;  %v9299_v53 = vld [vmem:[%s17679_s0 + $0x261] sm:$0xff] }
 0x19c   :  { %v1098_v10 = vpop.permute.xlu0 %1097  ;;  %v1100_v55 = vpop.permute.xlu1 %1099 }
 0x19d   :  { %1270 = vst.msk [vmem:[#allocation2 + $0xa0] sm:$0xff] %vm1249_vm3, %v1098_v10  ;;  %1271 = vst.msk [vmem:[#allocation2 + $0xa8] sm:$0xff] %vm1249_vm3, %v1100_v55 }
 0x19e   :  { %1470 = vrot.lane.b32.xlu0 %v9268_v2, %s10119_s25  ;;  %1472 = vrot.lane.b32.xlu1 %v9269_v3, %s10119_s25  ;;  %v9300_v2 = vld [vmem:[%s17679_s0 + $0x271] sm:$0xff]  ;;  %v9301_v3 = vld [vmem:[%s17679_s0 + $0x279] sm:$0xff] }
 0x1a0   :  { %v1102_v4 = vpop.permute.xlu0 %1101  ;;  %v1104_v5 = vpop.permute.xlu1 %1103 }
 0x1a1   :  { %1272 = vst.msk [vmem:[#allocation2 + $0xb0] sm:$0xff] %vm1249_vm3, %v1102_v4  ;;  %1273 = vst.msk [vmem:[#allocation2 + $0xb8] sm:$0xff] %vm1249_vm3, %v1104_v5 }
 0x1a2   :  { %1474 = vrot.lane.b32.xlu0 %v9270_v0, %s10119_s25  ;;  %1476 = vrot.lane.b32.xlu1 %v9271_v1, %s10119_s25  ;;  %v9302_v0 = vld [vmem:[%s17679_s0 + $0x289] sm:$0xff]  ;;  %v9303_v1 = vld [vmem:[%s17679_s0 + $0x291] sm:$0xff] }
 0x1a4   :  { %v1106_v12 = vpop.permute.xlu0 %1105  ;;  %v1108_v14 = vpop.permute.xlu1 %1107 }
 0x1a5   :  { %1274 = vst.msk [vmem:[#allocation2 + $0xc0] sm:$0xff] %vm1249_vm3, %v1106_v12  ;;  %1275 = vst.msk [vmem:[#allocation2 + $0xc8] sm:$0xff] %vm1249_vm3, %v1108_v14 }
 0x1a6   :  { %1478 = vrot.lane.b32.xlu0 %v9272_v8, %s10119_s25  ;;  %1480 = vrot.lane.b32.xlu1 %v9273_v9, %s10119_s25  ;;  %v9304_v8 = vld [vmem:[%s17679_s0 + $0x2a1] sm:$0xff]  ;;  %v9305_v9 = vld [vmem:[%s17679_s0 + $0x2a9] sm:$0xff] }
 0x1a8   :  { %v1110_v35 = vpop.permute.xlu0 %1109  ;;  %v1112_v37 = vpop.permute.xlu1 %1111 }
 0x1a9   :  { %1276 = vst.msk [vmem:[#allocation2 + $0xd0] sm:$0xff] %vm1249_vm3, %v1110_v35  ;;  %1277 = vst.msk [vmem:[#allocation2 + $0xd8] sm:$0xff] %vm1249_vm3, %v1112_v37 }
 0x1aa   :  { %1482 = vrot.lane.b32.xlu0 %v9274_v21, %s10119_s25  ;;  %1484 = vrot.lane.b32.xlu1 %v9275_v22, %s10119_s25  ;;  %v9306_v21 = vld [vmem:[%s17679_s0 + $0x2b9] sm:$0xff]  ;;  %v9307_v22 = vld [vmem:[%s17679_s0 + $0x2c1] sm:$0xff] }
 0x1ac   :  { %v1114_v58 = vpop.permute.xlu0 %1113  ;;  %v1116_v59 = vpop.permute.xlu1 %1115 }
 0x1ad   :  { %1278 = vst.msk [vmem:[#allocation2 + $0xe0] sm:$0xff] %vm1249_vm3, %v1114_v58  ;;  %1279 = vst.msk [vmem:[#allocation2 + $0xe8] sm:$0xff] %vm1249_vm3, %v1116_v59 }
 0x1ae   :  { %1486 = vrot.lane.b32.xlu0 %v9276_v50, %s10119_s25  ;;  %1488 = vrot.lane.b32.xlu1 %v9277_v51, %s10119_s25  ;;  %v9308_v50 = vld [vmem:[%s17679_s0 + $0x2d1] sm:$0xff]  ;;  %v9309_v51 = vld [vmem:[%s17679_s0 + $0x2d9] sm:$0xff] }
 0x1b0   :  { %v1118_v6 = vpop.permute.xlu0 %1117  ;;  %v1120_v7 = vpop.permute.xlu1 %1119 }
 0x1b1   :  { %1280 = vst.msk [vmem:[#allocation2 + $0xf0] sm:$0xff] %vm1249_vm3, %v1118_v6  ;;  %1281 = vst.msk [vmem:[#allocation2 + $0xf8] sm:$0xff] %vm1249_vm3, %v1120_v7 }
 0x1b2   :  { %1490 = vrot.lane.b32.xlu0 %v9278_v62, %s10119_s25  ;;  %1492 = vrot.lane.b32.xlu1 %v9279_v63, %s10119_s25  ;;  %v9310_v62 = vld [vmem:[%s17679_s0 + $0x2e9] sm:$0xff]  ;;  %v9311_v63 = vld [vmem:[%s17679_s0 + $0x2f1] sm:$0xff] }
 0x1b4   :  { %v1122_v44 = vpop.permute.xlu0 %1121  ;;  %v1124_v45 = vpop.permute.xlu1 %1123 }
 0x1b5   :  { %1282 = vst.msk [vmem:[#allocation2 + $0x100] sm:$0xff] %vm1249_vm3, %v1122_v44  ;;  %1283 = vst.msk [vmem:[#allocation2 + $0x108] sm:$0xff] %vm1249_vm3, %v1124_v45 }
 0x1b6   :  { %1494 = vrot.lane.b32.xlu0 %v9280_v15, %s10119_s25  ;;  %1496 = vrot.lane.b32.xlu1 %v9281_v16, %s10119_s25  ;;  %v9312_v15 = vld [vmem:[%s17679_s0 + $0x301] sm:$0xff]  ;;  %v9313_v16 = vld [vmem:[%s17679_s0 + $0x309] sm:$0xff] }
 0x1b8   :  { %v1126_v60 = vpop.permute.xlu0 %1125  ;;  %v1128_v61 = vpop.permute.xlu1 %1127 }
 0x1b9   :  { %1284 = vst.msk [vmem:[#allocation2 + $0x110] sm:$0xff] %vm1249_vm3, %v1126_v60  ;;  %1285 = vst.msk [vmem:[#allocation2 + $0x118] sm:$0xff] %vm1249_vm3, %v1128_v61 }
 0x1ba   :  { %1498 = vrot.lane.b32.xlu0 %v9282_v28, %s10119_s25  ;;  %1500 = vrot.lane.b32.xlu1 %v9283_v29, %s10119_s25  ;;  %v9314_v28 = vld [vmem:[%s17679_s0 + $0x319] sm:$0xff]  ;;  %v9315_v29 = vld [vmem:[%s17679_s0 + $0x321] sm:$0xff] }
 0x1bc   :  { %v1130_v13 = vpop.permute.xlu0 %1129  ;;  %v1132_v17 = vpop.permute.xlu1 %1131 }
 0x1bd   :  { %1286 = vst.msk [vmem:[#allocation2 + $0x120] sm:$0xff] %vm1249_vm3, %v1130_v13  ;;  %1287 = vst.msk [vmem:[#allocation2 + $0x128] sm:$0xff] %vm1249_vm3, %v1132_v17 }
 0x1be   :  { %1502 = vrot.lane.b32.xlu0 %v9284_v11, %s10119_s25  ;;  %1504 = vrot.lane.b32.xlu1 %v9285_v54, %s10119_s25  ;;  %v9316_v11 = vld [vmem:[%s17679_s0 + $0x331] sm:$0xff]  ;;  %v9317_v54 = vld [vmem:[%s17679_s0 + $0x339] sm:$0xff] }
 0x1c0   :  { %v1134_v20 = vpop.permute.xlu0 %1133  ;;  %v1136_v23 = vpop.permute.xlu1 %1135 }
 0x1c1   :  { %1288 = vst.msk [vmem:[#allocation2 + $0x130] sm:$0xff] %vm1249_vm3, %v1134_v20  ;;  %1289 = vst.msk [vmem:[#allocation2 + $0x138] sm:$0xff] %vm1249_vm3, %v1136_v23 }
 0x1c2   :  { %1506 = vrot.lane.b32.xlu0 %v9286_v18, %s10119_s25  ;;  %1508 = vrot.lane.b32.xlu1 %v9287_v19, %s10119_s25  ;;  %v9318_v18 = vld [vmem:[%s17679_s0 + $0x1a] sm:$0xff]  ;;  %v9319_v19 = vld [vmem:[%s17679_s0 + $0x22] sm:$0xff] }
 0x1c4   :  { %v1138_v26 = vpop.permute.xlu0 %1137  ;;  %v1140_v27 = vpop.permute.xlu1 %1139 }
 0x1c5   :  { %1290 = vst.msk [vmem:[#allocation2 + $0x140] sm:$0xff] %vm1249_vm3, %v1138_v26  ;;  %1291 = vst.msk [vmem:[#allocation2 + $0x148] sm:$0xff] %vm1249_vm3, %v1140_v27 }
 0x1c6   :  { %1510 = vrot.lane.b32.xlu0 %v9288_v24, %s10119_s25  ;;  %1512 = vrot.lane.b32.xlu1 %v9289_v25, %s10119_s25  ;;  %v9320_v24 = vld [vmem:[%s17679_s0 + $0x32] sm:$0xff]  ;;  %v9321_v25 = vld [vmem:[%s17679_s0 + $0x3a] sm:$0xff] }
 0x1c8   :  { %v1142_v32 = vpop.permute.xlu0 %1141  ;;  %v1144_v33 = vpop.permute.xlu1 %1143 }
 0x1c9   :  { %1292 = vst.msk [vmem:[#allocation2 + $0x150] sm:$0xff] %vm1249_vm3, %v1142_v32  ;;  %1293 = vst.msk [vmem:[#allocation2 + $0x158] sm:$0xff] %vm1249_vm3, %v1144_v33 }
 0x1ca   :  { %1514 = vrot.lane.b32.xlu0 %v9290_v30, %s10119_s25  ;;  %1516 = vrot.lane.b32.xlu1 %v9291_v31, %s10119_s25  ;;  %v9322_v30 = vld [vmem:[%s17679_s0 + $0x4a] sm:$0xff]  ;;  %v9323_v31 = vld [vmem:[%s17679_s0 + $0x52] sm:$0xff] }
 0x1cc   :  { %v1146_v38 = vpop.permute.xlu0 %1145  ;;  %v1148_v39 = vpop.permute.xlu1 %1147 }
 0x1cd   :  { %1294 = vst.msk [vmem:[#allocation2 + $0x160] sm:$0xff] %vm1249_vm3, %v1146_v38  ;;  %1295 = vst.msk [vmem:[#allocation2 + $0x168] sm:$0xff] %vm1249_vm3, %v1148_v39 }
 0x1ce   :  { %1518 = vrot.lane.b32.xlu0 %v9292_v34, %s10119_s25  ;;  %1520 = vrot.lane.b32.xlu1 %v9293_v36, %s10119_s25  ;;  %v9324_v34 = vld [vmem:[%s17679_s0 + $0x62] sm:$0xff]  ;;  %v9325_v36 = vld [vmem:[%s17679_s0 + $0x6a] sm:$0xff] }
 0x1d0   :  { %v1150_v42 = vpop.permute.xlu0 %1149  ;;  %v1152_v43 = vpop.permute.xlu1 %1151 }
 0x1d1   :  { %1296 = vst.msk [vmem:[#allocation2 + $0x170] sm:$0xff] %vm1249_vm3, %v1150_v42  ;;  %1297 = vst.msk [vmem:[#allocation2 + $0x178] sm:$0xff] %vm1249_vm3, %v1152_v43 }
 0x1d2   :  { %1522 = vrot.lane.b32.xlu0 %v9294_v40, %s10119_s25  ;;  %1524 = vrot.lane.b32.xlu1 %v9295_v41, %s10119_s25  ;;  %v9326_v40 = vld [vmem:[%s17679_s0 + $0x7a] sm:$0xff]  ;;  %v9327_v41 = vld [vmem:[%s17679_s0 + $0x82] sm:$0xff] }
 0x1d4   :  { %v1154_v48 = vpop.permute.xlu0 %1153  ;;  %v1156_v49 = vpop.permute.xlu1 %1155 }
 0x1d5   :  { %1298 = vst.msk [vmem:[#allocation2 + $0x180] sm:$0xff] %vm1249_vm3, %v1154_v48  ;;  %1299 = vst.msk [vmem:[#allocation2 + $0x188] sm:$0xff] %vm1249_vm3, %v1156_v49 }
 0x1d6   :  { %1526 = vrot.lane.b32.xlu0 %v9296_v46, %s10119_s25  ;;  %1528 = vrot.lane.b32.xlu1 %v9297_v47, %s10119_s25  ;;  %v9328_v46 = vld [vmem:[%s17679_s0 + $0x92] sm:$0xff]  ;;  %v9329_v47 = vld [vmem:[%s17679_s0 + $0x9a] sm:$0xff] }
 0x1d8   :  { %v1158_v56 = vpop.permute.xlu0 %1157  ;;  %v1160_v57 = vpop.permute.xlu1 %1159 }
 0x1d9   :  { %1300 = vst.msk [vmem:[#allocation2 + $0x190] sm:$0xff] %vm1249_vm3, %v1158_v56  ;;  %1301 = vst.msk [vmem:[#allocation2 + $0x198] sm:$0xff] %vm1249_vm3, %v1160_v57 }
 0x1da   :  { %1530 = vrot.lane.b32.xlu0 %v9298_v52, %s10119_s25  ;;  %1532 = vrot.lane.b32.xlu1 %v9299_v53, %s10119_s25  ;;  %v9330_v52 = vld [vmem:[%s17679_s0 + $0xaa] sm:$0xff]  ;;  %v9331_v53 = vld [vmem:[%s17679_s0 + $0xb2] sm:$0xff] }
 0x1dc   :  { %v1162_v10 = vpop.permute.xlu0 %1161  ;;  %v1164_v55 = vpop.permute.xlu1 %1163 }
 0x1dd   :  { %1302 = vst.msk [vmem:[#allocation2 + $0x1a0] sm:$0xff] %vm1249_vm3, %v1162_v10  ;;  %1303 = vst.msk [vmem:[#allocation2 + $0x1a8] sm:$0xff] %vm1249_vm3, %v1164_v55 }
 0x1de   :  { %1534 = vrot.lane.b32.xlu0 %v9300_v2, %s10119_s25  ;;  %1536 = vrot.lane.b32.xlu1 %v9301_v3, %s10119_s25  ;;  %v9332_v2 = vld [vmem:[%s17679_s0 + $0xc2] sm:$0xff]  ;;  %v9333_v3 = vld [vmem:[%s17679_s0 + $0xca] sm:$0xff] }
 0x1e0   :  { %v1166_v4 = vpop.permute.xlu0 %1165  ;;  %v1168_v5 = vpop.permute.xlu1 %1167 }
 0x1e1   :  { %1304 = vst.msk [vmem:[#allocation2 + $0x1b0] sm:$0xff] %vm1249_vm3, %v1166_v4  ;;  %1305 = vst.msk [vmem:[#allocation2 + $0x1b8] sm:$0xff] %vm1249_vm3, %v1168_v5 }
 0x1e2   :  { %1538 = vrot.lane.b32.xlu0 %v9302_v0, %s10119_s25  ;;  %1540 = vrot.lane.b32.xlu1 %v9303_v1, %s10119_s25  ;;  %v9334_v0 = vld [vmem:[%s17679_s0 + $0xda] sm:$0xff]  ;;  %v9335_v1 = vld [vmem:[%s17679_s0 + $0xe2] sm:$0xff] }
 0x1e4   :  { %v1170_v12 = vpop.permute.xlu0 %1169  ;;  %v1172_v14 = vpop.permute.xlu1 %1171 }
 0x1e5   :  { %1306 = vst.msk [vmem:[#allocation2 + $0x1c0] sm:$0xff] %vm1249_vm3, %v1170_v12  ;;  %1307 = vst.msk [vmem:[#allocation2 + $0x1c8] sm:$0xff] %vm1249_vm3, %v1172_v14 }
 0x1e6   :  { %1542 = vrot.lane.b32.xlu0 %v9304_v8, %s10119_s25  ;;  %1544 = vrot.lane.b32.xlu1 %v9305_v9, %s10119_s25  ;;  %v9336_v8 = vld [vmem:[%s17679_s0 + $0xf2] sm:$0xff]  ;;  %v9337_v9 = vld [vmem:[%s17679_s0 + $0xfa] sm:$0xff] }
 0x1e8   :  { %v1174_v35 = vpop.permute.xlu0 %1173  ;;  %v1176_v37 = vpop.permute.xlu1 %1175 }
 0x1e9   :  { %1308 = vst.msk [vmem:[#allocation2 + $0x1d0] sm:$0xff] %vm1249_vm3, %v1174_v35  ;;  %1309 = vst.msk [vmem:[#allocation2 + $0x1d8] sm:$0xff] %vm1249_vm3, %v1176_v37 }
 0x1ea   :  { %1546 = vrot.lane.b32.xlu0 %v9306_v21, %s10119_s25  ;;  %1548 = vrot.lane.b32.xlu1 %v9307_v22, %s10119_s25  ;;  %v9338_v21 = vld [vmem:[%s17679_s0 + $0x10a] sm:$0xff]  ;;  %v9339_v22 = vld [vmem:[%s17679_s0 + $0x112] sm:$0xff] }
 0x1ec   :  { %v1178_v58 = vpop.permute.xlu0 %1177  ;;  %v1180_v59 = vpop.permute.xlu1 %1179 }
 0x1ed   :  { %1310 = vst.msk [vmem:[#allocation2 + $0x1e0] sm:$0xff] %vm1249_vm3, %v1178_v58  ;;  %1311 = vst.msk [vmem:[#allocation2 + $0x1e8] sm:$0xff] %vm1249_vm3, %v1180_v59 }
 0x1ee   :  { %1550 = vrot.lane.b32.xlu0 %v9308_v50, %s10119_s25  ;;  %1552 = vrot.lane.b32.xlu1 %v9309_v51, %s10119_s25  ;;  %v9340_v50 = vld [vmem:[%s17679_s0 + $0x122] sm:$0xff]  ;;  %v9341_v51 = vld [vmem:[%s17679_s0 + $0x12a] sm:$0xff] }
 0x1f0   :  { %v1182_v6 = vpop.permute.xlu0 %1181  ;;  %v1184_v7 = vpop.permute.xlu1 %1183 }
 0x1f1   :  { %1312 = vst.msk [vmem:[#allocation2 + $0x1f0] sm:$0xff] %vm1249_vm3, %v1182_v6  ;;  %1313 = vst.msk [vmem:[#allocation2 + $0x1f8] sm:$0xff] %vm1249_vm3, %v1184_v7  ;;  %vm6577_vm3 = vcmask 392512  }
 0x1f2   :  { %1554 = vrot.lane.b32.xlu0 %v9310_v62, %s10119_s25  ;;  %1556 = vrot.lane.b32.xlu1 %v9311_v63, %s10119_s25  ;;  %v9342_v62 = vld [vmem:[%s17679_s0 + $0x13a] sm:$0xff]  ;;  %v9343_v63 = vld [vmem:[%s17679_s0 + $0x142] sm:$0xff] }
 0x1f4   :  { %v1443_v44 = vpop.permute.xlu0 %1442  ;;  %v1445_v45 = vpop.permute.xlu1 %1444 }
 0x1f5   :  { %1635 = vst.msk [vmem:[#allocation2] sm:$0xff] %vm1634_vm4, %v1443_v44  ;;  %1636 = vst.msk [vmem:[#allocation2 + $0x8] sm:$0xff] %vm1634_vm4, %v1445_v45 }
 0x1f6   :  { %1558 = vrot.lane.b32.xlu0 %v9312_v15, %s10119_s25  ;;  %1560 = vrot.lane.b32.xlu1 %v9313_v16, %s10119_s25  ;;  %v9344_v15 = vld [vmem:[%s17679_s0 + $0x152] sm:$0xff]  ;;  %v9345_v16 = vld [vmem:[%s17679_s0 + $0x15a] sm:$0xff] }
 0x1f8   :  { %v1447_v60 = vpop.permute.xlu0 %1446  ;;  %v1449_v61 = vpop.permute.xlu1 %1448 }
 0x1f9   :  { %1637 = vst.msk [vmem:[#allocation2 + $0x10] sm:$0xff] %vm1634_vm4, %v1447_v60  ;;  %1638 = vst.msk [vmem:[#allocation2 + $0x18] sm:$0xff] %vm1634_vm4, %v1449_v61 }
 0x1fa   :  { %1562 = vrot.lane.b32.xlu0 %v9314_v28, %s10119_s25  ;;  %1564 = vrot.lane.b32.xlu1 %v9315_v29, %s10119_s25  ;;  %v9346_v28 = vld [vmem:[%s17679_s0 + $0x16a] sm:$0xff]  ;;  %v9347_v29 = vld [vmem:[%s17679_s0 + $0x172] sm:$0xff] }
 0x1fc   :  { %v1451_v13 = vpop.permute.xlu0 %1450  ;;  %v1453_v17 = vpop.permute.xlu1 %1452 }
 0x1fd   :  { %1639 = vst.msk [vmem:[#allocation2 + $0x20] sm:$0xff] %vm1634_vm4, %v1451_v13  ;;  %1640 = vst.msk [vmem:[#allocation2 + $0x28] sm:$0xff] %vm1634_vm4, %v1453_v17 }
 0x1fe   :  { %1566 = vrot.lane.b32.xlu0 %v9316_v11, %s10119_s25  ;;  %1568 = vrot.lane.b32.xlu1 %v9317_v54, %s10119_s25  ;;  %v9348_v11 = vld [vmem:[%s17679_s0 + $0x182] sm:$0xff]  ;;  %v9349_v54 = vld [vmem:[%s17679_s0 + $0x18a] sm:$0xff] }
 0x200   :  { %v1455_v20 = vpop.permute.xlu0 %1454  ;;  %v1457_v23 = vpop.permute.xlu1 %1456 }
 0x201   :  { %1641 = vst.msk [vmem:[#allocation2 + $0x30] sm:$0xff] %vm1634_vm4, %v1455_v20  ;;  %1642 = vst.msk [vmem:[#allocation2 + $0x38] sm:$0xff] %vm1634_vm4, %v1457_v23 }
 0x202   :  { %1827 = vrot.lane.b32.xlu0 %v9318_v18, %s10120_s13  ;;  %1829 = vrot.lane.b32.xlu1 %v9319_v19, %s10120_s13  ;;  %v9350_v18 = vld [vmem:[%s17679_s0 + $0x1ca] sm:$0xff]  ;;  %v9351_v19 = vld [vmem:[%s17679_s0 + $0x1d2] sm:$0xff] }
 0x204   :  { %v1459_v26 = vpop.permute.xlu0 %1458  ;;  %v1461_v27 = vpop.permute.xlu1 %1460 }
 0x205   :  { %1643 = vst.msk [vmem:[#allocation2 + $0x40] sm:$0xff] %vm1634_vm4, %v1459_v26  ;;  %1644 = vst.msk [vmem:[#allocation2 + $0x48] sm:$0xff] %vm1634_vm4, %v1461_v27 }
 0x206   :  { %1831 = vrot.lane.b32.xlu0 %v9320_v24, %s10120_s13  ;;  %1833 = vrot.lane.b32.xlu1 %v9321_v25, %s10120_s13  ;;  %v9352_v24 = vld [vmem:[%s17679_s0 + $0x1e2] sm:$0xff]  ;;  %v9353_v25 = vld [vmem:[%s17679_s0 + $0x1ea] sm:$0xff] }
 0x208   :  { %v1463_v32 = vpop.permute.xlu0 %1462  ;;  %v1465_v33 = vpop.permute.xlu1 %1464 }
 0x209   :  { %1645 = vst.msk [vmem:[#allocation2 + $0x50] sm:$0xff] %vm1634_vm4, %v1463_v32  ;;  %1646 = vst.msk [vmem:[#allocation2 + $0x58] sm:$0xff] %vm1634_vm4, %v1465_v33 }
 0x20a   :  { %1835 = vrot.lane.b32.xlu0 %v9322_v30, %s10120_s13  ;;  %1837 = vrot.lane.b32.xlu1 %v9323_v31, %s10120_s13  ;;  %v9354_v30 = vld [vmem:[%s17679_s0 + $0x1fa] sm:$0xff]  ;;  %v9355_v31 = vld [vmem:[%s17679_s0 + $0x202] sm:$0xff] }
 0x20c   :  { %v1467_v38 = vpop.permute.xlu0 %1466  ;;  %v1469_v39 = vpop.permute.xlu1 %1468 }
 0x20d   :  { %1647 = vst.msk [vmem:[#allocation2 + $0x60] sm:$0xff] %vm1634_vm4, %v1467_v38  ;;  %1648 = vst.msk [vmem:[#allocation2 + $0x68] sm:$0xff] %vm1634_vm4, %v1469_v39 }
 0x20e   :  { %1839 = vrot.lane.b32.xlu0 %v9324_v34, %s10120_s13  ;;  %1841 = vrot.lane.b32.xlu1 %v9325_v36, %s10120_s13  ;;  %v9356_v34 = vld [vmem:[%s17679_s0 + $0x212] sm:$0xff]  ;;  %v9357_v36 = vld [vmem:[%s17679_s0 + $0x21a] sm:$0xff] }
 0x210   :  { %v1471_v42 = vpop.permute.xlu0 %1470  ;;  %v1473_v43 = vpop.permute.xlu1 %1472 }
 0x211   :  { %1649 = vst.msk [vmem:[#allocation2 + $0x70] sm:$0xff] %vm1634_vm4, %v1471_v42  ;;  %1650 = vst.msk [vmem:[#allocation2 + $0x78] sm:$0xff] %vm1634_vm4, %v1473_v43 }
 0x212   :  { %1843 = vrot.lane.b32.xlu0 %v9326_v40, %s10120_s13  ;;  %1845 = vrot.lane.b32.xlu1 %v9327_v41, %s10120_s13  ;;  %v9358_v40 = vld [vmem:[%s17679_s0 + $0x22a] sm:$0xff]  ;;  %v9359_v41 = vld [vmem:[%s17679_s0 + $0x232] sm:$0xff] }
 0x214   :  { %v1475_v48 = vpop.permute.xlu0 %1474  ;;  %v1477_v49 = vpop.permute.xlu1 %1476 }
 0x215   :  { %1651 = vst.msk [vmem:[#allocation2 + $0x80] sm:$0xff] %vm1634_vm4, %v1475_v48  ;;  %1652 = vst.msk [vmem:[#allocation2 + $0x88] sm:$0xff] %vm1634_vm4, %v1477_v49 }
 0x216   :  { %1847 = vrot.lane.b32.xlu0 %v9328_v46, %s10120_s13  ;;  %1849 = vrot.lane.b32.xlu1 %v9329_v47, %s10120_s13  ;;  %v9360_v46 = vld [vmem:[%s17679_s0 + $0x242] sm:$0xff]  ;;  %v9361_v47 = vld [vmem:[%s17679_s0 + $0x24a] sm:$0xff] }
 0x218   :  { %v1479_v56 = vpop.permute.xlu0 %1478  ;;  %v1481_v57 = vpop.permute.xlu1 %1480 }
 0x219   :  { %1653 = vst.msk [vmem:[#allocation2 + $0x90] sm:$0xff] %vm1634_vm4, %v1479_v56  ;;  %1654 = vst.msk [vmem:[#allocation2 + $0x98] sm:$0xff] %vm1634_vm4, %v1481_v57 }
 0x21a   :  { %1851 = vrot.lane.b32.xlu0 %v9330_v52, %s10120_s13  ;;  %1853 = vrot.lane.b32.xlu1 %v9331_v53, %s10120_s13  ;;  %v9362_v52 = vld [vmem:[%s17679_s0 + $0x25a] sm:$0xff]  ;;  %v9363_v53 = vld [vmem:[%s17679_s0 + $0x262] sm:$0xff] }
 0x21c   :  { %v1483_v10 = vpop.permute.xlu0 %1482  ;;  %v1485_v55 = vpop.permute.xlu1 %1484 }
 0x21d   :  { %1655 = vst.msk [vmem:[#allocation2 + $0xa0] sm:$0xff] %vm1634_vm4, %v1483_v10  ;;  %1656 = vst.msk [vmem:[#allocation2 + $0xa8] sm:$0xff] %vm1634_vm4, %v1485_v55 }
 0x21e   :  { %1855 = vrot.lane.b32.xlu0 %v9332_v2, %s10120_s13  ;;  %1857 = vrot.lane.b32.xlu1 %v9333_v3, %s10120_s13  ;;  %v9364_v2 = vld [vmem:[%s17679_s0 + $0x272] sm:$0xff]  ;;  %v9365_v3 = vld [vmem:[%s17679_s0 + $0x27a] sm:$0xff] }
 0x220   :  { %v1487_v4 = vpop.permute.xlu0 %1486  ;;  %v1489_v5 = vpop.permute.xlu1 %1488 }
 0x221   :  { %1657 = vst.msk [vmem:[#allocation2 + $0xb0] sm:$0xff] %vm1634_vm4, %v1487_v4  ;;  %1658 = vst.msk [vmem:[#allocation2 + $0xb8] sm:$0xff] %vm1634_vm4, %v1489_v5 }
 0x222   :  { %1859 = vrot.lane.b32.xlu0 %v9334_v0, %s10120_s13  ;;  %1861 = vrot.lane.b32.xlu1 %v9335_v1, %s10120_s13  ;;  %v9366_v0 = vld [vmem:[%s17679_s0 + $0x28a] sm:$0xff]  ;;  %v9367_v1 = vld [vmem:[%s17679_s0 + $0x292] sm:$0xff] }
 0x224   :  { %v1491_v12 = vpop.permute.xlu0 %1490  ;;  %v1493_v14 = vpop.permute.xlu1 %1492 }
 0x225   :  { %1659 = vst.msk [vmem:[#allocation2 + $0xc0] sm:$0xff] %vm1634_vm4, %v1491_v12  ;;  %1660 = vst.msk [vmem:[#allocation2 + $0xc8] sm:$0xff] %vm1634_vm4, %v1493_v14 }
 0x226   :  { %1863 = vrot.lane.b32.xlu0 %v9336_v8, %s10120_s13  ;;  %1865 = vrot.lane.b32.xlu1 %v9337_v9, %s10120_s13  ;;  %v9368_v8 = vld [vmem:[%s17679_s0 + $0x2a2] sm:$0xff]  ;;  %v9369_v9 = vld [vmem:[%s17679_s0 + $0x2aa] sm:$0xff] }
 0x228   :  { %v1495_v35 = vpop.permute.xlu0 %1494  ;;  %v1497_v37 = vpop.permute.xlu1 %1496 }
 0x229   :  { %1661 = vst.msk [vmem:[#allocation2 + $0xd0] sm:$0xff] %vm1634_vm4, %v1495_v35  ;;  %1662 = vst.msk [vmem:[#allocation2 + $0xd8] sm:$0xff] %vm1634_vm4, %v1497_v37 }
 0x22a   :  { %1867 = vrot.lane.b32.xlu0 %v9338_v21, %s10120_s13  ;;  %1869 = vrot.lane.b32.xlu1 %v9339_v22, %s10120_s13  ;;  %v9370_v21 = vld [vmem:[%s17679_s0 + $0x2ba] sm:$0xff]  ;;  %v9371_v22 = vld [vmem:[%s17679_s0 + $0x2c2] sm:$0xff] }
 0x22c   :  { %v1499_v58 = vpop.permute.xlu0 %1498  ;;  %v1501_v59 = vpop.permute.xlu1 %1500 }
 0x22d   :  { %1663 = vst.msk [vmem:[#allocation2 + $0xe0] sm:$0xff] %vm1634_vm4, %v1499_v58  ;;  %1664 = vst.msk [vmem:[#allocation2 + $0xe8] sm:$0xff] %vm1634_vm4, %v1501_v59 }
 0x22e   :  { %1871 = vrot.lane.b32.xlu0 %v9340_v50, %s10120_s13  ;;  %1873 = vrot.lane.b32.xlu1 %v9341_v51, %s10120_s13  ;;  %v9372_v50 = vld [vmem:[%s17679_s0 + $0x2d2] sm:$0xff]  ;;  %v9373_v51 = vld [vmem:[%s17679_s0 + $0x2da] sm:$0xff] }
 0x230   :  { %v1503_v6 = vpop.permute.xlu0 %1502  ;;  %v1505_v7 = vpop.permute.xlu1 %1504 }
 0x231   :  { %1665 = vst.msk [vmem:[#allocation2 + $0xf0] sm:$0xff] %vm1634_vm4, %v1503_v6  ;;  %1666 = vst.msk [vmem:[#allocation2 + $0xf8] sm:$0xff] %vm1634_vm4, %v1505_v7 }
 0x232   :  { %1875 = vrot.lane.b32.xlu0 %v9342_v62, %s10120_s13  ;;  %1877 = vrot.lane.b32.xlu1 %v9343_v63, %s10120_s13  ;;  %v9374_v62 = vld [vmem:[%s17679_s0 + $0x2ea] sm:$0xff]  ;;  %v9375_v63 = vld [vmem:[%s17679_s0 + $0x2f2] sm:$0xff] }
 0x234   :  { %v1507_v44 = vpop.permute.xlu0 %1506  ;;  %v1509_v45 = vpop.permute.xlu1 %1508 }
 0x235   :  { %1667 = vst.msk [vmem:[#allocation2 + $0x100] sm:$0xff] %vm1634_vm4, %v1507_v44  ;;  %1668 = vst.msk [vmem:[#allocation2 + $0x108] sm:$0xff] %vm1634_vm4, %v1509_v45 }
 0x236   :  { %1879 = vrot.lane.b32.xlu0 %v9344_v15, %s10120_s13  ;;  %1881 = vrot.lane.b32.xlu1 %v9345_v16, %s10120_s13  ;;  %v9376_v15 = vld [vmem:[%s17679_s0 + $0x302] sm:$0xff]  ;;  %v9377_v16 = vld [vmem:[%s17679_s0 + $0x30a] sm:$0xff] }
 0x238   :  { %v1511_v60 = vpop.permute.xlu0 %1510  ;;  %v1513_v61 = vpop.permute.xlu1 %1512 }
 0x239   :  { %1669 = vst.msk [vmem:[#allocation2 + $0x110] sm:$0xff] %vm1634_vm4, %v1511_v60  ;;  %1670 = vst.msk [vmem:[#allocation2 + $0x118] sm:$0xff] %vm1634_vm4, %v1513_v61 }
 0x23a   :  { %1883 = vrot.lane.b32.xlu0 %v9346_v28, %s10120_s13  ;;  %1885 = vrot.lane.b32.xlu1 %v9347_v29, %s10120_s13  ;;  %v9378_v28 = vld [vmem:[%s17679_s0 + $0x31a] sm:$0xff]  ;;  %v9379_v29 = vld [vmem:[%s17679_s0 + $0x322] sm:$0xff] }
 0x23c   :  { %v1515_v13 = vpop.permute.xlu0 %1514  ;;  %v1517_v17 = vpop.permute.xlu1 %1516 }
 0x23d   :  { %1671 = vst.msk [vmem:[#allocation2 + $0x120] sm:$0xff] %vm1634_vm4, %v1515_v13  ;;  %1672 = vst.msk [vmem:[#allocation2 + $0x128] sm:$0xff] %vm1634_vm4, %v1517_v17 }
 0x23e   :  { %1887 = vrot.lane.b32.xlu0 %v9348_v11, %s10120_s13  ;;  %1889 = vrot.lane.b32.xlu1 %v9349_v54, %s10120_s13  ;;  %v9380_v11 = vld [vmem:[%s17679_s0 + $0x332] sm:$0xff]  ;;  %v9381_v54 = vld [vmem:[%s17679_s0 + $0x33a] sm:$0xff] }
 0x240   :  { %v1519_v20 = vpop.permute.xlu0 %1518  ;;  %v1521_v23 = vpop.permute.xlu1 %1520 }
 0x241   :  { %1673 = vst.msk [vmem:[#allocation2 + $0x130] sm:$0xff] %vm1634_vm4, %v1519_v20  ;;  %1674 = vst.msk [vmem:[#allocation2 + $0x138] sm:$0xff] %vm1634_vm4, %v1521_v23 }
 0x242   :  { %1891 = vrot.lane.b32.xlu0 %v9350_v18, %s10120_s13  ;;  %1893 = vrot.lane.b32.xlu1 %v9351_v19, %s10120_s13  ;;  %v9382_v18 = vld [vmem:[%s17679_s0 + $0x30] sm:$0xff]  ;;  %v9383_v19 = vld [vmem:[%s17679_s0 + $0x38] sm:$0xff] }
 0x244   :  { %v1523_v26 = vpop.permute.xlu0 %1522  ;;  %v1525_v27 = vpop.permute.xlu1 %1524 }
 0x245   :  { %1675 = vst.msk [vmem:[#allocation2 + $0x140] sm:$0xff] %vm1634_vm4, %v1523_v26  ;;  %1676 = vst.msk [vmem:[#allocation2 + $0x148] sm:$0xff] %vm1634_vm4, %v1525_v27 }
 0x246   :  { %1895 = vrot.lane.b32.xlu0 %v9352_v24, %s10120_s13  ;;  %1897 = vrot.lane.b32.xlu1 %v9353_v25, %s10120_s13  ;;  %v9384_v24 = vld [vmem:[%s17679_s0 + $0x48] sm:$0xff]  ;;  %v9385_v25 = vld [vmem:[%s17679_s0 + $0x50] sm:$0xff] }
 0x248   :  { %v1527_v32 = vpop.permute.xlu0 %1526  ;;  %v1529_v33 = vpop.permute.xlu1 %1528 }
 0x249   :  { %1677 = vst.msk [vmem:[#allocation2 + $0x150] sm:$0xff] %vm1634_vm4, %v1527_v32  ;;  %1678 = vst.msk [vmem:[#allocation2 + $0x158] sm:$0xff] %vm1634_vm4, %v1529_v33 }
 0x24a   :  { %1899 = vrot.lane.b32.xlu0 %v9354_v30, %s10120_s13  ;;  %1901 = vrot.lane.b32.xlu1 %v9355_v31, %s10120_s13  ;;  %v9386_v30 = vld [vmem:[%s17679_s0 + $0x60] sm:$0xff]  ;;  %v9387_v31 = vld [vmem:[%s17679_s0 + $0x68] sm:$0xff] }
 0x24c   :  { %v1531_v38 = vpop.permute.xlu0 %1530  ;;  %v1533_v39 = vpop.permute.xlu1 %1532 }
 0x24d   :  { %1679 = vst.msk [vmem:[#allocation2 + $0x160] sm:$0xff] %vm1634_vm4, %v1531_v38  ;;  %1680 = vst.msk [vmem:[#allocation2 + $0x168] sm:$0xff] %vm1634_vm4, %v1533_v39 }
 0x24e   :  { %1903 = vrot.lane.b32.xlu0 %v9356_v34, %s10120_s13  ;;  %1905 = vrot.lane.b32.xlu1 %v9357_v36, %s10120_s13  ;;  %v9388_v34 = vld [vmem:[%s17679_s0 + $0x78] sm:$0xff]  ;;  %v9389_v36 = vld [vmem:[%s17679_s0 + $0x80] sm:$0xff] }
 0x250   :  { %v1535_v42 = vpop.permute.xlu0 %1534  ;;  %v1537_v43 = vpop.permute.xlu1 %1536 }
 0x251   :  { %1681 = vst.msk [vmem:[#allocation2 + $0x170] sm:$0xff] %vm1634_vm4, %v1535_v42  ;;  %1682 = vst.msk [vmem:[#allocation2 + $0x178] sm:$0xff] %vm1634_vm4, %v1537_v43 }
 0x252   :  { %1907 = vrot.lane.b32.xlu0 %v9358_v40, %s10120_s13  ;;  %1909 = vrot.lane.b32.xlu1 %v9359_v41, %s10120_s13  ;;  %v9390_v40 = vld [vmem:[%s17679_s0 + $0x90] sm:$0xff]  ;;  %v9391_v41 = vld [vmem:[%s17679_s0 + $0x98] sm:$0xff] }
 0x254   :  { %v1539_v48 = vpop.permute.xlu0 %1538  ;;  %v1541_v49 = vpop.permute.xlu1 %1540 }
 0x255   :  { %1683 = vst.msk [vmem:[#allocation2 + $0x180] sm:$0xff] %vm1634_vm4, %v1539_v48  ;;  %1684 = vst.msk [vmem:[#allocation2 + $0x188] sm:$0xff] %vm1634_vm4, %v1541_v49 }
 0x256   :  { %1911 = vrot.lane.b32.xlu0 %v9360_v46, %s10120_s13  ;;  %1913 = vrot.lane.b32.xlu1 %v9361_v47, %s10120_s13  ;;  %v9392_v46 = vld [vmem:[%s17679_s0 + $0xa8] sm:$0xff]  ;;  %v9393_v47 = vld [vmem:[%s17679_s0 + $0xb0] sm:$0xff] }
 0x258   :  { %v1543_v56 = vpop.permute.xlu0 %1542  ;;  %v1545_v57 = vpop.permute.xlu1 %1544 }
 0x259   :  { %1685 = vst.msk [vmem:[#allocation2 + $0x190] sm:$0xff] %vm1634_vm4, %v1543_v56  ;;  %1686 = vst.msk [vmem:[#allocation2 + $0x198] sm:$0xff] %vm1634_vm4, %v1545_v57 }
 0x25a   :  { %1915 = vrot.lane.b32.xlu0 %v9362_v52, %s10120_s13  ;;  %1917 = vrot.lane.b32.xlu1 %v9363_v53, %s10120_s13  ;;  %v9394_v52 = vld [vmem:[%s17679_s0 + $0xc0] sm:$0xff]  ;;  %v9395_v53 = vld [vmem:[%s17679_s0 + $0xc8] sm:$0xff] }
 0x25c   :  { %v1547_v10 = vpop.permute.xlu0 %1546  ;;  %v1549_v55 = vpop.permute.xlu1 %1548 }
 0x25d   :  { %1687 = vst.msk [vmem:[#allocation2 + $0x1a0] sm:$0xff] %vm1634_vm4, %v1547_v10  ;;  %1688 = vst.msk [vmem:[#allocation2 + $0x1a8] sm:$0xff] %vm1634_vm4, %v1549_v55 }
 0x25e   :  { %1919 = vrot.lane.b32.xlu0 %v9364_v2, %s10120_s13  ;;  %1921 = vrot.lane.b32.xlu1 %v9365_v3, %s10120_s13  ;;  %v9396_v2 = vld [vmem:[%s17679_s0 + $0xd8] sm:$0xff]  ;;  %v9397_v3 = vld [vmem:[%s17679_s0 + $0xe0] sm:$0xff] }
 0x260   :  { %v1551_v4 = vpop.permute.xlu0 %1550  ;;  %v1553_v5 = vpop.permute.xlu1 %1552 }
 0x261   :  { %1689 = vst.msk [vmem:[#allocation2 + $0x1b0] sm:$0xff] %vm1634_vm4, %v1551_v4  ;;  %1690 = vst.msk [vmem:[#allocation2 + $0x1b8] sm:$0xff] %vm1634_vm4, %v1553_v5 }
 0x262   :  { %1923 = vrot.lane.b32.xlu0 %v9366_v0, %s10120_s13  ;;  %1925 = vrot.lane.b32.xlu1 %v9367_v1, %s10120_s13  ;;  %v9398_v0 = vld [vmem:[%s17679_s0 + $0xf0] sm:$0xff]  ;;  %v9399_v1 = vld [vmem:[%s17679_s0 + $0xf8] sm:$0xff] }
 0x264   :  { %v1555_v12 = vpop.permute.xlu0 %1554  ;;  %v1557_v14 = vpop.permute.xlu1 %1556 }
 0x265   :  { %1691 = vst.msk [vmem:[#allocation2 + $0x1c0] sm:$0xff] %vm1634_vm4, %v1555_v12  ;;  %1692 = vst.msk [vmem:[#allocation2 + $0x1c8] sm:$0xff] %vm1634_vm4, %v1557_v14 }
 0x266   :  { %1927 = vrot.lane.b32.xlu0 %v9368_v8, %s10120_s13  ;;  %1929 = vrot.lane.b32.xlu1 %v9369_v9, %s10120_s13  ;;  %v9400_v8 = vld [vmem:[%s17679_s0 + $0x108] sm:$0xff]  ;;  %v9401_v9 = vld [vmem:[%s17679_s0 + $0x110] sm:$0xff] }
 0x268   :  { %v1559_v35 = vpop.permute.xlu0 %1558  ;;  %v1561_v37 = vpop.permute.xlu1 %1560 }
 0x269   :  { %1693 = vst.msk [vmem:[#allocation2 + $0x1d0] sm:$0xff] %vm1634_vm4, %v1559_v35  ;;  %1694 = vst.msk [vmem:[#allocation2 + $0x1d8] sm:$0xff] %vm1634_vm4, %v1561_v37 }
 0x26a   :  { %1931 = vrot.lane.b32.xlu0 %v9370_v21, %s10120_s13  ;;  %1933 = vrot.lane.b32.xlu1 %v9371_v22, %s10120_s13  ;;  %v9402_v21 = vld [vmem:[%s17679_s0 + $0x120] sm:$0xff]  ;;  %v9403_v22 = vld [vmem:[%s17679_s0 + $0x128] sm:$0xff] }
 0x26c   :  { %v1563_v58 = vpop.permute.xlu0 %1562  ;;  %v1565_v59 = vpop.permute.xlu1 %1564 }
 0x26d   :  { %1695 = vst.msk [vmem:[#allocation2 + $0x1e0] sm:$0xff] %vm1634_vm4, %v1563_v58  ;;  %1696 = vst.msk [vmem:[#allocation2 + $0x1e8] sm:$0xff] %vm1634_vm4, %v1565_v59 }
 0x26e   :  { %1935 = vrot.lane.b32.xlu0 %v9372_v50, %s10120_s13  ;;  %1937 = vrot.lane.b32.xlu1 %v9373_v51, %s10120_s13  ;;  %v9404_v50 = vld [vmem:[%s17679_s0 + $0x138] sm:$0xff]  ;;  %v9405_v51 = vld [vmem:[%s17679_s0 + $0x140] sm:$0xff] }
 0x270   :  { %v1567_v6 = vpop.permute.xlu0 %1566  ;;  %v1569_v7 = vpop.permute.xlu1 %1568 }
 0x271   :  { %1697 = vst.msk [vmem:[#allocation2 + $0x1f0] sm:$0xff] %vm1634_vm4, %v1567_v6  ;;  %1698 = vst.msk [vmem:[#allocation2 + $0x1f8] sm:$0xff] %vm1634_vm4, %v1569_v7  ;;  %vm6963_vm4 = vcmask 458112  }
 0x272   :  { %1939 = vrot.lane.b32.xlu0 %v9374_v62, %s10120_s13  ;;  %1941 = vrot.lane.b32.xlu1 %v9375_v63, %s10120_s13  ;;  %v9406_v62 = vld [vmem:[%s17679_s0 + $0x150] sm:$0xff]  ;;  %v9407_v63 = vld [vmem:[%s17679_s0 + $0x158] sm:$0xff] }
 0x274   :  { %v1828_v44 = vpop.permute.xlu0 %1827  ;;  %v1830_v45 = vpop.permute.xlu1 %1829 }
 0x275   :  { %2020 = vst.msk [vmem:[#allocation2] sm:$0xff] %vm2019_vm5, %v1828_v44  ;;  %2021 = vst.msk [vmem:[#allocation2 + $0x8] sm:$0xff] %vm2019_vm5, %v1830_v45 }
 0x276   :  { %1943 = vrot.lane.b32.xlu0 %v9376_v15, %s10120_s13  ;;  %1945 = vrot.lane.b32.xlu1 %v9377_v16, %s10120_s13  ;;  %v9408_v15 = vld [vmem:[%s17679_s0 + $0x168] sm:$0xff]  ;;  %v9409_v16 = vld [vmem:[%s17679_s0 + $0x170] sm:$0xff] }
 0x278   :  { %v1832_v60 = vpop.permute.xlu0 %1831  ;;  %v1834_v61 = vpop.permute.xlu1 %1833 }
 0x279   :  { %2022 = vst.msk [vmem:[#allocation2 + $0x10] sm:$0xff] %vm2019_vm5, %v1832_v60  ;;  %2023 = vst.msk [vmem:[#allocation2 + $0x18] sm:$0xff] %vm2019_vm5, %v1834_v61 }
 0x27a   :  { %1947 = vrot.lane.b32.xlu0 %v9378_v28, %s10120_s13  ;;  %1949 = vrot.lane.b32.xlu1 %v9379_v29, %s10120_s13  ;;  %v9410_v28 = vld [vmem:[%s17679_s0 + $0x180] sm:$0xff]  ;;  %v9411_v29 = vld [vmem:[%s17679_s0 + $0x188] sm:$0xff] }
 0x27c   :  { %v1836_v13 = vpop.permute.xlu0 %1835  ;;  %v1838_v17 = vpop.permute.xlu1 %1837 }
 0x27d   :  { %2024 = vst.msk [vmem:[#allocation2 + $0x20] sm:$0xff] %vm2019_vm5, %v1836_v13  ;;  %2025 = vst.msk [vmem:[#allocation2 + $0x28] sm:$0xff] %vm2019_vm5, %v1838_v17 }
 0x27e   :  { %1951 = vrot.lane.b32.xlu0 %v9380_v11, %s10120_s13  ;;  %1953 = vrot.lane.b32.xlu1 %v9381_v54, %s10120_s13  ;;  %v9412_v11 = vld [vmem:[%s17679_s0 + $0x198] sm:$0xff]  ;;  %v9413_v54 = vld [vmem:[%s17679_s0 + $0x1a0] sm:$0xff] }
 0x280   :  { %v1840_v20 = vpop.permute.xlu0 %1839  ;;  %v1842_v23 = vpop.permute.xlu1 %1841 }
 0x281   :  { %2026 = vst.msk [vmem:[#allocation2 + $0x30] sm:$0xff] %vm2019_vm5, %v1840_v20  ;;  %2027 = vst.msk [vmem:[#allocation2 + $0x38] sm:$0xff] %vm2019_vm5, %v1842_v23 }
 0x282   :  { %2213 = vrot.lane.b32.xlu0 %v9382_v18, %s10121_s29  ;;  %2215 = vrot.lane.b32.xlu1 %v9383_v19, %s10121_s29  ;;  %v9414_v18 = vld [vmem:[%s17679_s0 + $0x1e0] sm:$0xff]  ;;  %v9415_v19 = vld [vmem:[%s17679_s0 + $0x1e8] sm:$0xff] }
 0x284   :  { %v1844_v26 = vpop.permute.xlu0 %1843  ;;  %v1846_v27 = vpop.permute.xlu1 %1845 }
 0x285   :  { %2028 = vst.msk [vmem:[#allocation2 + $0x40] sm:$0xff] %vm2019_vm5, %v1844_v26  ;;  %2029 = vst.msk [vmem:[#allocation2 + $0x48] sm:$0xff] %vm2019_vm5, %v1846_v27 }
 0x286   :  { %2217 = vrot.lane.b32.xlu0 %v9384_v24, %s10121_s29  ;;  %2219 = vrot.lane.b32.xlu1 %v9385_v25, %s10121_s29  ;;  %v9416_v24 = vld [vmem:[%s17679_s0 + $0x1f8] sm:$0xff]  ;;  %v9417_v25 = vld [vmem:[%s17679_s0 + $0x200] sm:$0xff] }
 0x288   :  { %v1848_v32 = vpop.permute.xlu0 %1847  ;;  %v1850_v33 = vpop.permute.xlu1 %1849 }
 0x289   :  { %2030 = vst.msk [vmem:[#allocation2 + $0x50] sm:$0xff] %vm2019_vm5, %v1848_v32  ;;  %2031 = vst.msk [vmem:[#allocation2 + $0x58] sm:$0xff] %vm2019_vm5, %v1850_v33 }
 0x28a   :  { %2221 = vrot.lane.b32.xlu0 %v9386_v30, %s10121_s29  ;;  %2223 = vrot.lane.b32.xlu1 %v9387_v31, %s10121_s29  ;;  %v9418_v30 = vld [vmem:[%s17679_s0 + $0x210] sm:$0xff]  ;;  %v9419_v31 = vld [vmem:[%s17679_s0 + $0x218] sm:$0xff] }
 0x28c   :  { %v1852_v38 = vpop.permute.xlu0 %1851  ;;  %v1854_v39 = vpop.permute.xlu1 %1853 }
 0x28d   :  { %2032 = vst.msk [vmem:[#allocation2 + $0x60] sm:$0xff] %vm2019_vm5, %v1852_v38  ;;  %2033 = vst.msk [vmem:[#allocation2 + $0x68] sm:$0xff] %vm2019_vm5, %v1854_v39 }
 0x28e   :  { %2225 = vrot.lane.b32.xlu0 %v9388_v34, %s10121_s29  ;;  %2227 = vrot.lane.b32.xlu1 %v9389_v36, %s10121_s29  ;;  %v9420_v34 = vld [vmem:[%s17679_s0 + $0x228] sm:$0xff]  ;;  %v9421_v36 = vld [vmem:[%s17679_s0 + $0x230] sm:$0xff] }
 0x290   :  { %v1856_v42 = vpop.permute.xlu0 %1855  ;;  %v1858_v43 = vpop.permute.xlu1 %1857 }
 0x291   :  { %2034 = vst.msk [vmem:[#allocation2 + $0x70] sm:$0xff] %vm2019_vm5, %v1856_v42  ;;  %2035 = vst.msk [vmem:[#allocation2 + $0x78] sm:$0xff] %vm2019_vm5, %v1858_v43 }
 0x292   :  { %2229 = vrot.lane.b32.xlu0 %v9390_v40, %s10121_s29  ;;  %2231 = vrot.lane.b32.xlu1 %v9391_v41, %s10121_s29  ;;  %v9422_v40 = vld [vmem:[%s17679_s0 + $0x240] sm:$0xff]  ;;  %v9423_v41 = vld [vmem:[%s17679_s0 + $0x248] sm:$0xff] }
 0x294   :  { %v1860_v48 = vpop.permute.xlu0 %1859  ;;  %v1862_v49 = vpop.permute.xlu1 %1861 }
 0x295   :  { %2036 = vst.msk [vmem:[#allocation2 + $0x80] sm:$0xff] %vm2019_vm5, %v1860_v48  ;;  %2037 = vst.msk [vmem:[#allocation2 + $0x88] sm:$0xff] %vm2019_vm5, %v1862_v49 }
 0x296   :  { %2233 = vrot.lane.b32.xlu0 %v9392_v46, %s10121_s29  ;;  %2235 = vrot.lane.b32.xlu1 %v9393_v47, %s10121_s29  ;;  %v9424_v46 = vld [vmem:[%s17679_s0 + $0x258] sm:$0xff]  ;;  %v9425_v47 = vld [vmem:[%s17679_s0 + $0x260] sm:$0xff] }
 0x298   :  { %v1864_v56 = vpop.permute.xlu0 %1863  ;;  %v1866_v57 = vpop.permute.xlu1 %1865 }
 0x299   :  { %2038 = vst.msk [vmem:[#allocation2 + $0x90] sm:$0xff] %vm2019_vm5, %v1864_v56  ;;  %2039 = vst.msk [vmem:[#allocation2 + $0x98] sm:$0xff] %vm2019_vm5, %v1866_v57 }
 0x29a   :  { %2237 = vrot.lane.b32.xlu0 %v9394_v52, %s10121_s29  ;;  %2239 = vrot.lane.b32.xlu1 %v9395_v53, %s10121_s29  ;;  %v9426_v52 = vld [vmem:[%s17679_s0 + $0x270] sm:$0xff]  ;;  %v9427_v53 = vld [vmem:[%s17679_s0 + $0x278] sm:$0xff] }
 0x29c   :  { %v1868_v10 = vpop.permute.xlu0 %1867  ;;  %v1870_v55 = vpop.permute.xlu1 %1869 }
 0x29d   :  { %2040 = vst.msk [vmem:[#allocation2 + $0xa0] sm:$0xff] %vm2019_vm5, %v1868_v10  ;;  %2041 = vst.msk [vmem:[#allocation2 + $0xa8] sm:$0xff] %vm2019_vm5, %v1870_v55 }
 0x29e   :  { %2241 = vrot.lane.b32.xlu0 %v9396_v2, %s10121_s29  ;;  %2243 = vrot.lane.b32.xlu1 %v9397_v3, %s10121_s29  ;;  %v9428_v2 = vld [vmem:[%s17679_s0 + $0x288] sm:$0xff]  ;;  %v9429_v3 = vld [vmem:[%s17679_s0 + $0x290] sm:$0xff] }
 0x2a0   :  { %v1872_v4 = vpop.permute.xlu0 %1871  ;;  %v1874_v5 = vpop.permute.xlu1 %1873 }
 0x2a1   :  { %2042 = vst.msk [vmem:[#allocation2 + $0xb0] sm:$0xff] %vm2019_vm5, %v1872_v4  ;;  %2043 = vst.msk [vmem:[#allocation2 + $0xb8] sm:$0xff] %vm2019_vm5, %v1874_v5 }
 0x2a2   :  { %2245 = vrot.lane.b32.xlu0 %v9398_v0, %s10121_s29  ;;  %2247 = vrot.lane.b32.xlu1 %v9399_v1, %s10121_s29  ;;  %v9430_v0 = vld [vmem:[%s17679_s0 + $0x2a0] sm:$0xff]  ;;  %v9431_v1 = vld [vmem:[%s17679_s0 + $0x2a8] sm:$0xff] }
 0x2a4   :  { %v1876_v12 = vpop.permute.xlu0 %1875  ;;  %v1878_v14 = vpop.permute.xlu1 %1877 }
 0x2a5   :  { %2044 = vst.msk [vmem:[#allocation2 + $0xc0] sm:$0xff] %vm2019_vm5, %v1876_v12  ;;  %2045 = vst.msk [vmem:[#allocation2 + $0xc8] sm:$0xff] %vm2019_vm5, %v1878_v14 }
 0x2a6   :  { %2249 = vrot.lane.b32.xlu0 %v9400_v8, %s10121_s29  ;;  %2251 = vrot.lane.b32.xlu1 %v9401_v9, %s10121_s29  ;;  %v9432_v8 = vld [vmem:[%s17679_s0 + $0x2b8] sm:$0xff]  ;;  %v9433_v9 = vld [vmem:[%s17679_s0 + $0x2c0] sm:$0xff] }
 0x2a8   :  { %v1880_v35 = vpop.permute.xlu0 %1879  ;;  %v1882_v37 = vpop.permute.xlu1 %1881 }
 0x2a9   :  { %2046 = vst.msk [vmem:[#allocation2 + $0xd0] sm:$0xff] %vm2019_vm5, %v1880_v35  ;;  %2047 = vst.msk [vmem:[#allocation2 + $0xd8] sm:$0xff] %vm2019_vm5, %v1882_v37 }
 0x2aa   :  { %2253 = vrot.lane.b32.xlu0 %v9402_v21, %s10121_s29  ;;  %2255 = vrot.lane.b32.xlu1 %v9403_v22, %s10121_s29  ;;  %v9434_v21 = vld [vmem:[%s17679_s0 + $0x2d0] sm:$0xff]  ;;  %v9435_v22 = vld [vmem:[%s17679_s0 + $0x2d8] sm:$0xff] }
 0x2ac   :  { %v1884_v58 = vpop.permute.xlu0 %1883  ;;  %v1886_v59 = vpop.permute.xlu1 %1885 }
 0x2ad   :  { %2048 = vst.msk [vmem:[#allocation2 + $0xe0] sm:$0xff] %vm2019_vm5, %v1884_v58  ;;  %2049 = vst.msk [vmem:[#allocation2 + $0xe8] sm:$0xff] %vm2019_vm5, %v1886_v59 }
 0x2ae   :  { %2257 = vrot.lane.b32.xlu0 %v9404_v50, %s10121_s29  ;;  %2259 = vrot.lane.b32.xlu1 %v9405_v51, %s10121_s29  ;;  %v9436_v50 = vld [vmem:[%s17679_s0 + $0x2e8] sm:$0xff]  ;;  %v9437_v51 = vld [vmem:[%s17679_s0 + $0x2f0] sm:$0xff] }
 0x2b0   :  { %v1888_v6 = vpop.permute.xlu0 %1887  ;;  %v1890_v7 = vpop.permute.xlu1 %1889 }
 0x2b1   :  { %2050 = vst.msk [vmem:[#allocation2 + $0xf0] sm:$0xff] %vm2019_vm5, %v1888_v6  ;;  %2051 = vst.msk [vmem:[#allocation2 + $0xf8] sm:$0xff] %vm2019_vm5, %v1890_v7 }
 0x2b2   :  { %2261 = vrot.lane.b32.xlu0 %v9406_v62, %s10121_s29  ;;  %2263 = vrot.lane.b32.xlu1 %v9407_v63, %s10121_s29  ;;  %v9438_v62 = vld [vmem:[%s17679_s0 + $0x300] sm:$0xff]  ;;  %v9439_v63 = vld [vmem:[%s17679_s0 + $0x308] sm:$0xff] }
 0x2b4   :  { %v1892_v44 = vpop.permute.xlu0 %1891  ;;  %v1894_v45 = vpop.permute.xlu1 %1893 }
 0x2b5   :  { %2052 = vst.msk [vmem:[#allocation2 + $0x100] sm:$0xff] %vm2019_vm5, %v1892_v44  ;;  %2053 = vst.msk [vmem:[#allocation2 + $0x108] sm:$0xff] %vm2019_vm5, %v1894_v45 }
 0x2b6   :  { %2265 = vrot.lane.b32.xlu0 %v9408_v15, %s10121_s29  ;;  %2267 = vrot.lane.b32.xlu1 %v9409_v16, %s10121_s29  ;;  %v9440_v15 = vld [vmem:[%s17679_s0 + $0x318] sm:$0xff]  ;;  %v9441_v16 = vld [vmem:[%s17679_s0 + $0x320] sm:$0xff] }
 0x2b8   :  { %v1896_v60 = vpop.permute.xlu0 %1895  ;;  %v1898_v61 = vpop.permute.xlu1 %1897 }
 0x2b9   :  { %2054 = vst.msk [vmem:[#allocation2 + $0x110] sm:$0xff] %vm2019_vm5, %v1896_v60  ;;  %2055 = vst.msk [vmem:[#allocation2 + $0x118] sm:$0xff] %vm2019_vm5, %v1898_v61 }
 0x2ba   :  { %2269 = vrot.lane.b32.xlu0 %v9410_v28, %s10121_s29  ;;  %2271 = vrot.lane.b32.xlu1 %v9411_v29, %s10121_s29  ;;  %v9442_v28 = vld [vmem:[%s17679_s0 + $0x330] sm:$0xff]  ;;  %v9443_v29 = vld [vmem:[%s17679_s0 + $0x338] sm:$0xff] }
 0x2bc   :  { %v1900_v13 = vpop.permute.xlu0 %1899  ;;  %v1902_v17 = vpop.permute.xlu1 %1901 }
 0x2bd   :  { %2056 = vst.msk [vmem:[#allocation2 + $0x120] sm:$0xff] %vm2019_vm5, %v1900_v13  ;;  %2057 = vst.msk [vmem:[#allocation2 + $0x128] sm:$0xff] %vm2019_vm5, %v1902_v17 }
 0x2be   :  { %2273 = vrot.lane.b32.xlu0 %v9412_v11, %s10121_s29  ;;  %2275 = vrot.lane.b32.xlu1 %v9413_v54, %s10121_s29  ;;  %v9444_v11 = vld [vmem:[%s17679_s0 + $0x348] sm:$0xff]  ;;  %v9445_v54 = vld [vmem:[%s17679_s0 + $0x350] sm:$0xff] }
 0x2c0   :  { %v1904_v20 = vpop.permute.xlu0 %1903  ;;  %v1906_v23 = vpop.permute.xlu1 %1905 }
 0x2c1   :  { %2058 = vst.msk [vmem:[#allocation2 + $0x130] sm:$0xff] %vm2019_vm5, %v1904_v20  ;;  %2059 = vst.msk [vmem:[#allocation2 + $0x138] sm:$0xff] %vm2019_vm5, %v1906_v23 }
 0x2c2   :  { %2277 = vrot.lane.b32.xlu0 %v9414_v18, %s10121_s29  ;;  %2279 = vrot.lane.b32.xlu1 %v9415_v19, %s10121_s29  ;;  %v9446_v18 = vld [vmem:[%s17679_s0 + $0x31] sm:$0xff]  ;;  %v9447_v19 = vld [vmem:[%s17679_s0 + $0x39] sm:$0xff] }
 0x2c4   :  { %v1908_v26 = vpop.permute.xlu0 %1907  ;;  %v1910_v27 = vpop.permute.xlu1 %1909 }
 0x2c5   :  { %2060 = vst.msk [vmem:[#allocation2 + $0x140] sm:$0xff] %vm2019_vm5, %v1908_v26  ;;  %2061 = vst.msk [vmem:[#allocation2 + $0x148] sm:$0xff] %vm2019_vm5, %v1910_v27 }
 0x2c6   :  { %2281 = vrot.lane.b32.xlu0 %v9416_v24, %s10121_s29  ;;  %2283 = vrot.lane.b32.xlu1 %v9417_v25, %s10121_s29  ;;  %v9448_v24 = vld [vmem:[%s17679_s0 + $0x49] sm:$0xff]  ;;  %v9449_v25 = vld [vmem:[%s17679_s0 + $0x51] sm:$0xff] }
 0x2c8   :  { %v1912_v32 = vpop.permute.xlu0 %1911  ;;  %v1914_v33 = vpop.permute.xlu1 %1913 }
 0x2c9   :  { %2062 = vst.msk [vmem:[#allocation2 + $0x150] sm:$0xff] %vm2019_vm5, %v1912_v32  ;;  %2063 = vst.msk [vmem:[#allocation2 + $0x158] sm:$0xff] %vm2019_vm5, %v1914_v33 }
 0x2ca   :  { %2285 = vrot.lane.b32.xlu0 %v9418_v30, %s10121_s29  ;;  %2287 = vrot.lane.b32.xlu1 %v9419_v31, %s10121_s29  ;;  %v9450_v30 = vld [vmem:[%s17679_s0 + $0x61] sm:$0xff]  ;;  %v9451_v31 = vld [vmem:[%s17679_s0 + $0x69] sm:$0xff] }
 0x2cc   :  { %v1916_v38 = vpop.permute.xlu0 %1915  ;;  %v1918_v39 = vpop.permute.xlu1 %1917 }
 0x2cd   :  { %2064 = vst.msk [vmem:[#allocation2 + $0x160] sm:$0xff] %vm2019_vm5, %v1916_v38  ;;  %2065 = vst.msk [vmem:[#allocation2 + $0x168] sm:$0xff] %vm2019_vm5, %v1918_v39 }
 0x2ce   :  { %2289 = vrot.lane.b32.xlu0 %v9420_v34, %s10121_s29  ;;  %2291 = vrot.lane.b32.xlu1 %v9421_v36, %s10121_s29  ;;  %v9452_v34 = vld [vmem:[%s17679_s0 + $0x79] sm:$0xff]  ;;  %v9453_v36 = vld [vmem:[%s17679_s0 + $0x81] sm:$0xff] }
 0x2d0   :  { %v1920_v42 = vpop.permute.xlu0 %1919  ;;  %v1922_v43 = vpop.permute.xlu1 %1921 }
 0x2d1   :  { %2066 = vst.msk [vmem:[#allocation2 + $0x170] sm:$0xff] %vm2019_vm5, %v1920_v42  ;;  %2067 = vst.msk [vmem:[#allocation2 + $0x178] sm:$0xff] %vm2019_vm5, %v1922_v43 }
 0x2d2   :  { %2293 = vrot.lane.b32.xlu0 %v9422_v40, %s10121_s29  ;;  %2295 = vrot.lane.b32.xlu1 %v9423_v41, %s10121_s29  ;;  %v9454_v40 = vld [vmem:[%s17679_s0 + $0x91] sm:$0xff]  ;;  %v9455_v41 = vld [vmem:[%s17679_s0 + $0x99] sm:$0xff] }
 0x2d4   :  { %v1924_v48 = vpop.permute.xlu0 %1923  ;;  %v1926_v49 = vpop.permute.xlu1 %1925 }
 0x2d5   :  { %2068 = vst.msk [vmem:[#allocation2 + $0x180] sm:$0xff] %vm2019_vm5, %v1924_v48  ;;  %2069 = vst.msk [vmem:[#allocation2 + $0x188] sm:$0xff] %vm2019_vm5, %v1926_v49 }
 0x2d6   :  { %2297 = vrot.lane.b32.xlu0 %v9424_v46, %s10121_s29  ;;  %2299 = vrot.lane.b32.xlu1 %v9425_v47, %s10121_s29  ;;  %v9456_v46 = vld [vmem:[%s17679_s0 + $0xa9] sm:$0xff]  ;;  %v9457_v47 = vld [vmem:[%s17679_s0 + $0xb1] sm:$0xff] }
 0x2d8   :  { %v1928_v56 = vpop.permute.xlu0 %1927  ;;  %v1930_v57 = vpop.permute.xlu1 %1929 }
 0x2d9   :  { %2070 = vst.msk [vmem:[#allocation2 + $0x190] sm:$0xff] %vm2019_vm5, %v1928_v56  ;;  %2071 = vst.msk [vmem:[#allocation2 + $0x198] sm:$0xff] %vm2019_vm5, %v1930_v57 }
 0x2da   :  { %2301 = vrot.lane.b32.xlu0 %v9426_v52, %s10121_s29  ;;  %2303 = vrot.lane.b32.xlu1 %v9427_v53, %s10121_s29  ;;  %v9458_v52 = vld [vmem:[%s17679_s0 + $0xc1] sm:$0xff]  ;;  %v9459_v53 = vld [vmem:[%s17679_s0 + $0xc9] sm:$0xff] }
 0x2dc   :  { %v1932_v10 = vpop.permute.xlu0 %1931  ;;  %v1934_v55 = vpop.permute.xlu1 %1933 }
 0x2dd   :  { %2072 = vst.msk [vmem:[#allocation2 + $0x1a0] sm:$0xff] %vm2019_vm5, %v1932_v10  ;;  %2073 = vst.msk [vmem:[#allocation2 + $0x1a8] sm:$0xff] %vm2019_vm5, %v1934_v55 }
 0x2de   :  { %2305 = vrot.lane.b32.xlu0 %v9428_v2, %s10121_s29  ;;  %2307 = vrot.lane.b32.xlu1 %v9429_v3, %s10121_s29  ;;  %v9460_v2 = vld [vmem:[%s17679_s0 + $0xd9] sm:$0xff]  ;;  %v9461_v3 = vld [vmem:[%s17679_s0 + $0xe1] sm:$0xff] }
 0x2e0   :  { %v1936_v4 = vpop.permute.xlu0 %1935  ;;  %v1938_v5 = vpop.permute.xlu1 %1937 }
 0x2e1   :  { %2074 = vst.msk [vmem:[#allocation2 + $0x1b0] sm:$0xff] %vm2019_vm5, %v1936_v4  ;;  %2075 = vst.msk [vmem:[#allocation2 + $0x1b8] sm:$0xff] %vm2019_vm5, %v1938_v5 }
 0x2e2   :  { %2309 = vrot.lane.b32.xlu0 %v9430_v0, %s10121_s29  ;;  %2311 = vrot.lane.b32.xlu1 %v9431_v1, %s10121_s29  ;;  %v9462_v0 = vld [vmem:[%s17679_s0 + $0xf1] sm:$0xff]  ;;  %v9463_v1 = vld [vmem:[%s17679_s0 + $0xf9] sm:$0xff] }
 0x2e4   :  { %v1940_v12 = vpop.permute.xlu0 %1939  ;;  %v1942_v14 = vpop.permute.xlu1 %1941 }
 0x2e5   :  { %2076 = vst.msk [vmem:[#allocation2 + $0x1c0] sm:$0xff] %vm2019_vm5, %v1940_v12  ;;  %2077 = vst.msk [vmem:[#allocation2 + $0x1c8] sm:$0xff] %vm2019_vm5, %v1942_v14 }
 0x2e6   :  { %2313 = vrot.lane.b32.xlu0 %v9432_v8, %s10121_s29  ;;  %2315 = vrot.lane.b32.xlu1 %v9433_v9, %s10121_s29  ;;  %v9464_v8 = vld [vmem:[%s17679_s0 + $0x109] sm:$0xff]  ;;  %v9465_v9 = vld [vmem:[%s17679_s0 + $0x111] sm:$0xff] }
 0x2e8   :  { %v1944_v35 = vpop.permute.xlu0 %1943  ;;  %v1946_v37 = vpop.permute.xlu1 %1945 }
 0x2e9   :  { %2078 = vst.msk [vmem:[#allocation2 + $0x1d0] sm:$0xff] %vm2019_vm5, %v1944_v35  ;;  %2079 = vst.msk [vmem:[#allocation2 + $0x1d8] sm:$0xff] %vm2019_vm5, %v1946_v37 }
 0x2ea   :  { %2317 = vrot.lane.b32.xlu0 %v9434_v21, %s10121_s29  ;;  %2319 = vrot.lane.b32.xlu1 %v9435_v22, %s10121_s29  ;;  %v9466_v21 = vld [vmem:[%s17679_s0 + $0x121] sm:$0xff]  ;;  %v9467_v22 = vld [vmem:[%s17679_s0 + $0x129] sm:$0xff] }
 0x2ec   :  { %v1948_v58 = vpop.permute.xlu0 %1947  ;;  %v1950_v59 = vpop.permute.xlu1 %1949 }
 0x2ed   :  { %2080 = vst.msk [vmem:[#allocation2 + $0x1e0] sm:$0xff] %vm2019_vm5, %v1948_v58  ;;  %2081 = vst.msk [vmem:[#allocation2 + $0x1e8] sm:$0xff] %vm2019_vm5, %v1950_v59 }
 0x2ee   :  { %2321 = vrot.lane.b32.xlu0 %v9436_v50, %s10121_s29  ;;  %2323 = vrot.lane.b32.xlu1 %v9437_v51, %s10121_s29  ;;  %v9468_v50 = vld [vmem:[%s17679_s0 + $0x139] sm:$0xff]  ;;  %v9469_v51 = vld [vmem:[%s17679_s0 + $0x141] sm:$0xff] }
 0x2f0   :  { %v1952_v6 = vpop.permute.xlu0 %1951  ;;  %v1954_v7 = vpop.permute.xlu1 %1953 }
 0x2f1   :  { %2082 = vst.msk [vmem:[#allocation2 + $0x1f0] sm:$0xff] %vm2019_vm5, %v1952_v6  ;;  %2083 = vst.msk [vmem:[#allocation2 + $0x1f8] sm:$0xff] %vm2019_vm5, %v1954_v7  ;;  %vm7348_vm5 = vcmask 523712  }
 0x2f2   :  { %2325 = vrot.lane.b32.xlu0 %v9438_v62, %s10121_s29  ;;  %2327 = vrot.lane.b32.xlu1 %v9439_v63, %s10121_s29  ;;  %v9470_v62 = vld [vmem:[%s17679_s0 + $0x151] sm:$0xff]  ;;  %v9471_v63 = vld [vmem:[%s17679_s0 + $0x159] sm:$0xff] }
 0x2f4   :  { %v2214_v44 = vpop.permute.xlu0 %2213  ;;  %v2216_v45 = vpop.permute.xlu1 %2215 }
 0x2f5   :  { %2406 = vst.msk [vmem:[#allocation2] sm:$0xff] %vm2405_vm6, %v2214_v44  ;;  %2407 = vst.msk [vmem:[#allocation2 + $0x8] sm:$0xff] %vm2405_vm6, %v2216_v45 }
 0x2f6   :  { %2329 = vrot.lane.b32.xlu0 %v9440_v15, %s10121_s29  ;;  %2331 = vrot.lane.b32.xlu1 %v9441_v16, %s10121_s29  ;;  %v9472_v15 = vld [vmem:[%s17679_s0 + $0x169] sm:$0xff]  ;;  %v9473_v16 = vld [vmem:[%s17679_s0 + $0x171] sm:$0xff] }
 0x2f8   :  { %v2218_v60 = vpop.permute.xlu0 %2217  ;;  %v2220_v61 = vpop.permute.xlu1 %2219 }
 0x2f9   :  { %2408 = vst.msk [vmem:[#allocation2 + $0x10] sm:$0xff] %vm2405_vm6, %v2218_v60  ;;  %2409 = vst.msk [vmem:[#allocation2 + $0x18] sm:$0xff] %vm2405_vm6, %v2220_v61 }
 0x2fa   :  { %2333 = vrot.lane.b32.xlu0 %v9442_v28, %s10121_s29  ;;  %2335 = vrot.lane.b32.xlu1 %v9443_v29, %s10121_s29  ;;  %v9474_v28 = vld [vmem:[%s17679_s0 + $0x181] sm:$0xff]  ;;  %v9475_v29 = vld [vmem:[%s17679_s0 + $0x189] sm:$0xff] }
 0x2fc   :  { %v2222_v13 = vpop.permute.xlu0 %2221  ;;  %v2224_v17 = vpop.permute.xlu1 %2223 }
 0x2fd   :  { %2410 = vst.msk [vmem:[#allocation2 + $0x20] sm:$0xff] %vm2405_vm6, %v2222_v13  ;;  %2411 = vst.msk [vmem:[#allocation2 + $0x28] sm:$0xff] %vm2405_vm6, %v2224_v17 }
 0x2fe   :  { %2337 = vrot.lane.b32.xlu0 %v9444_v11, %s10121_s29  ;;  %2339 = vrot.lane.b32.xlu1 %v9445_v54, %s10121_s29  ;;  %v9476_v11 = vld [vmem:[%s17679_s0 + $0x199] sm:$0xff]  ;;  %v9477_v54 = vld [vmem:[%s17679_s0 + $0x1a1] sm:$0xff] }
 0x300   :  { %v2226_v20 = vpop.permute.xlu0 %2225  ;;  %v2228_v23 = vpop.permute.xlu1 %2227 }
 0x301   :  { %2412 = vst.msk [vmem:[#allocation2 + $0x30] sm:$0xff] %vm2405_vm6, %v2226_v20  ;;  %2413 = vst.msk [vmem:[#allocation2 + $0x38] sm:$0xff] %vm2405_vm6, %v2228_v23 }
 0x302   :  { %2598 = vrot.lane.b32.xlu0 %v9446_v18, %s10122_s23  ;;  %2600 = vrot.lane.b32.xlu1 %v9447_v19, %s10122_s23  ;;  %v9478_v18 = vld [vmem:[%s17679_s0 + $0x1e1] sm:$0xff]  ;;  %v9479_v19 = vld [vmem:[%s17679_s0 + $0x1e9] sm:$0xff] }
 0x304   :  { %v2230_v26 = vpop.permute.xlu0 %2229  ;;  %v2232_v27 = vpop.permute.xlu1 %2231 }
 0x305   :  { %2414 = vst.msk [vmem:[#allocation2 + $0x40] sm:$0xff] %vm2405_vm6, %v2230_v26  ;;  %2415 = vst.msk [vmem:[#allocation2 + $0x48] sm:$0xff] %vm2405_vm6, %v2232_v27 }
 0x306   :  { %2602 = vrot.lane.b32.xlu0 %v9448_v24, %s10122_s23  ;;  %2604 = vrot.lane.b32.xlu1 %v9449_v25, %s10122_s23  ;;  %v9480_v24 = vld [vmem:[%s17679_s0 + $0x1f9] sm:$0xff]  ;;  %v9481_v25 = vld [vmem:[%s17679_s0 + $0x201] sm:$0xff] }
 0x308   :  { %v2234_v32 = vpop.permute.xlu0 %2233  ;;  %v2236_v33 = vpop.permute.xlu1 %2235 }
 0x309   :  { %2416 = vst.msk [vmem:[#allocation2 + $0x50] sm:$0xff] %vm2405_vm6, %v2234_v32  ;;  %2417 = vst.msk [vmem:[#allocation2 + $0x58] sm:$0xff] %vm2405_vm6, %v2236_v33 }
 0x30a   :  { %2606 = vrot.lane.b32.xlu0 %v9450_v30, %s10122_s23  ;;  %2608 = vrot.lane.b32.xlu1 %v9451_v31, %s10122_s23  ;;  %v9482_v30 = vld [vmem:[%s17679_s0 + $0x211] sm:$0xff]  ;;  %v9483_v31 = vld [vmem:[%s17679_s0 + $0x219] sm:$0xff] }
 0x30c   :  { %v2238_v38 = vpop.permute.xlu0 %2237  ;;  %v2240_v39 = vpop.permute.xlu1 %2239 }
 0x30d   :  { %2418 = vst.msk [vmem:[#allocation2 + $0x60] sm:$0xff] %vm2405_vm6, %v2238_v38  ;;  %2419 = vst.msk [vmem:[#allocation2 + $0x68] sm:$0xff] %vm2405_vm6, %v2240_v39 }
 0x30e   :  { %2610 = vrot.lane.b32.xlu0 %v9452_v34, %s10122_s23  ;;  %2612 = vrot.lane.b32.xlu1 %v9453_v36, %s10122_s23  ;;  %v9484_v34 = vld [vmem:[%s17679_s0 + $0x229] sm:$0xff]  ;;  %v9485_v36 = vld [vmem:[%s17679_s0 + $0x231] sm:$0xff] }
 0x310   :  { %v2242_v42 = vpop.permute.xlu0 %2241  ;;  %v2244_v43 = vpop.permute.xlu1 %2243 }
 0x311   :  { %2420 = vst.msk [vmem:[#allocation2 + $0x70] sm:$0xff] %vm2405_vm6, %v2242_v42  ;;  %2421 = vst.msk [vmem:[#allocation2 + $0x78] sm:$0xff] %vm2405_vm6, %v2244_v43 }
 0x312   :  { %2614 = vrot.lane.b32.xlu0 %v9454_v40, %s10122_s23  ;;  %2616 = vrot.lane.b32.xlu1 %v9455_v41, %s10122_s23  ;;  %v9486_v40 = vld [vmem:[%s17679_s0 + $0x241] sm:$0xff]  ;;  %v9487_v41 = vld [vmem:[%s17679_s0 + $0x249] sm:$0xff] }
 0x314   :  { %v2246_v48 = vpop.permute.xlu0 %2245  ;;  %v2248_v49 = vpop.permute.xlu1 %2247 }
 0x315   :  { %2422 = vst.msk [vmem:[#allocation2 + $0x80] sm:$0xff] %vm2405_vm6, %v2246_v48  ;;  %2423 = vst.msk [vmem:[#allocation2 + $0x88] sm:$0xff] %vm2405_vm6, %v2248_v49 }
 0x316   :  { %2618 = vrot.lane.b32.xlu0 %v9456_v46, %s10122_s23  ;;  %2620 = vrot.lane.b32.xlu1 %v9457_v47, %s10122_s23  ;;  %v9488_v46 = vld [vmem:[%s17679_s0 + $0x259] sm:$0xff]  ;;  %v9489_v47 = vld [vmem:[%s17679_s0 + $0x261] sm:$0xff] }
 0x318   :  { %v2250_v56 = vpop.permute.xlu0 %2249  ;;  %v2252_v57 = vpop.permute.xlu1 %2251 }
 0x319   :  { %2424 = vst.msk [vmem:[#allocation2 + $0x90] sm:$0xff] %vm2405_vm6, %v2250_v56  ;;  %2425 = vst.msk [vmem:[#allocation2 + $0x98] sm:$0xff] %vm2405_vm6, %v2252_v57 }
 0x31a   :  { %2622 = vrot.lane.b32.xlu0 %v9458_v52, %s10122_s23  ;;  %2624 = vrot.lane.b32.xlu1 %v9459_v53, %s10122_s23  ;;  %v9490_v52 = vld [vmem:[%s17679_s0 + $0x271] sm:$0xff]  ;;  %v9491_v53 = vld [vmem:[%s17679_s0 + $0x279] sm:$0xff] }
 0x31c   :  { %v2254_v10 = vpop.permute.xlu0 %2253  ;;  %v2256_v55 = vpop.permute.xlu1 %2255 }
 0x31d   :  { %2426 = vst.msk [vmem:[#allocation2 + $0xa0] sm:$0xff] %vm2405_vm6, %v2254_v10  ;;  %2427 = vst.msk [vmem:[#allocation2 + $0xa8] sm:$0xff] %vm2405_vm6, %v2256_v55 }
 0x31e   :  { %2626 = vrot.lane.b32.xlu0 %v9460_v2, %s10122_s23  ;;  %2628 = vrot.lane.b32.xlu1 %v9461_v3, %s10122_s23  ;;  %v9492_v2 = vld [vmem:[%s17679_s0 + $0x289] sm:$0xff]  ;;  %v9493_v3 = vld [vmem:[%s17679_s0 + $0x291] sm:$0xff] }
 0x320   :  { %v2258_v4 = vpop.permute.xlu0 %2257  ;;  %v2260_v5 = vpop.permute.xlu1 %2259 }
 0x321   :  { %2428 = vst.msk [vmem:[#allocation2 + $0xb0] sm:$0xff] %vm2405_vm6, %v2258_v4  ;;  %2429 = vst.msk [vmem:[#allocation2 + $0xb8] sm:$0xff] %vm2405_vm6, %v2260_v5 }
 0x322   :  { %2630 = vrot.lane.b32.xlu0 %v9462_v0, %s10122_s23  ;;  %2632 = vrot.lane.b32.xlu1 %v9463_v1, %s10122_s23  ;;  %v9494_v0 = vld [vmem:[%s17679_s0 + $0x2a1] sm:$0xff]  ;;  %v9495_v1 = vld [vmem:[%s17679_s0 + $0x2a9] sm:$0xff] }
 0x324   :  { %v2262_v12 = vpop.permute.xlu0 %2261  ;;  %v2264_v14 = vpop.permute.xlu1 %2263 }
 0x325   :  { %2430 = vst.msk [vmem:[#allocation2 + $0xc0] sm:$0xff] %vm2405_vm6, %v2262_v12  ;;  %2431 = vst.msk [vmem:[#allocation2 + $0xc8] sm:$0xff] %vm2405_vm6, %v2264_v14 }
 0x326   :  { %2634 = vrot.lane.b32.xlu0 %v9464_v8, %s10122_s23  ;;  %2636 = vrot.lane.b32.xlu1 %v9465_v9, %s10122_s23  ;;  %v9496_v8 = vld [vmem:[%s17679_s0 + $0x2b9] sm:$0xff]  ;;  %v9497_v9 = vld [vmem:[%s17679_s0 + $0x2c1] sm:$0xff] }
 0x328   :  { %v2266_v35 = vpop.permute.xlu0 %2265  ;;  %v2268_v37 = vpop.permute.xlu1 %2267 }
 0x329   :  { %2432 = vst.msk [vmem:[#allocation2 + $0xd0] sm:$0xff] %vm2405_vm6, %v2266_v35  ;;  %2433 = vst.msk [vmem:[#allocation2 + $0xd8] sm:$0xff] %vm2405_vm6, %v2268_v37 }
 0x32a   :  { %2638 = vrot.lane.b32.xlu0 %v9466_v21, %s10122_s23  ;;  %2640 = vrot.lane.b32.xlu1 %v9467_v22, %s10122_s23  ;;  %v9498_v21 = vld [vmem:[%s17679_s0 + $0x2d1] sm:$0xff]  ;;  %v9499_v22 = vld [vmem:[%s17679_s0 + $0x2d9] sm:$0xff] }
 0x32c   :  { %v2270_v58 = vpop.permute.xlu0 %2269  ;;  %v2272_v59 = vpop.permute.xlu1 %2271 }
 0x32d   :  { %2434 = vst.msk [vmem:[#allocation2 + $0xe0] sm:$0xff] %vm2405_vm6, %v2270_v58  ;;  %2435 = vst.msk [vmem:[#allocation2 + $0xe8] sm:$0xff] %vm2405_vm6, %v2272_v59 }
 0x32e   :  { %2642 = vrot.lane.b32.xlu0 %v9468_v50, %s10122_s23  ;;  %2644 = vrot.lane.b32.xlu1 %v9469_v51, %s10122_s23  ;;  %v9500_v50 = vld [vmem:[%s17679_s0 + $0x2e9] sm:$0xff]  ;;  %v9501_v51 = vld [vmem:[%s17679_s0 + $0x2f1] sm:$0xff] }
 0x330   :  { %v2274_v6 = vpop.permute.xlu0 %2273  ;;  %v2276_v7 = vpop.permute.xlu1 %2275 }
 0x331   :  { %2436 = vst.msk [vmem:[#allocation2 + $0xf0] sm:$0xff] %vm2405_vm6, %v2274_v6  ;;  %2437 = vst.msk [vmem:[#allocation2 + $0xf8] sm:$0xff] %vm2405_vm6, %v2276_v7 }
 0x332   :  { %2646 = vrot.lane.b32.xlu0 %v9470_v62, %s10122_s23  ;;  %2648 = vrot.lane.b32.xlu1 %v9471_v63, %s10122_s23  ;;  %v9502_v62 = vld [vmem:[%s17679_s0 + $0x301] sm:$0xff]  ;;  %v9503_v63 = vld [vmem:[%s17679_s0 + $0x309] sm:$0xff] }
 0x334   :  { %v2278_v44 = vpop.permute.xlu0 %2277  ;;  %v2280_v45 = vpop.permute.xlu1 %2279 }
 0x335   :  { %2438 = vst.msk [vmem:[#allocation2 + $0x100] sm:$0xff] %vm2405_vm6, %v2278_v44  ;;  %2439 = vst.msk [vmem:[#allocation2 + $0x108] sm:$0xff] %vm2405_vm6, %v2280_v45  ;;  %v9504_v45 = vld [vmem:[%s17679_s0 + $0x319] sm:$0xff] }
 0x336   :  { %2650 = vrot.lane.b32.xlu0 %v9472_v15, %s10122_s23  ;;  %2652 = vrot.lane.b32.xlu1 %v9473_v16, %s10122_s23  ;;  %v3304_v15 = vld [vmem:[%s17680_s2] sm:$0xff]  ;;  %v3305_v16 = vld [vmem:[%s17680_s2 + $0x8] sm:$0xff] }
 0x337   :  { %v10065_v44 = vpack.c.bf16 %v3305_v16, %v3304_v15  ;;  %v9533_v15 = vld [vmem:[%s17679_s0 + $0x142] sm:$0xff] }
 0x338   :  { %v2282_v60 = vpop.permute.xlu0 %2281  ;;  %v2284_v61 = vpop.permute.xlu1 %2283 }
 0x339   :  { %2440 = vst.msk [vmem:[#allocation2 + $0x110] sm:$0xff] %vm2405_vm6, %v2282_v60  ;;  %2441 = vst.msk [vmem:[#allocation2 + $0x118] sm:$0xff] %vm2405_vm6, %v2284_v61  ;;  %10066 = vmatprep.subr.bf16.mxu0 %v10065_v44  ;;  %v3306_v61 = vld [vmem:[%s17680_s2 + $0x10] sm:$0xff] }
 0x33a   :  { %2654 = vrot.lane.b32.xlu0 %v9474_v28, %s10122_s23  ;;  %2656 = vrot.lane.b32.xlu1 %v9475_v29, %s10122_s23  ;;  %v9505_v28 = vld [vmem:[%s17679_s0 + $0x321] sm:$0xff] }
 0x33b   :  { %10068 = vmatpush3.bf16.msra.mxu0 %v10065_v44 }
 0x33c   :  { %v2286_v13 = vpop.permute.xlu0 %2285  ;;  %v2288_v17 = vpop.permute.xlu1 %2287 }
 0x33d   :  { %2442 = vst.msk [vmem:[#allocation2 + $0x120] sm:$0xff] %vm2405_vm6, %v2286_v13  ;;  %2443 = vst.msk [vmem:[#allocation2 + $0x128] sm:$0xff] %vm2405_vm6, %v2288_v17  ;;  %v9506_v13 = vld [vmem:[%s17679_s0 + $0x331] sm:$0xff]  ;;  %v9507_v17 = vld [vmem:[%s17679_s0 + $0x339] sm:$0xff] }
 0x33e   :  { %2658 = vrot.lane.b32.xlu0 %v9476_v11, %s10122_s23  ;;  %2660 = vrot.lane.b32.xlu1 %v9477_v54, %s10122_s23  ;;  %v3307_v11 = vld [vmem:[%s17680_s2 + $0x18] sm:$0xff] }
 0x33f   :  { %v10069_v54 = vpack.c.bf16 %v3307_v11, %v3306_v61  ;;  %v9536_v61 = vld [vmem:[%s17679_s0 + $0x16a] sm:$0xff]  ;;  %v9537_v11 = vld [vmem:[%s17679_s0 + $0x172] sm:$0xff] }
 0x340   :  { %v2290_v20 = vpop.permute.xlu0 %2289  ;;  %v2292_v23 = vpop.permute.xlu1 %2291 }
 0x341   :  { %2444 = vst.msk [vmem:[#allocation2 + $0x130] sm:$0xff] %vm2405_vm6, %v2290_v20  ;;  %2445 = vst.msk [vmem:[#allocation2 + $0x138] sm:$0xff] %vm2405_vm6, %v2292_v23  ;;  %10070 = vmatprep.subr.bf16.mxu0 %v10069_v54  ;;  %v3308_v20 = vld [vmem:[%s17680_s2 + $0x20] sm:$0xf]  ;;  %v9508_v23 = vld [vmem:[%s17679_s0 + $0x349] sm:$0xff] }
 0x342   :  { %2662 = vrot.lane.b32.xlu0 %v9478_v18, %s10122_s23  ;;  %2664 = vrot.lane.b32.xlu1 %v9479_v19, %s10122_s23 }
 0x343   :  { %10072 = vmatpush3.bf16.msra.mxu0 %v10069_v54 }
 0x344   :  { %v2294_v26 = vpop.permute.xlu0 %2293  ;;  %v2296_v27 = vpop.permute.xlu1 %2295  ;;  %9853 = vmatprep.subr.msk.mxu0 %vm3502_vm8, %v3308_v20 }
 0x345   :  { %2446 = vst.msk [vmem:[#allocation2 + $0x140] sm:$0xff] %vm2405_vm6, %v2294_v26  ;;  %2447 = vst.msk [vmem:[#allocation2 + $0x148] sm:$0xff] %vm2405_vm6, %v2296_v27  ;;  %v9510_v27 = vld [vmem:[%s17679_s0 + $0x32] sm:$0xff] }
 0x346   :  { %2666 = vrot.lane.b32.xlu0 %v9480_v24, %s10122_s23  ;;  %2668 = vrot.lane.b32.xlu1 %v9481_v25, %s10122_s23  ;;  %v9509_v24 = vld [vmem:[%s17679_s0 + $0x351] sm:$0xff] }
 0x347   :  { %9854 = vmatpush3.msk.msra.mxu0 %vm3502_vm8, %v3308_v20 }
 0x348   :  { %v2298_v32 = vpop.permute.xlu0 %2297  ;;  %v2300_v33 = vpop.permute.xlu1 %2299 }
 0x349   :  { %2448 = vst.msk [vmem:[#allocation2 + $0x150] sm:$0xff] %vm2405_vm6, %v2298_v32  ;;  %2449 = vst.msk [vmem:[#allocation2 + $0x158] sm:$0xff] %vm2405_vm6, %v2300_v33  ;;  %v9512_v33 = vld [vmem:[%s17679_s0 + $0x4a] sm:$0xff] }
 0x34a   :  { %2670 = vrot.lane.b32.xlu0 %v9482_v30, %s10122_s23  ;;  %2672 = vrot.lane.b32.xlu1 %v9483_v31, %s10122_s23  ;;  %v9511_v30 = vld [vmem:[%s17679_s0 + $0x3a] sm:$0xff] }
 0x34c   :  { %v2302_v38 = vpop.permute.xlu0 %2301  ;;  %v2304_v39 = vpop.permute.xlu1 %2303 }
 0x34d   :  { %2450 = vst.msk [vmem:[#allocation2 + $0x160] sm:$0xff] %vm2405_vm6, %v2302_v38  ;;  %2451 = vst.msk [vmem:[#allocation2 + $0x168] sm:$0xff] %vm2405_vm6, %v2304_v39  ;;  %v9514_v39 = vld [vmem:[%s17679_s0 + $0x62] sm:$0xff] }
 0x34e   :  { %2674 = vrot.lane.b32.xlu0 %v9484_v34, %s10122_s23  ;;  %2676 = vrot.lane.b32.xlu1 %v9485_v36, %s10122_s23  ;;  %v9513_v34 = vld [vmem:[%s17679_s0 + $0x52] sm:$0xff] }
 0x350   :  { %v2306_v42 = vpop.permute.xlu0 %2305  ;;  %v2308_v43 = vpop.permute.xlu1 %2307 }
 0x351   :  { %2452 = vst.msk [vmem:[#allocation2 + $0x170] sm:$0xff] %vm2405_vm6, %v2306_v42  ;;  %2453 = vst.msk [vmem:[#allocation2 + $0x178] sm:$0xff] %vm2405_vm6, %v2308_v43  ;;  %v9516_v43 = vld [vmem:[%s17679_s0 + $0x7a] sm:$0xff] }
 0x352   :  { %2678 = vrot.lane.b32.xlu0 %v9486_v40, %s10122_s23  ;;  %2680 = vrot.lane.b32.xlu1 %v9487_v41, %s10122_s23  ;;  %v9515_v40 = vld [vmem:[%s17679_s0 + $0x6a] sm:$0xff] }
 0x354   :  { %v2310_v48 = vpop.permute.xlu0 %2309  ;;  %v2312_v49 = vpop.permute.xlu1 %2311 }
 0x355   :  { %2454 = vst.msk [vmem:[#allocation2 + $0x180] sm:$0xff] %vm2405_vm6, %v2310_v48  ;;  %2455 = vst.msk [vmem:[#allocation2 + $0x188] sm:$0xff] %vm2405_vm6, %v2312_v49  ;;  %v9518_v49 = vld [vmem:[%s17679_s0 + $0x92] sm:$0xff] }
 0x356   :  { %2682 = vrot.lane.b32.xlu0 %v9488_v46, %s10122_s23  ;;  %2684 = vrot.lane.b32.xlu1 %v9489_v47, %s10122_s23  ;;  %v9517_v46 = vld [vmem:[%s17679_s0 + $0x82] sm:$0xff] }
 0x358   :  { %v2314_v56 = vpop.permute.xlu0 %2313  ;;  %v2316_v57 = vpop.permute.xlu1 %2315 }
 0x359   :  { %2456 = vst.msk [vmem:[#allocation2 + $0x190] sm:$0xff] %vm2405_vm6, %v2314_v56  ;;  %2457 = vst.msk [vmem:[#allocation2 + $0x198] sm:$0xff] %vm2405_vm6, %v2316_v57  ;;  %v9520_v57 = vld [vmem:[%s17679_s0 + $0xaa] sm:$0xff] }
 0x35a   :  { %2686 = vrot.lane.b32.xlu0 %v9490_v52, %s10122_s23  ;;  %2688 = vrot.lane.b32.xlu1 %v9491_v53, %s10122_s23  ;;  %v9519_v52 = vld [vmem:[%s17679_s0 + $0x9a] sm:$0xff] }
 0x35c   :  { %v2318_v10 = vpop.permute.xlu0 %2317  ;;  %v2320_v55 = vpop.permute.xlu1 %2319 }
 0x35d   :  { %2458 = vst.msk [vmem:[#allocation2 + $0x1a0] sm:$0xff] %vm2405_vm6, %v2318_v10  ;;  %2459 = vst.msk [vmem:[#allocation2 + $0x1a8] sm:$0xff] %vm2405_vm6, %v2320_v55  ;;  %v9522_v55 = vld [vmem:[%s17679_s0 + $0xc2] sm:$0xff] }
 0x35e   :  { %2690 = vrot.lane.b32.xlu0 %v9492_v2, %s10122_s23  ;;  %2692 = vrot.lane.b32.xlu1 %v9493_v3, %s10122_s23  ;;  %v9521_v2 = vld [vmem:[%s17679_s0 + $0xb2] sm:$0xff] }
 0x360   :  { %v2322_v4 = vpop.permute.xlu0 %2321  ;;  %v2324_v5 = vpop.permute.xlu1 %2323 }
 0x361   :  { %2460 = vst.msk [vmem:[#allocation2 + $0x1b0] sm:$0xff] %vm2405_vm6, %v2322_v4  ;;  %2461 = vst.msk [vmem:[#allocation2 + $0x1b8] sm:$0xff] %vm2405_vm6, %v2324_v5  ;;  %v9524_v5 = vld [vmem:[%s17679_s0 + $0xda] sm:$0xff] }
 0x362   :  { %2694 = vrot.lane.b32.xlu0 %v9494_v0, %s10122_s23  ;;  %2696 = vrot.lane.b32.xlu1 %v9495_v1, %s10122_s23  ;;  %v9523_v0 = vld [vmem:[%s17679_s0 + $0xca] sm:$0xff] }
 0x364   :  { %v2326_v12 = vpop.permute.xlu0 %2325  ;;  %v2328_v14 = vpop.permute.xlu1 %2327 }
 0x365   :  { %2462 = vst.msk [vmem:[#allocation2 + $0x1c0] sm:$0xff] %vm2405_vm6, %v2326_v12  ;;  %2463 = vst.msk [vmem:[#allocation2 + $0x1c8] sm:$0xff] %vm2405_vm6, %v2328_v14  ;;  %v9526_v14 = vld [vmem:[%s17679_s0 + $0xf2] sm:$0xff] }
 0x366   :  { %2698 = vrot.lane.b32.xlu0 %v9496_v8, %s10122_s23  ;;  %2700 = vrot.lane.b32.xlu1 %v9497_v9, %s10122_s23  ;;  %v9525_v8 = vld [vmem:[%s17679_s0 + $0xe2] sm:$0xff] }
 0x368   :  { %v2330_v35 = vpop.permute.xlu0 %2329  ;;  %v2332_v37 = vpop.permute.xlu1 %2331 }
 0x369   :  { %2464 = vst.msk [vmem:[#allocation2 + $0x1d0] sm:$0xff] %vm2405_vm6, %v2330_v35  ;;  %2465 = vst.msk [vmem:[#allocation2 + $0x1d8] sm:$0xff] %vm2405_vm6, %v2332_v37  ;;  %v9528_v37 = vld [vmem:[%s17679_s0 + $0x10a] sm:$0xff] }
 0x36a   :  { %2702 = vrot.lane.b32.xlu0 %v9498_v21, %s10122_s23  ;;  %2704 = vrot.lane.b32.xlu1 %v9499_v22, %s10122_s23  ;;  %v9527_v21 = vld [vmem:[%s17679_s0 + $0xfa] sm:$0xff] }
 0x36c   :  { %v2334_v58 = vpop.permute.xlu0 %2333  ;;  %v2336_v59 = vpop.permute.xlu1 %2335 }
 0x36d   :  { %2466 = vst.msk [vmem:[#allocation2 + $0x1e0] sm:$0xff] %vm2405_vm6, %v2334_v58  ;;  %2467 = vst.msk [vmem:[#allocation2 + $0x1e8] sm:$0xff] %vm2405_vm6, %v2336_v59  ;;  %v9530_v59 = vld [vmem:[%s17679_s0 + $0x122] sm:$0xff] }
 0x36e   :  { %2706 = vrot.lane.b32.xlu0 %v9500_v50, %s10122_s23  ;;  %2708 = vrot.lane.b32.xlu1 %v9501_v51, %s10122_s23  ;;  %v9529_v50 = vld [vmem:[%s17679_s0 + $0x112] sm:$0xff] }
 0x370   :  { %v2338_v6 = vpop.permute.xlu0 %2337  ;;  %v2340_v7 = vpop.permute.xlu1 %2339 }
 0x371   :  { %2468 = vst.msk [vmem:[#allocation2 + $0x1f0] sm:$0xff] %vm2405_vm6, %v2338_v6  ;;  %2469 = vst.msk [vmem:[#allocation2 + $0x1f8] sm:$0xff] %vm2405_vm6, %v2340_v7  ;;  %v9532_v7 = vld [vmem:[%s17679_s0 + $0x13a] sm:$0xff]  ;;  %vm7733_vm6 = vcmask 589312  }
 0x372   :  { %2710 = vrot.lane.b32.xlu0 %v9502_v62, %s10122_s23  ;;  %2712 = vrot.lane.b32.xlu1 %v9503_v63, %s10122_s23  ;;  %v9531_v62 = vld [vmem:[%s17679_s0 + $0x12a] sm:$0xff] }
 0x374   :  { %v2599_v29 = vpop.permute.xlu0 %2598  ;;  %v2601_v60 = vpop.permute.xlu1 %2600 }
 0x375   :  { %2791 = vst.msk [vmem:[#allocation2] sm:$0xff] %vm2790_vm7, %v2599_v29  ;;  %2792 = vst.msk [vmem:[#allocation2 + $0x8] sm:$0xff] %vm2790_vm7, %v2601_v60 }
 0x376   :  { %2714 = vrot.lane.b32.xlu0 %v9504_v45, %s10122_s23  ;;  %2716 = vrot.lane.b32.xlu1 %v9505_v28, %s10122_s23  ;;  %v9534_v45 = vld [vmem:[%s17679_s0 + $0x152] sm:$0xff]  ;;  %v9535_v28 = vld [vmem:[%s17679_s0 + $0x15a] sm:$0xff] }
 0x378   :  { %v2603_v18 = vpop.permute.xlu0 %2602  ;;  %v2605_v19 = vpop.permute.xlu1 %2604 }
 0x379   :  { %2793 = vst.msk [vmem:[#allocation2 + $0x10] sm:$0xff] %vm2790_vm7, %v2603_v18  ;;  %2794 = vst.msk [vmem:[#allocation2 + $0x18] sm:$0xff] %vm2790_vm7, %v2605_v19  ;;  %v9539_v18 = vld [vmem:[%s17679_s0 + $0x18a] sm:$0xff] }
 0x37a   :  { %2718 = vrot.lane.b32.xlu0 %v9506_v13, %s10122_s23  ;;  %2720 = vrot.lane.b32.xlu1 %v9507_v17, %s10122_s23  ;;  %v9538_v17 = vld [vmem:[%s17679_s0 + $0x182] sm:$0xff] }
 0x37c   :  { %v2607_v25 = vpop.permute.xlu0 %2606  ;;  %v2609_v26 = vpop.permute.xlu1 %2608 }
 0x37d   :  { %2795 = vst.msk [vmem:[#allocation2 + $0x20] sm:$0xff] %vm2790_vm7, %v2607_v25  ;;  %2796 = vst.msk [vmem:[#allocation2 + $0x28] sm:$0xff] %vm2790_vm7, %v2609_v26 }
 0x37e   :  { %2722 = vrot.lane.b32.xlu0 %v9508_v23, %s10122_s23  ;;  %2724 = vrot.lane.b32.xlu1 %v9509_v24, %s10122_s23  ;;  %v9540_v23 = vld [vmem:[%s17679_s0 + $0x19a] sm:$0xff]  ;;  %v9541_v24 = vld [vmem:[%s17679_s0 + $0x1a2] sm:$0xff] }
 0x380   :  { %v2611_v31 = vpop.permute.xlu0 %2610  ;;  %v2613_v32 = vpop.permute.xlu1 %2612 }
 0x381   :  { %2797 = vst.msk [vmem:[#allocation2 + $0x30] sm:$0xff] %vm2790_vm7, %v2611_v31  ;;  %2798 = vst.msk [vmem:[#allocation2 + $0x38] sm:$0xff] %vm2790_vm7, %v2613_v32 }
 0x382   :  { %2983 = vrot.lane.b32.xlu0 %v9510_v27, %s10123_s16  ;;  %2985 = vrot.lane.b32.xlu1 %v9511_v30, %s10123_s16  ;;  %v9542_v27 = vld [vmem:[%s17679_s0 + $0x1e2] sm:$0xff]  ;;  %v9543_v30 = vld [vmem:[%s17679_s0 + $0x1ea] sm:$0xff] }
 0x384   :  { %v2615_v36 = vpop.permute.xlu0 %2614  ;;  %v2617_v38 = vpop.permute.xlu1 %2616 }
 0x385   :  { %2799 = vst.msk [vmem:[#allocation2 + $0x40] sm:$0xff] %vm2790_vm7, %v2615_v36  ;;  %2800 = vst.msk [vmem:[#allocation2 + $0x48] sm:$0xff] %vm2790_vm7, %v2617_v38 }
 0x386   :  { %2987 = vrot.lane.b32.xlu0 %v9512_v33, %s10123_s16  ;;  %2989 = vrot.lane.b32.xlu1 %v9513_v34, %s10123_s16  ;;  %v9544_v33 = vld [vmem:[%s17679_s0 + $0x1fa] sm:$0xff]  ;;  %v9545_v34 = vld [vmem:[%s17679_s0 + $0x202] sm:$0xff] }
 0x388   :  { %v2619_v41 = vpop.permute.xlu0 %2618  ;;  %v2621_v42 = vpop.permute.xlu1 %2620 }
 0x389   :  { %2801 = vst.msk [vmem:[#allocation2 + $0x50] sm:$0xff] %vm2790_vm7, %v2619_v41  ;;  %2802 = vst.msk [vmem:[#allocation2 + $0x58] sm:$0xff] %vm2790_vm7, %v2621_v42 }
 0x38a   :  { %2991 = vrot.lane.b32.xlu0 %v9514_v39, %s10123_s16  ;;  %2993 = vrot.lane.b32.xlu1 %v9515_v40, %s10123_s16  ;;  %v9546_v39 = vld [vmem:[%s17679_s0 + $0x212] sm:$0xff]  ;;  %v9547_v40 = vld [vmem:[%s17679_s0 + $0x21a] sm:$0xff] }
 0x38c   :  { %v2623_v47 = vpop.permute.xlu0 %2622  ;;  %v2625_v48 = vpop.permute.xlu1 %2624 }
 0x38d   :  { %2803 = vst.msk [vmem:[#allocation2 + $0x60] sm:$0xff] %vm2790_vm7, %v2623_v47  ;;  %2804 = vst.msk [vmem:[#allocation2 + $0x68] sm:$0xff] %vm2790_vm7, %v2625_v48 }
 0x38e   :  { %2995 = vrot.lane.b32.xlu0 %v9516_v43, %s10123_s16  ;;  %2997 = vrot.lane.b32.xlu1 %v9517_v46, %s10123_s16  ;;  %v9548_v43 = vld [vmem:[%s17679_s0 + $0x22a] sm:$0xff]  ;;  %v9549_v46 = vld [vmem:[%s17679_s0 + $0x232] sm:$0xff] }
 0x390   :  { %v2627_v53 = vpop.permute.xlu0 %2626  ;;  %v2629_v56 = vpop.permute.xlu1 %2628 }
 0x391   :  { %2805 = vst.msk [vmem:[#allocation2 + $0x70] sm:$0xff] %vm2790_vm7, %v2627_v53  ;;  %2806 = vst.msk [vmem:[#allocation2 + $0x78] sm:$0xff] %vm2790_vm7, %v2629_v56 }
 0x392   :  { %2999 = vrot.lane.b32.xlu0 %v9518_v49, %s10123_s16  ;;  %3001 = vrot.lane.b32.xlu1 %v9519_v52, %s10123_s16  ;;  %v9550_v49 = vld [vmem:[%s17679_s0 + $0x242] sm:$0xff]  ;;  %v9551_v52 = vld [vmem:[%s17679_s0 + $0x24a] sm:$0xff] }
 0x394   :  { %v2631_v3 = vpop.permute.xlu0 %2630  ;;  %v2633_v10 = vpop.permute.xlu1 %2632 }
 0x395   :  { %2807 = vst.msk [vmem:[#allocation2 + $0x80] sm:$0xff] %vm2790_vm7, %v2631_v3  ;;  %2808 = vst.msk [vmem:[#allocation2 + $0x88] sm:$0xff] %vm2790_vm7, %v2633_v10 }
 0x396   :  { %3003 = vrot.lane.b32.xlu0 %v9520_v57, %s10123_s16  ;;  %3005 = vrot.lane.b32.xlu1 %v9521_v2, %s10123_s16  ;;  %v9552_v57 = vld [vmem:[%s17679_s0 + $0x25a] sm:$0xff]  ;;  %v9553_v2 = vld [vmem:[%s17679_s0 + $0x262] sm:$0xff] }
 0x398   :  { %v2635_v1 = vpop.permute.xlu0 %2634  ;;  %v2637_v4 = vpop.permute.xlu1 %2636 }
 0x399   :  { %2809 = vst.msk [vmem:[#allocation2 + $0x90] sm:$0xff] %vm2790_vm7, %v2635_v1  ;;  %2810 = vst.msk [vmem:[#allocation2 + $0x98] sm:$0xff] %vm2790_vm7, %v2637_v4 }
 0x39a   :  { %3007 = vrot.lane.b32.xlu0 %v9522_v55, %s10123_s16  ;;  %3009 = vrot.lane.b32.xlu1 %v9523_v0, %s10123_s16  ;;  %v9554_v55 = vld [vmem:[%s17679_s0 + $0x272] sm:$0xff]  ;;  %v9555_v0 = vld [vmem:[%s17679_s0 + $0x27a] sm:$0xff] }
 0x39c   :  { %v2639_v9 = vpop.permute.xlu0 %2638  ;;  %v2641_v12 = vpop.permute.xlu1 %2640 }
 0x39d   :  { %2811 = vst.msk [vmem:[#allocation2 + $0xa0] sm:$0xff] %vm2790_vm7, %v2639_v9  ;;  %2812 = vst.msk [vmem:[#allocation2 + $0xa8] sm:$0xff] %vm2790_vm7, %v2641_v12 }
 0x39e   :  { %3011 = vrot.lane.b32.xlu0 %v9524_v5, %s10123_s16  ;;  %3013 = vrot.lane.b32.xlu1 %v9525_v8, %s10123_s16  ;;  %v9556_v5 = vld [vmem:[%s17679_s0 + $0x28a] sm:$0xff]  ;;  %v9557_v8 = vld [vmem:[%s17679_s0 + $0x292] sm:$0xff] }
 0x3a0   :  { %v2643_v22 = vpop.permute.xlu0 %2642  ;;  %v2645_v35 = vpop.permute.xlu1 %2644 }
 0x3a1   :  { %2813 = vst.msk [vmem:[#allocation2 + $0xb0] sm:$0xff] %vm2790_vm7, %v2643_v22  ;;  %2814 = vst.msk [vmem:[#allocation2 + $0xb8] sm:$0xff] %vm2790_vm7, %v2645_v35 }
 0x3a2   :  { %3015 = vrot.lane.b32.xlu0 %v9526_v14, %s10123_s16  ;;  %3017 = vrot.lane.b32.xlu1 %v9527_v21, %s10123_s16  ;;  %v9558_v14 = vld [vmem:[%s17679_s0 + $0x2a2] sm:$0xff]  ;;  %v9559_v21 = vld [vmem:[%s17679_s0 + $0x2aa] sm:$0xff] }
 0x3a4   :  { %v2647_v51 = vpop.permute.xlu0 %2646  ;;  %v2649_v58 = vpop.permute.xlu1 %2648 }
 0x3a5   :  { %2815 = vst.msk [vmem:[#allocation2 + $0xc0] sm:$0xff] %vm2790_vm7, %v2647_v51  ;;  %2816 = vst.msk [vmem:[#allocation2 + $0xc8] sm:$0xff] %vm2790_vm7, %v2649_v58 }
 0x3a6   :  { %3019 = vrot.lane.b32.xlu0 %v9528_v37, %s10123_s16  ;;  %3021 = vrot.lane.b32.xlu1 %v9529_v50, %s10123_s16  ;;  %v9560_v37 = vld [vmem:[%s17679_s0 + $0x2ba] sm:$0xff]  ;;  %v9561_v50 = vld [vmem:[%s17679_s0 + $0x2c2] sm:$0xff] }
 0x3a8   :  { %v2651_v63 = vpop.permute.xlu0 %2650  ;;  %v2653_v6 = vpop.permute.xlu1 %2652 }
 0x3a9   :  { %2817 = vst.msk [vmem:[#allocation2 + $0xd0] sm:$0xff] %vm2790_vm7, %v2651_v63  ;;  %2818 = vst.msk [vmem:[#allocation2 + $0xd8] sm:$0xff] %vm2790_vm7, %v2653_v6 }
 0x3aa   :  { %3023 = vrot.lane.b32.xlu0 %v9530_v59, %s10123_s16  ;;  %3025 = vrot.lane.b32.xlu1 %v9531_v62, %s10123_s16  ;;  %v9562_v59 = vld [vmem:[%s17679_s0 + $0x2d2] sm:$0xff]  ;;  %v9563_v62 = vld [vmem:[%s17679_s0 + $0x2da] sm:$0xff] }
 0x3ac   :  { %v2655_v16 = vpop.permute.xlu0 %2654  ;;  %v2657_v44 = vpop.permute.xlu1 %2656 }
 0x3ad   :  { %2819 = vst.msk [vmem:[#allocation2 + $0xe0] sm:$0xff] %vm2790_vm7, %v2655_v16  ;;  %2820 = vst.msk [vmem:[#allocation2 + $0xe8] sm:$0xff] %vm2790_vm7, %v2657_v44 }
 0x3ae   :  { %3027 = vrot.lane.b32.xlu0 %v9532_v7, %s10123_s16  ;;  %3029 = vrot.lane.b32.xlu1 %v9533_v15, %s10123_s16  ;;  %v9564_v7 = vld [vmem:[%s17679_s0 + $0x2ea] sm:$0xff]  ;;  %v9565_v15 = vld [vmem:[%s17679_s0 + $0x2f2] sm:$0xff] }
 0x3b0   :  { %v2659_v29 = vpop.permute.xlu0 %2658  ;;  %v2661_v60 = vpop.permute.xlu1 %2660 }
 0x3b1   :  { %2821 = vst.msk [vmem:[#allocation2 + $0xf0] sm:$0xff] %vm2790_vm7, %v2659_v29  ;;  %2822 = vst.msk [vmem:[#allocation2 + $0xf8] sm:$0xff] %vm2790_vm7, %v2661_v60 }
 0x3b2   :  { %3031 = vrot.lane.b32.xlu0 %v9534_v45, %s10123_s16  ;;  %3033 = vrot.lane.b32.xlu1 %v9535_v28, %s10123_s16  ;;  %v9566_v45 = vld [vmem:[%s17679_s0 + $0x302] sm:$0xff]  ;;  %v9567_v28 = vld [vmem:[%s17679_s0 + $0x30a] sm:$0xff] }
 0x3b4   :  { %v2663_v54 = vpop.permute.xlu0 %2662  ;;  %v2665_v13 = vpop.permute.xlu1 %2664 }
 0x3b5   :  { %2823 = vst.msk [vmem:[#allocation2 + $0x100] sm:$0xff] %vm2790_vm7, %v2663_v54  ;;  %2824 = vst.msk [vmem:[#allocation2 + $0x108] sm:$0xff] %vm2790_vm7, %v2665_v13 }
 0x3b6   :  { %3035 = vrot.lane.b32.xlu0 %v9536_v61, %s10123_s16  ;;  %3037 = vrot.lane.b32.xlu1 %v9537_v11, %s10123_s16  ;;  %v9568_v61 = vld [vmem:[%s17679_s0 + $0x31a] sm:$0xff]  ;;  %v9569_v11 = vld [vmem:[%s17679_s0 + $0x322] sm:$0xff] }
 0x3b8   :  { %v2667_v19 = vpop.permute.xlu0 %2666  ;;  %v2669_v20 = vpop.permute.xlu1 %2668 }
 0x3b9   :  { %2825 = vst.msk [vmem:[#allocation2 + $0x110] sm:$0xff] %vm2790_vm7, %v2667_v19  ;;  %2826 = vst.msk [vmem:[#allocation2 + $0x118] sm:$0xff] %vm2790_vm7, %v2669_v20 }
 0x3ba   :  { %3039 = vrot.lane.b32.xlu0 %v9538_v17, %s10123_s16  ;;  %3041 = vrot.lane.b32.xlu1 %v9539_v18, %s10123_s16  ;;  %v9570_v17 = vld [vmem:[%s17679_s0 + $0x332] sm:$0xff]  ;;  %v9571_v18 = vld [vmem:[%s17679_s0 + $0x33a] sm:$0xff] }
 0x3bc   :  { %v2671_v25 = vpop.permute.xlu0 %2670  ;;  %v2673_v26 = vpop.permute.xlu1 %2672 }
 0x3bd   :  { %2827 = vst.msk [vmem:[#allocation2 + $0x120] sm:$0xff] %vm2790_vm7, %v2671_v25  ;;  %2828 = vst.msk [vmem:[#allocation2 + $0x128] sm:$0xff] %vm2790_vm7, %v2673_v26 }
 0x3be   :  { %3043 = vrot.lane.b32.xlu0 %v9540_v23, %s10123_s16  ;;  %3045 = vrot.lane.b32.xlu1 %v9541_v24, %s10123_s16  ;;  %v9572_v23 = vld [vmem:[%s17679_s0 + $0x34a] sm:$0xff] }
 0x3c0   :  { %v2675_v31 = vpop.permute.xlu0 %2674  ;;  %v2677_v32 = vpop.permute.xlu1 %2676 }
 0x3c1   :  { %2829 = vst.msk [vmem:[#allocation2 + $0x130] sm:$0xff] %vm2790_vm7, %v2675_v31  ;;  %2830 = vst.msk [vmem:[#allocation2 + $0x138] sm:$0xff] %vm2790_vm7, %v2677_v32 }
 0x3c2   :  { %3047 = vrot.lane.b32.xlu0 %v9542_v27, %s10123_s16  ;;  %3049 = vrot.lane.b32.xlu1 %v9543_v30, %s10123_s16  ;;  %v9573_v30 = vld [vmem:[%s17679_s0 + $0x352] sm:$0xff] }
 0x3c4   :  { %v2679_v36 = vpop.permute.xlu0 %2678  ;;  %v2681_v38 = vpop.permute.xlu1 %2680 }
 0x3c5   :  { %2831 = vst.msk [vmem:[#allocation2 + $0x140] sm:$0xff] %vm2790_vm7, %v2679_v36  ;;  %2832 = vst.msk [vmem:[#allocation2 + $0x148] sm:$0xff] %vm2790_vm7, %v2681_v38 }
 0x3c6   :  { %3051 = vrot.lane.b32.xlu0 %v9544_v33, %s10123_s16  ;;  %3053 = vrot.lane.b32.xlu1 %v9545_v34, %s10123_s16 }
 0x3c8   :  { %v2683_v41 = vpop.permute.xlu0 %2682  ;;  %v2685_v42 = vpop.permute.xlu1 %2684 }
 0x3c9   :  { %2833 = vst.msk [vmem:[#allocation2 + $0x150] sm:$0xff] %vm2790_vm7, %v2683_v41  ;;  %2834 = vst.msk [vmem:[#allocation2 + $0x158] sm:$0xff] %vm2790_vm7, %v2685_v42 }
 0x3ca   :  { %3055 = vrot.lane.b32.xlu0 %v9546_v39, %s10123_s16  ;;  %3057 = vrot.lane.b32.xlu1 %v9547_v40, %s10123_s16 }
 0x3cc   :  { %v2687_v47 = vpop.permute.xlu0 %2686  ;;  %v2689_v48 = vpop.permute.xlu1 %2688 }
 0x3cd   :  { %2835 = vst.msk [vmem:[#allocation2 + $0x160] sm:$0xff] %vm2790_vm7, %v2687_v47  ;;  %2836 = vst.msk [vmem:[#allocation2 + $0x168] sm:$0xff] %vm2790_vm7, %v2689_v48 }
 0x3ce   :  { %3059 = vrot.lane.b32.xlu0 %v9548_v43, %s10123_s16  ;;  %3061 = vrot.lane.b32.xlu1 %v9549_v46, %s10123_s16 }
 0x3d0   :  { %v2691_v53 = vpop.permute.xlu0 %2690  ;;  %v2693_v56 = vpop.permute.xlu1 %2692 }
 0x3d1   :  { %2837 = vst.msk [vmem:[#allocation2 + $0x170] sm:$0xff] %vm2790_vm7, %v2691_v53  ;;  %2838 = vst.msk [vmem:[#allocation2 + $0x178] sm:$0xff] %vm2790_vm7, %v2693_v56 }
 0x3d2   :  { %3063 = vrot.lane.b32.xlu0 %v9550_v49, %s10123_s16  ;;  %3065 = vrot.lane.b32.xlu1 %v9551_v52, %s10123_s16 }
 0x3d4   :  { %v2695_v3 = vpop.permute.xlu0 %2694  ;;  %v2697_v10 = vpop.permute.xlu1 %2696 }
 0x3d5   :  { %2839 = vst.msk [vmem:[#allocation2 + $0x180] sm:$0xff] %vm2790_vm7, %v2695_v3  ;;  %2840 = vst.msk [vmem:[#allocation2 + $0x188] sm:$0xff] %vm2790_vm7, %v2697_v10 }
 0x3d6   :  { %3067 = vrot.lane.b32.xlu0 %v9552_v57, %s10123_s16  ;;  %3069 = vrot.lane.b32.xlu1 %v9553_v2, %s10123_s16 }
 0x3d8   :  { %v2699_v1 = vpop.permute.xlu0 %2698  ;;  %v2701_v4 = vpop.permute.xlu1 %2700 }
 0x3d9   :  { %2841 = vst.msk [vmem:[#allocation2 + $0x190] sm:$0xff] %vm2790_vm7, %v2699_v1  ;;  %2842 = vst.msk [vmem:[#allocation2 + $0x198] sm:$0xff] %vm2790_vm7, %v2701_v4 }
 0x3da   :  { %3071 = vrot.lane.b32.xlu0 %v9554_v55, %s10123_s16  ;;  %3073 = vrot.lane.b32.xlu1 %v9555_v0, %s10123_s16 }
 0x3dc   :  { %v2703_v9 = vpop.permute.xlu0 %2702  ;;  %v2705_v12 = vpop.permute.xlu1 %2704 }
 0x3dd   :  { %2843 = vst.msk [vmem:[#allocation2 + $0x1a0] sm:$0xff] %vm2790_vm7, %v2703_v9  ;;  %2844 = vst.msk [vmem:[#allocation2 + $0x1a8] sm:$0xff] %vm2790_vm7, %v2705_v12 }
 0x3de   :  { %3075 = vrot.lane.b32.xlu0 %v9556_v5, %s10123_s16  ;;  %3077 = vrot.lane.b32.xlu1 %v9557_v8, %s10123_s16 }
 0x3e0   :  { %v2707_v22 = vpop.permute.xlu0 %2706  ;;  %v2709_v35 = vpop.permute.xlu1 %2708 }
 0x3e1   :  { %2845 = vst.msk [vmem:[#allocation2 + $0x1b0] sm:$0xff] %vm2790_vm7, %v2707_v22  ;;  %2846 = vst.msk [vmem:[#allocation2 + $0x1b8] sm:$0xff] %vm2790_vm7, %v2709_v35 }
 0x3e2   :  { %3079 = vrot.lane.b32.xlu0 %v9558_v14, %s10123_s16  ;;  %3081 = vrot.lane.b32.xlu1 %v9559_v21, %s10123_s16 }
 0x3e4   :  { %v2711_v51 = vpop.permute.xlu0 %2710  ;;  %v2713_v58 = vpop.permute.xlu1 %2712 }
 0x3e5   :  { %2847 = vst.msk [vmem:[#allocation2 + $0x1c0] sm:$0xff] %vm2790_vm7, %v2711_v51  ;;  %2848 = vst.msk [vmem:[#allocation2 + $0x1c8] sm:$0xff] %vm2790_vm7, %v2713_v58 }
 0x3e6   :  { %3083 = vrot.lane.b32.xlu0 %v9560_v37, %s10123_s16  ;;  %3085 = vrot.lane.b32.xlu1 %v9561_v50, %s10123_s16 }
 0x3e8   :  { %v2715_v63 = vpop.permute.xlu0 %2714  ;;  %v2717_v6 = vpop.permute.xlu1 %2716 }
 0x3e9   :  { %2849 = vst.msk [vmem:[#allocation2 + $0x1d0] sm:$0xff] %vm2790_vm7, %v2715_v63  ;;  %2850 = vst.msk [vmem:[#allocation2 + $0x1d8] sm:$0xff] %vm2790_vm7, %v2717_v6 }
 0x3ea   :  { %3087 = vrot.lane.b32.xlu0 %v9562_v59, %s10123_s16  ;;  %3089 = vrot.lane.b32.xlu1 %v9563_v62, %s10123_s16 }
 0x3ec   :  { %v2719_v16 = vpop.permute.xlu0 %2718  ;;  %v2721_v44 = vpop.permute.xlu1 %2720 }
 0x3ed   :  { %2851 = vst.msk [vmem:[#allocation2 + $0x1e0] sm:$0xff] %vm2790_vm7, %v2719_v16  ;;  %2852 = vst.msk [vmem:[#allocation2 + $0x1e8] sm:$0xff] %vm2790_vm7, %v2721_v44 }
 0x3ee   :  { %3091 = vrot.lane.b32.xlu0 %v9564_v7, %s10123_s16  ;;  %3093 = vrot.lane.b32.xlu1 %v9565_v15, %s10123_s16 }
 0x3f0   :  { %v2723_v29 = vpop.permute.xlu0 %2722  ;;  %v2725_v60 = vpop.permute.xlu1 %2724 }
 0x3f1   :  { %2853 = vst.msk [vmem:[#allocation2 + $0x1f0] sm:$0xff] %vm2790_vm7, %v2723_v29  ;;  %2854 = vst.msk [vmem:[#allocation2 + $0x1f8] sm:$0xff] %vm2790_vm7, %v2725_v60  ;;  %vm7871_vm7 = vcmask 588800  }
 0x3f2   :  { %3095 = vrot.lane.b32.xlu0 %v9566_v45, %s10123_s16  ;;  %3097 = vrot.lane.b32.xlu1 %v9567_v28, %s10123_s16 }
 0x3f4   :  { %v2984_v54 = vpop.permute.xlu0 %2983  ;;  %v2986_v13 = vpop.permute.xlu1 %2985 }
 0x3f5   :  { %3176 = vst.msk [vmem:[#allocation2] sm:$0xff] %vm3175_vm9, %v2984_v54  ;;  %3177 = vst.msk [vmem:[#allocation2 + $0x8] sm:$0xff] %vm3175_vm9, %v2986_v13 }
 0x3f6   :  { %3099 = vrot.lane.b32.xlu0 %v9568_v61, %s10123_s16  ;;  %3101 = vrot.lane.b32.xlu1 %v9569_v11, %s10123_s16 }
 0x3f8   :  { %v2988_v19 = vpop.permute.xlu0 %2987  ;;  %v2990_v20 = vpop.permute.xlu1 %2989 }
 0x3f9   :  { %3178 = vst.msk [vmem:[#allocation2 + $0x10] sm:$0xff] %vm3175_vm9, %v2988_v19  ;;  %3179 = vst.msk [vmem:[#allocation2 + $0x18] sm:$0xff] %vm3175_vm9, %v2990_v20 }
 0x3fa   :  { %3103 = vrot.lane.b32.xlu0 %v9570_v17, %s10123_s16  ;;  %3105 = vrot.lane.b32.xlu1 %v9571_v18, %s10123_s16 }
 0x3fc   :  { %v2992_v24 = vpop.permute.xlu0 %2991  ;;  %v2994_v25 = vpop.permute.xlu1 %2993  ;;  %v3240_v26 = vld [vmem:[#allocation2] sm:$0xff]  ;;  %v3241_v27 = vld [vmem:[#allocation2 + $0x8] sm:$0xff] }
 0x3fd   :  { %3180 = vst.msk [vmem:[#allocation2 + $0x20] sm:$0xff] %vm3175_vm9, %v2992_v24  ;;  %3181 = vst.msk [vmem:[#allocation2 + $0x28] sm:$0xff] %vm3175_vm9, %v2994_v25  ;;  %9855 = vmatprep.mubr.msk.f32.mxu0 %vm3309_vm10, %v3240_v26 }
 0x3fe   :  { %3107 = vrot.lane.b32.xlu0 %v9572_v23, %s10123_s16  ;;  %9856 = vmatmul.mubr.msk.f32.vlgmr.msra.gmra.mrb[0].mxu0 %vm3309_vm10, %v3241_v27 }
 0x3ff   :  { %3109 = vrot.lane.b32.xlu1 %v9573_v30, %s10123_s16 }
 0x400   :  { %v2996_v31 = vpop.permute.xlu0 %2995  ;;  %v2998_v32 = vpop.permute.xlu1 %2997  ;;  %v3242_v33 = vld [vmem:[#allocation2 + $0x10] sm:$0xff]  ;;  %v3243_v34 = vld [vmem:[#allocation2 + $0x18] sm:$0xff] }
 0x401   :  { %3182 = vst.msk [vmem:[#allocation2 + $0x30] sm:$0xff] %vm3175_vm9, %v2996_v31  ;;  %3183 = vst.msk [vmem:[#allocation2 + $0x38] sm:$0xff] %vm3175_vm9, %v2998_v32  ;;  %9858 = vmatprep.mubr.msk.f32.mxu0 %vm3309_vm10, %v3242_v33 }
 0x402   :  { %9859 = vmatmul.mubr.msk.f32.gmra.mrb[2].mxu0 %vm3309_vm10, %v3243_v34 }
 0x404   :  { %v3000_v36 = vpop.permute.xlu0 %2999  ;;  %v3002_v38 = vpop.permute.xlu1 %3001  ;;  %v3244_v39 = vld [vmem:[#allocation2 + $0x20] sm:$0xff]  ;;  %v3245_v40 = vld [vmem:[#allocation2 + $0x28] sm:$0xff] }
 0x405   :  { %3184 = vst.msk [vmem:[#allocation2 + $0x40] sm:$0xff] %vm3175_vm9, %v3000_v36  ;;  %3185 = vst.msk [vmem:[#allocation2 + $0x48] sm:$0xff] %vm3175_vm9, %v3002_v38  ;;  %9861 = vmatprep.mubr.msk.f32.mxu0 %vm3309_vm10, %v3244_v39 }
 0x406   :  { %9862 = vmatmul.mubr.msk.f32.gmra.mrb[4].mxu0 %vm3309_vm10, %v3245_v40 }
 0x408   :  { %v3004_v41 = vpop.permute.xlu0 %3003  ;;  %v3006_v42 = vpop.permute.xlu1 %3005  ;;  %v3246_v43 = vld [vmem:[#allocation2 + $0x30] sm:$0xff]  ;;  %v3247_v46 = vld [vmem:[#allocation2 + $0x38] sm:$0xff] }
 0x409   :  { %3186 = vst.msk [vmem:[#allocation2 + $0x50] sm:$0xff] %vm3175_vm9, %v3004_v41  ;;  %3187 = vst.msk [vmem:[#allocation2 + $0x58] sm:$0xff] %vm3175_vm9, %v3006_v42  ;;  %9864 = vmatprep.mubr.msk.f32.mxu0 %vm3309_vm10, %v3246_v43 }
 0x40a   :  { %9865 = vmatmul.mubr.msk.f32.gmra.mrb[6].mxu0 %vm3309_vm10, %v3247_v46 }
 0x40c   :  { %v3008_v47 = vpop.permute.xlu0 %3007  ;;  %v3010_v48 = vpop.permute.xlu1 %3009  ;;  %v3248_v49 = vld [vmem:[#allocation2 + $0x40] sm:$0xff]  ;;  %v3249_v52 = vld [vmem:[#allocation2 + $0x48] sm:$0xff] }
 0x40d   :  { %3188 = vst.msk [vmem:[#allocation2 + $0x60] sm:$0xff] %vm3175_vm9, %v3008_v47  ;;  %3189 = vst.msk [vmem:[#allocation2 + $0x68] sm:$0xff] %vm3175_vm9, %v3010_v48  ;;  %9867 = vmatprep.mubr.msk.f32.mxu0 %vm3309_vm10, %v3248_v49 }
 0x40e   :  { %9868 = vmatmul.mubr.msk.f32.gmra.mrb[8].mxu0 %vm3309_vm10, %v3249_v52 }
 0x410   :  { %v3012_v53 = vpop.permute.xlu0 %3011  ;;  %v3014_v56 = vpop.permute.xlu1 %3013  ;;  %v3250_v57 = vld [vmem:[#allocation2 + $0x50] sm:$0xff]  ;;  %v3251_v2 = vld [vmem:[#allocation2 + $0x58] sm:$0xff] }
 0x411   :  { %3190 = vst.msk [vmem:[#allocation2 + $0x70] sm:$0xff] %vm3175_vm9, %v3012_v53  ;;  %3191 = vst.msk [vmem:[#allocation2 + $0x78] sm:$0xff] %vm3175_vm9, %v3014_v56  ;;  %9870 = vmatprep.mubr.msk.f32.mxu0 %vm3309_vm10, %v3250_v57 }
 0x412   :  { %9871 = vmatmul.mubr.msk.f32.gmra.mrb[10].mxu0 %vm3309_vm10, %v3251_v2 }
 0x414   :  { %v3016_v3 = vpop.permute.xlu0 %3015  ;;  %v3018_v10 = vpop.permute.xlu1 %3017  ;;  %v3252_v55 = vld [vmem:[#allocation2 + $0x60] sm:$0xff]  ;;  %v3253_v0 = vld [vmem:[#allocation2 + $0x68] sm:$0xff] }
 0x415   :  { %3192 = vst.msk [vmem:[#allocation2 + $0x80] sm:$0xff] %vm3175_vm9, %v3016_v3  ;;  %3193 = vst.msk [vmem:[#allocation2 + $0x88] sm:$0xff] %vm3175_vm9, %v3018_v10  ;;  %9873 = vmatprep.mubr.msk.f32.mxu0 %vm3309_vm10, %v3252_v55 }
 0x416   :  { %9874 = vmatmul.mubr.msk.f32.gmra.mrb[12].mxu0 %vm3309_vm10, %v3253_v0 }
 0x418   :  { %v3020_v1 = vpop.permute.xlu0 %3019  ;;  %v3022_v4 = vpop.permute.xlu1 %3021  ;;  %v3254_v5 = vld [vmem:[#allocation2 + $0x70] sm:$0xff]  ;;  %v3255_v8 = vld [vmem:[#allocation2 + $0x78] sm:$0xff] }
 0x419   :  { %3194 = vst.msk [vmem:[#allocation2 + $0x90] sm:$0xff] %vm3175_vm9, %v3020_v1  ;;  %3195 = vst.msk [vmem:[#allocation2 + $0x98] sm:$0xff] %vm3175_vm9, %v3022_v4  ;;  %9876 = vmatprep.mubr.msk.f32.mxu0 %vm3309_vm10, %v3254_v5 }
 0x41a   :  { %9877 = vmatmul.mubr.msk.f32.gmra.mrb[14].mxu0 %vm3309_vm10, %v3255_v8 }
 0x41c   :  { %v3024_v9 = vpop.permute.xlu0 %3023  ;;  %v3026_v12 = vpop.permute.xlu1 %3025  ;;  %v3256_v14 = vld [vmem:[#allocation2 + $0x80] sm:$0xff]  ;;  %v3257_v21 = vld [vmem:[#allocation2 + $0x88] sm:$0xff] }
 0x41d   :  { %3196 = vst.msk [vmem:[#allocation2 + $0xa0] sm:$0xff] %vm3175_vm9, %v3024_v9  ;;  %3197 = vst.msk [vmem:[#allocation2 + $0xa8] sm:$0xff] %vm3175_vm9, %v3026_v12  ;;  %9879 = vmatprep.mubr.msk.f32.mxu0 %vm3309_vm10, %v3256_v14 }
 0x41e   :  { %9880 = vmatmul.mubr.msk.f32.gmra.mrb[16].mxu0 %vm3309_vm10, %v3257_v21 }
 0x420   :  { %v3028_v22 = vpop.permute.xlu0 %3027  ;;  %v3030_v35 = vpop.permute.xlu1 %3029  ;;  %v3258_v37 = vld [vmem:[#allocation2 + $0x90] sm:$0xff]  ;;  %v3259_v50 = vld [vmem:[#allocation2 + $0x98] sm:$0xff] }
 0x421   :  { %3198 = vst.msk [vmem:[#allocation2 + $0xb0] sm:$0xff] %vm3175_vm9, %v3028_v22  ;;  %3199 = vst.msk [vmem:[#allocation2 + $0xb8] sm:$0xff] %vm3175_vm9, %v3030_v35  ;;  %9882 = vmatprep.mubr.msk.f32.mxu0 %vm3309_vm10, %v3258_v37 }
 0x422   :  { %9883 = vmatmul.mubr.msk.f32.gmra.mrb[18].mxu0 %vm3309_vm10, %v3259_v50 }
 0x424   :  { %v3032_v51 = vpop.permute.xlu0 %3031  ;;  %v3034_v58 = vpop.permute.xlu1 %3033  ;;  %v3260_v59 = vld [vmem:[#allocation2 + $0xa0] sm:$0xff]  ;;  %v3261_v62 = vld [vmem:[#allocation2 + $0xa8] sm:$0xff] }
 0x425   :  { %3200 = vst.msk [vmem:[#allocation2 + $0xc0] sm:$0xff] %vm3175_vm9, %v3032_v51  ;;  %3201 = vst.msk [vmem:[#allocation2 + $0xc8] sm:$0xff] %vm3175_vm9, %v3034_v58  ;;  %9885 = vmatprep.mubr.msk.f32.mxu0 %vm3309_vm10, %v3260_v59 }
 0x426   :  { %9886 = vmatmul.mubr.msk.f32.gmra.mrb[20].mxu0 %vm3309_vm10, %v3261_v62 }
 0x428   :  { %v3036_v63 = vpop.permute.xlu0 %3035  ;;  %v3038_v6 = vpop.permute.xlu1 %3037  ;;  %v3262_v7 = vld [vmem:[#allocation2 + $0xb0] sm:$0xff]  ;;  %v3263_v15 = vld [vmem:[#allocation2 + $0xb8] sm:$0xff] }
 0x429   :  { %3202 = vst.msk [vmem:[#allocation2 + $0xd0] sm:$0xff] %vm3175_vm9, %v3036_v63  ;;  %3203 = vst.msk [vmem:[#allocation2 + $0xd8] sm:$0xff] %vm3175_vm9, %v3038_v6  ;;  %9888 = vmatprep.mubr.msk.f32.mxu0 %vm3309_vm10, %v3262_v7 }
 0x42a   :  { %9889 = vmatmul.mubr.msk.f32.gmra.mrb[22].mxu0 %vm3309_vm10, %v3263_v15 }
 0x42c   :  { %v3040_v16 = vpop.permute.xlu0 %3039  ;;  %v3042_v44 = vpop.permute.xlu1 %3041  ;;  %v3264_v45 = vld [vmem:[#allocation2 + $0xc0] sm:$0xff]  ;;  %v3265_v28 = vld [vmem:[#allocation2 + $0xc8] sm:$0xff] }
 0x42d   :  { %3204 = vst.msk [vmem:[#allocation2 + $0xe0] sm:$0xff] %vm3175_vm9, %v3040_v16  ;;  %3205 = vst.msk [vmem:[#allocation2 + $0xe8] sm:$0xff] %vm3175_vm9, %v3042_v44  ;;  %9891 = vmatprep.mubr.msk.f32.mxu0 %vm3309_vm10, %v3264_v45 }
 0x42e   :  { %9892 = vmatmul.mubr.msk.f32.gmra.mrb[24].mxu0 %vm3309_vm10, %v3265_v28 }
 0x430   :  { %v3044_v29 = vpop.permute.xlu0 %3043  ;;  %v3046_v60 = vpop.permute.xlu1 %3045  ;;  %v3266_v61 = vld [vmem:[#allocation2 + $0xd0] sm:$0xff]  ;;  %v3267_v11 = vld [vmem:[#allocation2 + $0xd8] sm:$0xff] }
 0x431   :  { %3206 = vst.msk [vmem:[#allocation2 + $0xf0] sm:$0xff] %vm3175_vm9, %v3044_v29  ;;  %3207 = vst.msk [vmem:[#allocation2 + $0xf8] sm:$0xff] %vm3175_vm9, %v3046_v60  ;;  %9894 = vmatprep.mubr.msk.f32.mxu0 %vm3309_vm10, %v3266_v61 }
 0x432   :  { %9895 = vmatmul.mubr.msk.f32.gmra.mrb[26].mxu0 %vm3309_vm10, %v3267_v11 }
 0x434   :  { %v3048_v54 = vpop.permute.xlu0 %3047  ;;  %v3050_v13 = vpop.permute.xlu1 %3049  ;;  %v3268_v17 = vld [vmem:[#allocation2 + $0xe0] sm:$0xff]  ;;  %v3269_v18 = vld [vmem:[#allocation2 + $0xe8] sm:$0xff] }
 0x435   :  { %3208 = vst.msk [vmem:[#allocation2 + $0x100] sm:$0xff] %vm3175_vm9, %v3048_v54  ;;  %3209 = vst.msk [vmem:[#allocation2 + $0x108] sm:$0xff] %vm3175_vm9, %v3050_v13  ;;  %9897 = vmatprep.mubr.msk.f32.mxu0 %vm3309_vm10, %v3268_v17 }
 0x436   :  { %9898 = vmatmul.mubr.msk.f32.gmra.mrb[28].mxu0 %vm3309_vm10, %v3269_v18 }
 0x438   :  { %v3052_v19 = vpop.permute.xlu0 %3051  ;;  %v3054_v20 = vpop.permute.xlu1 %3053  ;;  %v3270_v23 = vld [vmem:[#allocation2 + $0xf0] sm:$0xff]  ;;  %v3271_v24 = vld [vmem:[#allocation2 + $0xf8] sm:$0xff] }
 0x439   :  { %3210 = vst.msk [vmem:[#allocation2 + $0x110] sm:$0xff] %vm3175_vm9, %v3052_v19  ;;  %3211 = vst.msk [vmem:[#allocation2 + $0x118] sm:$0xff] %vm3175_vm9, %v3054_v20  ;;  %9900 = vmatprep.mubr.msk.f32.mxu0 %vm3309_vm10, %v3270_v23 }
 0x43a   :  { %9901 = vmatmul.mubr.msk.f32.gmra.mrb[30].mxu0 %vm3309_vm10, %v3271_v24 }
 0x43c   :  { %v3056_v25 = vpop.permute.xlu0 %3055  ;;  %v3058_v26 = vpop.permute.xlu1 %3057  ;;  %v3272_v27 = vld [vmem:[#allocation2 + $0x100] sm:$0xff]  ;;  %v3273_v30 = vld [vmem:[#allocation2 + $0x108] sm:$0xff] }
 0x43d   :  { %3212 = vst.msk [vmem:[#allocation2 + $0x120] sm:$0xff] %vm3175_vm9, %v3056_v25  ;;  %3213 = vst.msk [vmem:[#allocation2 + $0x128] sm:$0xff] %vm3175_vm9, %v3058_v26  ;;  %9903 = vmatprep.mubr.msk.f32.mxu0 %vm3309_vm10, %v3272_v27 }
 0x43e   :  { %9904 = vmatmul.mubr.msk.f32.gmra.mrb[32].mxu0 %vm3309_vm10, %v3273_v30 }
 0x440   :  { %v3060_v31 = vpop.permute.xlu0 %3059  ;;  %v3062_v32 = vpop.permute.xlu1 %3061  ;;  %v3274_v33 = vld [vmem:[#allocation2 + $0x110] sm:$0xff]  ;;  %v3275_v34 = vld [vmem:[#allocation2 + $0x118] sm:$0xff] }
 0x441   :  { %3214 = vst.msk [vmem:[#allocation2 + $0x130] sm:$0xff] %vm3175_vm9, %v3060_v31  ;;  %3215 = vst.msk [vmem:[#allocation2 + $0x138] sm:$0xff] %vm3175_vm9, %v3062_v32  ;;  %9906 = vmatprep.mubr.msk.f32.mxu0 %vm3309_vm10, %v3274_v33 }
 0x442   :  { %9907 = vmatmul.mubr.msk.f32.gmra.mrb[34].mxu0 %vm3309_vm10, %v3275_v34 }
 0x444   :  { %v3064_v36 = vpop.permute.xlu0 %3063  ;;  %v3066_v38 = vpop.permute.xlu1 %3065  ;;  %v3276_v39 = vld [vmem:[#allocation2 + $0x120] sm:$0xff]  ;;  %v3277_v40 = vld [vmem:[#allocation2 + $0x128] sm:$0xff] }
 0x445   :  { %3216 = vst.msk [vmem:[#allocation2 + $0x140] sm:$0xff] %vm3175_vm9, %v3064_v36  ;;  %3217 = vst.msk [vmem:[#allocation2 + $0x148] sm:$0xff] %vm3175_vm9, %v3066_v38  ;;  %9909 = vmatprep.mubr.msk.f32.mxu0 %vm3309_vm10, %v3276_v39 }
 0x446   :  { %9910 = vmatmul.mubr.msk.f32.gmra.mrb[36].mxu0 %vm3309_vm10, %v3277_v40 }
 0x448   :  { %v3068_v41 = vpop.permute.xlu0 %3067  ;;  %v3070_v42 = vpop.permute.xlu1 %3069  ;;  %v3278_v43 = vld [vmem:[#allocation2 + $0x130] sm:$0xff]  ;;  %v3279_v46 = vld [vmem:[#allocation2 + $0x138] sm:$0xff] }
 0x449   :  { %3218 = vst.msk [vmem:[#allocation2 + $0x150] sm:$0xff] %vm3175_vm9, %v3068_v41  ;;  %3219 = vst.msk [vmem:[#allocation2 + $0x158] sm:$0xff] %vm3175_vm9, %v3070_v42  ;;  %9912 = vmatprep.mubr.msk.f32.mxu0 %vm3309_vm10, %v3278_v43 }
 0x44a   :  { %9913 = vmatmul.mubr.msk.f32.gmra.mrb[38].mxu0 %vm3309_vm10, %v3279_v46 }
 0x44c   :  { %v3072_v47 = vpop.permute.xlu0 %3071  ;;  %v3074_v48 = vpop.permute.xlu1 %3073  ;;  %v3280_v49 = vld [vmem:[#allocation2 + $0x140] sm:$0xff]  ;;  %v3281_v52 = vld [vmem:[#allocation2 + $0x148] sm:$0xff] }
 0x44d   :  { %3220 = vst.msk [vmem:[#allocation2 + $0x160] sm:$0xff] %vm3175_vm9, %v3072_v47  ;;  %3221 = vst.msk [vmem:[#allocation2 + $0x168] sm:$0xff] %vm3175_vm9, %v3074_v48  ;;  %9915 = vmatprep.mubr.msk.f32.mxu0 %vm3309_vm10, %v3280_v49 }
 0x44e   :  { %9916 = vmatmul.mubr.msk.f32.gmra.mrb[40].mxu0 %vm3309_vm10, %v3281_v52 }
 0x450   :  { %v3076_v53 = vpop.permute.xlu0 %3075  ;;  %v3078_v56 = vpop.permute.xlu1 %3077  ;;  %v3282_v57 = vld [vmem:[#allocation2 + $0x150] sm:$0xff]  ;;  %v3283_v2 = vld [vmem:[#allocation2 + $0x158] sm:$0xff] }
 0x451   :  { %3222 = vst.msk [vmem:[#allocation2 + $0x170] sm:$0xff] %vm3175_vm9, %v3076_v53  ;;  %3223 = vst.msk [vmem:[#allocation2 + $0x178] sm:$0xff] %vm3175_vm9, %v3078_v56  ;;  %9918 = vmatprep.mubr.msk.f32.mxu0 %vm3309_vm10, %v3282_v57 }
 0x452   :  { %9919 = vmatmul.mubr.msk.f32.gmra.mrb[42].mxu0 %vm3309_vm10, %v3283_v2 }
 0x454   :  { %v3080_v3 = vpop.permute.xlu0 %3079  ;;  %v3082_v10 = vpop.permute.xlu1 %3081  ;;  %v3284_v55 = vld [vmem:[#allocation2 + $0x160] sm:$0xff]  ;;  %v3285_v0 = vld [vmem:[#allocation2 + $0x168] sm:$0xff] }
 0x455   :  { %3224 = vst.msk [vmem:[#allocation2 + $0x180] sm:$0xff] %vm3175_vm9, %v3080_v3  ;;  %3225 = vst.msk [vmem:[#allocation2 + $0x188] sm:$0xff] %vm3175_vm9, %v3082_v10  ;;  %9921 = vmatprep.mubr.msk.f32.mxu0 %vm3309_vm10, %v3284_v55 }
 0x456   :  { %9922 = vmatmul.mubr.msk.f32.gmra.mrb[44].mxu0 %vm3309_vm10, %v3285_v0 }
 0x458   :  { %v3084_v1 = vpop.permute.xlu0 %3083  ;;  %v3086_v4 = vpop.permute.xlu1 %3085  ;;  %v3286_v5 = vld [vmem:[#allocation2 + $0x170] sm:$0xff]  ;;  %v3287_v8 = vld [vmem:[#allocation2 + $0x178] sm:$0xff] }
 0x459   :  { %3226 = vst.msk [vmem:[#allocation2 + $0x190] sm:$0xff] %vm3175_vm9, %v3084_v1  ;;  %3227 = vst.msk [vmem:[#allocation2 + $0x198] sm:$0xff] %vm3175_vm9, %v3086_v4  ;;  %9924 = vmatprep.mubr.msk.f32.mxu0 %vm3309_vm10, %v3286_v5 }
 0x45a   :  { %9925 = vmatmul.mubr.msk.f32.gmra.mrb[46].mxu0 %vm3309_vm10, %v3287_v8 }
 0x45c   :  { %v3088_v9 = vpop.permute.xlu0 %3087  ;;  %v3090_v12 = vpop.permute.xlu1 %3089  ;;  %v3288_v14 = vld [vmem:[#allocation2 + $0x180] sm:$0xff]  ;;  %v3289_v21 = vld [vmem:[#allocation2 + $0x188] sm:$0xff] }
 0x45d   :  { %3228 = vst.msk [vmem:[#allocation2 + $0x1a0] sm:$0xff] %vm3175_vm9, %v3088_v9  ;;  %3229 = vst.msk [vmem:[#allocation2 + $0x1a8] sm:$0xff] %vm3175_vm9, %v3090_v12  ;;  %9927 = vmatprep.mubr.msk.f32.mxu0 %vm3309_vm10, %v3288_v14 }
 0x45e   :  { %9928 = vmatmul.mubr.msk.f32.gmra.mrb[48].mxu0 %vm3309_vm10, %v3289_v21 }
 0x460   :  { %v3092_v22 = vpop.permute.xlu0 %3091  ;;  %v3094_v35 = vpop.permute.xlu1 %3093  ;;  %v3290_v37 = vld [vmem:[#allocation2 + $0x190] sm:$0xff]  ;;  %v3291_v50 = vld [vmem:[#allocation2 + $0x198] sm:$0xff] }
 0x461   :  { %3230 = vst.msk [vmem:[#allocation2 + $0x1b0] sm:$0xff] %vm3175_vm9, %v3092_v22  ;;  %3231 = vst.msk [vmem:[#allocation2 + $0x1b8] sm:$0xff] %vm3175_vm9, %v3094_v35  ;;  %9930 = vmatprep.mubr.msk.f32.mxu0 %vm3309_vm10, %v3290_v37 }
 0x462   :  { %9931 = vmatmul.mubr.msk.f32.gmra.mrb[50].mxu0 %vm3309_vm10, %v3291_v50 }
 0x464   :  { %v3096_v51 = vpop.permute.xlu0 %3095  ;;  %v3098_v58 = vpop.permute.xlu1 %3097  ;;  %v3292_v59 = vld [vmem:[#allocation2 + $0x1a0] sm:$0xff]  ;;  %v3293_v62 = vld [vmem:[#allocation2 + $0x1a8] sm:$0xff] }
 0x465   :  { %3232 = vst.msk [vmem:[#allocation2 + $0x1c0] sm:$0xff] %vm3175_vm9, %v3096_v51  ;;  %3233 = vst.msk [vmem:[#allocation2 + $0x1c8] sm:$0xff] %vm3175_vm9, %v3098_v58  ;;  %9933 = vmatprep.mubr.msk.f32.mxu0 %vm3309_vm10, %v3292_v59 }
 0x466   :  { %9934 = vmatmul.mubr.msk.f32.gmra.mrb[52].mxu0 %vm3309_vm10, %v3293_v62 }
 0x468   :  { %v3100_v63 = vpop.permute.xlu0 %3099  ;;  %v3102_v6 = vpop.permute.xlu1 %3101  ;;  %v3294_v7 = vld [vmem:[#allocation2 + $0x1b0] sm:$0xff]  ;;  %v3295_v15 = vld [vmem:[#allocation2 + $0x1b8] sm:$0xff] }
 0x469   :  { %3234 = vst.msk [vmem:[#allocation2 + $0x1d0] sm:$0xff] %vm3175_vm9, %v3100_v63  ;;  %3235 = vst.msk [vmem:[#allocation2 + $0x1d8] sm:$0xff] %vm3175_vm9, %v3102_v6  ;;  %9936 = vmatprep.mubr.msk.f32.mxu0 %vm3309_vm10, %v3294_v7 }
 0x46a   :  { %9937 = vmatmul.mubr.msk.f32.gmra.mrb[54].mxu0 %vm3309_vm10, %v3295_v15 }
 0x46c   :  { %v3104_v16 = vpop.permute.xlu0 %3103  ;;  %v3106_v44 = vpop.permute.xlu1 %3105  ;;  %v3296_v45 = vld [vmem:[#allocation2 + $0x1c0] sm:$0xff]  ;;  %v3297_v28 = vld [vmem:[#allocation2 + $0x1c8] sm:$0xff] }
 0x46d   :  { %3236 = vst.msk [vmem:[#allocation2 + $0x1e0] sm:$0xff] %vm3175_vm9, %v3104_v16  ;;  %3237 = vst.msk [vmem:[#allocation2 + $0x1e8] sm:$0xff] %vm3175_vm9, %v3106_v44  ;;  %9939 = vmatprep.mubr.msk.f32.mxu0 %vm3309_vm10, %v3296_v45 }
 0x46e   :  { %9940 = vmatmul.mubr.msk.f32.gmra.mrb[56].mxu0 %vm3309_vm10, %v3297_v28 }
 0x470   :  { %v3108_v29 = vpop.permute.xlu0 %3107  ;;  %v3298_v60 = vld [vmem:[#allocation2 + $0x1d0] sm:$0xff]  ;;  %v3299_v61 = vld [vmem:[#allocation2 + $0x1d8] sm:$0xff] }
 0x471   :  { %3238 = vst.msk [vmem:[#allocation2 + $0x1f0] sm:$0xff] %vm3175_vm9, %v3108_v29  ;;  %v3110_v11 = vpop.permute.xlu1 %3109  ;;  %9942 = vmatprep.mubr.msk.f32.mxu0 %vm3309_vm10, %v3298_v60 }
 0x472   :  { %3239 = vst.msk [vmem:[#allocation2 + $0x1f8] sm:$0xff] %vm3175_vm9, %v3110_v11  ;;  %9943 = vmatmul.mubr.msk.f32.gmra.mrb[58].mxu0 %vm3309_vm10, %v3299_v61 }
 0x474   :  { %v3300_v54 = vld [vmem:[#allocation2 + $0x1e0] sm:$0xff]  ;;  %v3301_v13 = vld [vmem:[#allocation2 + $0x1e8] sm:$0xff] }
 0x475   :  { %9945 = vmatprep.mubr.msk.f32.mxu0 %vm3309_vm10, %v3300_v54 }
 0x476   :  { %9946 = vmatmul.mubr.msk.f32.gmra.mrb[60].mxu0 %vm3309_vm10, %v3301_v13 }
 0x478   :  { %v3302_v17 = vld [vmem:[#allocation2 + $0x1f0] sm:$0xff] }
 0x479   :  { %9948 = vmatprep.mubr.msk.f32.mxu0 %vm3309_vm10, %v3302_v17  ;;  %v3303_v18 = vld [vmem:[#allocation2 + $0x1f8] sm:$0xff] }
 0x47a   :  { %9949 = vmatmul.mubr.msk.f32.gmra.mrb[62].mxu0 %vm3309_vm10, %v3303_v18 }
 0x4d1   :  { %v13129_v19 = vpop.f32.mrb[0].mxu0 }
 0x4d2   :  { %v3893_v20 = vsel %vm3891_vm11, %v13129_v19, 0.0  ;;  %v4026_v23 = vmul.f32 %v13129_v19, %v13129_v19  ;;  %v13135_v24 = vpop.f32.mrb[1].mxu0 }
 0x4d3   :  { %v3892_v25 = vsel %vm3891_vm11, %v13135_v24, 0.0  ;;  %v4025_v26 = vmul.f32 %v13135_v24, %v13135_v24 }
 0x4d4   :  { %v4090_v27 = vsel %vm3891_vm11, %v4026_v23, 0.0  ;;  %v3894_v30 = vadd.f32 %v3893_v20, %v3892_v25 }
 0x4d5   :  { %v4089_v31 = vsel %vm3891_vm11, %v4025_v26, 0.0  ;;  %v13143_v32 = vpop.f32.mrb[2].mxu0 }
 0x4d6   :  { %v4091_v33 = vadd.f32 %v4090_v27, %v4089_v31  ;;  %v13145_v34 = vpop.f32.mrb[3].mxu0  ;;  %v4028_v36 = vmul.f32 %v13143_v32, %v13143_v32  ;;  %v3897_v41 = vsel %vm3891_vm11, %v13143_v32, 0.0 }
 0x4d7   :  { %v3895_v38 = vsel %vm3891_vm11, %v13145_v34, 0.0  ;;  %v4027_v39 = vmul.f32 %v13145_v34, %v13145_v34 }
 0x4d8   :  { %v3896_v40 = vadd.f32 %v3895_v38, %v3894_v30  ;;  %v4094_v49 = vsel %vm3891_vm11, %v4028_v36, 0.0 }
 0x4d9   :  { %v4092_v42 = vsel %vm3891_vm11, %v4027_v39, 0.0  ;;  %v13156_v43 = vpop.f32.mrb[4].mxu0 }
 0x4da   :  { %v3898_v46 = vadd.f32 %v3897_v41, %v3896_v40  ;;  %v4093_v47 = vadd.f32 %v4092_v42, %v4091_v33  ;;  %v13158_v48 = vpop.f32.mrb[5].mxu0  ;;  %v4030_v52 = vmul.f32 %v13156_v43, %v13156_v43  ;;  %v3901_v3 = vsel %vm3891_vm11, %v13156_v43, 0.0 }
 0x4db   :  { %v3899_v53 = vsel %vm3891_vm11, %v13158_v48, 0.0  ;;  %v4029_v56 = vmul.f32 %v13158_v48, %v13158_v48 }
 0x4dc   :  { %v4095_v57 = vadd.f32 %v4094_v49, %v4093_v47  ;;  %v3900_v2 = vadd.f32 %v3899_v53, %v3898_v46  ;;  %v4098_v5 = vsel %vm3891_vm11, %v4030_v52, 0.0 }
 0x4dd   :  { %v4096_v10 = vsel %vm3891_vm11, %v4029_v56, 0.0  ;;  %v13170_v55 = vpop.f32.mrb[6].mxu0 }
 0x4de   :  { %v4097_v0 = vadd.f32 %v4096_v10, %v4095_v57  ;;  %v13172_v1 = vpop.f32.mrb[7].mxu0  ;;  %v3902_v4 = vadd.f32 %v3901_v3, %v3900_v2  ;;  %v4032_v8 = vmul.f32 %v13170_v55, %v13170_v55  ;;  %v3905_v22 = vsel %vm3891_vm11, %v13170_v55, 0.0 }
 0x4df   :  { %v3903_v9 = vsel %vm3891_vm11, %v13172_v1, 0.0  ;;  %v4031_v12 = vmul.f32 %v13172_v1, %v13172_v1 }
 0x4e0   :  { %v3904_v14 = vadd.f32 %v3903_v9, %v3902_v4  ;;  %v4099_v21 = vadd.f32 %v4098_v5, %v4097_v0  ;;  %v4102_v59 = vsel %vm3891_vm11, %v4032_v8, 0.0 }
 0x4e1   :  { %v4100_v35 = vsel %vm3891_vm11, %v4031_v12, 0.0  ;;  %v13184_v37 = vpop.f32.mrb[8].mxu0 }
 0x4e2   :  { %v4101_v50 = vadd.f32 %v4100_v35, %v4099_v21  ;;  %v13186_v51 = vpop.f32.mrb[9].mxu0  ;;  %v3906_v58 = vadd.f32 %v3905_v22, %v3904_v14  ;;  %v4034_v62 = vmul.f32 %v13184_v37, %v13184_v37  ;;  %v3909_v16 = vsel %vm3891_vm11, %v13184_v37, 0.0 }
 0x4e3   :  { %v3907_v63 = vsel %vm3891_vm11, %v13186_v51, 0.0  ;;  %v4033_v6 = vmul.f32 %v13186_v51, %v13186_v51 }
 0x4e4   :  { %v3908_v7 = vadd.f32 %v3907_v63, %v3906_v58  ;;  %v4103_v15 = vadd.f32 %v4102_v59, %v4101_v50  ;;  %v4106_v61 = vsel %vm3891_vm11, %v4034_v62, 0.0 }
 0x4e5   :  { %v4104_v44 = vsel %vm3891_vm11, %v4033_v6, 0.0  ;;  %v13198_v45 = vpop.f32.mrb[10].mxu0 }
 0x4e6   :  { %v4105_v28 = vadd.f32 %v4104_v44, %v4103_v15  ;;  %v13200_v29 = vpop.f32.mrb[11].mxu0  ;;  %v3910_v60 = vadd.f32 %v3909_v16, %v3908_v7  ;;  %v4036_v11 = vmul.f32 %v13198_v45, %v13198_v45  ;;  %v3913_v20 = vsel %vm3891_vm11, %v13198_v45, 0.0 }
 0x4e7   :  { %v3911_v54 = vsel %vm3891_vm11, %v13200_v29, 0.0  ;;  %v4035_v13 = vmul.f32 %v13200_v29, %v13200_v29 }
 0x4e8   :  { %v3912_v17 = vadd.f32 %v3911_v54, %v3910_v60  ;;  %v4107_v18 = vadd.f32 %v4106_v61, %v4105_v28  ;;  %v4110_v31 = vsel %vm3891_vm11, %v4036_v11, 0.0 }
 0x4e9   :  { %v4108_v23 = vsel %vm3891_vm11, %v4035_v13, 0.0  ;;  %v13212_v25 = vpop.f32.mrb[12].mxu0 }
 0x4ea   :  { %v4109_v26 = vadd.f32 %v4108_v23, %v4107_v18  ;;  %v13214_v27 = vpop.f32.mrb[13].mxu0  ;;  %v3914_v30 = vadd.f32 %v3913_v20, %v3912_v17  ;;  %v4038_v33 = vmul.f32 %v13212_v25, %v13212_v25  ;;  %v3917_v41 = vsel %vm3891_vm11, %v13212_v25, 0.0 }
 0x4eb   :  { %v3915_v36 = vsel %vm3891_vm11, %v13214_v27, 0.0  ;;  %v4037_v38 = vmul.f32 %v13214_v27, %v13214_v27 }
 0x4ec   :  { %v3916_v39 = vadd.f32 %v3915_v36, %v3914_v30  ;;  %v4111_v40 = vadd.f32 %v4110_v31, %v4109_v26  ;;  %v4114_v53 = vsel %vm3891_vm11, %v4038_v33, 0.0 }
 0x4ed   :  { %v4112_v42 = vsel %vm3891_vm11, %v4037_v38, 0.0  ;;  %v13226_v46 = vpop.f32.mrb[14].mxu0 }
 0x4ee   :  { %v4113_v47 = vadd.f32 %v4112_v42, %v4111_v40  ;;  %v13228_v49 = vpop.f32.mrb[15].mxu0  ;;  %v3918_v52 = vadd.f32 %v3917_v41, %v3916_v39  ;;  %v4040_v56 = vmul.f32 %v13226_v46, %v13226_v46  ;;  %v3921_v0 = vsel %vm3891_vm11, %v13226_v46, 0.0 }
 0x4ef   :  { %v3919_v57 = vsel %vm3891_vm11, %v13228_v49, 0.0  ;;  %v4039_v2 = vmul.f32 %v13228_v49, %v13228_v49 }
 0x4f0   :  { %v3920_v3 = vadd.f32 %v3919_v57, %v3918_v52  ;;  %v4115_v10 = vadd.f32 %v4114_v53, %v4113_v47  ;;  %v4118_v14 = vsel %vm3891_vm11, %v4040_v56, 0.0 }
 0x4f1   :  { %v4116_v4 = vsel %vm3891_vm11, %v4039_v2, 0.0  ;;  %v13240_v5 = vpop.f32.mrb[16].mxu0 }
 0x4f2   :  { %v4117_v8 = vadd.f32 %v4116_v4, %v4115_v10  ;;  %v13242_v9 = vpop.f32.mrb[17].mxu0  ;;  %v3922_v12 = vadd.f32 %v3921_v0, %v3920_v3  ;;  %v4042_v21 = vmul.f32 %v13240_v5, %v13240_v5  ;;  %v3925_v59 = vsel %vm3891_vm11, %v13240_v5, 0.0 }
 0x4f3   :  { %v3923_v22 = vsel %vm3891_vm11, %v13242_v9, 0.0  ;;  %v4041_v35 = vmul.f32 %v13242_v9, %v13242_v9 }
 0x4f4   :  { %v3924_v50 = vadd.f32 %v3923_v22, %v3922_v12  ;;  %v4119_v58 = vadd.f32 %v4118_v14, %v4117_v8  ;;  %v4122_v16 = vsel %vm3891_vm11, %v4042_v21, 0.0 }
 0x4f5   :  { %v4120_v62 = vsel %vm3891_vm11, %v4041_v35, 0.0  ;;  %v13254_v63 = vpop.f32.mrb[18].mxu0 }
 0x4f6   :  { %v4121_v6 = vadd.f32 %v4120_v62, %v4119_v58  ;;  %v13256_v7 = vpop.f32.mrb[19].mxu0  ;;  %v3926_v15 = vadd.f32 %v3925_v59, %v3924_v50  ;;  %v4044_v44 = vmul.f32 %v13254_v63, %v13254_v63  ;;  %v3929_v54 = vsel %vm3891_vm11, %v13254_v63, 0.0 }
 0x4f7   :  { %v3927_v28 = vsel %vm3891_vm11, %v13256_v7, 0.0  ;;  %v4043_v60 = vmul.f32 %v13256_v7, %v13256_v7 }
 0x4f8   :  { %v3928_v61 = vadd.f32 %v3927_v28, %v3926_v15  ;;  %v4123_v11 = vadd.f32 %v4122_v16, %v4121_v6  ;;  %v4126_v26 = vsel %vm3891_vm11, %v4044_v44, 0.0 }
 0x4f9   :  { %v4124_v13 = vsel %vm3891_vm11, %v4043_v60, 0.0  ;;  %v13268_v17 = vpop.f32.mrb[20].mxu0 }
 0x4fa   :  { %v4125_v18 = vadd.f32 %v4124_v13, %v4123_v11  ;;  %v13270_v20 = vpop.f32.mrb[21].mxu0  ;;  %v3930_v23 = vadd.f32 %v3929_v54, %v3928_v61  ;;  %v4046_v30 = vmul.f32 %v13268_v17, %v13268_v17  ;;  %v3933_v39 = vsel %vm3891_vm11, %v13268_v17, 0.0 }
 0x4fb   :  { %v3931_v31 = vsel %vm3891_vm11, %v13270_v20, 0.0  ;;  %v4045_v33 = vmul.f32 %v13270_v20, %v13270_v20 }
 0x4fc   :  { %v3932_v36 = vadd.f32 %v3931_v31, %v3930_v23  ;;  %v4127_v38 = vadd.f32 %v4126_v26, %v4125_v18  ;;  %v4130_v53 = vsel %vm3891_vm11, %v4046_v30, 0.0  ;;  %v10124_v26 = vmov 0.0  }
 0x4fd   :  { %v4128_v40 = vsel %vm3891_vm11, %v4045_v33, 0.0  ;;  %v13282_v41 = vpop.f32.mrb[22].mxu0  ;;  %4438 = vst.msk [vmem:[#allocation3 + $0x8] sm:$0xff] %vm3891_vm11, %v10124_v26  ;;  %4437 = vst.msk [vmem:[#allocation3] sm:$0xff] %vm3891_vm11, %v10124_v26 }
 0x4fe   :  { %v4129_v42 = vadd.f32 %v4128_v40, %v4127_v38  ;;  %v13284_v47 = vpop.f32.mrb[23].mxu0  ;;  %v3934_v52 = vadd.f32 %v3933_v39, %v3932_v36  ;;  %v4048_v56 = vmul.f32 %v13282_v41, %v13282_v41  ;;  %v3937_v0 = vsel %vm3891_vm11, %v13282_v41, 0.0  ;;  %4440 = vst.msk [vmem:[#allocation3 + $0x10] sm:$0x3] %vm4439_vm12, %v10124_v26  ;;  %4443 = vst.msk [vmem:[#allocation3 + $0x1c0] sm:$0x3] %vm4439_vm12, %v10124_v26 }
 0x4ff   :  { %v3935_v57 = vsel %vm3891_vm11, %v13284_v47, 0.0  ;;  %v4047_v2 = vmul.f32 %v13284_v47, %v13284_v47  ;;  %4441 = vst.msk [vmem:[#allocation3 + $0x1b0] sm:$0xff] %vm3891_vm11, %v10124_v26  ;;  %4442 = vst.msk [vmem:[#allocation3 + $0x1b8] sm:$0xff] %vm3891_vm11, %v10124_v26 }
 0x500   :  { %v3936_v3 = vadd.f32 %v3935_v57, %v3934_v52  ;;  %v4131_v10 = vadd.f32 %v4130_v53, %v4129_v42  ;;  %v4134_v35 = vsel %vm3891_vm11, %v4048_v56, 0.0  ;;  %4445 = vst.msk [vmem:[#allocation3 + $0x198] sm:$0xff] %vm3891_vm11, %v10124_v26  ;;  %4446 = vst.msk [vmem:[#allocation3 + $0x1a0] sm:$0xff] %vm3891_vm11, %v10124_v26 }
 0x501   :  { %v4132_v4 = vsel %vm3891_vm11, %v4047_v2, 0.0  ;;  %v13296_v8 = vpop.f32.mrb[24].mxu0  ;;  %4447 = vst.msk [vmem:[#allocation3 + $0x1a8] sm:$0x3] %vm4439_vm12, %v10124_v26  ;;  %4450 = vst.msk [vmem:[#allocation3 + $0x358] sm:$0x3] %vm4439_vm12, %v10124_v26 }
 0x502   :  { %v4133_v12 = vadd.f32 %v4132_v4, %v4131_v10  ;;  %v4050_v14 = vmul.f32 %v13296_v8, %v13296_v8  ;;  %v13300_v21 = vpop.f32.mrb[25].mxu0  ;;  %v3938_v22 = vadd.f32 %v3937_v0, %v3936_v3  ;;  %v3941_v6 = vsel %vm3891_vm11, %v13296_v8, 0.0  ;;  %4448 = vst.msk [vmem:[#allocation3 + $0x348] sm:$0xff] %vm3891_vm11, %v10124_v26  ;;  %4449 = vst.msk [vmem:[#allocation3 + $0x350] sm:$0xff] %vm3891_vm11, %v10124_v26 }
 0x503   :  { %v3939_v50 = vsel %vm3891_vm11, %v13300_v21, 0.0  ;;  %v4049_v58 = vmul.f32 %v13300_v21, %v13300_v21  ;;  %4452 = vst.msk [vmem:[#allocation3] sm:$0x1] %vm4451_vm13, %v10124_v26  ;;  %4453 = vst.msk [vmem:[#allocation3 + $0x18] sm:$0x1] %vm4451_vm13, %v10124_v26 }
 0x504   :  { %v3940_v59 = vadd.f32 %v3939_v50, %v3938_v22  ;;  %v4135_v62 = vadd.f32 %v4134_v35, %v4133_v12  ;;  %v4138_v44 = vsel %vm3891_vm11, %v4050_v14, 0.0  ;;  %4454 = vst.msk [vmem:[#allocation3 + $0x30] sm:$0x1] %vm4451_vm13, %v10124_v26  ;;  %4455 = vst.msk [vmem:[#allocation3 + $0x48] sm:$0x1] %vm4451_vm13, %v10124_v26 }
 0x505   :  { %v4136_v15 = vsel %vm3891_vm11, %v4049_v58, 0.0  ;;  %v13310_v16 = vpop.f32.mrb[26].mxu0  ;;  %v4718_v58 = vld [vmem:[#allocation3 + $0x9] sm:$0xff]  ;;  %4456 = vst.msk [vmem:[#allocation3 + $0x60] sm:$0x1] %vm4451_vm13, %v10124_v26 }
 0x506   :  { %v4137_v28 = vadd.f32 %v4136_v15, %v4135_v62  ;;  %v4052_v60 = vmul.f32 %v13310_v16, %v13310_v16  ;;  %v13315_v61 = vpop.f32.mrb[27].mxu0  ;;  %v3942_v11 = vadd.f32 %v3941_v6, %v3940_v59  ;;  %v3945_v30 = vsel %vm3891_vm11, %v13310_v16, 0.0  ;;  %4847 = vrot.lane.b32.xlu1 %v4718_v58, %s10117_s14  ;;  %4457 = vst.msk [vmem:[#allocation3 + $0x78] sm:$0x1] %vm4451_vm13, %v10124_v26 }
 0x507   :  { %v3943_v54 = vsel %vm3891_vm11, %v13315_v61, 0.0  ;;  %v4051_v13 = vmul.f32 %v13315_v61, %v13315_v61  ;;  %4458 = vst.msk [vmem:[#allocation3 + $0x90] sm:$0x1] %vm4451_vm13, %v10124_v26  ;;  %4459 = vst.msk [vmem:[#allocation3 + $0xa8] sm:$0x1] %vm4451_vm13, %v10124_v26 }
 0x508   :  { %v3944_v18 = vadd.f32 %v3943_v54, %v3942_v11  ;;  %v4139_v23 = vadd.f32 %v4138_v44, %v4137_v28  ;;  %v4142_v40 = vsel %vm3891_vm11, %v4052_v60, 0.0  ;;  %4460 = vst.msk [vmem:[#allocation3 + $0xc0] sm:$0x1] %vm4451_vm13, %v10124_v26  ;;  %4461 = vst.msk [vmem:[#allocation3 + $0xd8] sm:$0x1] %vm4451_vm13, %v10124_v26 }
 0x509   :  { %v4140_v31 = vsel %vm3891_vm11, %v4051_v13, 0.0  ;;  %v13344_v33 = vpop.f32.mrb[28].mxu0  ;;  %4462 = vst.msk [vmem:[#allocation3 + $0xf0] sm:$0x1] %vm4451_vm13, %v10124_v26  ;;  %4463 = vst.msk [vmem:[#allocation3 + $0x108] sm:$0x1] %vm4451_vm13, %v10124_v26 }
 0x50a   :  { %v4141_v36 = vadd.f32 %v4140_v31, %v4139_v23  ;;  %v13346_v38 = vpop.f32.mrb[29].mxu0  ;;  %v3946_v39 = vadd.f32 %v3945_v30, %v3944_v18  ;;  %v4054_v42 = vmul.f32 %v13344_v33, %v13344_v33  ;;  %v3949_v2 = vsel %vm3891_vm11, %v13344_v33, 0.0  ;;  %4464 = vst.msk [vmem:[#allocation3 + $0x120] sm:$0x1] %vm4451_vm13, %v10124_v26  ;;  %4465 = vst.msk [vmem:[#allocation3 + $0x138] sm:$0x1] %vm4451_vm13, %v10124_v26 }
 0x50b   :  { %v3947_v52 = vsel %vm3891_vm11, %v13346_v38, 0.0  ;;  %v4053_v53 = vmul.f32 %v13346_v38, %v13346_v38  ;;  %4466 = vst.msk [vmem:[#allocation3 + $0x150] sm:$0x1] %vm4451_vm13, %v10124_v26  ;;  %4467 = vst.msk [vmem:[#allocation3 + $0x168] sm:$0x1] %vm4451_vm13, %v10124_v26 }
 0x50c   :  { %v3948_v56 = vadd.f32 %v3947_v52, %v3946_v39  ;;  %v4143_v57 = vadd.f32 %v4142_v40, %v4141_v36  ;;  %v4146_v14 = vsel %vm3891_vm11, %v4054_v42, 0.0  ;;  %4468 = vst.msk [vmem:[#allocation3 + $0x180] sm:$0x1] %vm4451_vm13, %v10124_v26  ;;  %4469 = vst.msk [vmem:[#allocation3 + $0x198] sm:$0x1] %vm4451_vm13, %v10124_v26 }
 0x50d   :  { %v4144_v3 = vsel %vm3891_vm11, %v4053_v53, 0.0  ;;  %v13358_v10 = vpop.f32.mrb[30].mxu0  ;;  %4470 = vst.msk [vmem:[#allocation3 + $0x1b0] sm:$0x1] %vm4451_vm13, %v10124_v26  ;;  %4471 = vst.msk [vmem:[#allocation3 + $0x1c8] sm:$0x1] %vm4451_vm13, %v10124_v26 }
 0x50e   :  { %v4145_v0 = vadd.f32 %v4144_v3, %v4143_v57  ;;  %v13360_v4 = vpop.f32.mrb[31].mxu0  ;;  %v3950_v12 = vadd.f32 %v3949_v2, %v3948_v56  ;;  %v4056_v22 = vmul.f32 %v13358_v10, %v13358_v10  ;;  %v3953_v6 = vsel %vm3891_vm11, %v13358_v10, 0.0  ;;  %4472 = vst.msk [vmem:[#allocation3 + $0x1e0] sm:$0x1] %vm4451_vm13, %v10124_v26  ;;  %4473 = vst.msk [vmem:[#allocation3 + $0x1f8] sm:$0x1] %vm4451_vm13, %v10124_v26 }
 0x50f   :  { %v3951_v35 = vsel %vm3891_vm11, %v13360_v4, 0.0  ;;  %v4055_v50 = vmul.f32 %v13360_v4, %v13360_v4  ;;  %4474 = vst.msk [vmem:[#allocation3 + $0x210] sm:$0x1] %vm4451_vm13, %v10124_v26  ;;  %4475 = vst.msk [vmem:[#allocation3 + $0x228] sm:$0x1] %vm4451_vm13, %v10124_v26 }
 0x510   :  { %v3952_v59 = vadd.f32 %v3951_v35, %v3950_v12  ;;  %v4147_v62 = vadd.f32 %v4146_v14, %v4145_v0  ;;  %v4150_v13 = vsel %vm3891_vm11, %v4056_v22, 0.0  ;;  %v4717_v0 = vld [vmem:[#allocation3 + $0x1] sm:$0xff]  ;;  %4476 = vst.msk [vmem:[#allocation3 + $0x240] sm:$0x1] %vm4451_vm13, %v10124_v26  ;;  %4477 = vst.msk [vmem:[#allocation3 + $0x258] sm:$0x1] %vm4451_vm13, %v10124_v26 }
 0x511   :  { %v4148_v15 = vsel %vm3891_vm11, %v4055_v50, 0.0  ;;  %v13373_v44 = vpop.f32.mrb[32].mxu0  ;;  %4845 = vrot.lane.b32.xlu0 %v4717_v0, %s10117_s14  ;;  %4478 = vst.msk [vmem:[#allocation3 + $0x270] sm:$0x1] %vm4451_vm13, %v10124_v26  ;;  %4479 = vst.msk [vmem:[#allocation3 + $0x288] sm:$0x1] %vm4451_vm13, %v10124_v26 }
 0x512   :  { %v4149_v28 = vadd.f32 %v4148_v15, %v4147_v62  ;;  %v4058_v60 = vmul.f32 %v13373_v44, %v13373_v44  ;;  %v13377_v11 = vpop.f32.mrb[33].mxu0  ;;  %v3954_v54 = vadd.f32 %v3953_v6, %v3952_v59  ;;  %v3957_v36 = vsel %vm3891_vm11, %v13373_v44, 0.0  ;;  %4480 = vst.msk [vmem:[#allocation3 + $0x2a0] sm:$0x1] %vm4451_vm13, %v10124_v26  ;;  %4481 = vst.msk [vmem:[#allocation3 + $0x2b8] sm:$0x1] %vm4451_vm13, %v10124_v26 }
 0x513   :  { %v3955_v18 = vsel %vm3891_vm11, %v13377_v11, 0.0  ;;  %v4057_v23 = vmul.f32 %v13377_v11, %v13377_v11  ;;  %4482 = vst.msk [vmem:[#allocation3 + $0x2d0] sm:$0x1] %vm4451_vm13, %v10124_v26  ;;  %4483 = vst.msk [vmem:[#allocation3 + $0x2e8] sm:$0x1] %vm4451_vm13, %v10124_v26 }
 0x514   :  { %v3956_v30 = vadd.f32 %v3955_v18, %v3954_v54  ;;  %v4151_v31 = vadd.f32 %v4150_v13, %v4149_v28  ;;  %v4154_v42 = vsel %vm3891_vm11, %v4058_v60, 0.0  ;;  %4484 = vst.msk [vmem:[#allocation3 + $0x300] sm:$0x1] %vm4451_vm13, %v10124_v26  ;;  %4485 = vst.msk [vmem:[#allocation3 + $0x318] sm:$0x1] %vm4451_vm13, %v10124_v26 }
 0x515   :  { %v4152_v39 = vsel %vm3891_vm11, %v4057_v23, 0.0  ;;  %v13387_v40 = vpop.f32.mrb[34].mxu0  ;;  %4486 = vst.msk [vmem:[#allocation3 + $0x330] sm:$0x1] %vm4451_vm13, %v10124_v26  ;;  %4487 = vst.msk [vmem:[#allocation3 + $0x348] sm:$0x1] %vm4451_vm13, %v10124_v26 }
 0x516   :  { %v4153_v52 = vadd.f32 %v4152_v39, %v4151_v31  ;;  %v13390_v53 = vpop.f32.mrb[35].mxu0  ;;  %v3958_v56 = vadd.f32 %v3957_v36, %v3956_v30  ;;  %v13394_v57 = vmul.f32 %v13387_v40, %v13387_v40  ;;  %4488 = vst.msk [vmem:[#allocation3 + $0x11] sm:$0x1] %vm4451_vm13, %v10124_v26  ;;  %4489 = vst.msk [vmem:[#allocation3 + $0x29] sm:$0x1] %vm4451_vm13, %v10124_v26  ;;  %v3961_v22 = vsel %vm3891_vm11, %v13387_v40, 0.0 }
 0x517   :  { %v3959_v2 = vsel %vm3891_vm11, %v13390_v53, 0.0  ;;  %v13400_v3 = vmul.f32 %v13390_v53, %v13390_v53  ;;  %4490 = vst.msk [vmem:[#allocation3 + $0x41] sm:$0x1] %vm4451_vm13, %v10124_v26  ;;  %4491 = vst.msk [vmem:[#allocation3 + $0x59] sm:$0x1] %vm4451_vm13, %v10124_v26 }
 0x518   :  { %v13402_v12 = vadd.f32 %v3959_v2, %v3958_v56  ;;  %v13404_v14 = vadd.f32 %v4154_v42, %v4153_v52  ;;  %4492 = vst.msk [vmem:[#allocation3 + $0x71] sm:$0x1] %vm4451_vm13, %v10124_v26  ;;  %4493 = vst.msk [vmem:[#allocation3 + $0x89] sm:$0x1] %vm4451_vm13, %v10124_v26  ;;  %v4158_v6 = vsel %vm3891_vm11, %v13394_v57, 0.0 }
 0x519   :  { %4494 = vst.msk [vmem:[#allocation3 + $0xa1] sm:$0x1] %vm4451_vm13, %v10124_v26  ;;  %4495 = vst.msk [vmem:[#allocation3 + $0xb9] sm:$0x1] %vm4451_vm13, %v10124_v26  ;;  %v4156_v35 = vsel %vm3891_vm11, %v13400_v3, 0.0  ;;  %v13555_v50 = vpop.f32.mrb[36].mxu0 }
 0x51a   :  { %4496 = vst.msk [vmem:[#allocation3 + $0xd1] sm:$0x1] %vm4451_vm13, %v10124_v26  ;;  %4497 = vst.msk [vmem:[#allocation3 + $0xe9] sm:$0x1] %vm4451_vm13, %v10124_v26  ;;  %v4157_v58 = vadd.f32 %v4156_v35, %v13404_v14  ;;  %v13558_v59 = vpop.f32.mrb[37].mxu0  ;;  %v3962_v62 = vadd.f32 %v3961_v22, %v13402_v12  ;;  %v3965_v13 = vsel %vm3891_vm11, %v13555_v50, 0.0 }
 0x51b   :  { %4498 = vst.msk [vmem:[#allocation3 + $0x101] sm:$0x1] %vm4451_vm13, %v10124_v26  ;;  %4499 = vst.msk [vmem:[#allocation3 + $0x119] sm:$0x1] %vm4451_vm13, %v10124_v26  ;;  %v3963_v15 = vsel %vm3891_vm11, %v13558_v59, 0.0  ;;  %v4061_v28 = vmul.f32 %v13558_v59, %v13558_v59 }
 0x51c   :  { %4500 = vst.msk [vmem:[#allocation3 + $0x131] sm:$0x1] %vm4451_vm13, %v10124_v26  ;;  %4501 = vst.msk [vmem:[#allocation3 + $0x149] sm:$0x1] %vm4451_vm13, %v10124_v26  ;;  %v3964_v60 = vadd.f32 %v3963_v15, %v3962_v62  ;;  %v4159_v54 = vadd.f32 %v4158_v6, %v4157_v58 }
 0x51d   :  { %4502 = vst.msk [vmem:[#allocation3 + $0x161] sm:$0x1] %vm4451_vm13, %v10124_v26  ;;  %4503 = vst.msk [vmem:[#allocation3 + $0x179] sm:$0x1] %vm4451_vm13, %v10124_v26  ;;  %v4160_v18 = vsel %vm3891_vm11, %v4061_v28, 0.0  ;;  %v13572_v23 = vpop.f32.mrb[38].mxu0 }
 0x51e   :  { %4504 = vst.msk [vmem:[#allocation3 + $0x191] sm:$0x1] %vm4451_vm13, %v10124_v26  ;;  %4505 = vst.msk [vmem:[#allocation3 + $0x1a9] sm:$0x1] %vm4451_vm13, %v10124_v26  ;;  %v4161_v30 = vadd.f32 %v4160_v18, %v4159_v54  ;;  %v13574_v31 = vpop.f32.mrb[39].mxu0  ;;  %v3966_v36 = vadd.f32 %v3965_v13, %v3964_v60  ;;  %v4064_v42 = vmul.f32 %v13572_v23, %v13572_v23  ;;  %v3969_v3 = vsel %vm3891_vm11, %v13572_v23, 0.0 }
 0x51f   :  { %4506 = vst.msk [vmem:[#allocation3 + $0x1c1] sm:$0x1] %vm4451_vm13, %v10124_v26  ;;  %4507 = vst.msk [vmem:[#allocation3 + $0x1d9] sm:$0x1] %vm4451_vm13, %v10124_v26  ;;  %v3967_v52 = vsel %vm3891_vm11, %v13574_v31, 0.0  ;;  %v4063_v56 = vmul.f32 %v13574_v31, %v13574_v31 }
 0x520   :  { %4508 = vst.msk [vmem:[#allocation3 + $0x1f1] sm:$0x1] %vm4451_vm13, %v10124_v26  ;;  %4509 = vst.msk [vmem:[#allocation3 + $0x209] sm:$0x1] %vm4451_vm13, %v10124_v26  ;;  %v3968_v57 = vadd.f32 %v3967_v52, %v3966_v36  ;;  %v4166_v58 = vsel %vm3891_vm11, %v4064_v42, 0.0 }
 0x521   :  { %4510 = vst.msk [vmem:[#allocation3 + $0x221] sm:$0x1] %vm4451_vm13, %v10124_v26  ;;  %4511 = vst.msk [vmem:[#allocation3 + $0x239] sm:$0x1] %vm4451_vm13, %v10124_v26  ;;  %v4164_v0 = vsel %vm3891_vm11, %v4063_v56, 0.0  ;;  %v13586_v12 = vpop.f32.mrb[40].mxu0 }
 0x522   :  { %4512 = vst.msk [vmem:[#allocation3 + $0x251] sm:$0x1] %vm4451_vm13, %v10124_v26  ;;  %4513 = vst.msk [vmem:[#allocation3 + $0x269] sm:$0x1] %vm4451_vm13, %v10124_v26  ;;  %v13588_v22 = vpop.f32.mrb[41].mxu0  ;;  %v3970_v35 = vadd.f32 %v3969_v3, %v3968_v57  ;;  %v4066_v62 = vmul.f32 %v13586_v12, %v13586_v12  ;;  %v3973_v60 = vsel %vm3891_vm11, %v13586_v12, 0.0 }
 0x523   :  { %4514 = vst.msk [vmem:[#allocation3 + $0x281] sm:$0x1] %vm4451_vm13, %v10124_v26  ;;  %4515 = vst.msk [vmem:[#allocation3 + $0x299] sm:$0x1] %vm4451_vm13, %v10124_v26  ;;  %v3971_v6 = vsel %vm3891_vm11, %v13588_v22, 0.0 }
 0x524   :  { %4516 = vst.msk [vmem:[#allocation3 + $0x2b1] sm:$0x1] %vm4451_vm13, %v10124_v26  ;;  %4517 = vst.msk [vmem:[#allocation3 + $0x2c9] sm:$0x1] %vm4451_vm13, %v10124_v26  ;;  %v3972_v15 = vadd.f32 %v3971_v6, %v3970_v35 }
 0x525   :  { %4518 = vst.msk [vmem:[#allocation3 + $0x2e1] sm:$0x1] %vm4451_vm13, %v10124_v26  ;;  %4519 = vst.msk [vmem:[#allocation3 + $0x2f9] sm:$0x1] %vm4451_vm13, %v10124_v26  ;;  %v13600_v13 = vpop.f32.mrb[42].mxu0 }
 0x526   :  { %4520 = vst.msk [vmem:[#allocation3 + $0x311] sm:$0x1] %vm4451_vm13, %v10124_v26  ;;  %4521 = vst.msk [vmem:[#allocation3 + $0x329] sm:$0x1] %vm4451_vm13, %v10124_v26  ;;  %v3974_v36 = vadd.f32 %v3973_v60, %v3972_v15  ;;  %v4068_v42 = vmul.f32 %v13600_v13, %v13600_v13  ;;  %v3977_v3 = vsel %vm3891_vm11, %v13600_v13, 0.0 }
 0x527   :  { %4522 = vst.msk [vmem:[#allocation3 + $0x341] sm:$0x1] %vm4451_vm13, %v10124_v26  ;;  %4523 = vst.msk [vmem:[#allocation3 + $0x359] sm:$0x1] %vm4451_vm13, %v10124_v26  ;;  %v4062_v26 = vmul.f32 %v13555_v50, %v13555_v50 }
 0x528   :  { %17756 = vst [vmem:[#allocation4_spill] sm:$0xff] %v13572_v23  ;;  %17757 = vst [vmem:[#allocation5_spill] sm:$0xff] %v13586_v12  ;;  %v4174_v6 = vsel %vm3891_vm11, %v4068_v42, 0.0 }
 0x529   :  { %v4162_v39 = vsel %vm3891_vm11, %v4062_v26, 0.0  ;;  %17758 = vst [vmem:[#allocation6_spill] sm:$0xff] %v13588_v22  ;;  %v4065_v26 = vmul.f32 %v13588_v22, %v13588_v22  ;;  %17759 = vst [vmem:[#allocation7_spill] sm:$0xff] %v13600_v13 }
 0x52a   :  { %v4163_v2 = vadd.f32 %v4162_v39, %v4161_v30  ;;  %v13602_v30 = vpop.f32.mrb[43].mxu0  ;;  %v4170_v39 = vsel %vm3891_vm11, %v4066_v62, 0.0 }
 0x52b   :  { %v4168_v54 = vsel %vm3891_vm11, %v4065_v26, 0.0  ;;  %17760 = vst [vmem:[#allocation8_spill] sm:$0xff] %v13602_v30  ;;  %v3975_v52 = vsel %vm3891_vm11, %v13602_v30, 0.0  ;;  %v4067_v56 = vmul.f32 %v13602_v30, %v13602_v30 }
 0x52c   :  { %v4165_v14 = vadd.f32 %v4164_v0, %v4163_v2  ;;  %v3976_v57 = vadd.f32 %v3975_v52, %v3974_v36 }
 0x52d   :  { %v4172_v0 = vsel %vm3891_vm11, %v4067_v56, 0.0 }
 0x52e   :  { %v4167_v28 = vadd.f32 %v4166_v58, %v4165_v14  ;;  %v13614_v14 = vpop.f32.mrb[44].mxu0  ;;  %v3978_v62 = vadd.f32 %v3977_v3, %v3976_v57 }
 0x52f   :  { %17761 = vst [vmem:[#allocation9_spill] sm:$0xff] %v13614_v14  ;;  %v13616_v58 = vpop.f32.mrb[45].mxu0  ;;  %v4070_v26 = vmul.f32 %v13614_v14, %v13614_v14 }
 0x530   :  { %v4169_v18 = vadd.f32 %v4168_v54, %v4167_v28  ;;  %17762 = vst [vmem:[#allocation10_spill] sm:$0xff] %v13616_v58  ;;  %v3979_v15 = vsel %vm3891_vm11, %v13616_v58, 0.0  ;;  %v4069_v28 = vmul.f32 %v13616_v58, %v13616_v58 }
 0x531   :  { %v3980_v60 = vadd.f32 %v3979_v15, %v3978_v62  ;;  %v4178_v57 = vsel %vm3891_vm11, %v4070_v26, 0.0 }
 0x532   :  { %v4171_v2 = vadd.f32 %v4170_v39, %v4169_v18  ;;  %v3981_v18 = vsel %vm3891_vm11, %v13614_v14, 0.0  ;;  %v4176_v36 = vsel %vm3891_vm11, %v4069_v28, 0.0  ;;  %v13628_v39 = vpop.f32.mrb[46].mxu0 }
 0x533   :  { %17763 = vst [vmem:[#allocation11_spill] sm:$0xff] %v13628_v39  ;;  %v13630_v42 = vpop.f32.mrb[47].mxu0  ;;  %v3982_v56 = vadd.f32 %v3981_v18, %v3980_v60 }
 0x534   :  { %v4173_v35 = vadd.f32 %v4172_v0, %v4171_v2  ;;  %17764 = vst [vmem:[#allocation12_spill] sm:$0xff] %v13630_v42  ;;  %v4072_v2 = vmul.f32 %v13628_v39, %v13628_v39  ;;  %v3983_v3 = vsel %vm3891_vm11, %v13630_v42, 0.0  ;;  %v4071_v0 = vmul.f32 %v13630_v42, %v13630_v42  ;;  %v13642_v28 = vpop.f32.mrb[48].mxu0 }
 0x535   :  { %17765 = vst [vmem:[#allocation13_spill] sm:$0xff] %v13642_v28  ;;  %v13644_v26 = vpop.f32.mrb[49].mxu0 }
 0x536   :  { %v4175_v54 = vadd.f32 %v4174_v6, %v4173_v35  ;;  %v3984_v35 = vadd.f32 %v3983_v3, %v3982_v56  ;;  %v3985_v6 = vsel %vm3891_vm11, %v13628_v39, 0.0  ;;  %v4180_v15 = vsel %vm3891_vm11, %v4071_v0, 0.0  ;;  %17766 = vst [vmem:[#allocation14_spill] sm:$0xff] %v13644_v26 }
 0x537   :  { %v4182_v18 = vsel %vm3891_vm11, %v4072_v2, 0.0  ;;  %v3987_v56 = vsel %vm3891_vm11, %v13644_v26, 0.0  ;;  %v3989_v0 = vsel %vm3891_vm11, %v13642_v28, 0.0 }
 0x538   :  { %v4177_v52 = vadd.f32 %v4176_v36, %v4175_v54  ;;  %v3986_v54 = vadd.f32 %v3985_v6, %v3984_v35  ;;  %v4074_v36 = vmul.f32 %v13642_v28, %v13642_v28 }
 0x53a   :  { %v4179_v62 = vadd.f32 %v4178_v57, %v4177_v52  ;;  %v4073_v52 = vmul.f32 %v13644_v26, %v13644_v26  ;;  %v3988_v57 = vadd.f32 %v3987_v56, %v3986_v54  ;;  %v4186_v39 = vsel %vm3891_vm11, %v4074_v36, 0.0 }
 0x53c   :  { %v4181_v60 = vadd.f32 %v4180_v15, %v4179_v62  ;;  %v4184_v62 = vsel %vm3891_vm11, %v4073_v52, 0.0  ;;  %v13656_v15 = vpop.f32.mrb[50].mxu0  ;;  %v3990_v6 = vadd.f32 %v3989_v0, %v3988_v57 }
 0x53d   :  { %17767 = vst [vmem:[#allocation15_spill] sm:$0xff] %v13656_v15  ;;  %v13658_v2 = vpop.f32.mrb[51].mxu0  ;;  %v4076_v42 = vmul.f32 %v13656_v15, %v13656_v15  ;;  %v3993_v52 = vsel %vm3891_vm11, %v13656_v15, 0.0 }
 0x53e   :  { %v4183_v3 = vadd.f32 %v4182_v18, %v4181_v60  ;;  %17768 = vst [vmem:[#allocation16_spill] sm:$0xff] %v13658_v2  ;;  %v3991_v54 = vsel %vm3891_vm11, %v13658_v2, 0.0  ;;  %v4075_v60 = vmul.f32 %v13658_v2, %v13658_v2 }
 0x53f   :  { %v3992_v18 = vadd.f32 %v3991_v54, %v3990_v6  ;;  %v4190_v28 = vsel %vm3891_vm11, %v4076_v42, 0.0 }
 0x540   :  { %v4185_v35 = vadd.f32 %v4184_v62, %v4183_v3  ;;  %v4188_v3 = vsel %vm3891_vm11, %v4075_v60, 0.0  ;;  %v13670_v62 = vpop.f32.mrb[52].mxu0 }
 0x541   :  { %17769 = vst [vmem:[#allocation17_spill] sm:$0xff] %v13670_v62  ;;  %v13672_v36 = vpop.f32.mrb[53].mxu0  ;;  %v3994_v0 = vadd.f32 %v3993_v52, %v3992_v18  ;;  %v4078_v26 = vmul.f32 %v13670_v62, %v13670_v62  ;;  %v3997_v60 = vsel %vm3891_vm11, %v13670_v62, 0.0 }
 0x542   :  { %v4187_v56 = vadd.f32 %v4186_v39, %v4185_v35  ;;  %17770 = vst [vmem:[#allocation18_spill] sm:$0xff] %v13672_v36  ;;  %v3995_v6 = vsel %vm3891_vm11, %v13672_v36, 0.0  ;;  %v4077_v39 = vmul.f32 %v13672_v36, %v13672_v36 }
 0x543   :  { %v3996_v35 = vadd.f32 %v3995_v6, %v3994_v0  ;;  %v4194_v15 = vsel %vm3891_vm11, %v4078_v26, 0.0 }
 0x544   :  { %v4189_v57 = vadd.f32 %v4188_v3, %v4187_v56  ;;  %v4192_v56 = vsel %vm3891_vm11, %v4077_v39, 0.0  ;;  %v13684_v3 = vpop.f32.mrb[54].mxu0 }
 0x545   :  { %17771 = vst [vmem:[#allocation19_spill] sm:$0xff] %v13684_v3  ;;  %v13686_v42 = vpop.f32.mrb[55].mxu0  ;;  %v3998_v52 = vadd.f32 %v3997_v60, %v3996_v35  ;;  %v4080_v2 = vmul.f32 %v13684_v3, %v13684_v3  ;;  %v4001_v39 = vsel %vm3891_vm11, %v13684_v3, 0.0 }
 0x546   :  { %v4191_v54 = vadd.f32 %v4190_v28, %v4189_v57  ;;  %17772 = vst [vmem:[#allocation20_spill] sm:$0xff] %v13686_v42  ;;  %v3999_v0 = vsel %vm3891_vm11, %v13686_v42, 0.0  ;;  %v4079_v28 = vmul.f32 %v13686_v42, %v13686_v42 }
 0x547   :  { %v4000_v57 = vadd.f32 %v3999_v0, %v3998_v52  ;;  %v4198_v62 = vsel %vm3891_vm11, %v4080_v2, 0.0 }
 0x548   :  { %v4193_v18 = vadd.f32 %v4192_v56, %v4191_v54  ;;  %v4196_v54 = vsel %vm3891_vm11, %v4079_v28, 0.0  ;;  %v13698_v56 = vpop.f32.mrb[56].mxu0 }
 0x549   :  { %17773 = vst [vmem:[#allocation21_spill] sm:$0xff] %v13698_v56  ;;  %v13700_v26 = vpop.f32.mrb[57].mxu0  ;;  %v4002_v60 = vadd.f32 %v4001_v39, %v4000_v57  ;;  %v4082_v36 = vmul.f32 %v13698_v56, %v13698_v56  ;;  %v4005_v28 = vsel %vm3891_vm11, %v13698_v56, 0.0 }
 0x54a   :  { %v4195_v6 = vadd.f32 %v4194_v15, %v4193_v18  ;;  %17774 = vst [vmem:[#allocation22_spill] sm:$0xff] %v13700_v26  ;;  %v4003_v52 = vsel %vm3891_vm11, %v13700_v26, 0.0  ;;  %v4081_v15 = vmul.f32 %v13700_v26, %v13700_v26 }
 0x54b   :  { %v4004_v18 = vadd.f32 %v4003_v52, %v4002_v60  ;;  %v4202_v3 = vsel %vm3891_vm11, %v4082_v36, 0.0 }
 0x54c   :  { %v4197_v35 = vadd.f32 %v4196_v54, %v4195_v6  ;;  %v4200_v6 = vsel %vm3891_vm11, %v4081_v15, 0.0  ;;  %v13712_v54 = vpop.f32.mrb[58].mxu0 }
 0x54d   :  { %17775 = vst [vmem:[#allocation23_spill] sm:$0xff] %v13712_v54  ;;  %v13714_v2 = vpop.f32.mrb[59].mxu0  ;;  %v4006_v39 = vadd.f32 %v4005_v28, %v4004_v18  ;;  %v4084_v42 = vmul.f32 %v13712_v54, %v13712_v54  ;;  %v4009_v15 = vsel %vm3891_vm11, %v13712_v54, 0.0 }
 0x54e   :  { %v4199_v0 = vadd.f32 %v4198_v62, %v4197_v35  ;;  %17776 = vst [vmem:[#allocation24_spill] sm:$0xff] %v13714_v2  ;;  %v4007_v60 = vsel %vm3891_vm11, %v13714_v2, 0.0  ;;  %v4083_v62 = vmul.f32 %v13714_v2, %v13714_v2 }
 0x54f   :  { %v4008_v35 = vadd.f32 %v4007_v60, %v4006_v39  ;;  %v4206_v56 = vsel %vm3891_vm11, %v4084_v42, 0.0 }
 0x550   :  { %v4201_v57 = vadd.f32 %v4200_v6, %v4199_v0  ;;  %v4204_v0 = vsel %vm3891_vm11, %v4083_v62, 0.0  ;;  %v13726_v6 = vpop.f32.mrb[60].mxu0 }
 0x551   :  { %17777 = vst [vmem:[#allocation25_spill] sm:$0xff] %v13726_v6  ;;  %v13728_v36 = vpop.f32.mrb[61].mxu0  ;;  %v4010_v28 = vadd.f32 %v4009_v15, %v4008_v35  ;;  %v4086_v26 = vmul.f32 %v13726_v6, %v13726_v6  ;;  %v4013_v62 = vsel %vm3891_vm11, %v13726_v6, 0.0 }
 0x552   :  { %v4203_v52 = vadd.f32 %v4202_v3, %v4201_v57  ;;  %17778 = vst [vmem:[#allocation26_spill] sm:$0xff] %v13728_v36  ;;  %v4011_v39 = vsel %vm3891_vm11, %v13728_v36, 0.0  ;;  %v4085_v3 = vmul.f32 %v13728_v36, %v13728_v36 }
 0x553   :  { %v4012_v57 = vadd.f32 %v4011_v39, %v4010_v28  ;;  %v4210_v54 = vsel %vm3891_vm11, %v4086_v26, 0.0 }
 0x554   :  { %v4205_v18 = vadd.f32 %v4204_v0, %v4203_v52  ;;  %v4208_v52 = vsel %vm3891_vm11, %v4085_v3, 0.0  ;;  %v13740_v0 = vpop.f32.mrb[62].mxu0 }
 0x555   :  { %17779 = vst [vmem:[#allocation27_spill] sm:$0xff] %v13740_v0  ;;  %v3882_v42 = vpop.f32.mrb[63].mxu0  ;;  %v4014_v15 = vadd.f32 %v4013_v62, %v4012_v57  ;;  %v4088_v2 = vmul.f32 %v13740_v0, %v13740_v0 }
 0x556   :  { %v4207_v60 = vadd.f32 %v4206_v56, %v4205_v18  ;;  %v4015_v14 = vsel %vm3891_vm11, %v3882_v42, 0.0  ;;  %v4087_v36 = vmul.f32 %v3882_v42, %v3882_v42  ;;  %v4017_v18 = vsel %vm3891_vm11, %v13740_v0, 0.0 }
 0x557   :  { %v4016_v28 = vadd.f32 %v4015_v14, %v4014_v15 }
 0x558   :  { %v4209_v35 = vadd.f32 %v4208_v52, %v4207_v60  ;;  %v4212_v39 = vsel %vm3891_vm11, %v4087_v36, 0.0  ;;  %v4214_v60 = vsel %vm3891_vm11, %v4088_v2, 0.0  ;;  %v4234_v2 = vlaneseq }
 0x559   :  { %v4018_v3 = vadd.f32 %v4017_v18, %v4016_v28 }
 0x55a   :  { %v4211_v56 = vadd.f32 %v4210_v54, %v4209_v35  ;;  %v4235_v18 = vshrl.u32 %v4234_v2, 7 }
 0x55b   :  { %v4019_v57 = vrot.slane %v4018_v3, 4 }
 0x55c   :  { %v4213_v6 = vadd.f32 %v4212_v39, %v4211_v56  ;;  %v13753_v39 = vsub.s32 0, %v4235_v18  ;;  %v17787_v18 = vld [vmem:[#allocation9_spill] sm:$0xff] }
 0x55d   :  { %v4020_v26 = vadd.f32 %v4019_v57, %v4018_v3 }
 0x55e   :  { %v4215_v62 = vadd.f32 %v4214_v60, %v4213_v6  ;;  %v4226_v6 = vld [vmem:[%s17681_s3] sm:$0x1]  ;;  %17780 = vst [vmem:[#allocation28_spill] sm:$0xff] %v13753_v39  ;;  %s10125_s3 = smov 40  }
 0x55f   :  { %v4021_v58 = vrot.slane %v4020_v26, 2 }
 0x560   :  { %v4216_v52 = vrot.slane %v4215_v62, 4 }
 0x561   :  { %v4022_v30 = vadd.f32 %v4021_v58, %v4020_v26 }
 0x562   :  { %v4217_v13 = vadd.f32 %v4216_v52, %v4215_v62 }
 0x563   :  { %v4023_v22 = vrot.slane %v4022_v30, 1 }
 0x564   :  { %v4218_v12 = vrot.slane %v4217_v13, 2 }
 0x565   :  { %v4024_v54 = vadd.f32 %v4023_v22, %v4022_v30 }
 0x566   :  { %v4219_v14 = vadd.f32 %v4218_v12, %v4217_v13  ;;  %v4230_v12 = vld [vmem:[%s17682_s4] sm:$0x1] }
 0x567   :  { %v4222_v0 = vmul.f32 0.001953125, %v4024_v54  ;;  %v17781_v54 = vld [vmem:[#allocation4_spill] sm:$0xff] }
 0x568   :  { %v4220_v35 = vrot.slane %v4219_v14, 1 }
 0x569   :  { %v4224_v36 = vmul.f32 %v4222_v0, %v4222_v0 }
 0x56a   :  { %v4221_v15 = vadd.f32 %v4220_v35, %v4219_v14  ;;  %v17782_v35 = vld [vmem:[#allocation6_spill] sm:$0xff] }
 0x56c   :  { %v4223_v23 = vmul.f32 0.001953125, %v4221_v15  ;;  %v17783_v15 = vld [vmem:[#allocation5_spill] sm:$0xff] }
 0x56e   :  { %v4225_v28 = vsub.f32 %v4223_v23, %v4224_v36  ;;  %v17784_v36 = vld [vmem:[#allocation8_spill] sm:$0xff] }
 0x570   :  { %v4227_v56 = vadd.f32 1e-05, %v4225_v28  ;;  %v17785_v28 = vld [vmem:[#allocation7_spill] sm:$0xff] }
 0x572   :  { %10112 = vrsqrt.f32 %v4227_v56  ;;  %v17786_v56 = vld [vmem:[#allocation10_spill] sm:$0xff] }
 0x57c   :  { %v10113_v58 = vpop.eup %10112 }
 0x57d   :  { %v4229_v3 = vmul.f32 %v10113_v58, %v4226_v6  ;;  %v17788_v58 = vld [vmem:[#allocation12_spill] sm:$0xff] }
 0x57f   :  { %v4231_v22 = vmul.f32 %v4229_v3, %v4222_v0  ;;  %v13759_v13 = vrot.slane %v4229_v3, %v13753_v39 }
 0x581   :  { %v4232_v23 = vsub.f32 %v4230_v12, %v4231_v22  ;;  %v4301_v30 = vmul.f32 %v13759_v13, %v3882_v42  ;;  %v13764_v60 = vmul.f32 %v13759_v13, %v13135_v24  ;;  %v13768_v57 = vmul.f32 %v13129_v19, %v13759_v13  ;;  %v17789_v12 = vld [vmem:[#allocation11_spill] sm:$0xff] }
 0x582   :  { %v13772_v62 = vmul.f32 %v13759_v13, %v13145_v34  ;;  %v13776_v0 = vmul.f32 %v13143_v32, %v13759_v13  ;;  %v13780_v26 = vmul.f32 %v13759_v13, %v13158_v48  ;;  %v13784_v24 = vmul.f32 %v13156_v43, %v13759_v13 }
 0x583   :  { %v13787_v42 = vrot.slane %v4232_v23, %v13753_v39  ;;  %v13791_v19 = vmul.f32 %v13759_v13, %v13172_v1  ;;  %v13795_v34 = vmul.f32 %v13170_v55, %v13759_v13  ;;  %v13799_v32 = vmul.f32 %v13759_v13, %v13186_v51  ;;  %v17790_v23 = vld [vmem:[#allocation14_spill] sm:$0xff] }
 0x584   :  { %v13803_v48 = vmul.f32 %v13184_v37, %v13759_v13  ;;  %v13807_v43 = vmul.f32 %v13759_v13, %v13200_v29  ;;  %v13811_v1 = vmul.f32 %v13198_v45, %v13759_v13  ;;  %v13815_v55 = vmul.f32 %v13759_v13, %v13214_v27  ;;  %v17803_v39 = vld [vmem:[#allocation22_spill] sm:$0xff] }
 0x585   :  { %v4371_v52 = vadd.f32 %v13787_v42, %v4301_v30  ;;  %v13820_v51 = vmul.f32 %v13212_v25, %v13759_v13  ;;  %v13824_v37 = vmul.f32 %v13759_v13, %v13228_v49  ;;  %v13828_v29 = vmul.f32 %v13226_v46, %v13759_v13 }
 0x586   :  { %v13832_v45 = vmul.f32 %v13759_v13, %v13242_v9  ;;  %v13836_v27 = vmul.f32 %v13240_v5, %v13759_v13  ;;  %v13840_v25 = vmul.f32 %v13759_v13, %v13256_v7  ;;  %v13844_v49 = vmul.f32 %v13254_v63, %v13759_v13 }
 0x587   :  { %v4435_v14 = vmax.f32 %v4371_v52, 0.0  ;;  %v13848_v46 = vmul.f32 %v13759_v13, %v13270_v20  ;;  %v13852_v9 = vmul.f32 %v13268_v17, %v13759_v13  ;;  %v13856_v5 = vmul.f32 %v13759_v13, %v13284_v47  ;;  %v17791_v52 = vld [vmem:[#allocation13_spill] sm:$0xff] }
 0x588   :  { %v13860_v7 = vmul.f32 %v13282_v41, %v13759_v13  ;;  %v13864_v63 = vmul.f32 %v13759_v13, %v13300_v21  ;;  %v13868_v20 = vmul.f32 %v13296_v8, %v13759_v13  ;;  %v13872_v17 = vmul.f32 %v13759_v13, %v13315_v61 }
 0x589   :  { %4587 = vst.msk [vmem:[#allocation3 + $0x331] sm:$0xff] %vm3891_vm11, %v4435_v14  ;;  %v13877_v47 = vmul.f32 %v13310_v16, %v13759_v13  ;;  %v13881_v41 = vmul.f32 %v13759_v13, %v13346_v38  ;;  %v13885_v21 = vmul.f32 %v13344_v33, %v13759_v13  ;;  %v13889_v8 = vmul.f32 %v13759_v13, %v13360_v4 }
 0x58a   :  { %v13893_v61 = vmul.f32 %v13358_v10, %v13759_v13  ;;  %v13897_v16 = vmul.f32 %v13759_v13, %v13377_v11  ;;  %v13901_v38 = vmul.f32 %v13373_v44, %v13759_v13  ;;  %v13905_v33 = vmul.f32 %v13759_v13, %v13390_v53 }
 0x58b   :  { %v13909_v4 = vmul.f32 %v13387_v40, %v13759_v13  ;;  %v13913_v10 = vmul.f32 %v13759_v13, %v13558_v59  ;;  %v13917_v11 = vmul.f32 %v13555_v50, %v13759_v13  ;;  %v13921_v44 = vmul.f32 %v13759_v13, %v13574_v31 }
 0x58c   :  { %v13925_v53 = vmul.f32 %v17781_v54, %v13759_v13  ;;  %v13929_v40 = vmul.f32 %v13759_v13, %v17782_v35  ;;  %v13933_v59 = vmul.f32 %v17783_v15, %v13759_v13  ;;  %v13937_v50 = vmul.f32 %v13759_v13, %v17784_v36  ;;  %v17792_v54 = vld [vmem:[#allocation16_spill] sm:$0xff]  ;;  %v17793_v15 = vld [vmem:[#allocation15_spill] sm:$0xff] }
 0x58d   :  { %v13941_v31 = vmul.f32 %v17785_v28, %v13759_v13  ;;  %v13945_v2 = vmul.f32 %v13759_v13, %v17786_v56  ;;  %v13949_v6 = vmul.f32 %v17787_v18, %v13759_v13  ;;  %v13953_v3 = vmul.f32 %v13759_v13, %v17788_v58  ;;  %v17795_v28 = vld [vmem:[#allocation18_spill] sm:$0xff]  ;;  %v17797_v18 = vld [vmem:[#allocation17_spill] sm:$0xff] }
 0x58e   :  { %v13957_v22 = vmul.f32 %v17789_v12, %v13759_v13  ;;  %v13961_v30 = vmul.f32 %v13759_v13, %v17790_v23  ;;  %v13965_v14 = vmul.f32 %v17791_v52, %v13759_v13  ;;  %v13969_v35 = vmul.f32 %v13759_v13, %v17792_v54  ;;  %v17799_v12 = vld [vmem:[#allocation20_spill] sm:$0xff]  ;;  %v17801_v52 = vld [vmem:[#allocation19_spill] sm:$0xff] }
 0x58f   :  { %v13973_v36 = vmul.f32 %v17793_v15, %v13759_v13  ;;  %v13977_v56 = vmul.f32 %v13759_v13, %v17795_v28  ;;  %v13981_v58 = vmul.f32 %v17797_v18, %v13759_v13  ;;  %v13985_v23 = vmul.f32 %v13759_v13, %v17799_v12 }
 0x590   :  { %v13989_v54 = vmul.f32 %v17801_v52, %v13759_v13  ;;  %v13993_v15 = vmul.f32 %v13759_v13, %v17803_v39 }
 0x591   :  { %17794 = vst [vmem:[#allocation4_spill] sm:$0xff] %v13973_v36  ;;  %17796 = vst [vmem:[#allocation6_spill] sm:$0xff] %v13977_v56  ;;  %v17805_v36 = vld [vmem:[#allocation21_spill] sm:$0xff]  ;;  %v17806_v56 = vld [vmem:[#allocation24_spill] sm:$0xff] }
 0x592   :  { %17798 = vst [vmem:[#allocation5_spill] sm:$0xff] %v13981_v58  ;;  %17800 = vst [vmem:[#allocation8_spill] sm:$0xff] %v13985_v23  ;;  %v13997_v28 = vmul.f32 %v17805_v36, %v13759_v13  ;;  %v14001_v18 = vmul.f32 %v13759_v13, %v17806_v56  ;;  %v17807_v58 = vld [vmem:[#allocation23_spill] sm:$0xff]  ;;  %v17808_v23 = vld [vmem:[#allocation26_spill] sm:$0xff]  ;;  %v14021_v56 = vadd.f32 %v13787_v42, %v13764_v60 }
 0x593   :  { %17802 = vst [vmem:[#allocation7_spill] sm:$0xff] %v13989_v54  ;;  %17804 = vst [vmem:[#allocation10_spill] sm:$0xff] %v13993_v15  ;;  %v14005_v12 = vmul.f32 %v17807_v58, %v13759_v13  ;;  %v14009_v52 = vmul.f32 %v13759_v13, %v17808_v23  ;;  %v17809_v54 = vld [vmem:[#allocation25_spill] sm:$0xff]  ;;  %v17810_v15 = vld [vmem:[#allocation27_spill] sm:$0xff]  ;;  %v14025_v58 = vadd.f32 %v13787_v42, %v13768_v57 }
 0x594   :  { %v14013_v39 = vmul.f32 %v17809_v54, %v13759_v13  ;;  %v14017_v36 = vmul.f32 %v17810_v15, %v13759_v13  ;;  %v14029_v23 = vadd.f32 %v13787_v42, %v13772_v62  ;;  %v14033_v54 = vadd.f32 %v13787_v42, %v13776_v0  ;;  %v4590_v15 = vld [vmem:[#allocation3 + $0x8] sm:$0xff] }
 0x595   :  { %v14037_v13 = vadd.f32 %v13787_v42, %v13780_v26  ;;  %v14041_v60 = vadd.f32 %v13787_v42, %v13784_v24  ;;  %v14045_v57 = vadd.f32 %v13787_v42, %v13791_v19  ;;  %v14049_v62 = vadd.f32 %v13787_v42, %v13795_v34  ;;  %4654 = vst.msk [vmem:[#allocation2 + $0x8] sm:$0xff] %vm3891_vm11, %v4590_v15 }
 0x596   :  { %v14053_v0 = vadd.f32 %v13787_v42, %v13799_v32  ;;  %v14057_v26 = vadd.f32 %v13787_v42, %v13803_v48  ;;  %v14061_v24 = vadd.f32 %v13787_v42, %v13807_v43  ;;  %v14065_v19 = vadd.f32 %v13787_v42, %v13811_v1 }
 0x597   :  { %v14069_v34 = vadd.f32 %v13787_v42, %v13815_v55  ;;  %v14073_v32 = vadd.f32 %v13787_v42, %v13820_v51  ;;  %v14077_v48 = vadd.f32 %v13787_v42, %v13824_v37  ;;  %v14081_v43 = vadd.f32 %v13787_v42, %v13828_v29 }
 0x598   :  { %v14085_v1 = vadd.f32 %v13787_v42, %v13832_v45  ;;  %v14089_v55 = vadd.f32 %v13787_v42, %v13836_v27  ;;  %v14093_v51 = vadd.f32 %v13787_v42, %v13840_v25  ;;  %v14097_v37 = vadd.f32 %v13787_v42, %v13844_v49  ;;  %v17817_v15 = vld [vmem:[#allocation6_spill] sm:$0xff] }
 0x599   :  { %v14101_v29 = vadd.f32 %v13787_v42, %v13848_v46  ;;  %v14105_v45 = vadd.f32 %v13787_v42, %v13852_v9  ;;  %v14109_v27 = vadd.f32 %v13787_v42, %v13856_v5  ;;  %v14113_v25 = vadd.f32 %v13787_v42, %v13860_v7 }
 0x59a   :  { %v14117_v49 = vadd.f32 %v13787_v42, %v13864_v63  ;;  %v14121_v46 = vadd.f32 %v13787_v42, %v13868_v20  ;;  %v14125_v9 = vadd.f32 %v13787_v42, %v13872_v17  ;;  %v14129_v5 = vadd.f32 %v13787_v42, %v13877_v47 }
 0x59b   :  { %17811 = vst [vmem:[#allocation9_spill] sm:$0xff] %v14109_v27  ;;  %v4589_v27 = vld [vmem:[#allocation3] sm:$0xff]  ;;  %v14133_v7 = vadd.f32 %v13787_v42, %v13881_v41  ;;  %v14137_v63 = vadd.f32 %v13787_v42, %v13885_v21  ;;  %v14141_v20 = vadd.f32 %v13787_v42, %v13889_v8  ;;  %v14145_v17 = vadd.f32 %v13787_v42, %v13893_v61 }
 0x59c   :  { %4653 = vst.msk [vmem:[#allocation2] sm:$0xff] %vm3891_vm11, %v4589_v27  ;;  %v14151_v47 = vadd.f32 %v13787_v42, %v13897_v16  ;;  %v14155_v41 = vadd.f32 %v13787_v42, %v13901_v38  ;;  %v14159_v21 = vadd.f32 %v13787_v42, %v13905_v33  ;;  %v14163_v8 = vadd.f32 %v13787_v42, %v13909_v4  ;;  %v17816_v27 = vld [vmem:[#allocation4_spill] sm:$0xff] }
 0x59d   :  { %v14167_v61 = vadd.f32 %v13787_v42, %v13913_v10  ;;  %v14171_v16 = vadd.f32 %v13787_v42, %v13917_v11  ;;  %v14175_v38 = vadd.f32 %v13787_v42, %v13921_v44  ;;  %v14179_v33 = vadd.f32 %v13787_v42, %v13925_v53 }
 0x59e   :  { %v14183_v4 = vadd.f32 %v13787_v42, %v13929_v40  ;;  %v14187_v10 = vadd.f32 %v13787_v42, %v13933_v59  ;;  %v14191_v11 = vadd.f32 %v13787_v42, %v13937_v50  ;;  %v14195_v44 = vadd.f32 %v13787_v42, %v13941_v31 }
 0x59f   :  { %v14199_v53 = vadd.f32 %v13787_v42, %v13945_v2  ;;  %v14203_v40 = vadd.f32 %v13787_v42, %v13949_v6  ;;  %v14207_v59 = vadd.f32 %v13787_v42, %v13953_v3  ;;  %v14211_v50 = vadd.f32 %v13787_v42, %v13957_v22 }
 0x5a0   :  { %v14215_v31 = vadd.f32 %v13787_v42, %v13961_v30  ;;  %v14219_v2 = vadd.f32 %v13787_v42, %v13965_v14  ;;  %v14223_v6 = vadd.f32 %v13787_v42, %v13969_v35  ;;  %v14227_v3 = vadd.f32 %v13787_v42, %v17816_v27 }
 0x5a1   :  { %17812 = vst [vmem:[#allocation12_spill] sm:$0xff] %v14211_v50  ;;  %v14231_v22 = vadd.f32 %v13787_v42, %v17817_v15  ;;  %v17818_v50 = vld [vmem:[#allocation5_spill] sm:$0xff]  ;;  %v14251_v15 = vadd.f32 %v13787_v42, %v13997_v28  ;;  %v14271_v28 = vadd.f32 %v13787_v42, %v14017_v36  ;;  %v4383_v36 = vmax.f32 %v14061_v24, 0.0 }
 0x5a2   :  { %17813 = vst [vmem:[#allocation11_spill] sm:$0xff] %v14215_v31  ;;  %17814 = vst [vmem:[#allocation14_spill] sm:$0xff] %v14219_v2  ;;  %v14235_v30 = vadd.f32 %v13787_v42, %v17818_v50  ;;  %v17819_v31 = vld [vmem:[#allocation8_spill] sm:$0xff]  ;;  %v17820_v2 = vld [vmem:[#allocation7_spill] sm:$0xff]  ;;  %v14255_v50 = vadd.f32 %v13787_v42, %v14001_v18  ;;  %v4374_v18 = vmax.f32 %v14025_v58, 0.0  ;;  %v4385_v58 = vmax.f32 %v14069_v34, 0.0 }
 0x5a3   :  { %17815 = vst [vmem:[#allocation13_spill] sm:$0xff] %v14223_v6  ;;  %v14239_v14 = vadd.f32 %v13787_v42, %v17819_v31  ;;  %v14243_v35 = vadd.f32 %v13787_v42, %v17820_v2  ;;  %v17821_v6 = vld [vmem:[#allocation10_spill] sm:$0xff]  ;;  %17822 = vst [vmem:[#allocation16_spill] sm:$0xff] %v14251_v15  ;;  %v14259_v31 = vadd.f32 %v13787_v42, %v14005_v12  ;;  %v4373_v15 = vmax.f32 %v14021_v56, 0.0 }
 0x5a4   :  { %v14247_v27 = vadd.f32 %v13787_v42, %v17821_v6  ;;  %17823 = vst [vmem:[#allocation15_spill] sm:$0xff] %v14255_v50  ;;  %v14263_v2 = vadd.f32 %v13787_v42, %v14009_v52  ;;  %v14267_v6 = vadd.f32 %v13787_v42, %v14013_v39  ;;  %v4375_v50 = vmax.f32 %v14029_v23, 0.0  ;;  %4526 = vst.msk [vmem:[#allocation3 + $0x21] sm:$0xff] %vm3891_vm11, %v4374_v18 }
 0x5a5   :  { %17824 = vst [vmem:[#allocation18_spill] sm:$0xff] %v14259_v31  ;;  %v4376_v12 = vmax.f32 %v14033_v54, 0.0  ;;  %v4377_v31 = vmax.f32 %v14037_v13, 0.0  ;;  %v4378_v52 = vmax.f32 %v14041_v60, 0.0  ;;  %v4380_v39 = vmax.f32 %v14049_v62, 0.0  ;;  %4525 = vst.msk [vmem:[#allocation3 + $0x19] sm:$0xff] %vm3891_vm11, %v4373_v15 }
 0x5a6   :  { %17825 = vst [vmem:[#allocation17_spill] sm:$0xff] %v14263_v2  ;;  %17826 = vst [vmem:[#allocation20_spill] sm:$0xff] %v14267_v6  ;;  %v4379_v2 = vmax.f32 %v14045_v57, 0.0  ;;  %v4381_v6 = vmax.f32 %v14053_v0, 0.0  ;;  %v4382_v42 = vmax.f32 %v14057_v26, 0.0  ;;  %v4384_v56 = vmax.f32 %v14065_v19, 0.0 }
 0x5a7   :  { %4527 = vst.msk [vmem:[#allocation3 + $0x31] sm:$0xff] %vm3891_vm11, %v4375_v50  ;;  %4528 = vst.msk [vmem:[#allocation3 + $0x39] sm:$0xff] %vm3891_vm11, %v4376_v12  ;;  %v4386_v23 = vmax.f32 %v14073_v32, 0.0  ;;  %v4387_v54 = vmax.f32 %v14077_v48, 0.0  ;;  %v4388_v13 = vmax.f32 %v14081_v43, 0.0  ;;  %v4389_v60 = vmax.f32 %v14085_v1, 0.0 }
 0x5a8   :  { %4529 = vst.msk [vmem:[#allocation3 + $0x49] sm:$0xff] %vm3891_vm11, %v4377_v31  ;;  %4530 = vst.msk [vmem:[#allocation3 + $0x51] sm:$0xff] %vm3891_vm11, %v4378_v52  ;;  %v4390_v57 = vmax.f32 %v14089_v55, 0.0  ;;  %v4391_v62 = vmax.f32 %v14093_v51, 0.0  ;;  %v4392_v0 = vmax.f32 %v14097_v37, 0.0  ;;  %v4393_v26 = vmax.f32 %v14101_v29, 0.0 }
 0x5a9   :  { %4531 = vst.msk [vmem:[#allocation3 + $0x61] sm:$0xff] %vm3891_vm11, %v4379_v2  ;;  %4532 = vst.msk [vmem:[#allocation3 + $0x69] sm:$0xff] %vm3891_vm11, %v4380_v39  ;;  %v4394_v24 = vmax.f32 %v14105_v45, 0.0  ;;  %v17827_v19 = vld [vmem:[#allocation9_spill] sm:$0xff]  ;;  %v4396_v32 = vmax.f32 %v14113_v25, 0.0  ;;  %v4397_v48 = vmax.f32 %v14117_v49, 0.0 }
 0x5aa   :  { %4533 = vst.msk [vmem:[#allocation3 + $0x79] sm:$0xff] %vm3891_vm11, %v4381_v6  ;;  %4534 = vst.msk [vmem:[#allocation3 + $0x81] sm:$0xff] %vm3891_vm11, %v4382_v42  ;;  %v4395_v34 = vmax.f32 %v17827_v19, 0.0  ;;  %v4398_v43 = vmax.f32 %v14121_v46, 0.0  ;;  %v4399_v1 = vmax.f32 %v14125_v9, 0.0  ;;  %v4400_v55 = vmax.f32 %v14129_v5, 0.0  ;;  %v4846_v42 = vpop.permute.xlu0 %4845 }
 0x5ab   :  { %4535 = vst.msk [vmem:[#allocation3 + $0x91] sm:$0xff] %vm3891_vm11, %v4383_v36  ;;  %4536 = vst.msk [vmem:[#allocation3 + $0x99] sm:$0xff] %vm3891_vm11, %v4384_v56  ;;  %v4401_v51 = vmax.f32 %v14133_v7, 0.0  ;;  %v4402_v37 = vmax.f32 %v14137_v63, 0.0  ;;  %v4403_v29 = vmax.f32 %v14141_v20, 0.0  ;;  %v4404_v45 = vmax.f32 %v14145_v17, 0.0 }
 0x5ac   :  { %4537 = vst.msk [vmem:[#allocation3 + $0xa9] sm:$0xff] %vm3891_vm11, %v4385_v58  ;;  %4538 = vst.msk [vmem:[#allocation3 + $0xb1] sm:$0xff] %vm3891_vm11, %v4386_v23  ;;  %v4405_v25 = vmax.f32 %v14151_v47, 0.0  ;;  %v4406_v49 = vmax.f32 %v14155_v41, 0.0  ;;  %v4407_v46 = vmax.f32 %v14159_v21, 0.0  ;;  %v4408_v9 = vmax.f32 %v14163_v8, 0.0 }
 0x5ad   :  { %4539 = vst.msk [vmem:[#allocation3 + $0xc1] sm:$0xff] %vm3891_vm11, %v4387_v54  ;;  %4540 = vst.msk [vmem:[#allocation3 + $0xc9] sm:$0xff] %vm3891_vm11, %v4388_v13  ;;  %v4409_v5 = vmax.f32 %v14167_v61, 0.0  ;;  %v4719_v7 = vld [vmem:[#allocation3 + $0x19] sm:$0xff]  ;;  %v4410_v20 = vmax.f32 %v14171_v16, 0.0  ;;  %v4411_v17 = vmax.f32 %v14175_v38, 0.0 }
 0x5ae   :  { %4541 = vst.msk [vmem:[#allocation3 + $0xd9] sm:$0xff] %vm3891_vm11, %v4389_v60  ;;  %4542 = vst.msk [vmem:[#allocation3 + $0xe1] sm:$0xff] %vm3891_vm11, %v4390_v57  ;;  %v14339_v63 = vld [vmem:[#allocation3 + $0x18] sm:$0xff]  ;;  %v4412_v47 = vmax.f32 %v14179_v33, 0.0  ;;  %v4413_v41 = vmax.f32 %v14183_v4, 0.0  ;;  %v4720_v21 = vld [vmem:[#allocation3 + $0x21] sm:$0xff]  ;;  %4849 = vrot.lane.b32.xlu0 %v4719_v7, %s10117_s14 }
 0x5af   :  { %4543 = vst.msk [vmem:[#allocation3 + $0xf1] sm:$0xff] %vm3891_vm11, %v4391_v62  ;;  %4544 = vst.msk [vmem:[#allocation3 + $0xf9] sm:$0xff] %vm3891_vm11, %v4392_v0  ;;  %v4414_v8 = vmax.f32 %v14187_v10, 0.0  ;;  %v4415_v61 = vmax.f32 %v14191_v11, 0.0  ;;  %v4416_v16 = vmax.f32 %v14195_v44, 0.0  ;;  %v4417_v38 = vmax.f32 %v14199_v53, 0.0  ;;  %4851 = vrot.lane.b32.xlu1 %v4720_v21, %s10117_s14 }
 0x5b0   :  { %4545 = vst.msk [vmem:[#allocation3 + $0x109] sm:$0xff] %vm3891_vm11, %v4393_v26  ;;  %4546 = vst.msk [vmem:[#allocation3 + $0x111] sm:$0xff] %vm3891_vm11, %v4394_v24  ;;  %v4418_v33 = vmax.f32 %v14203_v40, 0.0  ;;  %v4419_v4 = vmax.f32 %v14207_v59, 0.0  ;;  %v17828_v10 = vld [vmem:[#allocation12_spill] sm:$0xff]  ;;  %v17829_v15 = vld [vmem:[#allocation11_spill] sm:$0xff] }
 0x5b1   :  { %4547 = vst.msk [vmem:[#allocation3 + $0x121] sm:$0xff] %vm3891_vm11, %v4395_v34  ;;  %4548 = vst.msk [vmem:[#allocation3 + $0x129] sm:$0xff] %vm3891_vm11, %v4396_v32  ;;  %v4420_v11 = vmax.f32 %v17828_v10, 0.0  ;;  %v4421_v44 = vmax.f32 %v17829_v15, 0.0  ;;  %v17830_v53 = vld [vmem:[#allocation14_spill] sm:$0xff]  ;;  %v17831_v31 = vld [vmem:[#allocation13_spill] sm:$0xff] }
 0x5b2   :  { %4549 = vst.msk [vmem:[#allocation3 + $0x139] sm:$0xff] %vm3891_vm11, %v4397_v48  ;;  %4550 = vst.msk [vmem:[#allocation3 + $0x141] sm:$0xff] %vm3891_vm11, %v4398_v43  ;;  %v4422_v50 = vmax.f32 %v17830_v53, 0.0  ;;  %v4423_v2 = vmax.f32 %v17831_v31, 0.0  ;;  %v4424_v40 = vmax.f32 %v14227_v3, 0.0  ;;  %v4425_v59 = vmax.f32 %v14231_v22, 0.0  ;;  %v4848_v22 = vpop.permute.xlu1 %4847 }
 0x5b3   :  { %4551 = vst.msk [vmem:[#allocation3 + $0x151] sm:$0xff] %vm3891_vm11, %v4399_v1  ;;  %4552 = vst.msk [vmem:[#allocation3 + $0x159] sm:$0xff] %vm3891_vm11, %v4400_v55  ;;  %v4721_v6 = vld [vmem:[#allocation3 + $0x31] sm:$0xff]  ;;  %v4426_v18 = vmax.f32 %v14235_v30, 0.0  ;;  %v4427_v12 = vmax.f32 %v14239_v14, 0.0  ;;  %v4428_v52 = vmax.f32 %v14243_v35, 0.0 }
 0x5b4   :  { %4553 = vst.msk [vmem:[#allocation3 + $0x169] sm:$0xff] %vm3891_vm11, %v4401_v51  ;;  %4554 = vst.msk [vmem:[#allocation3 + $0x171] sm:$0xff] %vm3891_vm11, %v4402_v37  ;;  %v4429_v39 = vmax.f32 %v14247_v27, 0.0  ;;  %v4722_v3 = vld [vmem:[#allocation3 + $0x39] sm:$0xff]  ;;  %4853 = vrot.lane.b32.xlu0 %v4721_v6, %s10117_s14  ;;  %v17834_v35 = vld [vmem:[#allocation18_spill] sm:$0xff]  ;;  %v4436_v60 = vmax.f32 %v14271_v28, 0.0 }
 0x5b5   :  { %4555 = vst.msk [vmem:[#allocation3 + $0x181] sm:$0xff] %vm3891_vm11, %v4403_v29  ;;  %4556 = vst.msk [vmem:[#allocation3 + $0x189] sm:$0xff] %vm3891_vm11, %v4404_v45  ;;  %v17832_v30 = vld [vmem:[#allocation16_spill] sm:$0xff]  ;;  %v17833_v14 = vld [vmem:[#allocation15_spill] sm:$0xff]  ;;  %v4432_v58 = vmax.f32 %v17834_v35, 0.0  ;;  %4855 = vrot.lane.b32.xlu1 %v4722_v3, %s10117_s14 }
 0x5b6   :  { %4557 = vst.msk [vmem:[#allocation3 + $0x1c9] sm:$0xff] %vm3891_vm11, %v4405_v25  ;;  %4655 = vst.msk [vmem:[#allocation2 + $0x10] sm:$0xff] %vm3891_vm11, %v14339_v63  ;;  %v4430_v36 = vmax.f32 %v17832_v30, 0.0  ;;  %v4431_v56 = vmax.f32 %v17833_v14, 0.0  ;;  %v17835_v27 = vld [vmem:[#allocation17_spill] sm:$0xff]  ;;  %v17836_v54 = vld [vmem:[#allocation20_spill] sm:$0xff] }
 0x5b7   :  { %4558 = vst.msk [vmem:[#allocation3 + $0x1d1] sm:$0xff] %vm3891_vm11, %v4406_v49  ;;  %4559 = vst.msk [vmem:[#allocation3 + $0x1e1] sm:$0xff] %vm3891_vm11, %v4407_v46  ;;  %v4433_v23 = vmax.f32 %v17835_v27, 0.0  ;;  %v4434_v13 = vmax.f32 %v17836_v54, 0.0  ;;  %v4723_v57 = vld [vmem:[#allocation3 + $0x49] sm:$0xff]  ;;  %v4724_v28 = vld [vmem:[#allocation3 + $0x51] sm:$0xff] }
 0x5b8   :  { %4560 = vst.msk [vmem:[#allocation3 + $0x1e9] sm:$0xff] %vm3891_vm11, %v4408_v9  ;;  %4561 = vst.msk [vmem:[#allocation3 + $0x1f9] sm:$0xff] %vm3891_vm11, %v4409_v5  ;;  %4857 = vrot.lane.b32.xlu0 %v4723_v57, %s10117_s14  ;;  %v4725_v62 = vld [vmem:[#allocation3 + $0x61] sm:$0xff]  ;;  %v4726_v0 = vld [vmem:[#allocation3 + $0x69] sm:$0xff] }
 0x5b9   :  { %4562 = vst.msk [vmem:[#allocation3 + $0x201] sm:$0xff] %vm3891_vm11, %v4410_v20  ;;  %4563 = vst.msk [vmem:[#allocation3 + $0x211] sm:$0xff] %vm3891_vm11, %v4411_v17  ;;  %4859 = vrot.lane.b32.xlu1 %v4724_v28, %s10117_s14  ;;  %v4727_v26 = vld [vmem:[#allocation3 + $0x79] sm:$0xff]  ;;  %v4728_v24 = vld [vmem:[#allocation3 + $0x81] sm:$0xff] }
 0x5ba   :  { %4564 = vst.msk [vmem:[#allocation3 + $0x219] sm:$0xff] %vm3891_vm11, %v4412_v47  ;;  %4565 = vst.msk [vmem:[#allocation3 + $0x229] sm:$0xff] %vm3891_vm11, %v4413_v41  ;;  %v4729_v19 = vld [vmem:[#allocation3 + $0x91] sm:$0xff]  ;;  %v4730_v34 = vld [vmem:[#allocation3 + $0x99] sm:$0xff] }
 0x5bb   :  { %4566 = vst.msk [vmem:[#allocation3 + $0x231] sm:$0xff] %vm3891_vm11, %v4414_v8  ;;  %4567 = vst.msk [vmem:[#allocation3 + $0x241] sm:$0xff] %vm3891_vm11, %v4415_v61  ;;  %v14416_v32 = vld [vmem:[#allocation3 + $0x20] sm:$0xff]  ;;  %v14421_v48 = vld [vmem:[#allocation3 + $0x38] sm:$0xff] }
 0x5bc   :  { %4568 = vst.msk [vmem:[#allocation3 + $0x249] sm:$0xff] %vm3891_vm11, %v4416_v16  ;;  %4569 = vst.msk [vmem:[#allocation3 + $0x259] sm:$0xff] %vm3891_vm11, %v4417_v38  ;;  %4861 = vrot.lane.b32.xlu0 %v4725_v62, %s10117_s14  ;;  %v14423_v43 = vld [vmem:[#allocation3 + $0x30] sm:$0xff]  ;;  %v14433_v51 = vld [vmem:[#allocation3 + $0x48] sm:$0xff] }
 0x5bd   :  { %4570 = vst.msk [vmem:[#allocation3 + $0x261] sm:$0xff] %vm3891_vm11, %v4418_v33  ;;  %4571 = vst.msk [vmem:[#allocation3 + $0x271] sm:$0xff] %vm3891_vm11, %v4419_v4  ;;  %4863 = vrot.lane.b32.xlu1 %v4726_v0, %s10117_s14  ;;  %v4731_v1 = vld [vmem:[#allocation3 + $0xa9] sm:$0xff]  ;;  %v14437_v29 = vld [vmem:[#allocation3 + $0x60] sm:$0xff] }
 0x5be   :  { %4572 = vst.msk [vmem:[#allocation3 + $0x279] sm:$0xff] %vm3891_vm11, %v4420_v11  ;;  %4573 = vst.msk [vmem:[#allocation3 + $0x289] sm:$0xff] %vm3891_vm11, %v4421_v44  ;;  %v14429_v55 = vld [vmem:[#allocation3 + $0x50] sm:$0xff]  ;;  %v14435_v37 = vld [vmem:[#allocation3 + $0x68] sm:$0xff] }
 0x5bf   :  { %4574 = vst.msk [vmem:[#allocation3 + $0x291] sm:$0xff] %vm3891_vm11, %v4422_v50  ;;  %4575 = vst.msk [vmem:[#allocation3 + $0x2a1] sm:$0xff] %vm3891_vm11, %v4423_v2  ;;  %v4732_v45 = vld [vmem:[#allocation3 + $0xb1] sm:$0xff]  ;;  %v14446_v25 = vld [vmem:[#allocation3 + $0x80] sm:$0xff] }
 0x5c0   :  { %4576 = vst.msk [vmem:[#allocation3 + $0x2a9] sm:$0xff] %vm3891_vm11, %v4424_v40  ;;  %4577 = vst.msk [vmem:[#allocation3 + $0x2b9] sm:$0xff] %vm3891_vm11, %v4425_v59  ;;  %4865 = vrot.lane.b32.xlu0 %v4727_v26, %s10117_s14  ;;  %v14451_v49 = vld [vmem:[#allocation3 + $0x78] sm:$0xff]  ;;  %v14457_v9 = vld [vmem:[#allocation3 + $0x90] sm:$0xff] }
 0x5c1   :  { %4578 = vst.msk [vmem:[#allocation3 + $0x2c1] sm:$0xff] %vm3891_vm11, %v4426_v18  ;;  %4579 = vst.msk [vmem:[#allocation3 + $0x2d1] sm:$0xff] %vm3891_vm11, %v4427_v12  ;;  %4867 = vrot.lane.b32.xlu1 %v4728_v24, %s10117_s14  ;;  %v14455_v46 = vld [vmem:[#allocation3 + $0x98] sm:$0xff]  ;;  %v4733_v5 = vld [vmem:[#allocation3 + $0xc1] sm:$0xff] }
 0x5c2   :  { %4580 = vst.msk [vmem:[#allocation3 + $0x2d9] sm:$0xff] %vm3891_vm11, %v4428_v52  ;;  %4581 = vst.msk [vmem:[#allocation3 + $0x2e9] sm:$0xff] %vm3891_vm11, %v4429_v39  ;;  %v14463_v7 = vld [vmem:[#allocation3 + $0xb0] sm:$0xff]  ;;  %v14465_v20 = vld [vmem:[#allocation3 + $0xa8] sm:$0xff] }
 0x5c3   :  { %4582 = vst.msk [vmem:[#allocation3 + $0x2f1] sm:$0xff] %vm3891_vm11, %v4430_v36  ;;  %4583 = vst.msk [vmem:[#allocation3 + $0x301] sm:$0xff] %vm3891_vm11, %v4431_v56  ;;  %v4734_v17 = vld [vmem:[#allocation3 + $0xc9] sm:$0xff]  ;;  %v14477_v41 = vld [vmem:[#allocation3 + $0xc0] sm:$0xff] }
 0x5c4   :  { %4584 = vst.msk [vmem:[#allocation3 + $0x309] sm:$0xff] %vm3891_vm11, %v4432_v58  ;;  %4585 = vst.msk [vmem:[#allocation3 + $0x319] sm:$0xff] %vm3891_vm11, %v4433_v23  ;;  %4869 = vrot.lane.b32.xlu0 %v4729_v19, %s10117_s14  ;;  %v14472_v47 = vld [vmem:[#allocation3 + $0xc8] sm:$0xff]  ;;  %v14481_v21 = vld [vmem:[#allocation3 + $0xe0] sm:$0xff] }
 0x5c5   :  { %5039 = vst.msk [vmem:[#allocation2 + $0x8] sm:$0xff] %vm5037_vm14, %v4848_v22  ;;  %5038 = vst.msk [vmem:[#allocation2] sm:$0xff] %vm5037_vm14, %v4846_v42  ;;  %4871 = vrot.lane.b32.xlu1 %v4730_v34, %s10117_s14  ;;  %v14483_v8 = vld [vmem:[#allocation3 + $0xd8] sm:$0xff]  ;;  %v14491_v38 = vld [vmem:[#allocation3 + $0xf0] sm:$0xff] }
 0x5c6   :  { %4586 = vst.msk [vmem:[#allocation3 + $0x321] sm:$0xff] %vm3891_vm11, %v4434_v13  ;;  %4588 = vst.msk [vmem:[#allocation3 + $0x339] sm:$0xff] %vm3891_vm11, %v4436_v60  ;;  %v4735_v61 = vld [vmem:[#allocation3 + $0xd9] sm:$0xff]  ;;  %v4736_v33 = vld [vmem:[#allocation3 + $0xe1] sm:$0xff] }
 0x5c7   :  { %4656 = vst.msk [vmem:[#allocation2 + $0x18] sm:$0xff] %vm3891_vm11, %v14416_v32  ;;  %4658 = vst.msk [vmem:[#allocation2 + $0x28] sm:$0xff] %vm3891_vm11, %v14421_v48  ;;  %v14489_v16 = vld [vmem:[#allocation3 + $0xf8] sm:$0xff]  ;;  %v14498_v4 = vld [vmem:[#allocation3 + $0x110] sm:$0xff] }
 0x5c8   :  { %4657 = vst.msk [vmem:[#allocation2 + $0x20] sm:$0xff] %vm3891_vm11, %v14423_v43  ;;  %4660 = vst.msk [vmem:[#allocation2 + $0x38] sm:$0xff] %vm3891_vm11, %v14429_v55  ;;  %4873 = vrot.lane.b32.xlu0 %v4731_v1, %s10117_s14  ;;  %v14503_v10 = vld [vmem:[#allocation3 + $0x108] sm:$0xff]  ;;  %v14509_v15 = vld [vmem:[#allocation3 + $0x120] sm:$0xff] }
 0x5c9   :  { %4659 = vst.msk [vmem:[#allocation2 + $0x30] sm:$0xff] %vm3891_vm11, %v14433_v51  ;;  %4662 = vst.msk [vmem:[#allocation2 + $0x48] sm:$0xff] %vm3891_vm11, %v14435_v37  ;;  %4875 = vrot.lane.b32.xlu1 %v4732_v45, %s10117_s14  ;;  %v14507_v11 = vld [vmem:[#allocation3 + $0x128] sm:$0xff]  ;;  %v4737_v44 = vld [vmem:[#allocation3 + $0xf1] sm:$0xff] }
 0x5ca   :  { %4661 = vst.msk [vmem:[#allocation2 + $0x40] sm:$0xff] %vm3891_vm11, %v14437_v29  ;;  %4664 = vst.msk [vmem:[#allocation2 + $0x58] sm:$0xff] %vm3891_vm11, %v14446_v25  ;;  %v14515_v53 = vld [vmem:[#allocation3 + $0x140] sm:$0xff]  ;;  %v14517_v50 = vld [vmem:[#allocation3 + $0x138] sm:$0xff] }
 0x5cb   :  { %4663 = vst.msk [vmem:[#allocation2 + $0x50] sm:$0xff] %vm3891_vm11, %v14451_v49  ;;  %4666 = vst.msk [vmem:[#allocation2 + $0x68] sm:$0xff] %vm3891_vm11, %v14455_v46  ;;  %v4738_v31 = vld [vmem:[#allocation3 + $0xf9] sm:$0xff]  ;;  %v14529_v40 = vld [vmem:[#allocation3 + $0x150] sm:$0xff] }
 0x5cc   :  { %4665 = vst.msk [vmem:[#allocation2 + $0x60] sm:$0xff] %vm3891_vm11, %v14457_v9  ;;  %4877 = vrot.lane.b32.xlu0 %v4733_v5, %s10117_s14  ;;  %4668 = vst.msk [vmem:[#allocation2 + $0x78] sm:$0xff] %vm3891_vm11, %v14463_v7  ;;  %v14524_v2 = vld [vmem:[#allocation3 + $0x158] sm:$0xff]  ;;  %v14533_v59 = vld [vmem:[#allocation3 + $0x170] sm:$0xff] }
 0x5cd   :  { %4667 = vst.msk [vmem:[#allocation2 + $0x70] sm:$0xff] %vm3891_vm11, %v14465_v20  ;;  %4879 = vrot.lane.b32.xlu1 %v4734_v17, %s10117_s14  ;;  %4670 = vst.msk [vmem:[#allocation2 + $0x88] sm:$0xff] %vm3891_vm11, %v14472_v47  ;;  %v14535_v6 = vld [vmem:[#allocation3 + $0x168] sm:$0xff]  ;;  %v4740_v12 = vld [vmem:[#allocation3 + $0x111] sm:$0xff] }
 0x5ce   :  { %4669 = vst.msk [vmem:[#allocation2 + $0x80] sm:$0xff] %vm3891_vm11, %v14477_v41  ;;  %4672 = vst.msk [vmem:[#allocation2 + $0x98] sm:$0xff] %vm3891_vm11, %v14481_v21  ;;  %v4739_v18 = vld [vmem:[#allocation3 + $0x109] sm:$0xff]  ;;  %v14553_v22 = vld [vmem:[#allocation3 + $0x1e0] sm:$0xff] }
 0x5cf   :  { %4671 = vst.msk [vmem:[#allocation2 + $0x90] sm:$0xff] %vm3891_vm11, %v14483_v8  ;;  %4674 = vst.msk [vmem:[#allocation2 + $0xa8] sm:$0xff] %vm3891_vm11, %v14489_v16  ;;  %v14542_v52 = vld [vmem:[#allocation3 + $0x1d0] sm:$0xff]  ;;  %v14544_v39 = vld [vmem:[#allocation3 + $0x1c8] sm:$0xff] }
 0x5d0   :  { %4881 = vrot.lane.b32.xlu0 %v4735_v61, %s10117_s14  ;;  %4673 = vst.msk [vmem:[#allocation2 + $0xa0] sm:$0xff] %vm3891_vm11, %v14491_v38  ;;  %4676 = vst.msk [vmem:[#allocation2 + $0xb8] sm:$0xff] %vm3891_vm11, %v14498_v4  ;;  %v14551_v3 = vld [vmem:[#allocation3 + $0x1e8] sm:$0xff]  ;;  %v14559_v30 = vld [vmem:[#allocation3 + $0x200] sm:$0xff] }
 0x5d1   :  { %4883 = vrot.lane.b32.xlu1 %v4736_v33, %s10117_s14  ;;  %4675 = vst.msk [vmem:[#allocation2 + $0xb0] sm:$0xff] %vm3891_vm11, %v14503_v10  ;;  %4678 = vst.msk [vmem:[#allocation2 + $0xc8] sm:$0xff] %vm3891_vm11, %v14507_v11  ;;  %v4741_v42 = vld [vmem:[#allocation3 + $0x121] sm:$0xff]  ;;  %v14563_v36 = vld [vmem:[#allocation3 + $0x1f8] sm:$0xff] }
 0x5d2   :  { %4677 = vst.msk [vmem:[#allocation2 + $0xc0] sm:$0xff] %vm3891_vm11, %v14509_v15  ;;  %4680 = vst.msk [vmem:[#allocation2 + $0xd8] sm:$0xff] %vm3891_vm11, %v14515_v53  ;;  %v14565_v14 = vld [vmem:[#allocation3 + $0x218] sm:$0xff]  ;;  %v14567_v56 = vld [vmem:[#allocation3 + $0x210] sm:$0xff] }
 0x5d3   :  { %4679 = vst.msk [vmem:[#allocation2 + $0xd0] sm:$0xff] %vm3891_vm11, %v14517_v50  ;;  %4682 = vst.msk [vmem:[#allocation2 + $0xe8] sm:$0xff] %vm3891_vm11, %v14524_v2  ;;  %v4742_v35 = vld [vmem:[#allocation3 + $0x129] sm:$0xff]  ;;  %v4622_v27 = vld [vmem:[#allocation3 + $0x1b8] sm:$0xff] }
 0x5d4   :  { %4885 = vrot.lane.b32.xlu0 %v4737_v44, %s10117_s14  ;;  %4681 = vst.msk [vmem:[#allocation2 + $0xe0] sm:$0xff] %vm3891_vm11, %v14529_v40  ;;  %4684 = vst.msk [vmem:[#allocation2 + $0xf8] sm:$0xff] %vm3891_vm11, %v14533_v59  ;;  %v14576_v58 = vld [vmem:[#allocation3 + $0x230] sm:$0xff]  ;;  %v14581_v23 = vld [vmem:[#allocation3 + $0x228] sm:$0xff] }
 0x5d5   :  { %4887 = vrot.lane.b32.xlu1 %v4738_v31, %s10117_s14  ;;  %4683 = vst.msk [vmem:[#allocation2 + $0xf0] sm:$0xff] %vm3891_vm11, %v14535_v6  ;;  %4688 = vst.msk [vmem:[#allocation2 + $0x118] sm:$0xff] %vm3891_vm11, %v14542_v52  ;;  %v14586_v54 = vld [vmem:[#allocation3 + $0x248] sm:$0xff]  ;;  %v14588_v13 = vld [vmem:[#allocation3 + $0x240] sm:$0xff] }
 0x5d6   :  { %4687 = vst.msk [vmem:[#allocation2 + $0x110] sm:$0xff] %vm3891_vm11, %v14544_v39  ;;  %4690 = vst.msk [vmem:[#allocation2 + $0x128] sm:$0xff] %vm3891_vm11, %v14551_v3  ;;  %v4743_v60 = vld [vmem:[#allocation3 + $0x139] sm:$0xff]  ;;  %v4744_v28 = vld [vmem:[#allocation3 + $0x141] sm:$0xff] }
 0x5d7   :  { %4689 = vst.msk [vmem:[#allocation2 + $0x120] sm:$0xff] %vm3891_vm11, %v14553_v22  ;;  %4692 = vst.msk [vmem:[#allocation2 + $0x138] sm:$0xff] %vm3891_vm11, %v14559_v30  ;;  %v14594_v57 = vld [vmem:[#allocation3 + $0x260] sm:$0xff]  ;;  %v4621_v62 = vld [vmem:[#allocation3 + $0x1b0] sm:$0xff] }
 0x5d8   :  { %4889 = vrot.lane.b32.xlu0 %v4739_v18, %s10117_s14  ;;  %4691 = vst.msk [vmem:[#allocation2 + $0x130] sm:$0xff] %vm3891_vm11, %v14563_v36  ;;  %4694 = vst.msk [vmem:[#allocation2 + $0x148] sm:$0xff] %vm3891_vm11, %v14565_v14  ;;  %v14599_v0 = vld [vmem:[#allocation3 + $0x258] sm:$0xff]  ;;  %v14607_v24 = vld [vmem:[#allocation3 + $0x270] sm:$0xff] }
 0x5d9   :  { %4891 = vrot.lane.b32.xlu1 %v4740_v12, %s10117_s14  ;;  %4693 = vst.msk [vmem:[#allocation2 + $0x140] sm:$0xff] %vm3891_vm11, %v14567_v56  ;;  %4696 = vst.msk [vmem:[#allocation2 + $0x158] sm:$0xff] %vm3891_vm11, %v14576_v58  ;;  %v14605_v26 = vld [vmem:[#allocation3 + $0x278] sm:$0xff]  ;;  %v14613_v19 = vld [vmem:[#allocation3 + $0x290] sm:$0xff] }
 0x5da   :  { %4686 = vst.msk [vmem:[#allocation2 + $0x108] sm:$0xff] %vm3891_vm11, %v4622_v27  ;;  %4695 = vst.msk [vmem:[#allocation2 + $0x150] sm:$0xff] %vm3891_vm11, %v14581_v23  ;;  %v4745_v34 = vld [vmem:[#allocation3 + $0x151] sm:$0xff]  ;;  %v14617_v1 = vld [vmem:[#allocation3 + $0x288] sm:$0xff] }
 0x5db   :  { %4698 = vst.msk [vmem:[#allocation2 + $0x168] sm:$0xff] %vm3891_vm11, %v14586_v54  ;;  %4697 = vst.msk [vmem:[#allocation2 + $0x160] sm:$0xff] %vm3891_vm11, %v14588_v13  ;;  %v4746_v45 = vld [vmem:[#allocation3 + $0x159] sm:$0xff]  ;;  %v14622_v5 = vld [vmem:[#allocation3 + $0x2a8] sm:$0xff] }
 0x5dc   :  { %4893 = vrot.lane.b32.xlu0 %v4741_v42, %s10117_s14  ;;  %4700 = vst.msk [vmem:[#allocation2 + $0x178] sm:$0xff] %vm3891_vm11, %v14594_v57  ;;  %4685 = vst.msk [vmem:[#allocation2 + $0x100] sm:$0xff] %vm3891_vm11, %v4621_v62  ;;  %v14624_v17 = vld [vmem:[#allocation3 + $0x2a0] sm:$0xff]  ;;  %v14633_v33 = vld [vmem:[#allocation3 + $0x2b8] sm:$0xff] }
 0x5dd   :  { %4895 = vrot.lane.b32.xlu1 %v4742_v35, %s10117_s14  ;;  %4699 = vst.msk [vmem:[#allocation2 + $0x170] sm:$0xff] %vm3891_vm11, %v14599_v0  ;;  %4702 = vst.msk [vmem:[#allocation2 + $0x188] sm:$0xff] %vm3891_vm11, %v14605_v26  ;;  %v14631_v61 = vld [vmem:[#allocation3 + $0x2c0] sm:$0xff]  ;;  %v14639_v44 = vld [vmem:[#allocation3 + $0x2d8] sm:$0xff] }
 0x5de   :  { %4701 = vst.msk [vmem:[#allocation2 + $0x180] sm:$0xff] %vm3891_vm11, %v14607_v24  ;;  %4704 = vst.msk [vmem:[#allocation2 + $0x198] sm:$0xff] %vm3891_vm11, %v14613_v19  ;;  %v4747_v31 = vld [vmem:[#allocation3 + $0x169] sm:$0xff]  ;;  %v4748_v12 = vld [vmem:[#allocation3 + $0x171] sm:$0xff] }
 0x5df   :  { %4703 = vst.msk [vmem:[#allocation2 + $0x190] sm:$0xff] %vm3891_vm11, %v14617_v1  ;;  %4706 = vst.msk [vmem:[#allocation2 + $0x1a8] sm:$0xff] %vm3891_vm11, %v14622_v5  ;;  %v14643_v18 = vld [vmem:[#allocation3 + $0x2d0] sm:$0xff]  ;;  %v14650_v35 = vld [vmem:[#allocation3 + $0x2e8] sm:$0xff] }
 0x5e0   :  { %4897 = vrot.lane.b32.xlu0 %v4743_v60, %s10117_s14  ;;  %4705 = vst.msk [vmem:[#allocation2 + $0x1a0] sm:$0xff] %vm3891_vm11, %v14624_v17  ;;  %4708 = vst.msk [vmem:[#allocation2 + $0x1b8] sm:$0xff] %vm3891_vm11, %v14631_v61  ;;  %v14648_v42 = vld [vmem:[#allocation3 + $0x2f0] sm:$0xff]  ;;  %v14657_v60 = vld [vmem:[#allocation3 + $0x308] sm:$0xff] }
 0x5e1   :  { %4899 = vrot.lane.b32.xlu1 %v4744_v28, %s10117_s14  ;;  %4707 = vst.msk [vmem:[#allocation2 + $0x1b0] sm:$0xff] %vm3891_vm11, %v14633_v33  ;;  %4710 = vst.msk [vmem:[#allocation2 + $0x1c8] sm:$0xff] %vm3891_vm11, %v14639_v44  ;;  %v4749_v27 = vld [vmem:[#allocation3 + $0x1b1] sm:$0xff]  ;;  %v14659_v28 = vld [vmem:[#allocation3 + $0x300] sm:$0xff] }
 0x5e2   :  { %4709 = vst.msk [vmem:[#allocation2 + $0x1c0] sm:$0xff] %vm3891_vm11, %v14643_v18  ;;  %17837 = vst [vmem:[#allocation19_spill] sm:$0xff] %v14648_v42  ;;  %v4750_v62 = vld [vmem:[#allocation3 + $0x1b9] sm:$0xff] }
 0x5e3   :  { %17838 = vst [vmem:[#allocation22_spill] sm:$0xff] %v14650_v35  ;;  %4712 = vst.msk [vmem:[#allocation2 + $0x1d8] sm:$0xff] %vm3891_vm11, %v14648_v42  ;;  %v4756_v42 = vld [vmem:[#allocation3 + $0x201] sm:$0xff] }
 0x5e4   :  { %4901 = vrot.lane.b32.xlu0 %v4745_v34, %s10117_s14  ;;  %4711 = vst.msk [vmem:[#allocation2 + $0x1d0] sm:$0xff] %vm3891_vm11, %v14650_v35  ;;  %17839 = vst [vmem:[#allocation21_spill] sm:$0xff] %v14657_v60  ;;  %v14665_v34 = vld [vmem:[#allocation3 + $0x320] sm:$0xff] }
 0x5e5   :  { %4903 = vrot.lane.b32.xlu1 %v4746_v45, %s10117_s14  ;;  %17840 = vst [vmem:[#allocation24_spill] sm:$0xff] %v14659_v28  ;;  %4714 = vst.msk [vmem:[#allocation2 + $0x1e8] sm:$0xff] %vm3891_vm11, %v14657_v60  ;;  %v14669_v45 = vld [vmem:[#allocation3 + $0x318] sm:$0xff]  ;;  %v4753_v60 = vld [vmem:[#allocation3 + $0x1e1] sm:$0xff] }
 0x5e6   :  { %4713 = vst.msk [vmem:[#allocation2 + $0x1e0] sm:$0xff] %vm3891_vm11, %v14659_v28  ;;  %17841 = vst [vmem:[#allocation23_spill] sm:$0xff] %v14665_v34  ;;  %v4754_v28 = vld [vmem:[#allocation3 + $0x1e9] sm:$0xff] }
 0x5e7   :  { %4716 = vst.msk [vmem:[#allocation2 + $0x1f8] sm:$0xff] %vm3891_vm11, %v14665_v34  ;;  %17842 = vst [vmem:[#allocation26_spill] sm:$0xff] %v14669_v45  ;;  %v4755_v34 = vld [vmem:[#allocation3 + $0x1f9] sm:$0xff] }
 0x5e8   :  { %4905 = vrot.lane.b32.xlu0 %v4747_v31, %s10117_s14  ;;  %4715 = vst.msk [vmem:[#allocation2 + $0x1f0] sm:$0xff] %vm3891_vm11, %v14669_v45  ;;  %v4751_v31 = vld [vmem:[#allocation3 + $0x1c9] sm:$0xff]  ;;  %v4777_v45 = vld [vmem:[#allocation3 + $0x301] sm:$0xff] }
 0x5e9   :  { %4907 = vrot.lane.b32.xlu1 %v4748_v12, %s10117_s14  ;;  %v4752_v12 = vld [vmem:[#allocation3 + $0x1d1] sm:$0xff] }
 0x5ec   :  { %4909 = vrot.lane.b32.xlu0 %v4749_v27, %s10117_s14  ;;  %v4757_v27 = vld [vmem:[#allocation3 + $0x211] sm:$0xff] }
 0x5ed   :  { %4911 = vrot.lane.b32.xlu1 %v4750_v62, %s10117_s14  ;;  %v4758_v62 = vld [vmem:[#allocation3 + $0x219] sm:$0xff] }
 0x5f0   :  { %4913 = vrot.lane.b32.xlu0 %v4751_v31, %s10117_s14  ;;  %v4759_v31 = vld [vmem:[#allocation3 + $0x229] sm:$0xff] }
 0x5f1   :  { %4915 = vrot.lane.b32.xlu1 %v4752_v12, %s10117_s14  ;;  %v4760_v12 = vld [vmem:[#allocation3 + $0x231] sm:$0xff] }
 0x5f4   :  { %4917 = vrot.lane.b32.xlu0 %v4753_v60, %s10117_s14  ;;  %v4761_v60 = vld [vmem:[#allocation3 + $0x241] sm:$0xff] }
 0x5f5   :  { %4919 = vrot.lane.b32.xlu1 %v4754_v28, %s10117_s14  ;;  %v4762_v28 = vld [vmem:[#allocation3 + $0x249] sm:$0xff] }
 0x5f8   :  { %4921 = vrot.lane.b32.xlu0 %v4755_v34, %s10117_s14  ;;  %v4763_v34 = vld [vmem:[#allocation3 + $0x259] sm:$0xff] }
 0x5f9   :  { %4923 = vrot.lane.b32.xlu1 %v4756_v42, %s10117_s14  ;;  %v4764_v42 = vld [vmem:[#allocation3 + $0x261] sm:$0xff] }
 0x5fc   :  { %4925 = vrot.lane.b32.xlu0 %v4757_v27, %s10117_s14  ;;  %v4765_v27 = vld [vmem:[#allocation3 + $0x271] sm:$0xff] }
 0x5fd   :  { %4927 = vrot.lane.b32.xlu1 %v4758_v62, %s10117_s14  ;;  %v4766_v62 = vld [vmem:[#allocation3 + $0x279] sm:$0xff] }
 0x600   :  { %4929 = vrot.lane.b32.xlu0 %v4759_v31, %s10117_s14  ;;  %v4767_v31 = vld [vmem:[#allocation3 + $0x289] sm:$0xff] }
 0x601   :  { %4931 = vrot.lane.b32.xlu1 %v4760_v12, %s10117_s14  ;;  %v4768_v12 = vld [vmem:[#allocation3 + $0x291] sm:$0xff] }
 0x604   :  { %4933 = vrot.lane.b32.xlu0 %v4761_v60, %s10117_s14  ;;  %v4769_v60 = vld [vmem:[#allocation3 + $0x2a1] sm:$0xff] }
 0x605   :  { %4935 = vrot.lane.b32.xlu1 %v4762_v28, %s10117_s14  ;;  %v4770_v28 = vld [vmem:[#allocation3 + $0x2a9] sm:$0xff] }
 0x608   :  { %4937 = vrot.lane.b32.xlu0 %v4763_v34, %s10117_s14  ;;  %v4771_v34 = vld [vmem:[#allocation3 + $0x2b9] sm:$0xff] }
 0x609   :  { %4939 = vrot.lane.b32.xlu1 %v4764_v42, %s10117_s14  ;;  %v4772_v42 = vld [vmem:[#allocation3 + $0x2c1] sm:$0xff] }
 0x60c   :  { %4941 = vrot.lane.b32.xlu0 %v4765_v27, %s10117_s14  ;;  %v4773_v27 = vld [vmem:[#allocation3 + $0x2d1] sm:$0xff] }
 0x60d   :  { %4943 = vrot.lane.b32.xlu1 %v4766_v62, %s10117_s14  ;;  %v4774_v62 = vld [vmem:[#allocation3 + $0x2d9] sm:$0xff] }
 0x610   :  { %4945 = vrot.lane.b32.xlu0 %v4767_v31, %s10117_s14  ;;  %v4775_v31 = vld [vmem:[#allocation3 + $0x2e9] sm:$0xff] }
 0x611   :  { %4947 = vrot.lane.b32.xlu1 %v4768_v12, %s10117_s14  ;;  %v4776_v12 = vld [vmem:[#allocation3 + $0x2f1] sm:$0xff] }
 0x614   :  { %4949 = vrot.lane.b32.xlu0 %v4769_v60, %s10117_s14 }
 0x615   :  { %4951 = vrot.lane.b32.xlu1 %v4770_v28, %s10117_s14 }
 0x618   :  { %4953 = vrot.lane.b32.xlu0 %v4771_v34, %s10117_s14  ;;  %v4778_v34 = vld [vmem:[#allocation3 + $0x309] sm:$0xff] }
 0x619   :  { %4955 = vrot.lane.b32.xlu1 %v4772_v42, %s10117_s14 }
 0x61c   :  { %4957 = vrot.lane.b32.xlu0 %v4773_v27, %s10117_s14 }
 0x61d   :  { %4959 = vrot.lane.b32.xlu1 %v4774_v62, %s10117_s14  ;;  %v4779_v62 = vld [vmem:[#allocation3 + $0x319] sm:$0xff] }
 0x620   :  { %4961 = vrot.lane.b32.xlu0 %v4775_v31, %s10117_s14  ;;  %v4850_v60 = vpop.permute.xlu0 %4849  ;;  %v4780_v31 = vld [vmem:[#allocation3 + $0x321] sm:$0xff] }
 0x621   :  { %4963 = vrot.lane.b32.xlu1 %v4776_v12, %s10117_s14  ;;  %v4852_v28 = vpop.permute.xlu1 %4851  ;;  %5040 = vst.msk [vmem:[#allocation2 + $0x10] sm:$0xff] %vm5037_vm14, %v4850_v60  ;;  %v5102_v12 = vld [vmem:[#allocation3 + $0x2] sm:$0xff] }
 0x622   :  { %5041 = vst.msk [vmem:[#allocation2 + $0x18] sm:$0xff] %vm5037_vm14, %v4852_v28  ;;  %v5103_v28 = vld [vmem:[#allocation3 + $0xa] sm:$0xff] }
 0x624   :  { %4965 = vrot.lane.b32.xlu0 %v4777_v45, %s10117_s14 }
 0x625   :  { %4967 = vrot.lane.b32.xlu1 %v4778_v34, %s10117_s14 }
 0x626   :  { %v4854_v42 = vpop.permute.xlu0 %4853 }
 0x627   :  { %v4856_v27 = vpop.permute.xlu1 %4855  ;;  %5042 = vst.msk [vmem:[#allocation2 + $0x20] sm:$0xff] %vm5037_vm14, %v4854_v42  ;;  %v5104_v42 = vld [vmem:[#allocation3 + $0x1a] sm:$0xff] }
 0x628   :  { %5043 = vst.msk [vmem:[#allocation2 + $0x28] sm:$0xff] %vm5037_vm14, %v4856_v27  ;;  %4969 = vrot.lane.b32.xlu0 %v4779_v62, %s10117_s14  ;;  %v5105_v27 = vld [vmem:[#allocation3 + $0x22] sm:$0xff] }
 0x629   :  { %4971 = vrot.lane.b32.xlu1 %v4780_v31, %s10117_s14 }
 0x62a   :  { %v4858_v60 = vpop.permute.xlu0 %4857 }
 0x62b   :  { %v4860_v35 = vpop.permute.xlu1 %4859  ;;  %5044 = vst.msk [vmem:[#allocation2 + $0x30] sm:$0xff] %vm5037_vm14, %v4858_v60 }
 0x62c   :  { %5045 = vst.msk [vmem:[#allocation2 + $0x38] sm:$0xff] %vm5037_vm14, %v4860_v35  ;;  %5230 = vrot.lane.b32.xlu0 %v5102_v12, %s10119_s25  ;;  %v5106_v35 = vld [vmem:[#allocation3 + $0x32] sm:$0xff]  ;;  %v5107_v12 = vld [vmem:[#allocation3 + $0x3a] sm:$0xff] }
 0x62d   :  { %5232 = vrot.lane.b32.xlu1 %v5103_v28, %s10119_s25 }
 0x62e   :  { %v4862_v45 = vpop.permute.xlu0 %4861 }
 0x62f   :  { %v4864_v34 = vpop.permute.xlu1 %4863  ;;  %5046 = vst.msk [vmem:[#allocation2 + $0x40] sm:$0xff] %vm5037_vm14, %v4862_v45  ;;  %v5108_v45 = vld [vmem:[#allocation3 + $0x4a] sm:$0xff] }
 0x630   :  { %5047 = vst.msk [vmem:[#allocation2 + $0x48] sm:$0xff] %vm5037_vm14, %v4864_v34  ;;  %5234 = vrot.lane.b32.xlu0 %v5104_v42, %s10119_s25  ;;  %v5109_v34 = vld [vmem:[#allocation3 + $0x52] sm:$0xff] }
 0x631   :  { %5236 = vrot.lane.b32.xlu1 %v5105_v27, %s10119_s25 }
 0x632   :  { %v4866_v62 = vpop.permute.xlu0 %4865 }
 0x633   :  { %v4868_v31 = vpop.permute.xlu1 %4867  ;;  %5048 = vst.msk [vmem:[#allocation2 + $0x50] sm:$0xff] %vm5037_vm14, %v4866_v62  ;;  %v5110_v62 = vld [vmem:[#allocation3 + $0x62] sm:$0xff] }
 0x634   :  { %5049 = vst.msk [vmem:[#allocation2 + $0x58] sm:$0xff] %vm5037_vm14, %v4868_v31  ;;  %5238 = vrot.lane.b32.xlu0 %v5106_v35, %s10119_s25  ;;  %v5111_v31 = vld [vmem:[#allocation3 + $0x6a] sm:$0xff] }
 0x635   :  { %5240 = vrot.lane.b32.xlu1 %v5107_v12, %s10119_s25 }
 0x636   :  { %v4870_v60 = vpop.permute.xlu0 %4869 }
 0x637   :  { %v4872_v28 = vpop.permute.xlu1 %4871  ;;  %5050 = vst.msk [vmem:[#allocation2 + $0x60] sm:$0xff] %vm5037_vm14, %v4870_v60  ;;  %v5112_v60 = vld [vmem:[#allocation3 + $0x7a] sm:$0xff] }
 0x638   :  { %5051 = vst.msk [vmem:[#allocation2 + $0x68] sm:$0xff] %vm5037_vm14, %v4872_v28  ;;  %5242 = vrot.lane.b32.xlu0 %v5108_v45, %s10119_s25  ;;  %v5113_v28 = vld [vmem:[#allocation3 + $0x82] sm:$0xff] }
 0x639   :  { %5244 = vrot.lane.b32.xlu1 %v5109_v34, %s10119_s25 }
 0x63a   :  { %v4874_v42 = vpop.permute.xlu0 %4873 }
 0x63b   :  { %v4876_v27 = vpop.permute.xlu1 %4875  ;;  %5052 = vst.msk [vmem:[#allocation2 + $0x70] sm:$0xff] %vm5037_vm14, %v4874_v42  ;;  %v5114_v42 = vld [vmem:[#allocation3 + $0x92] sm:$0xff] }
 0x63c   :  { %5053 = vst.msk [vmem:[#allocation2 + $0x78] sm:$0xff] %vm5037_vm14, %v4876_v27  ;;  %5246 = vrot.lane.b32.xlu0 %v5110_v62, %s10119_s25  ;;  %v5115_v27 = vld [vmem:[#allocation3 + $0x9a] sm:$0xff] }
 0x63d   :  { %5248 = vrot.lane.b32.xlu1 %v5111_v31, %s10119_s25 }
 0x63e   :  { %v4878_v35 = vpop.permute.xlu0 %4877 }
 0x63f   :  { %v4880_v12 = vpop.permute.xlu1 %4879  ;;  %5054 = vst.msk [vmem:[#allocation2 + $0x80] sm:$0xff] %vm5037_vm14, %v4878_v35  ;;  %v5116_v35 = vld [vmem:[#allocation3 + $0xaa] sm:$0xff] }
 0x640   :  { %5055 = vst.msk [vmem:[#allocation2 + $0x88] sm:$0xff] %vm5037_vm14, %v4880_v12  ;;  %5250 = vrot.lane.b32.xlu0 %v5112_v60, %s10119_s25  ;;  %v5117_v12 = vld [vmem:[#allocation3 + $0xb2] sm:$0xff] }
 0x641   :  { %5252 = vrot.lane.b32.xlu1 %v5113_v28, %s10119_s25 }
 0x642   :  { %v4882_v45 = vpop.permute.xlu0 %4881 }
 0x643   :  { %v4884_v34 = vpop.permute.xlu1 %4883  ;;  %5056 = vst.msk [vmem:[#allocation2 + $0x90] sm:$0xff] %vm5037_vm14, %v4882_v45  ;;  %v5118_v45 = vld [vmem:[#allocation3 + $0xc2] sm:$0xff] }
 0x644   :  { %5057 = vst.msk [vmem:[#allocation2 + $0x98] sm:$0xff] %vm5037_vm14, %v4884_v34  ;;  %5254 = vrot.lane.b32.xlu0 %v5114_v42, %s10119_s25  ;;  %v5119_v34 = vld [vmem:[#allocation3 + $0xca] sm:$0xff] }
 0x645   :  { %5256 = vrot.lane.b32.xlu1 %v5115_v27, %s10119_s25 }
 0x646   :  { %v4886_v62 = vpop.permute.xlu0 %4885 }
 0x647   :  { %v4888_v31 = vpop.permute.xlu1 %4887  ;;  %5058 = vst.msk [vmem:[#allocation2 + $0xa0] sm:$0xff] %vm5037_vm14, %v4886_v62  ;;  %v5120_v62 = vld [vmem:[#allocation3 + $0xda] sm:$0xff] }
 0x648   :  { %5059 = vst.msk [vmem:[#allocation2 + $0xa8] sm:$0xff] %vm5037_vm14, %v4888_v31  ;;  %5258 = vrot.lane.b32.xlu0 %v5116_v35, %s10119_s25  ;;  %v5121_v31 = vld [vmem:[#allocation3 + $0xe2] sm:$0xff] }
 0x649   :  { %5260 = vrot.lane.b32.xlu1 %v5117_v12, %s10119_s25 }
 0x64a   :  { %v4890_v60 = vpop.permute.xlu0 %4889 }
 0x64b   :  { %v4892_v28 = vpop.permute.xlu1 %4891  ;;  %5060 = vst.msk [vmem:[#allocation2 + $0xb0] sm:$0xff] %vm5037_vm14, %v4890_v60  ;;  %v5122_v60 = vld [vmem:[#allocation3 + $0xf2] sm:$0xff] }
 0x64c   :  { %5061 = vst.msk [vmem:[#allocation2 + $0xb8] sm:$0xff] %vm5037_vm14, %v4892_v28  ;;  %5262 = vrot.lane.b32.xlu0 %v5118_v45, %s10119_s25  ;;  %v5123_v28 = vld [vmem:[#allocation3 + $0xfa] sm:$0xff] }
 0x64d   :  { %5264 = vrot.lane.b32.xlu1 %v5119_v34, %s10119_s25 }
 0x64e   :  { %v4894_v42 = vpop.permute.xlu0 %4893 }
 0x64f   :  { %v4896_v27 = vpop.permute.xlu1 %4895  ;;  %5062 = vst.msk [vmem:[#allocation2 + $0xc0] sm:$0xff] %vm5037_vm14, %v4894_v42  ;;  %v5124_v42 = vld [vmem:[#allocation3 + $0x10a] sm:$0xff] }
 0x650   :  { %5063 = vst.msk [vmem:[#allocation2 + $0xc8] sm:$0xff] %vm5037_vm14, %v4896_v27  ;;  %5266 = vrot.lane.b32.xlu0 %v5120_v62, %s10119_s25  ;;  %v5125_v27 = vld [vmem:[#allocation3 + $0x112] sm:$0xff] }
 0x651   :  { %5268 = vrot.lane.b32.xlu1 %v5121_v31, %s10119_s25 }
 0x652   :  { %v4898_v35 = vpop.permute.xlu0 %4897 }
 0x653   :  { %v4900_v12 = vpop.permute.xlu1 %4899  ;;  %5064 = vst.msk [vmem:[#allocation2 + $0xd0] sm:$0xff] %vm5037_vm14, %v4898_v35  ;;  %v5126_v35 = vld [vmem:[#allocation3 + $0x122] sm:$0xff] }
 0x654   :  { %5065 = vst.msk [vmem:[#allocation2 + $0xd8] sm:$0xff] %vm5037_vm14, %v4900_v12  ;;  %5270 = vrot.lane.b32.xlu0 %v5122_v60, %s10119_s25  ;;  %v5127_v12 = vld [vmem:[#allocation3 + $0x12a] sm:$0xff] }
 0x655   :  { %5272 = vrot.lane.b32.xlu1 %v5123_v28, %s10119_s25 }
 0x656   :  { %v4902_v45 = vpop.permute.xlu0 %4901 }
 0x657   :  { %v4904_v34 = vpop.permute.xlu1 %4903  ;;  %5066 = vst.msk [vmem:[#allocation2 + $0xe0] sm:$0xff] %vm5037_vm14, %v4902_v45  ;;  %v5128_v45 = vld [vmem:[#allocation3 + $0x13a] sm:$0xff] }
 0x658   :  { %5067 = vst.msk [vmem:[#allocation2 + $0xe8] sm:$0xff] %vm5037_vm14, %v4904_v34  ;;  %5274 = vrot.lane.b32.xlu0 %v5124_v42, %s10119_s25  ;;  %v5129_v34 = vld [vmem:[#allocation3 + $0x142] sm:$0xff] }
 0x659   :  { %5276 = vrot.lane.b32.xlu1 %v5125_v27, %s10119_s25 }
 0x65a   :  { %v4906_v62 = vpop.permute.xlu0 %4905 }
 0x65b   :  { %v4908_v31 = vpop.permute.xlu1 %4907  ;;  %5068 = vst.msk [vmem:[#allocation2 + $0xf0] sm:$0xff] %vm5037_vm14, %v4906_v62  ;;  %v5130_v62 = vld [vmem:[#allocation3 + $0x152] sm:$0xff] }
 0x65c   :  { %5069 = vst.msk [vmem:[#allocation2 + $0xf8] sm:$0xff] %vm5037_vm14, %v4908_v31  ;;  %5278 = vrot.lane.b32.xlu0 %v5126_v35, %s10119_s25  ;;  %v5131_v31 = vld [vmem:[#allocation3 + $0x15a] sm:$0xff] }
 0x65d   :  { %5280 = vrot.lane.b32.xlu1 %v5127_v12, %s10119_s25 }
 0x65e   :  { %v4910_v60 = vpop.permute.xlu0 %4909 }
 0x65f   :  { %v4912_v28 = vpop.permute.xlu1 %4911  ;;  %5070 = vst.msk [vmem:[#allocation2 + $0x100] sm:$0xff] %vm5037_vm14, %v4910_v60  ;;  %v5132_v60 = vld [vmem:[#allocation3 + $0x16a] sm:$0xff] }
 0x660   :  { %5071 = vst.msk [vmem:[#allocation2 + $0x108] sm:$0xff] %vm5037_vm14, %v4912_v28  ;;  %5282 = vrot.lane.b32.xlu0 %v5128_v45, %s10119_s25  ;;  %v5133_v28 = vld [vmem:[#allocation3 + $0x172] sm:$0xff] }
 0x661   :  { %5284 = vrot.lane.b32.xlu1 %v5129_v34, %s10119_s25  ;;  %v5134_v45 = vld [vmem:[#allocation3 + $0x1b2] sm:$0xff] }
 0x662   :  { %v4914_v42 = vpop.permute.xlu0 %4913 }
 0x663   :  { %v4916_v27 = vpop.permute.xlu1 %4915  ;;  %5072 = vst.msk [vmem:[#allocation2 + $0x110] sm:$0xff] %vm5037_vm14, %v4914_v42  ;;  %v5135_v42 = vld [vmem:[#allocation3 + $0x1ba] sm:$0xff] }
 0x664   :  { %5073 = vst.msk [vmem:[#allocation2 + $0x118] sm:$0xff] %vm5037_vm14, %v4916_v27  ;;  %5286 = vrot.lane.b32.xlu0 %v5130_v62, %s10119_s25 }
 0x665   :  { %5288 = vrot.lane.b32.xlu1 %v5131_v31, %s10119_s25 }
 0x666   :  { %v4918_v35 = vpop.permute.xlu0 %4917 }
 0x667   :  { %v4920_v12 = vpop.permute.xlu1 %4919  ;;  %5074 = vst.msk [vmem:[#allocation2 + $0x120] sm:$0xff] %vm5037_vm14, %v4918_v35  ;;  %v5136_v35 = vld [vmem:[#allocation3 + $0x1ca] sm:$0xff] }
 0x668   :  { %5075 = vst.msk [vmem:[#allocation2 + $0x128] sm:$0xff] %vm5037_vm14, %v4920_v12  ;;  %5290 = vrot.lane.b32.xlu0 %v5132_v60, %s10119_s25  ;;  %v5137_v12 = vld [vmem:[#allocation3 + $0x1d2] sm:$0xff] }
 0x669   :  { %5292 = vrot.lane.b32.xlu1 %v5133_v28, %s10119_s25 }
 0x66a   :  { %v4922_v34 = vpop.permute.xlu0 %4921 }
 0x66b   :  { %v4924_v27 = vpop.permute.xlu1 %4923  ;;  %5076 = vst.msk [vmem:[#allocation2 + $0x130] sm:$0xff] %vm5037_vm14, %v4922_v34  ;;  %v5138_v34 = vld [vmem:[#allocation3 + $0x1e2] sm:$0xff] }
 0x66c   :  { %5077 = vst.msk [vmem:[#allocation2 + $0x138] sm:$0xff] %vm5037_vm14, %v4924_v27  ;;  %5294 = vrot.lane.b32.xlu0 %v5134_v45, %s10119_s25  ;;  %v5139_v45 = vld [vmem:[#allocation3 + $0x1ea] sm:$0xff] }
 0x66d   :  { %5296 = vrot.lane.b32.xlu1 %v5135_v42, %s10119_s25 }
 0x66e   :  { %v4926_v62 = vpop.permute.xlu0 %4925 }
 0x66f   :  { %v4928_v31 = vpop.permute.xlu1 %4927  ;;  %5078 = vst.msk [vmem:[#allocation2 + $0x140] sm:$0xff] %vm5037_vm14, %v4926_v62  ;;  %v5140_v62 = vld [vmem:[#allocation3 + $0x1fa] sm:$0xff] }
 0x670   :  { %5079 = vst.msk [vmem:[#allocation2 + $0x148] sm:$0xff] %vm5037_vm14, %v4928_v31  ;;  %5298 = vrot.lane.b32.xlu0 %v5136_v35, %s10119_s25  ;;  %v5141_v31 = vld [vmem:[#allocation3 + $0x202] sm:$0xff] }
 0x671   :  { %5300 = vrot.lane.b32.xlu1 %v5137_v12, %s10119_s25 }
 0x672   :  { %v4930_v60 = vpop.permute.xlu0 %4929 }
 0x673   :  { %v4932_v28 = vpop.permute.xlu1 %4931  ;;  %5080 = vst.msk [vmem:[#allocation2 + $0x150] sm:$0xff] %vm5037_vm14, %v4930_v60  ;;  %v5142_v60 = vld [vmem:[#allocation3 + $0x212] sm:$0xff] }
 0x674   :  { %5081 = vst.msk [vmem:[#allocation2 + $0x158] sm:$0xff] %vm5037_vm14, %v4932_v28  ;;  %5302 = vrot.lane.b32.xlu0 %v5138_v34, %s10119_s25  ;;  %v5143_v28 = vld [vmem:[#allocation3 + $0x21a] sm:$0xff] }
 0x675   :  { %5304 = vrot.lane.b32.xlu1 %v5139_v45, %s10119_s25 }
 0x676   :  { %v4934_v42 = vpop.permute.xlu0 %4933 }
 0x677   :  { %v4936_v27 = vpop.permute.xlu1 %4935  ;;  %5082 = vst.msk [vmem:[#allocation2 + $0x160] sm:$0xff] %vm5037_vm14, %v4934_v42  ;;  %v5144_v42 = vld [vmem:[#allocation3 + $0x22a] sm:$0xff] }
 0x678   :  { %5083 = vst.msk [vmem:[#allocation2 + $0x168] sm:$0xff] %vm5037_vm14, %v4936_v27  ;;  %5306 = vrot.lane.b32.xlu0 %v5140_v62, %s10119_s25  ;;  %v5145_v27 = vld [vmem:[#allocation3 + $0x232] sm:$0xff] }
 0x679   :  { %5308 = vrot.lane.b32.xlu1 %v5141_v31, %s10119_s25 }
 0x67a   :  { %v4938_v35 = vpop.permute.xlu0 %4937 }
 0x67b   :  { %v4940_v12 = vpop.permute.xlu1 %4939  ;;  %5084 = vst.msk [vmem:[#allocation2 + $0x170] sm:$0xff] %vm5037_vm14, %v4938_v35  ;;  %v5146_v35 = vld [vmem:[#allocation3 + $0x242] sm:$0xff] }
 0x67c   :  { %5085 = vst.msk [vmem:[#allocation2 + $0x178] sm:$0xff] %vm5037_vm14, %v4940_v12  ;;  %5310 = vrot.lane.b32.xlu0 %v5142_v60, %s10119_s25  ;;  %v5147_v12 = vld [vmem:[#allocation3 + $0x24a] sm:$0xff] }
 0x67d   :  { %5312 = vrot.lane.b32.xlu1 %v5143_v28, %s10119_s25 }
 0x67e   :  { %v4942_v34 = vpop.permute.xlu0 %4941 }
 0x67f   :  { %v4944_v45 = vpop.permute.xlu1 %4943  ;;  %5086 = vst.msk [vmem:[#allocation2 + $0x180] sm:$0xff] %vm5037_vm14, %v4942_v34  ;;  %v5148_v34 = vld [vmem:[#allocation3 + $0x25a] sm:$0xff] }
 0x680   :  { %5087 = vst.msk [vmem:[#allocation2 + $0x188] sm:$0xff] %vm5037_vm14, %v4944_v45  ;;  %5314 = vrot.lane.b32.xlu0 %v5144_v42, %s10119_s25  ;;  %v5149_v45 = vld [vmem:[#allocation3 + $0x262] sm:$0xff] }
 0x681   :  { %5316 = vrot.lane.b32.xlu1 %v5145_v27, %s10119_s25 }
 0x682   :  { %v4946_v62 = vpop.permute.xlu0 %4945 }
 0x683   :  { %v4948_v31 = vpop.permute.xlu1 %4947  ;;  %5088 = vst.msk [vmem:[#allocation2 + $0x190] sm:$0xff] %vm5037_vm14, %v4946_v62  ;;  %v5150_v62 = vld [vmem:[#allocation3 + $0x272] sm:$0xff] }
 0x684   :  { %5089 = vst.msk [vmem:[#allocation2 + $0x198] sm:$0xff] %vm5037_vm14, %v4948_v31  ;;  %5318 = vrot.lane.b32.xlu0 %v5146_v35, %s10119_s25  ;;  %v5151_v31 = vld [vmem:[#allocation3 + $0x27a] sm:$0xff] }
 0x685   :  { %5320 = vrot.lane.b32.xlu1 %v5147_v12, %s10119_s25 }
 0x686   :  { %v4950_v60 = vpop.permute.xlu0 %4949 }
 0x687   :  { %v4952_v28 = vpop.permute.xlu1 %4951  ;;  %5090 = vst.msk [vmem:[#allocation2 + $0x1a0] sm:$0xff] %vm5037_vm14, %v4950_v60  ;;  %v5152_v60 = vld [vmem:[#allocation3 + $0x28a] sm:$0xff] }
 0x688   :  { %5091 = vst.msk [vmem:[#allocation2 + $0x1a8] sm:$0xff] %vm5037_vm14, %v4952_v28  ;;  %5322 = vrot.lane.b32.xlu0 %v5148_v34, %s10119_s25  ;;  %v5153_v28 = vld [vmem:[#allocation3 + $0x292] sm:$0xff] }
 0x689   :  { %5324 = vrot.lane.b32.xlu1 %v5149_v45, %s10119_s25 }
 0x68a   :  { %v4954_v42 = vpop.permute.xlu0 %4953 }
 0x68b   :  { %v4956_v27 = vpop.permute.xlu1 %4955  ;;  %5092 = vst.msk [vmem:[#allocation2 + $0x1b0] sm:$0xff] %vm5037_vm14, %v4954_v42  ;;  %v5154_v42 = vld [vmem:[#allocation3 + $0x2a2] sm:$0xff] }
 0x68c   :  { %5093 = vst.msk [vmem:[#allocation2 + $0x1b8] sm:$0xff] %vm5037_vm14, %v4956_v27  ;;  %5326 = vrot.lane.b32.xlu0 %v5150_v62, %s10119_s25  ;;  %v5155_v27 = vld [vmem:[#allocation3 + $0x2aa] sm:$0xff] }
 0x68d   :  { %5328 = vrot.lane.b32.xlu1 %v5151_v31, %s10119_s25 }
 0x68e   :  { %v4958_v35 = vpop.permute.xlu0 %4957 }
 0x68f   :  { %v4960_v12 = vpop.permute.xlu1 %4959  ;;  %5094 = vst.msk [vmem:[#allocation2 + $0x1c0] sm:$0xff] %vm5037_vm14, %v4958_v35  ;;  %v5156_v35 = vld [vmem:[#allocation3 + $0x2ba] sm:$0xff] }
 0x690   :  { %5095 = vst.msk [vmem:[#allocation2 + $0x1c8] sm:$0xff] %vm5037_vm14, %v4960_v12  ;;  %5330 = vrot.lane.b32.xlu0 %v5152_v60, %s10119_s25  ;;  %v5157_v12 = vld [vmem:[#allocation3 + $0x2c2] sm:$0xff] }
 0x691   :  { %5332 = vrot.lane.b32.xlu1 %v5153_v28, %s10119_s25 }
 0x692   :  { %v4962_v34 = vpop.permute.xlu0 %4961 }
 0x693   :  { %v4964_v45 = vpop.permute.xlu1 %4963  ;;  %5096 = vst.msk [vmem:[#allocation2 + $0x1d0] sm:$0xff] %vm5037_vm14, %v4962_v34  ;;  %v5158_v34 = vld [vmem:[#allocation3 + $0x2d2] sm:$0xff] }
 0x694   :  { %5097 = vst.msk [vmem:[#allocation2 + $0x1d8] sm:$0xff] %vm5037_vm14, %v4964_v45  ;;  %5334 = vrot.lane.b32.xlu0 %v5154_v42, %s10119_s25  ;;  %v5159_v45 = vld [vmem:[#allocation3 + $0x2da] sm:$0xff] }
 0x695   :  { %5336 = vrot.lane.b32.xlu1 %v5155_v27, %s10119_s25 }
 0x696   :  { %v4966_v62 = vpop.permute.xlu0 %4965 }
 0x697   :  { %v4968_v31 = vpop.permute.xlu1 %4967  ;;  %5098 = vst.msk [vmem:[#allocation2 + $0x1e0] sm:$0xff] %vm5037_vm14, %v4966_v62  ;;  %v5160_v62 = vld [vmem:[#allocation3 + $0x2ea] sm:$0xff] }
 0x698   :  { %5099 = vst.msk [vmem:[#allocation2 + $0x1e8] sm:$0xff] %vm5037_vm14, %v4968_v31  ;;  %5338 = vrot.lane.b32.xlu0 %v5156_v35, %s10119_s25  ;;  %v5161_v31 = vld [vmem:[#allocation3 + $0x2f2] sm:$0xff] }
 0x699   :  { %5340 = vrot.lane.b32.xlu1 %v5157_v12, %s10119_s25 }
 0x69a   :  { %v4970_v60 = vpop.permute.xlu0 %4969 }
 0x69b   :  { %v4972_v28 = vpop.permute.xlu1 %4971  ;;  %5100 = vst.msk [vmem:[#allocation2 + $0x1f0] sm:$0xff] %vm5037_vm14, %v4970_v60  ;;  %v5162_v60 = vld [vmem:[#allocation3 + $0x302] sm:$0xff] }
 0x69c   :  { %5101 = vst.msk [vmem:[#allocation2 + $0x1f8] sm:$0xff] %vm5037_vm14, %v4972_v28  ;;  %5342 = vrot.lane.b32.xlu0 %v5158_v34, %s10119_s25  ;;  %v5163_v28 = vld [vmem:[#allocation3 + $0x30a] sm:$0xff] }
 0x69d   :  { %5344 = vrot.lane.b32.xlu1 %v5159_v45, %s10119_s25 }
 0x69e   :  { %v5231_v42 = vpop.permute.xlu0 %5230 }
 0x69f   :  { %v5233_v27 = vpop.permute.xlu1 %5232  ;;  %5423 = vst.msk [vmem:[#allocation2] sm:$0xff] %vm5422_vm15, %v5231_v42  ;;  %v5164_v42 = vld [vmem:[#allocation3 + $0x31a] sm:$0xff] }
 0x6a0   :  { %5424 = vst.msk [vmem:[#allocation2 + $0x8] sm:$0xff] %vm5422_vm15, %v5233_v27  ;;  %5346 = vrot.lane.b32.xlu0 %v5160_v62, %s10119_s25  ;;  %v5165_v27 = vld [vmem:[#allocation3 + $0x322] sm:$0xff] }
 0x6a1   :  { %5348 = vrot.lane.b32.xlu1 %v5161_v31, %s10119_s25 }
 0x6a2   :  { %v5235_v35 = vpop.permute.xlu0 %5234 }
 0x6a3   :  { %v5237_v12 = vpop.permute.xlu1 %5236  ;;  %5425 = vst.msk [vmem:[#allocation2 + $0x10] sm:$0xff] %vm5422_vm15, %v5235_v35 }
 0x6a4   :  { %5426 = vst.msk [vmem:[#allocation2 + $0x18] sm:$0xff] %vm5422_vm15, %v5237_v12  ;;  %5350 = vrot.lane.b32.xlu0 %v5162_v60, %s10119_s25 }
 0x6a5   :  { %5352 = vrot.lane.b32.xlu1 %v5163_v28, %s10119_s25 }
 0x6a6   :  { %v5239_v34 = vpop.permute.xlu0 %5238 }
 0x6a7   :  { %v5241_v45 = vpop.permute.xlu1 %5240  ;;  %5427 = vst.msk [vmem:[#allocation2 + $0x20] sm:$0xff] %vm5422_vm15, %v5239_v34 }
 0x6a8   :  { %5428 = vst.msk [vmem:[#allocation2 + $0x28] sm:$0xff] %vm5422_vm15, %v5241_v45  ;;  %5354 = vrot.lane.b32.xlu0 %v5164_v42, %s10119_s25 }
 0x6a9   :  { %5356 = vrot.lane.b32.xlu1 %v5165_v27, %s10119_s25 }
 0x6aa   :  { %v5243_v62 = vpop.permute.xlu0 %5242 }
 0x6ab   :  { %v5245_v31 = vpop.permute.xlu1 %5244  ;;  %5429 = vst.msk [vmem:[#allocation2 + $0x30] sm:$0xff] %vm5422_vm15, %v5243_v62 }
 0x6ac   :  { %5430 = vst.msk [vmem:[#allocation2 + $0x38] sm:$0xff] %vm5422_vm15, %v5245_v31  ;;  %5615 = vrot.lane.b32.xlu0 %v14339_v63, %s10121_s29 }
 0x6ad   :  { %5617 = vrot.lane.b32.xlu1 %v14416_v32, %s10121_s29 }
 0x6ae   :  { %v5247_v35 = vpop.permute.xlu0 %5246 }
 0x6af   :  { %v5249_v12 = vpop.permute.xlu1 %5248  ;;  %5431 = vst.msk [vmem:[#allocation2 + $0x40] sm:$0xff] %vm5422_vm15, %v5247_v35 }
 0x6b0   :  { %5432 = vst.msk [vmem:[#allocation2 + $0x48] sm:$0xff] %vm5422_vm15, %v5249_v12  ;;  %5619 = vrot.lane.b32.xlu0 %v14423_v43, %s10121_s29 }
 0x6b1   :  { %5621 = vrot.lane.b32.xlu1 %v14421_v48, %s10121_s29 }
 0x6b2   :  { %v5251_v60 = vpop.permute.xlu0 %5250 }
 0x6b3   :  { %v5253_v28 = vpop.permute.xlu1 %5252  ;;  %5433 = vst.msk [vmem:[#allocation2 + $0x50] sm:$0xff] %vm5422_vm15, %v5251_v60  ;;  %v17847_v60 = vld [vmem:[#allocation26_spill] sm:$0xff] }
 0x6b4   :  { %5434 = vst.msk [vmem:[#allocation2 + $0x58] sm:$0xff] %vm5422_vm15, %v5253_v28  ;;  %5623 = vrot.lane.b32.xlu0 %v14433_v51, %s10121_s29  ;;  %v17848_v28 = vld [vmem:[#allocation23_spill] sm:$0xff] }
 0x6b5   :  { %5625 = vrot.lane.b32.xlu1 %v14429_v55, %s10121_s29 }
 0x6b6   :  { %v5255_v63 = vpop.permute.xlu0 %5254 }
 0x6b7   :  { %v5257_v32 = vpop.permute.xlu1 %5256  ;;  %5435 = vst.msk [vmem:[#allocation2 + $0x60] sm:$0xff] %vm5422_vm15, %v5255_v63 }
 0x6b8   :  { %5436 = vst.msk [vmem:[#allocation2 + $0x68] sm:$0xff] %vm5422_vm15, %v5257_v32  ;;  %5627 = vrot.lane.b32.xlu0 %v14437_v29, %s10121_s29 }
 0x6b9   :  { %5629 = vrot.lane.b32.xlu1 %v14435_v37, %s10121_s29 }
 0x6ba   :  { %v5259_v48 = vpop.permute.xlu0 %5258 }
 0x6bb   :  { %v5261_v43 = vpop.permute.xlu1 %5260  ;;  %5437 = vst.msk [vmem:[#allocation2 + $0x70] sm:$0xff] %vm5422_vm15, %v5259_v48  ;;  %v5549_v48 = vld [vmem:[#allocation3 + $0x330] sm:$0xff] }
 0x6bc   :  { %5438 = vst.msk [vmem:[#allocation2 + $0x78] sm:$0xff] %vm5422_vm15, %v5261_v43  ;;  %5631 = vrot.lane.b32.xlu0 %v14451_v49, %s10121_s29  ;;  %v5550_v43 = vld [vmem:[#allocation3 + $0x338] sm:$0xff] }
 0x6bd   :  { %5633 = vrot.lane.b32.xlu1 %v14446_v25, %s10121_s29 }
 0x6be   :  { %v5263_v55 = vpop.permute.xlu0 %5262 }
 0x6bf   :  { %v5265_v51 = vpop.permute.xlu1 %5264  ;;  %5439 = vst.msk [vmem:[#allocation2 + $0x80] sm:$0xff] %vm5422_vm15, %v5263_v55 }
 0x6c0   :  { %5440 = vst.msk [vmem:[#allocation2 + $0x88] sm:$0xff] %vm5422_vm15, %v5265_v51  ;;  %5635 = vrot.lane.b32.xlu0 %v14457_v9, %s10121_s29 }
 0x6c1   :  { %5637 = vrot.lane.b32.xlu1 %v14455_v46, %s10121_s29 }
 0x6c2   :  { %v5267_v37 = vpop.permute.xlu0 %5266 }
 0x6c3   :  { %v5269_v29 = vpop.permute.xlu1 %5268  ;;  %5441 = vst.msk [vmem:[#allocation2 + $0x90] sm:$0xff] %vm5422_vm15, %v5267_v37  ;;  %v5872_v37 = vld [vmem:[#allocation3 + $0x19] sm:$0xff] }
 0x6c4   :  { %5442 = vst.msk [vmem:[#allocation2 + $0x98] sm:$0xff] %vm5422_vm15, %v5269_v29  ;;  %5639 = vrot.lane.b32.xlu0 %v14465_v20, %s10121_s29  ;;  %v5873_v29 = vld [vmem:[#allocation3 + $0x21] sm:$0xff] }
 0x6c5   :  { %5641 = vrot.lane.b32.xlu1 %v14463_v7, %s10121_s29 }
 0x6c6   :  { %v5271_v25 = vpop.permute.xlu0 %5270 }
 0x6c7   :  { %v5273_v49 = vpop.permute.xlu1 %5272  ;;  %5443 = vst.msk [vmem:[#allocation2 + $0xa0] sm:$0xff] %vm5422_vm15, %v5271_v25 }
 0x6c8   :  { %5444 = vst.msk [vmem:[#allocation2 + $0xa8] sm:$0xff] %vm5422_vm15, %v5273_v49  ;;  %5643 = vrot.lane.b32.xlu0 %v14477_v41, %s10121_s29 }
 0x6c9   :  { %5645 = vrot.lane.b32.xlu1 %v14472_v47, %s10121_s29 }
 0x6ca   :  { %v5275_v46 = vpop.permute.xlu0 %5274 }
 0x6cb   :  { %v5277_v9 = vpop.permute.xlu1 %5276  ;;  %5445 = vst.msk [vmem:[#allocation2 + $0xb0] sm:$0xff] %vm5422_vm15, %v5275_v46  ;;  %v15030_v46 = vld [vmem:[#allocation3 + $0x31] sm:$0xff] }
 0x6cc   :  { %5446 = vst.msk [vmem:[#allocation2 + $0xb8] sm:$0xff] %vm5422_vm15, %v5277_v9  ;;  %5647 = vrot.lane.b32.xlu0 %v14483_v8, %s10121_s29  ;;  %v15033_v9 = vld [vmem:[#allocation3 + $0x39] sm:$0xff] }
 0x6cd   :  { %5649 = vrot.lane.b32.xlu1 %v14481_v21, %s10121_s29 }
 0x6ce   :  { %v5279_v7 = vpop.permute.xlu0 %5278 }
 0x6cf   :  { %v5281_v20 = vpop.permute.xlu1 %5280  ;;  %5447 = vst.msk [vmem:[#allocation2 + $0xc0] sm:$0xff] %vm5422_vm15, %v5279_v7 }
 0x6d0   :  { %5448 = vst.msk [vmem:[#allocation2 + $0xc8] sm:$0xff] %vm5422_vm15, %v5281_v20  ;;  %5651 = vrot.lane.b32.xlu0 %v14491_v38, %s10121_s29 }
 0x6d1   :  { %5653 = vrot.lane.b32.xlu1 %v14489_v16, %s10121_s29 }
 0x6d2   :  { %v5283_v47 = vpop.permute.xlu0 %5282 }
 0x6d3   :  { %v5285_v41 = vpop.permute.xlu1 %5284  ;;  %5449 = vst.msk [vmem:[#allocation2 + $0xd0] sm:$0xff] %vm5422_vm15, %v5283_v47  ;;  %v15040_v47 = vld [vmem:[#allocation3 + $0x49] sm:$0xff] }
 0x6d4   :  { %5450 = vst.msk [vmem:[#allocation2 + $0xd8] sm:$0xff] %vm5422_vm15, %v5285_v41  ;;  %5655 = vrot.lane.b32.xlu0 %v14503_v10, %s10121_s29  ;;  %v15043_v41 = vld [vmem:[#allocation3 + $0x51] sm:$0xff] }
 0x6d5   :  { %5657 = vrot.lane.b32.xlu1 %v14498_v4, %s10121_s29 }
 0x6d6   :  { %v5287_v21 = vpop.permute.xlu0 %5286 }
 0x6d7   :  { %v5289_v8 = vpop.permute.xlu1 %5288  ;;  %5451 = vst.msk [vmem:[#allocation2 + $0xe0] sm:$0xff] %vm5422_vm15, %v5287_v21 }
 0x6d8   :  { %5452 = vst.msk [vmem:[#allocation2 + $0xe8] sm:$0xff] %vm5422_vm15, %v5289_v8  ;;  %5659 = vrot.lane.b32.xlu0 %v14509_v15, %s10121_s29 }
 0x6d9   :  { %5661 = vrot.lane.b32.xlu1 %v14507_v11, %s10121_s29 }
 0x6da   :  { %v5291_v16 = vpop.permute.xlu0 %5290 }
 0x6db   :  { %v5293_v38 = vpop.permute.xlu1 %5292  ;;  %5453 = vst.msk [vmem:[#allocation2 + $0xf0] sm:$0xff] %vm5422_vm15, %v5291_v16  ;;  %v15050_v16 = vld [vmem:[#allocation3 + $0x61] sm:$0xff] }
 0x6dc   :  { %5454 = vst.msk [vmem:[#allocation2 + $0xf8] sm:$0xff] %vm5422_vm15, %v5293_v38  ;;  %5663 = vrot.lane.b32.xlu0 %v14517_v50, %s10121_s29  ;;  %v15053_v38 = vld [vmem:[#allocation3 + $0x69] sm:$0xff] }
 0x6dd   :  { %5665 = vrot.lane.b32.xlu1 %v14515_v53, %s10121_s29 }
 0x6de   :  { %v5295_v4 = vpop.permute.xlu0 %5294 }
 0x6df   :  { %v5297_v10 = vpop.permute.xlu1 %5296  ;;  %5455 = vst.msk [vmem:[#allocation2 + $0x100] sm:$0xff] %vm5422_vm15, %v5295_v4 }
 0x6e0   :  { %5456 = vst.msk [vmem:[#allocation2 + $0x108] sm:$0xff] %vm5422_vm15, %v5297_v10  ;;  %5667 = vrot.lane.b32.xlu0 %v14529_v40, %s10121_s29  ;;  %v5517_v40 = vld [vmem:[#allocation3 + $0x180] sm:$0xff] }
 0x6e1   :  { %5669 = vrot.lane.b32.xlu1 %v14524_v2, %s10121_s29  ;;  %v5518_v2 = vld [vmem:[#allocation3 + $0x188] sm:$0xff] }
 0x6e2   :  { %v5299_v11 = vpop.permute.xlu0 %5298 }
 0x6e3   :  { %v5301_v15 = vpop.permute.xlu1 %5300  ;;  %5457 = vst.msk [vmem:[#allocation2 + $0x110] sm:$0xff] %vm5422_vm15, %v5299_v11  ;;  %v15060_v11 = vld [vmem:[#allocation3 + $0x79] sm:$0xff] }
 0x6e4   :  { %5458 = vst.msk [vmem:[#allocation2 + $0x118] sm:$0xff] %vm5422_vm15, %v5301_v15  ;;  %5671 = vrot.lane.b32.xlu0 %v14535_v6, %s10121_s29  ;;  %v15063_v15 = vld [vmem:[#allocation3 + $0x81] sm:$0xff] }
 0x6e5   :  { %5673 = vrot.lane.b32.xlu1 %v14533_v59, %s10121_s29 }
 0x6e6   :  { %v5303_v53 = vpop.permute.xlu0 %5302 }
 0x6e7   :  { %v5305_v50 = vpop.permute.xlu1 %5304  ;;  %5459 = vst.msk [vmem:[#allocation2 + $0x120] sm:$0xff] %vm5422_vm15, %v5303_v53 }
 0x6e8   :  { %5460 = vst.msk [vmem:[#allocation2 + $0x128] sm:$0xff] %vm5422_vm15, %v5305_v50  ;;  %5675 = vrot.lane.b32.xlu0 %v5517_v40, %s10121_s29  ;;  %v15070_v40 = vld [vmem:[#allocation3 + $0x91] sm:$0xff] }
 0x6e9   :  { %5677 = vrot.lane.b32.xlu1 %v5518_v2, %s10121_s29  ;;  %v15073_v2 = vld [vmem:[#allocation3 + $0x99] sm:$0xff] }
 0x6ea   :  { %v5307_v34 = vpop.permute.xlu0 %5306 }
 0x6eb   :  { %v5309_v45 = vpop.permute.xlu1 %5308  ;;  %5461 = vst.msk [vmem:[#allocation2 + $0x130] sm:$0xff] %vm5422_vm15, %v5307_v34 }
 0x6ec   :  { %5462 = vst.msk [vmem:[#allocation2 + $0x138] sm:$0xff] %vm5422_vm15, %v5309_v45  ;;  %5679 = vrot.lane.b32.xlu0 %v14544_v39, %s10121_s29 }
 0x6ed   :  { %5681 = vrot.lane.b32.xlu1 %v14542_v52, %s10121_s29 }
 0x6ee   :  { %v5311_v59 = vpop.permute.xlu0 %5310 }
 0x6ef   :  { %v5313_v6 = vpop.permute.xlu1 %5312  ;;  %5463 = vst.msk [vmem:[#allocation2 + $0x140] sm:$0xff] %vm5422_vm15, %v5311_v59  ;;  %v15080_v59 = vld [vmem:[#allocation3 + $0xa9] sm:$0xff] }
 0x6f0   :  { %5464 = vst.msk [vmem:[#allocation2 + $0x148] sm:$0xff] %vm5422_vm15, %v5313_v6  ;;  %5683 = vrot.lane.b32.xlu0 %v14553_v22, %s10121_s29  ;;  %v15083_v6 = vld [vmem:[#allocation3 + $0xb1] sm:$0xff] }
 0x6f1   :  { %5685 = vrot.lane.b32.xlu1 %v14551_v3, %s10121_s29 }
 0x6f2   :  { %v5315_v42 = vpop.permute.xlu0 %5314 }
 0x6f3   :  { %v5317_v27 = vpop.permute.xlu1 %5316  ;;  %5465 = vst.msk [vmem:[#allocation2 + $0x150] sm:$0xff] %vm5422_vm15, %v5315_v42 }
 0x6f4   :  { %5466 = vst.msk [vmem:[#allocation2 + $0x158] sm:$0xff] %vm5422_vm15, %v5317_v27  ;;  %5687 = vrot.lane.b32.xlu0 %v14563_v36, %s10121_s29 }
 0x6f5   :  { %5689 = vrot.lane.b32.xlu1 %v14559_v30, %s10121_s29 }
 0x6f6   :  { %v5319_v52 = vpop.permute.xlu0 %5318 }
 0x6f7   :  { %v5321_v39 = vpop.permute.xlu1 %5320  ;;  %5467 = vst.msk [vmem:[#allocation2 + $0x160] sm:$0xff] %vm5422_vm15, %v5319_v52  ;;  %v15090_v52 = vld [vmem:[#allocation3 + $0xc1] sm:$0xff] }
 0x6f8   :  { %5468 = vst.msk [vmem:[#allocation2 + $0x168] sm:$0xff] %vm5422_vm15, %v5321_v39  ;;  %5691 = vrot.lane.b32.xlu0 %v14567_v56, %s10121_s29  ;;  %v15093_v39 = vld [vmem:[#allocation3 + $0xc9] sm:$0xff] }
 0x6f9   :  { %5693 = vrot.lane.b32.xlu1 %v14565_v14, %s10121_s29 }
 0x6fa   :  { %v5323_v3 = vpop.permute.xlu0 %5322 }
 0x6fb   :  { %v5325_v22 = vpop.permute.xlu1 %5324  ;;  %5469 = vst.msk [vmem:[#allocation2 + $0x170] sm:$0xff] %vm5422_vm15, %v5323_v3 }
 0x6fc   :  { %5470 = vst.msk [vmem:[#allocation2 + $0x178] sm:$0xff] %vm5422_vm15, %v5325_v22  ;;  %5695 = vrot.lane.b32.xlu0 %v14581_v23, %s10121_s29 }
 0x6fd   :  { %5697 = vrot.lane.b32.xlu1 %v14576_v58, %s10121_s29 }
 0x6fe   :  { %v5327_v30 = vpop.permute.xlu0 %5326 }
 0x6ff   :  { %v5329_v36 = vpop.permute.xlu1 %5328  ;;  %5471 = vst.msk [vmem:[#allocation2 + $0x180] sm:$0xff] %vm5422_vm15, %v5327_v30  ;;  %v15100_v30 = vld [vmem:[#allocation3 + $0xd9] sm:$0xff] }
 0x700   :  { %5472 = vst.msk [vmem:[#allocation2 + $0x188] sm:$0xff] %vm5422_vm15, %v5329_v36  ;;  %5699 = vrot.lane.b32.xlu0 %v14588_v13, %s10121_s29  ;;  %v15103_v36 = vld [vmem:[#allocation3 + $0xe1] sm:$0xff] }
 0x701   :  { %5701 = vrot.lane.b32.xlu1 %v14586_v54, %s10121_s29 }
 0x702   :  { %v5331_v14 = vpop.permute.xlu0 %5330 }
 0x703   :  { %v5333_v56 = vpop.permute.xlu1 %5332  ;;  %5473 = vst.msk [vmem:[#allocation2 + $0x190] sm:$0xff] %vm5422_vm15, %v5331_v14 }
 0x704   :  { %5474 = vst.msk [vmem:[#allocation2 + $0x198] sm:$0xff] %vm5422_vm15, %v5333_v56  ;;  %5703 = vrot.lane.b32.xlu0 %v14599_v0, %s10121_s29 }
 0x705   :  { %5705 = vrot.lane.b32.xlu1 %v14594_v57, %s10121_s29 }
 0x706   :  { %v5335_v58 = vpop.permute.xlu0 %5334 }
 0x707   :  { %v5337_v23 = vpop.permute.xlu1 %5336  ;;  %5475 = vst.msk [vmem:[#allocation2 + $0x1a0] sm:$0xff] %vm5422_vm15, %v5335_v58  ;;  %v15110_v58 = vld [vmem:[#allocation3 + $0xf1] sm:$0xff] }
 0x708   :  { %5476 = vst.msk [vmem:[#allocation2 + $0x1a8] sm:$0xff] %vm5422_vm15, %v5337_v23  ;;  %5707 = vrot.lane.b32.xlu0 %v14607_v24, %s10121_s29  ;;  %v15113_v23 = vld [vmem:[#allocation3 + $0xf9] sm:$0xff] }
 0x709   :  { %5709 = vrot.lane.b32.xlu1 %v14605_v26, %s10121_s29 }
 0x70a   :  { %v5339_v54 = vpop.permute.xlu0 %5338 }
 0x70b   :  { %v5341_v13 = vpop.permute.xlu1 %5340  ;;  %5477 = vst.msk [vmem:[#allocation2 + $0x1b0] sm:$0xff] %vm5422_vm15, %v5339_v54 }
 0x70c   :  { %5478 = vst.msk [vmem:[#allocation2 + $0x1b8] sm:$0xff] %vm5422_vm15, %v5341_v13  ;;  %5711 = vrot.lane.b32.xlu0 %v14617_v1, %s10121_s29 }
 0x70d   :  { %5713 = vrot.lane.b32.xlu1 %v14613_v19, %s10121_s29 }
 0x70e   :  { %v5343_v57 = vpop.permute.xlu0 %5342 }
 0x70f   :  { %v5345_v0 = vpop.permute.xlu1 %5344  ;;  %5479 = vst.msk [vmem:[#allocation2 + $0x1c0] sm:$0xff] %vm5422_vm15, %v5343_v57  ;;  %v5892_v57 = vld [vmem:[#allocation3 + $0x109] sm:$0xff] }
 0x710   :  { %5480 = vst.msk [vmem:[#allocation2 + $0x1c8] sm:$0xff] %vm5422_vm15, %v5345_v0  ;;  %5715 = vrot.lane.b32.xlu0 %v14624_v17, %s10121_s29  ;;  %v5893_v0 = vld [vmem:[#allocation3 + $0x111] sm:$0xff] }
 0x711   :  { %5717 = vrot.lane.b32.xlu1 %v14622_v5, %s10121_s29 }
 0x712   :  { %v5347_v26 = vpop.permute.xlu0 %5346 }
 0x713   :  { %v5349_v24 = vpop.permute.xlu1 %5348  ;;  %5481 = vst.msk [vmem:[#allocation2 + $0x1d0] sm:$0xff] %vm5422_vm15, %v5347_v26 }
 0x714   :  { %5482 = vst.msk [vmem:[#allocation2 + $0x1d8] sm:$0xff] %vm5422_vm15, %v5349_v24  ;;  %5719 = vrot.lane.b32.xlu0 %v14633_v33, %s10121_s29  ;;  %v17844_v33 = vld [vmem:[#allocation19_spill] sm:$0xff] }
 0x715   :  { %5721 = vrot.lane.b32.xlu1 %v14631_v61, %s10121_s29  ;;  %v17843_v61 = vld [vmem:[#allocation22_spill] sm:$0xff] }
 0x716   :  { %v5351_v19 = vpop.permute.xlu0 %5350 }
 0x717   :  { %v5353_v1 = vpop.permute.xlu1 %5352  ;;  %5483 = vst.msk [vmem:[#allocation2 + $0x1e0] sm:$0xff] %vm5422_vm15, %v5351_v19  ;;  %v5894_v19 = vld [vmem:[#allocation3 + $0x121] sm:$0xff] }
 0x718   :  { %5484 = vst.msk [vmem:[#allocation2 + $0x1e8] sm:$0xff] %vm5422_vm15, %v5353_v1  ;;  %5723 = vrot.lane.b32.xlu0 %v14643_v18, %s10121_s29  ;;  %v17846_v18 = vld [vmem:[#allocation21_spill] sm:$0xff] }
 0x719   :  { %5725 = vrot.lane.b32.xlu1 %v14639_v44, %s10121_s29  ;;  %v17845_v44 = vld [vmem:[#allocation24_spill] sm:$0xff]  ;;  %v5895_v1 = vld [vmem:[#allocation3 + $0x129] sm:$0xff] }
 0x71a   :  { %v5355_v5 = vpop.permute.xlu0 %5354 }
 0x71b   :  { %v5357_v17 = vpop.permute.xlu1 %5356  ;;  %5485 = vst.msk [vmem:[#allocation2 + $0x1f0] sm:$0xff] %vm5422_vm15, %v5355_v5 }
 0x71c   :  { %5486 = vst.msk [vmem:[#allocation2 + $0x1f8] sm:$0xff] %vm5422_vm15, %v5357_v17  ;;  %5727 = vrot.lane.b32.xlu0 %v17843_v61, %s10121_s29  ;;  %v5896_v61 = vld [vmem:[#allocation3 + $0x139] sm:$0xff] }
 0x71d   :  { %5729 = vrot.lane.b32.xlu1 %v17844_v33, %s10121_s29  ;;  %v5897_v33 = vld [vmem:[#allocation3 + $0x141] sm:$0xff] }
 0x71e   :  { %v5616_v62 = vpop.permute.xlu0 %5615 }
 0x71f   :  { %v5618_v31 = vpop.permute.xlu1 %5617  ;;  %5808 = vst.msk [vmem:[#allocation2] sm:$0xff] %vm5807_vm1, %v5616_v62 }
 0x720   :  { %5809 = vst.msk [vmem:[#allocation2 + $0x8] sm:$0xff] %vm5807_vm1, %v5618_v31  ;;  %5731 = vrot.lane.b32.xlu0 %v17845_v44, %s10121_s29  ;;  %v5898_v44 = vld [vmem:[#allocation3 + $0x151] sm:$0xff] }
 0x721   :  { %5733 = vrot.lane.b32.xlu1 %v17846_v18, %s10121_s29  ;;  %v5899_v18 = vld [vmem:[#allocation3 + $0x159] sm:$0xff] }
 0x722   :  { %v5620_v35 = vpop.permute.xlu0 %5619 }
 0x723   :  { %v5622_v12 = vpop.permute.xlu1 %5621  ;;  %5810 = vst.msk [vmem:[#allocation2 + $0x10] sm:$0xff] %vm5807_vm1, %v5620_v35 }
 0x724   :  { %5811 = vst.msk [vmem:[#allocation2 + $0x18] sm:$0xff] %vm5807_vm1, %v5622_v12  ;;  %5735 = vrot.lane.b32.xlu0 %v17847_v60, %s10121_s29  ;;  %v5900_v60 = vld [vmem:[#allocation3 + $0x169] sm:$0xff] }
 0x725   :  { %5737 = vrot.lane.b32.xlu1 %v17848_v28, %s10121_s29  ;;  %v5901_v28 = vld [vmem:[#allocation3 + $0x171] sm:$0xff] }
 0x726   :  { %v5624_v63 = vpop.permute.xlu0 %5623 }
 0x727   :  { %v5626_v32 = vpop.permute.xlu1 %5625  ;;  %5812 = vst.msk [vmem:[#allocation2 + $0x20] sm:$0xff] %vm5807_vm1, %v5624_v63 }
 0x728   :  { %5813 = vst.msk [vmem:[#allocation2 + $0x28] sm:$0xff] %vm5807_vm1, %v5626_v32  ;;  %5739 = vrot.lane.b32.xlu0 %v5549_v48, %s10121_s29  ;;  %v5902_v48 = vld [vmem:[#allocation3 + $0x181] sm:$0xff] }
 0x729   :  { %5741 = vrot.lane.b32.xlu1 %v5550_v43, %s10121_s29  ;;  %v5903_v43 = vld [vmem:[#allocation3 + $0x189] sm:$0xff] }
 0x72a   :  { %v5628_v55 = vpop.permute.xlu0 %5627 }
 0x72b   :  { %v5630_v51 = vpop.permute.xlu1 %5629  ;;  %5814 = vst.msk [vmem:[#allocation2 + $0x30] sm:$0xff] %vm5807_vm1, %v5628_v55 }
 0x72c   :  { %5815 = vst.msk [vmem:[#allocation2 + $0x38] sm:$0xff] %vm5807_vm1, %v5630_v51  ;;  %6000 = vrot.lane.b32.xlu0 %v5872_v37, %s10123_s16  ;;  %v5904_v37 = vld [vmem:[#allocation3 + $0x1c9] sm:$0xff] }
 0x72d   :  { %6002 = vrot.lane.b32.xlu1 %v5873_v29, %s10123_s16  ;;  %v5905_v29 = vld [vmem:[#allocation3 + $0x1d1] sm:$0xff] }
 0x72e   :  { %v5632_v25 = vpop.permute.xlu0 %5631 }
 0x72f   :  { %v5634_v49 = vpop.permute.xlu1 %5633  ;;  %5816 = vst.msk [vmem:[#allocation2 + $0x40] sm:$0xff] %vm5807_vm1, %v5632_v25 }
 0x730   :  { %5817 = vst.msk [vmem:[#allocation2 + $0x48] sm:$0xff] %vm5807_vm1, %v5634_v49  ;;  %6004 = vrot.lane.b32.xlu0 %v15030_v46, %s10123_s16 }
 0x731   :  { %6006 = vrot.lane.b32.xlu1 %v15033_v9, %s10123_s16 }
 0x732   :  { %v5636_v7 = vpop.permute.xlu0 %5635 }
 0x733   :  { %v5638_v20 = vpop.permute.xlu1 %5637  ;;  %5818 = vst.msk [vmem:[#allocation2 + $0x50] sm:$0xff] %vm5807_vm1, %v5636_v7  ;;  %v5906_v7 = vld [vmem:[#allocation3 + $0x1e1] sm:$0xff] }
 0x734   :  { %5819 = vst.msk [vmem:[#allocation2 + $0x58] sm:$0xff] %vm5807_vm1, %v5638_v20  ;;  %6008 = vrot.lane.b32.xlu0 %v15040_v47, %s10123_s16  ;;  %v5907_v20 = vld [vmem:[#allocation3 + $0x1e9] sm:$0xff] }
 0x735   :  { %6010 = vrot.lane.b32.xlu1 %v15043_v41, %s10123_s16 }
 0x736   :  { %v5640_v21 = vpop.permute.xlu0 %5639 }
 0x737   :  { %v5642_v8 = vpop.permute.xlu1 %5641  ;;  %5820 = vst.msk [vmem:[#allocation2 + $0x60] sm:$0xff] %vm5807_vm1, %v5640_v21 }
 0x738   :  { %5821 = vst.msk [vmem:[#allocation2 + $0x68] sm:$0xff] %vm5807_vm1, %v5642_v8  ;;  %6012 = vrot.lane.b32.xlu0 %v15050_v16, %s10123_s16 }
 0x739   :  { %6014 = vrot.lane.b32.xlu1 %v15053_v38, %s10123_s16 }
 0x73a   :  { %v5644_v4 = vpop.permute.xlu0 %5643 }
 0x73b   :  { %v5646_v10 = vpop.permute.xlu1 %5645  ;;  %5822 = vst.msk [vmem:[#allocation2 + $0x70] sm:$0xff] %vm5807_vm1, %v5644_v4  ;;  %v5908_v4 = vld [vmem:[#allocation3 + $0x1f9] sm:$0xff] }
 0x73c   :  { %5823 = vst.msk [vmem:[#allocation2 + $0x78] sm:$0xff] %vm5807_vm1, %v5646_v10  ;;  %6016 = vrot.lane.b32.xlu0 %v15060_v11, %s10123_s16  ;;  %v5909_v10 = vld [vmem:[#allocation3 + $0x201] sm:$0xff] }
 0x73d   :  { %6018 = vrot.lane.b32.xlu1 %v15063_v15, %s10123_s16 }
 0x73e   :  { %v5648_v53 = vpop.permute.xlu0 %5647 }
 0x73f   :  { %v5650_v50 = vpop.permute.xlu1 %5649  ;;  %5824 = vst.msk [vmem:[#allocation2 + $0x80] sm:$0xff] %vm5807_vm1, %v5648_v53 }
 0x740   :  { %5825 = vst.msk [vmem:[#allocation2 + $0x88] sm:$0xff] %vm5807_vm1, %v5650_v50  ;;  %6020 = vrot.lane.b32.xlu0 %v15070_v40, %s10123_s16 }
 0x741   :  { %6022 = vrot.lane.b32.xlu1 %v15073_v2, %s10123_s16 }
 0x742   :  { %v5652_v34 = vpop.permute.xlu0 %5651 }
 0x743   :  { %v5654_v45 = vpop.permute.xlu1 %5653  ;;  %5826 = vst.msk [vmem:[#allocation2 + $0x90] sm:$0xff] %vm5807_vm1, %v5652_v34  ;;  %v5910_v34 = vld [vmem:[#allocation3 + $0x211] sm:$0xff] }
 0x744   :  { %5827 = vst.msk [vmem:[#allocation2 + $0x98] sm:$0xff] %vm5807_vm1, %v5654_v45  ;;  %6024 = vrot.lane.b32.xlu0 %v15080_v59, %s10123_s16  ;;  %v5911_v45 = vld [vmem:[#allocation3 + $0x219] sm:$0xff] }
 0x745   :  { %6026 = vrot.lane.b32.xlu1 %v15083_v6, %s10123_s16 }
 0x746   :  { %v5656_v42 = vpop.permute.xlu0 %5655 }
 0x747   :  { %v5658_v27 = vpop.permute.xlu1 %5657  ;;  %5828 = vst.msk [vmem:[#allocation2 + $0xa0] sm:$0xff] %vm5807_vm1, %v5656_v42 }
 0x748   :  { %5829 = vst.msk [vmem:[#allocation2 + $0xa8] sm:$0xff] %vm5807_vm1, %v5658_v27  ;;  %6028 = vrot.lane.b32.xlu0 %v15090_v52, %s10123_s16 }
 0x749   :  { %6030 = vrot.lane.b32.xlu1 %v15093_v39, %s10123_s16 }
 0x74a   :  { %v5660_v3 = vpop.permute.xlu0 %5659 }
 0x74b   :  { %v5662_v22 = vpop.permute.xlu1 %5661  ;;  %5830 = vst.msk [vmem:[#allocation2 + $0xb0] sm:$0xff] %vm5807_vm1, %v5660_v3  ;;  %v5912_v3 = vld [vmem:[#allocation3 + $0x229] sm:$0xff] }
 0x74c   :  { %5831 = vst.msk [vmem:[#allocation2 + $0xb8] sm:$0xff] %vm5807_vm1, %v5662_v22  ;;  %6032 = vrot.lane.b32.xlu0 %v15100_v30, %s10123_s16  ;;  %v5913_v22 = vld [vmem:[#allocation3 + $0x231] sm:$0xff] }
 0x74d   :  { %6034 = vrot.lane.b32.xlu1 %v15103_v36, %s10123_s16 }
 0x74e   :  { %v5664_v14 = vpop.permute.xlu0 %5663 }
 0x74f   :  { %v5666_v56 = vpop.permute.xlu1 %5665  ;;  %5832 = vst.msk [vmem:[#allocation2 + $0xc0] sm:$0xff] %vm5807_vm1, %v5664_v14 }
 0x750   :  { %5833 = vst.msk [vmem:[#allocation2 + $0xc8] sm:$0xff] %vm5807_vm1, %v5666_v56  ;;  %6036 = vrot.lane.b32.xlu0 %v15110_v58, %s10123_s16 }
 0x751   :  { %6038 = vrot.lane.b32.xlu1 %v15113_v23, %s10123_s16 }
 0x752   :  { %v5668_v54 = vpop.permute.xlu0 %5667 }
 0x753   :  { %v5670_v13 = vpop.permute.xlu1 %5669  ;;  %5834 = vst.msk [vmem:[#allocation2 + $0xd0] sm:$0xff] %vm5807_vm1, %v5668_v54  ;;  %v5914_v54 = vld [vmem:[#allocation3 + $0x241] sm:$0xff] }
 0x754   :  { %5835 = vst.msk [vmem:[#allocation2 + $0xd8] sm:$0xff] %vm5807_vm1, %v5670_v13  ;;  %6040 = vrot.lane.b32.xlu0 %v5892_v57, %s10123_s16  ;;  %v5915_v13 = vld [vmem:[#allocation3 + $0x249] sm:$0xff] }
 0x755   :  { %6042 = vrot.lane.b32.xlu1 %v5893_v0, %s10123_s16 }
 0x756   :  { %v5672_v26 = vpop.permute.xlu0 %5671 }
 0x757   :  { %v5674_v24 = vpop.permute.xlu1 %5673  ;;  %5836 = vst.msk [vmem:[#allocation2 + $0xe0] sm:$0xff] %vm5807_vm1, %v5672_v26  ;;  %v5916_v26 = vld [vmem:[#allocation3 + $0x259] sm:$0xff] }
 0x758   :  { %5837 = vst.msk [vmem:[#allocation2 + $0xe8] sm:$0xff] %vm5807_vm1, %v5674_v24  ;;  %6044 = vrot.lane.b32.xlu0 %v5894_v19, %s10123_s16  ;;  %v5917_v24 = vld [vmem:[#allocation3 + $0x261] sm:$0xff] }
 0x759   :  { %6046 = vrot.lane.b32.xlu1 %v5895_v1, %s10123_s16 }
 0x75a   :  { %v5676_v5 = vpop.permute.xlu0 %5675 }
 0x75b   :  { %v5678_v17 = vpop.permute.xlu1 %5677  ;;  %5838 = vst.msk [vmem:[#allocation2 + $0xf0] sm:$0xff] %vm5807_vm1, %v5676_v5  ;;  %v5918_v5 = vld [vmem:[#allocation3 + $0x271] sm:$0xff] }
 0x75c   :  { %5839 = vst.msk [vmem:[#allocation2 + $0xf8] sm:$0xff] %vm5807_vm1, %v5678_v17  ;;  %6048 = vrot.lane.b32.xlu0 %v5896_v61, %s10123_s16  ;;  %v5919_v17 = vld [vmem:[#allocation3 + $0x279] sm:$0xff] }
 0x75d   :  { %6050 = vrot.lane.b32.xlu1 %v5897_v33, %s10123_s16 }
 0x75e   :  { %v5680_v62 = vpop.permute.xlu0 %5679 }
 0x75f   :  { %v5682_v31 = vpop.permute.xlu1 %5681  ;;  %5840 = vst.msk [vmem:[#allocation2 + $0x100] sm:$0xff] %vm5807_vm1, %v5680_v62  ;;  %v5920_v62 = vld [vmem:[#allocation3 + $0x289] sm:$0xff] }
 0x760   :  { %5841 = vst.msk [vmem:[#allocation2 + $0x108] sm:$0xff] %vm5807_vm1, %v5682_v31  ;;  %6052 = vrot.lane.b32.xlu0 %v5898_v44, %s10123_s16  ;;  %v5921_v31 = vld [vmem:[#allocation3 + $0x291] sm:$0xff] }
 0x761   :  { %6054 = vrot.lane.b32.xlu1 %v5899_v18, %s10123_s16 }
 0x762   :  { %v5684_v35 = vpop.permute.xlu0 %5683 }
 0x763   :  { %v5686_v12 = vpop.permute.xlu1 %5685  ;;  %5842 = vst.msk [vmem:[#allocation2 + $0x110] sm:$0xff] %vm5807_vm1, %v5684_v35  ;;  %v5922_v35 = vld [vmem:[#allocation3 + $0x2a1] sm:$0xff] }
 0x764   :  { %5843 = vst.msk [vmem:[#allocation2 + $0x118] sm:$0xff] %vm5807_vm1, %v5686_v12  ;;  %6056 = vrot.lane.b32.xlu0 %v5900_v60, %s10123_s16  ;;  %v5923_v12 = vld [vmem:[#allocation3 + $0x2a9] sm:$0xff] }
 0x765   :  { %6058 = vrot.lane.b32.xlu1 %v5901_v28, %s10123_s16 }
 0x766   :  { %v5688_v63 = vpop.permute.xlu0 %5687 }
 0x767   :  { %v5690_v32 = vpop.permute.xlu1 %5689  ;;  %5844 = vst.msk [vmem:[#allocation2 + $0x120] sm:$0xff] %vm5807_vm1, %v5688_v63  ;;  %v5924_v63 = vld [vmem:[#allocation3 + $0x2b9] sm:$0xff] }
 0x768   :  { %5845 = vst.msk [vmem:[#allocation2 + $0x128] sm:$0xff] %vm5807_vm1, %v5690_v32  ;;  %6060 = vrot.lane.b32.xlu0 %v5902_v48, %s10123_s16  ;;  %v5925_v32 = vld [vmem:[#allocation3 + $0x2c1] sm:$0xff] }
 0x769   :  { %6062 = vrot.lane.b32.xlu1 %v5903_v43, %s10123_s16 }
 0x76a   :  { %v5692_v55 = vpop.permute.xlu0 %5691 }
 0x76b   :  { %v5694_v51 = vpop.permute.xlu1 %5693  ;;  %5846 = vst.msk [vmem:[#allocation2 + $0x130] sm:$0xff] %vm5807_vm1, %v5692_v55  ;;  %v5926_v55 = vld [vmem:[#allocation3 + $0x2d1] sm:$0xff] }
 0x76c   :  { %5847 = vst.msk [vmem:[#allocation2 + $0x138] sm:$0xff] %vm5807_vm1, %v5694_v51  ;;  %6064 = vrot.lane.b32.xlu0 %v5904_v37, %s10123_s16  ;;  %v5927_v51 = vld [vmem:[#allocation3 + $0x2d9] sm:$0xff] }
 0x76d   :  { %6066 = vrot.lane.b32.xlu1 %v5905_v29, %s10123_s16 }
 0x76e   :  { %v5696_v25 = vpop.permute.xlu0 %5695 }
 0x76f   :  { %v5698_v49 = vpop.permute.xlu1 %5697  ;;  %5848 = vst.msk [vmem:[#allocation2 + $0x140] sm:$0xff] %vm5807_vm1, %v5696_v25  ;;  %v5928_v25 = vld [vmem:[#allocation3 + $0x2e9] sm:$0xff] }
 0x770   :  { %5849 = vst.msk [vmem:[#allocation2 + $0x148] sm:$0xff] %vm5807_vm1, %v5698_v49  ;;  %6068 = vrot.lane.b32.xlu0 %v5906_v7, %s10123_s16  ;;  %v5929_v49 = vld [vmem:[#allocation3 + $0x2f1] sm:$0xff] }
 0x771   :  { %6070 = vrot.lane.b32.xlu1 %v5907_v20, %s10123_s16 }
 0x772   :  { %v5700_v21 = vpop.permute.xlu0 %5699 }
 0x773   :  { %v5702_v8 = vpop.permute.xlu1 %5701  ;;  %5850 = vst.msk [vmem:[#allocation2 + $0x150] sm:$0xff] %vm5807_vm1, %v5700_v21  ;;  %v5930_v21 = vld [vmem:[#allocation3 + $0x301] sm:$0xff] }
 0x774   :  { %5851 = vst.msk [vmem:[#allocation2 + $0x158] sm:$0xff] %vm5807_vm1, %v5702_v8  ;;  %6072 = vrot.lane.b32.xlu0 %v5908_v4, %s10123_s16  ;;  %v5931_v8 = vld [vmem:[#allocation3 + $0x309] sm:$0xff] }
 0x775   :  { %6074 = vrot.lane.b32.xlu1 %v5909_v10, %s10123_s16 }
 0x776   :  { %v5704_v53 = vpop.permute.xlu0 %5703 }
 0x777   :  { %v5706_v50 = vpop.permute.xlu1 %5705  ;;  %5852 = vst.msk [vmem:[#allocation2 + $0x160] sm:$0xff] %vm5807_vm1, %v5704_v53  ;;  %v5932_v53 = vld [vmem:[#allocation3 + $0x319] sm:$0xff] }
 0x778   :  { %5853 = vst.msk [vmem:[#allocation2 + $0x168] sm:$0xff] %vm5807_vm1, %v5706_v50  ;;  %6076 = vrot.lane.b32.xlu0 %v5910_v34, %s10123_s16  ;;  %v5933_v50 = vld [vmem:[#allocation3 + $0x321] sm:$0xff] }
 0x779   :  { %6078 = vrot.lane.b32.xlu1 %v5911_v45, %s10123_s16 }
 0x77a   :  { %v5708_v42 = vpop.permute.xlu0 %5707 }
 0x77b   :  { %v5710_v27 = vpop.permute.xlu1 %5709  ;;  %5854 = vst.msk [vmem:[#allocation2 + $0x170] sm:$0xff] %vm5807_vm1, %v5708_v42  ;;  %v5934_v42 = vld [vmem:[#allocation3 + $0x331] sm:$0xff] }
 0x77c   :  { %5855 = vst.msk [vmem:[#allocation2 + $0x178] sm:$0xff] %vm5807_vm1, %v5710_v27  ;;  %6080 = vrot.lane.b32.xlu0 %v5912_v3, %s10123_s16  ;;  %v5935_v27 = vld [vmem:[#allocation3 + $0x339] sm:$0xff] }
 0x77d   :  { %6082 = vrot.lane.b32.xlu1 %v5913_v22, %s10123_s16 }
 0x77e   :  { %v5712_v14 = vpop.permute.xlu0 %5711 }
 0x77f   :  { %v5714_v56 = vpop.permute.xlu1 %5713  ;;  %5856 = vst.msk [vmem:[#allocation2 + $0x180] sm:$0xff] %vm5807_vm1, %v5712_v14  ;;  %v6257_v14 = vld [vmem:[#allocation3 + $0x1a] sm:$0xff] }
 0x780   :  { %5857 = vst.msk [vmem:[#allocation2 + $0x188] sm:$0xff] %vm5807_vm1, %v5714_v56  ;;  %6084 = vrot.lane.b32.xlu0 %v5914_v54, %s10123_s16  ;;  %v6258_v56 = vld [vmem:[#allocation3 + $0x22] sm:$0xff] }
 0x781   :  { %6086 = vrot.lane.b32.xlu1 %v5915_v13, %s10123_s16 }
 0x782   :  { %v5716_v57 = vpop.permute.xlu0 %5715 }
 0x783   :  { %v5718_v0 = vpop.permute.xlu1 %5717  ;;  %5858 = vst.msk [vmem:[#allocation2 + $0x190] sm:$0xff] %vm5807_vm1, %v5716_v57  ;;  %v15212_v57 = vld [vmem:[#allocation3 + $0x32] sm:$0xff] }
 0x784   :  { %5859 = vst.msk [vmem:[#allocation2 + $0x198] sm:$0xff] %vm5807_vm1, %v5718_v0  ;;  %6088 = vrot.lane.b32.xlu0 %v5916_v26, %s10123_s16  ;;  %v15215_v0 = vld [vmem:[#allocation3 + $0x3a] sm:$0xff] }
 0x785   :  { %6090 = vrot.lane.b32.xlu1 %v5917_v24, %s10123_s16 }
 0x786   :  { %v5720_v19 = vpop.permute.xlu0 %5719 }
 0x787   :  { %v5722_v1 = vpop.permute.xlu1 %5721  ;;  %5860 = vst.msk [vmem:[#allocation2 + $0x1a0] sm:$0xff] %vm5807_vm1, %v5720_v19  ;;  %v15222_v19 = vld [vmem:[#allocation3 + $0x4a] sm:$0xff] }
 0x788   :  { %5861 = vst.msk [vmem:[#allocation2 + $0x1a8] sm:$0xff] %vm5807_vm1, %v5722_v1  ;;  %6092 = vrot.lane.b32.xlu0 %v5918_v5, %s10123_s16  ;;  %v15225_v1 = vld [vmem:[#allocation3 + $0x52] sm:$0xff] }
 0x789   :  { %6094 = vrot.lane.b32.xlu1 %v5919_v17, %s10123_s16 }
 0x78a   :  { %v5724_v61 = vpop.permute.xlu0 %5723 }
 0x78b   :  { %v5726_v33 = vpop.permute.xlu1 %5725  ;;  %5862 = vst.msk [vmem:[#allocation2 + $0x1b0] sm:$0xff] %vm5807_vm1, %v5724_v61  ;;  %v15232_v61 = vld [vmem:[#allocation3 + $0x62] sm:$0xff] }
 0x78c   :  { %5863 = vst.msk [vmem:[#allocation2 + $0x1b8] sm:$0xff] %vm5807_vm1, %v5726_v33  ;;  %6096 = vrot.lane.b32.xlu0 %v5920_v62, %s10123_s16  ;;  %v15235_v33 = vld [vmem:[#allocation3 + $0x6a] sm:$0xff] }
 0x78d   :  { %6098 = vrot.lane.b32.xlu1 %v5921_v31, %s10123_s16 }
 0x78e   :  { %v5728_v44 = vpop.permute.xlu0 %5727 }
 0x78f   :  { %v5730_v18 = vpop.permute.xlu1 %5729  ;;  %5864 = vst.msk [vmem:[#allocation2 + $0x1c0] sm:$0xff] %vm5807_vm1, %v5728_v44  ;;  %v15242_v44 = vld [vmem:[#allocation3 + $0x7a] sm:$0xff] }
 0x790   :  { %5865 = vst.msk [vmem:[#allocation2 + $0x1c8] sm:$0xff] %vm5807_vm1, %v5730_v18  ;;  %6100 = vrot.lane.b32.xlu0 %v5922_v35, %s10123_s16  ;;  %v15245_v18 = vld [vmem:[#allocation3 + $0x82] sm:$0xff] }
 0x791   :  { %6102 = vrot.lane.b32.xlu1 %v5923_v12, %s10123_s16 }
 0x792   :  { %v5732_v60 = vpop.permute.xlu0 %5731 }
 0x793   :  { %v5734_v28 = vpop.permute.xlu1 %5733  ;;  %5866 = vst.msk [vmem:[#allocation2 + $0x1d0] sm:$0xff] %vm5807_vm1, %v5732_v60  ;;  %v15252_v60 = vld [vmem:[#allocation3 + $0x92] sm:$0xff] }
 0x794   :  { %5867 = vst.msk [vmem:[#allocation2 + $0x1d8] sm:$0xff] %vm5807_vm1, %v5734_v28  ;;  %6104 = vrot.lane.b32.xlu0 %v5924_v63, %s10123_s16  ;;  %v15255_v28 = vld [vmem:[#allocation3 + $0x9a] sm:$0xff] }
 0x795   :  { %6106 = vrot.lane.b32.xlu1 %v5925_v32, %s10123_s16 }
 0x796   :  { %v5736_v48 = vpop.permute.xlu0 %5735 }
 0x797   :  { %v5738_v43 = vpop.permute.xlu1 %5737  ;;  %5868 = vst.msk [vmem:[#allocation2 + $0x1e0] sm:$0xff] %vm5807_vm1, %v5736_v48  ;;  %v15262_v48 = vld [vmem:[#allocation3 + $0xaa] sm:$0xff] }
 0x798   :  { %5869 = vst.msk [vmem:[#allocation2 + $0x1e8] sm:$0xff] %vm5807_vm1, %v5738_v43  ;;  %6108 = vrot.lane.b32.xlu0 %v5926_v55, %s10123_s16  ;;  %v15265_v43 = vld [vmem:[#allocation3 + $0xb2] sm:$0xff] }
 0x799   :  { %6110 = vrot.lane.b32.xlu1 %v5927_v51, %s10123_s16 }
 0x79a   :  { %v5740_v37 = vpop.permute.xlu0 %5739 }
 0x79b   :  { %v5742_v29 = vpop.permute.xlu1 %5741  ;;  %5870 = vst.msk [vmem:[#allocation2 + $0x1f0] sm:$0xff] %vm5807_vm1, %v5740_v37  ;;  %v15272_v37 = vld [vmem:[#allocation3 + $0xc2] sm:$0xff] }
 0x79c   :  { %5871 = vst.msk [vmem:[#allocation2 + $0x1f8] sm:$0xff] %vm5807_vm1, %v5742_v29  ;;  %6112 = vrot.lane.b32.xlu0 %v5928_v25, %s10123_s16  ;;  %v15275_v29 = vld [vmem:[#allocation3 + $0xca] sm:$0xff] }
 0x79d   :  { %6114 = vrot.lane.b32.xlu1 %v5929_v49, %s10123_s16 }
 0x79e   :  { %v6001_v7 = vpop.permute.xlu0 %6000 }
 0x79f   :  { %v6003_v20 = vpop.permute.xlu1 %6002  ;;  %6193 = vst.msk [vmem:[#allocation2] sm:$0xff] %vm6192_vm2, %v6001_v7  ;;  %v15282_v7 = vld [vmem:[#allocation3 + $0xda] sm:$0xff] }
 0x7a0   :  { %6194 = vst.msk [vmem:[#allocation2 + $0x8] sm:$0xff] %vm6192_vm2, %v6003_v20  ;;  %6116 = vrot.lane.b32.xlu0 %v5930_v21, %s10123_s16  ;;  %v15285_v20 = vld [vmem:[#allocation3 + $0xe2] sm:$0xff] }
 0x7a1   :  { %6118 = vrot.lane.b32.xlu1 %v5931_v8, %s10123_s16 }
 0x7a2   :  { %v6005_v4 = vpop.permute.xlu0 %6004 }
 0x7a3   :  { %v6007_v10 = vpop.permute.xlu1 %6006  ;;  %6195 = vst.msk [vmem:[#allocation2 + $0x10] sm:$0xff] %vm6192_vm2, %v6005_v4  ;;  %v15292_v4 = vld [vmem:[#allocation3 + $0xf2] sm:$0xff] }
 0x7a4   :  { %6196 = vst.msk [vmem:[#allocation2 + $0x18] sm:$0xff] %vm6192_vm2, %v6007_v10  ;;  %6120 = vrot.lane.b32.xlu0 %v5932_v53, %s10123_s16  ;;  %v15295_v10 = vld [vmem:[#allocation3 + $0xfa] sm:$0xff] }
 0x7a5   :  { %6122 = vrot.lane.b32.xlu1 %v5933_v50, %s10123_s16 }
 0x7a6   :  { %v6009_v34 = vpop.permute.xlu0 %6008 }
 0x7a7   :  { %v6011_v45 = vpop.permute.xlu1 %6010  ;;  %6197 = vst.msk [vmem:[#allocation2 + $0x20] sm:$0xff] %vm6192_vm2, %v6009_v34  ;;  %v15302_v34 = vld [vmem:[#allocation3 + $0x10a] sm:$0xff] }
 0x7a8   :  { %6198 = vst.msk [vmem:[#allocation2 + $0x28] sm:$0xff] %vm6192_vm2, %v6011_v45  ;;  %6124 = vrot.lane.b32.xlu0 %v5934_v42, %s10123_s16  ;;  %v15305_v45 = vld [vmem:[#allocation3 + $0x112] sm:$0xff] }
 0x7a9   :  { %6126 = vrot.lane.b32.xlu1 %v5935_v27, %s10123_s16 }
 0x7aa   :  { %v6013_v3 = vpop.permute.xlu0 %6012 }
 0x7ab   :  { %v6015_v22 = vpop.permute.xlu1 %6014  ;;  %6199 = vst.msk [vmem:[#allocation2 + $0x30] sm:$0xff] %vm6192_vm2, %v6013_v3  ;;  %v15312_v3 = vld [vmem:[#allocation3 + $0x122] sm:$0xff] }
 0x7ac   :  { %6200 = vst.msk [vmem:[#allocation2 + $0x38] sm:$0xff] %vm6192_vm2, %v6015_v22  ;;  %6385 = vrot.lane.b32.xlu0 %v6257_v14, %s10125_s3  ;;  %v15315_v22 = vld [vmem:[#allocation3 + $0x12a] sm:$0xff] }
 0x7ad   :  { %6387 = vrot.lane.b32.xlu1 %v6258_v56, %s10125_s3 }
 0x7ae   :  { %v6017_v54 = vpop.permute.xlu0 %6016 }
 0x7af   :  { %v6019_v13 = vpop.permute.xlu1 %6018  ;;  %6201 = vst.msk [vmem:[#allocation2 + $0x40] sm:$0xff] %vm6192_vm2, %v6017_v54  ;;  %v15322_v54 = vld [vmem:[#allocation3 + $0x13a] sm:$0xff] }
 0x7b0   :  { %6202 = vst.msk [vmem:[#allocation2 + $0x48] sm:$0xff] %vm6192_vm2, %v6019_v13  ;;  %6389 = vrot.lane.b32.xlu0 %v15212_v57, %s10125_s3  ;;  %v15325_v13 = vld [vmem:[#allocation3 + $0x142] sm:$0xff] }
 0x7b1   :  { %6391 = vrot.lane.b32.xlu1 %v15215_v0, %s10125_s3 }
 0x7b2   :  { %v6021_v26 = vpop.permute.xlu0 %6020 }
 0x7b3   :  { %v6023_v24 = vpop.permute.xlu1 %6022  ;;  %6203 = vst.msk [vmem:[#allocation2 + $0x50] sm:$0xff] %vm6192_vm2, %v6021_v26 }
 0x7b4   :  { %6204 = vst.msk [vmem:[#allocation2 + $0x58] sm:$0xff] %vm6192_vm2, %v6023_v24  ;;  %6393 = vrot.lane.b32.xlu0 %v15222_v19, %s10125_s3  ;;  %v7862_v24 = vld [vmem:[%s17683_s5] sm:$0xff] }
 0x7b5   :  { %6395 = vrot.lane.b32.xlu1 %v15225_v1, %s10125_s3 }
 0x7b6   :  { %v6025_v5 = vpop.permute.xlu0 %6024 }
 0x7b7   :  { %v6027_v17 = vpop.permute.xlu1 %6026  ;;  %6205 = vst.msk [vmem:[#allocation2 + $0x60] sm:$0xff] %vm6192_vm2, %v6025_v5  ;;  %v7863_v5 = vld [vmem:[%s17683_s5 + $0x8] sm:$0xff] }
 0x7b8   :  { %6206 = vst.msk [vmem:[#allocation2 + $0x68] sm:$0xff] %vm6192_vm2, %v6027_v17  ;;  %6397 = vrot.lane.b32.xlu0 %v15232_v61, %s10125_s3 }
 0x7b9   :  { %6399 = vrot.lane.b32.xlu1 %v15235_v33, %s10125_s3 }
 0x7ba   :  { %v6029_v62 = vpop.permute.xlu0 %6028 }
 0x7bb   :  { %v6031_v31 = vpop.permute.xlu1 %6030  ;;  %6207 = vst.msk [vmem:[#allocation2 + $0x70] sm:$0xff] %vm6192_vm2, %v6029_v62  ;;  %v15338_v62 = vld [vmem:[#allocation3 + $0x152] sm:$0xff] }
 0x7bc   :  { %6208 = vst.msk [vmem:[#allocation2 + $0x78] sm:$0xff] %vm6192_vm2, %v6031_v31  ;;  %6401 = vrot.lane.b32.xlu0 %v15242_v44, %s10125_s3  ;;  %v10073_v31 = vpack.c.bf16 %v7863_v5, %v7862_v24 }
 0x7bd   :  { %6403 = vrot.lane.b32.xlu1 %v15245_v18, %s10125_s3 }
 0x7be   :  { %v6033_v35 = vpop.permute.xlu0 %6032  ;;  %10074 = vmatprep.subr.bf16.mxu0 %v10073_v31  ;;  %10089 = vmatprep.subr.bf16.mxu1 %v10073_v31 }
 0x7bf   :  { %v6035_v12 = vpop.permute.xlu1 %6034  ;;  %6209 = vst.msk [vmem:[#allocation2 + $0x80] sm:$0xff] %vm6192_vm2, %v6033_v35  ;;  %v15341_v35 = vld [vmem:[#allocation3 + $0x15a] sm:$0xff]  ;;  %10076 = vmatpush3.bf16.msra.mxu0 %v10073_v31  ;;  %10094 = vmatpush3.bf16.msra.mxu1 %v10073_v31 }
 0x7c0   :  { %6210 = vst.msk [vmem:[#allocation2 + $0x88] sm:$0xff] %vm6192_vm2, %v6035_v12  ;;  %6405 = vrot.lane.b32.xlu0 %v15252_v60, %s10125_s3  ;;  %v7864_v12 = vld [vmem:[%s17683_s5 + $0x10] sm:$0xff] }
 0x7c1   :  { %6407 = vrot.lane.b32.xlu1 %v15255_v28, %s10125_s3 }
 0x7c2   :  { %v6037_v63 = vpop.permute.xlu0 %6036 }
 0x7c3   :  { %v6039_v32 = vpop.permute.xlu1 %6038  ;;  %6211 = vst.msk [vmem:[#allocation2 + $0x90] sm:$0xff] %vm6192_vm2, %v6037_v63  ;;  %v7865_v63 = vld [vmem:[%s17683_s5 + $0x18] sm:$0xff] }
 0x7c4   :  { %6212 = vst.msk [vmem:[#allocation2 + $0x98] sm:$0xff] %vm6192_vm2, %v6039_v32  ;;  %6409 = vrot.lane.b32.xlu0 %v15262_v48, %s10125_s3 }
 0x7c5   :  { %6411 = vrot.lane.b32.xlu1 %v15265_v43, %s10125_s3 }
 0x7c6   :  { %v6041_v55 = vpop.permute.xlu0 %6040 }
 0x7c7   :  { %v6043_v51 = vpop.permute.xlu1 %6042  ;;  %6213 = vst.msk [vmem:[#allocation2 + $0xa0] sm:$0xff] %vm6192_vm2, %v6041_v55  ;;  %v10077_v55 = vpack.c.bf16 %v7865_v63, %v7864_v12  ;;  %v6646_v63 = vld [vmem:[#allocation3 + $0x50] sm:$0xff] }
 0x7c8   :  { %6214 = vst.msk [vmem:[#allocation2 + $0xa8] sm:$0xff] %vm6192_vm2, %v6043_v51  ;;  %6413 = vrot.lane.b32.xlu0 %v15272_v37, %s10125_s3 }
 0x7c9   :  { %6415 = vrot.lane.b32.xlu1 %v15275_v29, %s10125_s3  ;;  %10078 = vmatprep.subr.bf16.mxu0 %v10077_v55 }
 0x7ca   :  { %v6045_v25 = vpop.permute.xlu0 %6044  ;;  %10090 = vmatprep.subr.bf16.mxu1 %v10077_v55  ;;  %10080 = vmatpush3.bf16.msra.mxu0 %v10077_v55 }
 0x7cb   :  { %v6047_v49 = vpop.permute.xlu1 %6046  ;;  %6215 = vst.msk [vmem:[#allocation2 + $0xb0] sm:$0xff] %vm6192_vm2, %v6045_v25  ;;  %v15354_v25 = vld [vmem:[#allocation3 + $0x16a] sm:$0xff]  ;;  %10095 = vmatpush3.bf16.msra.mxu1 %v10077_v55 }
 0x7cc   :  { %6216 = vst.msk [vmem:[#allocation2 + $0xb8] sm:$0xff] %vm6192_vm2, %v6047_v49  ;;  %6417 = vrot.lane.b32.xlu0 %v15282_v7, %s10125_s3  ;;  %v6643_v49 = vld [vmem:[#allocation3 + $0x30] sm:$0xff] }
 0x7cd   :  { %6419 = vrot.lane.b32.xlu1 %v15285_v20, %s10125_s3 }
 0x7ce   :  { %v6049_v21 = vpop.permute.xlu0 %6048 }
 0x7cf   :  { %v6051_v8 = vpop.permute.xlu1 %6050  ;;  %6217 = vst.msk [vmem:[#allocation2 + $0xc0] sm:$0xff] %vm6192_vm2, %v6049_v21  ;;  %v7866_v21 = vld [vmem:[%s17683_s5 + $0x20] sm:$0xff] }
 0x7d0   :  { %6218 = vst.msk [vmem:[#allocation2 + $0xc8] sm:$0xff] %vm6192_vm2, %v6051_v8  ;;  %6421 = vrot.lane.b32.xlu0 %v15292_v4, %s10125_s3  ;;  %v7867_v8 = vld [vmem:[%s17683_s5 + $0x28] sm:$0xff] }
 0x7d1   :  { %6423 = vrot.lane.b32.xlu1 %v15295_v10, %s10125_s3 }
 0x7d2   :  { %v6053_v53 = vpop.permute.xlu0 %6052 }
 0x7d3   :  { %v6055_v50 = vpop.permute.xlu1 %6054  ;;  %6219 = vst.msk [vmem:[#allocation2 + $0xd0] sm:$0xff] %vm6192_vm2, %v6053_v53 }
 0x7d4   :  { %6220 = vst.msk [vmem:[#allocation2 + $0xd8] sm:$0xff] %vm6192_vm2, %v6055_v50  ;;  %6425 = vrot.lane.b32.xlu0 %v15302_v34, %s10125_s3  ;;  %v10081_v50 = vpack.c.bf16 %v7867_v8, %v7866_v21 }
 0x7d5   :  { %6427 = vrot.lane.b32.xlu1 %v15305_v45, %s10125_s3 }
 0x7d6   :  { %v6057_v42 = vpop.permute.xlu0 %6056  ;;  %10082 = vmatprep.subr.bf16.mxu0 %v10081_v50  ;;  %10091 = vmatprep.subr.bf16.mxu1 %v10081_v50 }
 0x7d7   :  { %v6059_v27 = vpop.permute.xlu1 %6058  ;;  %6221 = vst.msk [vmem:[#allocation2 + $0xe0] sm:$0xff] %vm6192_vm2, %v6057_v42  ;;  %10084 = vmatpush3.bf16.msra.mxu0 %v10081_v50  ;;  %10096 = vmatpush3.bf16.msra.mxu1 %v10081_v50  ;;  %v6649_v50 = vld [vmem:[#allocation3 + $0x78] sm:$0xff] }
 0x7d8   :  { %6222 = vst.msk [vmem:[#allocation2 + $0xe8] sm:$0xff] %vm6192_vm2, %v6059_v27  ;;  %6429 = vrot.lane.b32.xlu0 %v15312_v3, %s10125_s3  ;;  %v6644_v27 = vld [vmem:[#allocation3 + $0x38] sm:$0xff] }
 0x7d9   :  { %6431 = vrot.lane.b32.xlu1 %v15315_v22, %s10125_s3 }
 0x7da   :  { %v6061_v14 = vpop.permute.xlu0 %6060 }
 0x7db   :  { %v6063_v56 = vpop.permute.xlu1 %6062  ;;  %6223 = vst.msk [vmem:[#allocation2 + $0xf0] sm:$0xff] %vm6192_vm2, %v6061_v14  ;;  %v7868_v14 = vld [vmem:[%s17683_s5 + $0x30] sm:$0xff] }
 0x7dc   :  { %6224 = vst.msk [vmem:[#allocation2 + $0xf8] sm:$0xff] %vm6192_vm2, %v6063_v56  ;;  %6433 = vrot.lane.b32.xlu0 %v15322_v54, %s10125_s3  ;;  %v7869_v56 = vld [vmem:[%s17683_s5 + $0x38] sm:$0xff] }
 0x7dd   :  { %6435 = vrot.lane.b32.xlu1 %v15325_v13, %s10125_s3  ;;  %v10085_v24 = vpack.c.bf16 %v7869_v56, %v7868_v14  ;;  %v6651_v56 = vld [vmem:[#allocation3 + $0x90] sm:$0xff] }
 0x7de   :  { %v6065_v26 = vpop.permute.xlu0 %6064 }
 0x7df   :  { %v6067_v17 = vpop.permute.xlu1 %6066  ;;  %6225 = vst.msk [vmem:[#allocation2 + $0x100] sm:$0xff] %vm6192_vm2, %v6065_v26  ;;  %10086 = vmatprep.subr.bf16.mxu0 %v10085_v24  ;;  %10092 = vmatprep.subr.bf16.mxu1 %v10085_v24 }
 0x7e0   :  { %6226 = vst.msk [vmem:[#allocation2 + $0x108] sm:$0xff] %vm6192_vm2, %v6067_v17  ;;  %6437 = vrot.lane.b32.xlu0 %v15338_v62, %s10125_s3  ;;  %v6645_v17 = vld [vmem:[#allocation3 + $0x48] sm:$0xff]  ;;  %10088 = vmatpush3.bf16.msra.mxu0 %v10085_v24 }
 0x7e1   :  { %6439 = vrot.lane.b32.xlu1 %v15341_v35, %s10125_s3  ;;  %10097 = vmatpush3.bf16.msra.mxu1 %v10085_v24 }
 0x7e2   :  { %v6069_v32 = vpop.permute.xlu0 %6068 }
 0x7e3   :  { %v6071_v51 = vpop.permute.xlu1 %6070  ;;  %6227 = vst.msk [vmem:[#allocation2 + $0x110] sm:$0xff] %vm6192_vm2, %v6069_v32 }
 0x7e4   :  { %6228 = vst.msk [vmem:[#allocation2 + $0x118] sm:$0xff] %vm6192_vm2, %v6071_v51  ;;  %6441 = vrot.lane.b32.xlu0 %v15354_v25, %s10125_s3 }
 0x7e5   :  { %6771 = vrot.lane.b32.xlu1 %v6643_v49, %s10126_s12 }
 0x7e6   :  { %v6073_v53 = vpop.permute.xlu0 %6072 }
 0x7e7   :  { %v6075_v42 = vpop.permute.xlu1 %6074  ;;  %6229 = vst.msk [vmem:[#allocation2 + $0x120] sm:$0xff] %vm6192_vm2, %v6073_v53 }
 0x7e8   :  { %6230 = vst.msk [vmem:[#allocation2 + $0x128] sm:$0xff] %vm6192_vm2, %v6075_v42  ;;  %6773 = vrot.lane.b32.xlu0 %v6644_v27, %s10126_s12 }
 0x7e9   :  { %7156 = vrot.lane.b32.xlu1 %v15030_v46, %s10127_s18  ;;  %v7870_v46 = vld [vmem:[%s17683_s5 + $0x40] sm:$0xff] }
 0x7ea   :  { %v6077_v26 = vpop.permute.xlu0 %6076  ;;  %9967 = vmatprep.subr.mxu0 %v7870_v46  ;;  %10093 = vmatprep.subr.mxu1 %v7870_v46 }
 0x7eb   :  { %v6079_v5 = vpop.permute.xlu1 %6078  ;;  %6231 = vst.msk [vmem:[#allocation2 + $0x130] sm:$0xff] %vm6192_vm2, %v6077_v26  ;;  %9968 = vmatpush3.msra.mxu0 %v7870_v46  ;;  %10098 = vmatpush3.msra.mxu1 %v7870_v46 }
 0x7ec   :  { %6232 = vst.msk [vmem:[#allocation2 + $0x138] sm:$0xff] %vm6192_vm2, %v6079_v5  ;;  %6775 = vrot.lane.b32.xlu0 %v6645_v17, %s10126_s12 }
 0x7ed   :  { %7158 = vrot.lane.b32.xlu1 %v15033_v9, %s10127_s18 }
 0x7ee   :  { %v6081_v31 = vpop.permute.xlu0 %6080 }
 0x7ef   :  { %v6083_v12 = vpop.permute.xlu1 %6082  ;;  %6233 = vst.msk [vmem:[#allocation2 + $0x140] sm:$0xff] %vm6192_vm2, %v6081_v31 }
 0x7f0   :  { %6234 = vst.msk [vmem:[#allocation2 + $0x148] sm:$0xff] %vm6192_vm2, %v6083_v12  ;;  %7541 = vrot.lane.b32.xlu0 %v15212_v57, %s10128_s27 }
 0x7f1   :  { %6777 = vrot.lane.b32.xlu1 %v6646_v63, %s10126_s12  ;;  %v6655_v63 = vld [vmem:[#allocation3 + $0xc0] sm:$0xff] }
 0x7f2   :  { %v6085_v9 = vpop.permute.xlu0 %6084 }
 0x7f3   :  { %v6087_v32 = vpop.permute.xlu1 %6086  ;;  %6235 = vst.msk [vmem:[#allocation2 + $0x150] sm:$0xff] %vm6192_vm2, %v6085_v9 }
 0x7f4   :  { %6236 = vst.msk [vmem:[#allocation2 + $0x158] sm:$0xff] %vm6192_vm2, %v6087_v32  ;;  %7160 = vrot.lane.b32.xlu0 %v15040_v47, %s10127_s18  ;;  %v6647_v47 = vld [vmem:[#allocation3 + $0x60] sm:$0xff] }
 0x7f5   :  { %7543 = vrot.lane.b32.xlu1 %v15215_v0, %s10128_s27 }
 0x7f6   :  { %v6089_v55 = vpop.permute.xlu0 %6088 }
 0x7f7   :  { %v6091_v51 = vpop.permute.xlu1 %6090  ;;  %6237 = vst.msk [vmem:[#allocation2 + $0x160] sm:$0xff] %vm6192_vm2, %v6089_v55 }
 0x7f8   :  { %6238 = vst.msk [vmem:[#allocation2 + $0x168] sm:$0xff] %vm6192_vm2, %v6091_v51  ;;  %7162 = vrot.lane.b32.xlu0 %v15043_v41, %s10127_s18  ;;  %v6648_v41 = vld [vmem:[#allocation3 + $0x68] sm:$0xff]  ;;  %v6657_v51 = vld [vmem:[#allocation3 + $0xd8] sm:$0xff] }
 0x7f9   :  { %7545 = vrot.lane.b32.xlu1 %v15222_v19, %s10128_s27 }
 0x7fa   :  { %v6093_v57 = vpop.permute.xlu0 %6092 }
 0x7fb   :  { %v6095_v49 = vpop.permute.xlu1 %6094  ;;  %6239 = vst.msk [vmem:[#allocation2 + $0x170] sm:$0xff] %vm6192_vm2, %v6093_v57 }
 0x7fc   :  { %6240 = vst.msk [vmem:[#allocation2 + $0x178] sm:$0xff] %vm6192_vm2, %v6095_v49  ;;  %7547 = vrot.lane.b32.xlu0 %v15225_v1, %s10128_s27 }
 0x7fd   :  { %6779 = vrot.lane.b32.xlu1 %v6647_v47, %s10126_s12 }
 0x7fe   :  { %v6097_v0 = vpop.permute.xlu0 %6096 }
 0x7ff   :  { %v6099_v21 = vpop.permute.xlu1 %6098  ;;  %6241 = vst.msk [vmem:[#allocation2 + $0x180] sm:$0xff] %vm6192_vm2, %v6097_v0  ;;  %v6659_v0 = vld [vmem:[#allocation3 + $0xf0] sm:$0xff] }
 0x800   :  { %6242 = vst.msk [vmem:[#allocation2 + $0x188] sm:$0xff] %vm6192_vm2, %v6099_v21  ;;  %6781 = vrot.lane.b32.xlu0 %v6648_v41, %s10126_s12 }
 0x801   :  { %7164 = vrot.lane.b32.xlu1 %v15050_v16, %s10127_s18 }
 0x802   :  { %v6101_v19 = vpop.permute.xlu0 %6100 }
 0x803   :  { %v6103_v8 = vpop.permute.xlu1 %6102  ;;  %6243 = vst.msk [vmem:[#allocation2 + $0x190] sm:$0xff] %vm6192_vm2, %v6101_v19 }
 0x804   :  { %6244 = vst.msk [vmem:[#allocation2 + $0x198] sm:$0xff] %vm6192_vm2, %v6103_v8  ;;  %7166 = vrot.lane.b32.xlu0 %v15053_v38, %s10127_s18  ;;  %v6650_v38 = vld [vmem:[#allocation3 + $0x80] sm:$0xff]  ;;  %v6661_v8 = vld [vmem:[#allocation3 + $0x108] sm:$0xff] }
 0x805   :  { %7549 = vrot.lane.b32.xlu1 %v15232_v61, %s10128_s27 }
 0x806   :  { %v6105_v1 = vpop.permute.xlu0 %6104 }
 0x807   :  { %v6107_v53 = vpop.permute.xlu1 %6106  ;;  %6245 = vst.msk [vmem:[#allocation2 + $0x1a0] sm:$0xff] %vm6192_vm2, %v6105_v1 }
 0x808   :  { %6246 = vst.msk [vmem:[#allocation2 + $0x1a8] sm:$0xff] %vm6192_vm2, %v6107_v53  ;;  %7551 = vrot.lane.b32.xlu0 %v15235_v33, %s10128_s27 }
 0x809   :  { %6783 = vrot.lane.b32.xlu1 %v6649_v50, %s10126_s12 }
 0x80a   :  { %v6109_v16 = vpop.permute.xlu0 %6108 }
 0x80b   :  { %v6111_v42 = vpop.permute.xlu1 %6110  ;;  %6247 = vst.msk [vmem:[#allocation2 + $0x1b0] sm:$0xff] %vm6192_vm2, %v6109_v16 }
 0x80c   :  { %6248 = vst.msk [vmem:[#allocation2 + $0x1b8] sm:$0xff] %vm6192_vm2, %v6111_v42  ;;  %6785 = vrot.lane.b32.xlu0 %v6650_v38, %s10126_s12  ;;  %v6663_v38 = vld [vmem:[#allocation3 + $0x120] sm:$0xff] }
 0x80d   :  { %7168 = vrot.lane.b32.xlu1 %v15060_v11, %s10127_s18 }
 0x80e   :  { %v6113_v61 = vpop.permute.xlu0 %6112 }
 0x80f   :  { %v6115_v27 = vpop.permute.xlu1 %6114  ;;  %6249 = vst.msk [vmem:[#allocation2 + $0x1c0] sm:$0xff] %vm6192_vm2, %v6113_v61 }
 0x810   :  { %6250 = vst.msk [vmem:[#allocation2 + $0x1c8] sm:$0xff] %vm6192_vm2, %v6115_v27  ;;  %7170 = vrot.lane.b32.xlu0 %v15063_v15, %s10127_s18  ;;  %v6652_v15 = vld [vmem:[#allocation3 + $0x98] sm:$0xff] }
 0x811   :  { %7553 = vrot.lane.b32.xlu1 %v15242_v44, %s10128_s27 }
 0x812   :  { %v6117_v33 = vpop.permute.xlu0 %6116 }
 0x813   :  { %v6119_v14 = vpop.permute.xlu1 %6118  ;;  %6251 = vst.msk [vmem:[#allocation2 + $0x1d0] sm:$0xff] %vm6192_vm2, %v6117_v33  ;;  %v6664_v33 = vld [vmem:[#allocation3 + $0x128] sm:$0xff] }
 0x814   :  { %6252 = vst.msk [vmem:[#allocation2 + $0x1d8] sm:$0xff] %vm6192_vm2, %v6119_v14  ;;  %7555 = vrot.lane.b32.xlu0 %v15245_v18, %s10128_s27 }
 0x815   :  { %6787 = vrot.lane.b32.xlu1 %v6651_v56, %s10126_s12 }
 0x816   :  { %v6121_v11 = vpop.permute.xlu0 %6120 }
 0x817   :  { %v6123_v26 = vpop.permute.xlu1 %6122  ;;  %6253 = vst.msk [vmem:[#allocation2 + $0x1e0] sm:$0xff] %vm6192_vm2, %v6121_v11 }
 0x818   :  { %6254 = vst.msk [vmem:[#allocation2 + $0x1e8] sm:$0xff] %vm6192_vm2, %v6123_v26  ;;  %6789 = vrot.lane.b32.xlu0 %v6652_v15, %s10126_s12  ;;  %v6665_v15 = vld [vmem:[#allocation3 + $0x138] sm:$0xff] }
 0x819   :  { %7172 = vrot.lane.b32.xlu1 %v15070_v40, %s10127_s18  ;;  %v6653_v40 = vld [vmem:[#allocation3 + $0xa8] sm:$0xff] }
 0x81a   :  { %v6125_v44 = vpop.permute.xlu0 %6124 }
 0x81b   :  { %v6127_v24 = vpop.permute.xlu1 %6126  ;;  %6255 = vst.msk [vmem:[#allocation2 + $0x1f0] sm:$0xff] %vm6192_vm2, %v6125_v44 }
 0x81c   :  { %6256 = vst.msk [vmem:[#allocation2 + $0x1f8] sm:$0xff] %vm6192_vm2, %v6127_v24  ;;  %7174 = vrot.lane.b32.xlu0 %v15073_v2, %s10127_s18  ;;  %v6654_v2 = vld [vmem:[#allocation3 + $0xb0] sm:$0xff] }
 0x81d   :  { %7557 = vrot.lane.b32.xlu1 %v15252_v60, %s10128_s27 }
 0x81e   :  { %v6386_v18 = vpop.permute.xlu0 %6385 }
 0x81f   :  { %v6388_v5 = vpop.permute.xlu1 %6387  ;;  %6578 = vst.msk [vmem:[#allocation2] sm:$0xff] %vm6577_vm3, %v6386_v18 }
 0x820   :  { %6579 = vst.msk [vmem:[#allocation2 + $0x8] sm:$0xff] %vm6577_vm3, %v6388_v5  ;;  %7559 = vrot.lane.b32.xlu0 %v15255_v28, %s10128_s27  ;;  %v7050_v5 = vld [vmem:[#allocation3 + $0x139] sm:$0xff] }
 0x821   :  { %6791 = vrot.lane.b32.xlu1 %v6653_v40, %s10126_s12 }
 0x822   :  { %v6390_v17 = vpop.permute.xlu0 %6389 }
 0x823   :  { %v6392_v46 = vpop.permute.xlu1 %6391  ;;  %6580 = vst.msk [vmem:[#allocation2 + $0x10] sm:$0xff] %vm6577_vm3, %v6390_v17 }
 0x824   :  { %6581 = vst.msk [vmem:[#allocation2 + $0x18] sm:$0xff] %vm6577_vm3, %v6392_v46  ;;  %6793 = vrot.lane.b32.xlu0 %v6654_v2, %s10126_s12  ;;  %v7051_v46 = vld [vmem:[#allocation3 + $0x141] sm:$0xff] }
 0x825   :  { %7176 = vrot.lane.b32.xlu1 %v15080_v59, %s10127_s18 }
 0x826   :  { %v6394_v60 = vpop.permute.xlu0 %6393 }
 0x827   :  { %v6396_v31 = vpop.permute.xlu1 %6395  ;;  %6582 = vst.msk [vmem:[#allocation2 + $0x20] sm:$0xff] %vm6577_vm3, %v6394_v60 }
 0x828   :  { %6583 = vst.msk [vmem:[#allocation2 + $0x28] sm:$0xff] %vm6577_vm3, %v6396_v31  ;;  %7178 = vrot.lane.b32.xlu0 %v15083_v6, %s10127_s18  ;;  %v6656_v6 = vld [vmem:[#allocation3 + $0xc8] sm:$0xff] }
 0x829   :  { %7561 = vrot.lane.b32.xlu1 %v15262_v48, %s10128_s27 }
 0x82a   :  { %v6398_v28 = vpop.permute.xlu0 %6397 }
 0x82b   :  { %v6400_v12 = vpop.permute.xlu1 %6399  ;;  %6584 = vst.msk [vmem:[#allocation2 + $0x30] sm:$0xff] %vm6577_vm3, %v6398_v28  ;;  %v6667_v28 = vld [vmem:[#allocation3 + $0x150] sm:$0xff] }
 0x82c   :  { %6585 = vst.msk [vmem:[#allocation2 + $0x38] sm:$0xff] %vm6577_vm3, %v6400_v12  ;;  %7563 = vrot.lane.b32.xlu0 %v15265_v43, %s10128_s27 }
 0x82d   :  { %6795 = vrot.lane.b32.xlu1 %v6655_v63, %s10126_s12 }
 0x82e   :  { %v6402_v59 = vpop.permute.xlu0 %6401 }
 0x82f   :  { %v6404_v9 = vpop.permute.xlu1 %6403  ;;  %6586 = vst.msk [vmem:[#allocation2 + $0x40] sm:$0xff] %vm6577_vm3, %v6402_v59 }
 0x830   :  { %6587 = vst.msk [vmem:[#allocation2 + $0x48] sm:$0xff] %vm6577_vm3, %v6404_v9  ;;  %6797 = vrot.lane.b32.xlu0 %v6656_v6, %s10126_s12  ;;  %v7052_v9 = vld [vmem:[#allocation3 + $0x151] sm:$0xff] }
 0x831   :  { %7180 = vrot.lane.b32.xlu1 %v15090_v52, %s10127_s18 }
 0x832   :  { %v6406_v48 = vpop.permute.xlu0 %6405 }
 0x833   :  { %v6408_v32 = vpop.permute.xlu1 %6407  ;;  %6588 = vst.msk [vmem:[#allocation2 + $0x50] sm:$0xff] %vm6577_vm3, %v6406_v48 }
 0x834   :  { %6589 = vst.msk [vmem:[#allocation2 + $0x58] sm:$0xff] %vm6577_vm3, %v6408_v32  ;;  %7182 = vrot.lane.b32.xlu0 %v15093_v39, %s10127_s18  ;;  %v6658_v39 = vld [vmem:[#allocation3 + $0xe0] sm:$0xff] }
 0x835   :  { %7565 = vrot.lane.b32.xlu1 %v15272_v37, %s10128_s27 }
 0x836   :  { %v6410_v43 = vpop.permute.xlu0 %6409 }
 0x837   :  { %v6412_v55 = vpop.permute.xlu1 %6411  ;;  %6590 = vst.msk [vmem:[#allocation2 + $0x60] sm:$0xff] %vm6577_vm3, %v6410_v43 }
 0x838   :  { %6591 = vst.msk [vmem:[#allocation2 + $0x68] sm:$0xff] %vm6577_vm3, %v6412_v55  ;;  %7567 = vrot.lane.b32.xlu0 %v15275_v29, %s10128_s27 }
 0x839   :  { %6799 = vrot.lane.b32.xlu1 %v6657_v51, %s10126_s12  ;;  %v6669_v51 = vld [vmem:[#allocation3 + $0x168] sm:$0xff] }
 0x83a   :  { %v6414_v52 = vpop.permute.xlu0 %6413 }
 0x83b   :  { %v6416_v57 = vpop.permute.xlu1 %6415  ;;  %6592 = vst.msk [vmem:[#allocation2 + $0x70] sm:$0xff] %vm6577_vm3, %v6414_v52 }
 0x83c   :  { %6593 = vst.msk [vmem:[#allocation2 + $0x78] sm:$0xff] %vm6577_vm3, %v6416_v57  ;;  %6801 = vrot.lane.b32.xlu0 %v6658_v39, %s10126_s12 }
 0x83d   :  { %7184 = vrot.lane.b32.xlu1 %v15100_v30, %s10127_s18 }
 0x83e   :  { %v6418_v37 = vpop.permute.xlu0 %6417 }
 0x83f   :  { %v6420_v49 = vpop.permute.xlu1 %6419  ;;  %6594 = vst.msk [vmem:[#allocation2 + $0x80] sm:$0xff] %vm6577_vm3, %v6418_v37  ;;  %v7054_v37 = vld [vmem:[#allocation3 + $0x169] sm:$0xff] }
 0x840   :  { %6595 = vst.msk [vmem:[#allocation2 + $0x88] sm:$0xff] %vm6577_vm3, %v6420_v49  ;;  %7186 = vrot.lane.b32.xlu0 %v15103_v36, %s10127_s18  ;;  %v6660_v36 = vld [vmem:[#allocation3 + $0xf8] sm:$0xff] }
 0x841   :  { %7569 = vrot.lane.b32.xlu1 %v15282_v7, %s10128_s27 }
 0x842   :  { %v6422_v29 = vpop.permute.xlu0 %6421 }
 0x843   :  { %v6424_v47 = vpop.permute.xlu1 %6423  ;;  %6596 = vst.msk [vmem:[#allocation2 + $0x90] sm:$0xff] %vm6577_vm3, %v6422_v29 }
 0x844   :  { %6597 = vst.msk [vmem:[#allocation2 + $0x98] sm:$0xff] %vm6577_vm3, %v6424_v47  ;;  %7571 = vrot.lane.b32.xlu0 %v15285_v20, %s10128_s27 }
 0x845   :  { %6803 = vrot.lane.b32.xlu1 %v6659_v0, %s10126_s12 }
 0x846   :  { %v6426_v30 = vpop.permute.xlu0 %6425 }
 0x847   :  { %v6428_v21 = vpop.permute.xlu1 %6427  ;;  %6598 = vst.msk [vmem:[#allocation2 + $0xa0] sm:$0xff] %vm6577_vm3, %v6426_v30 }
 0x848   :  { %6599 = vst.msk [vmem:[#allocation2 + $0xa8] sm:$0xff] %vm6577_vm3, %v6428_v21  ;;  %6805 = vrot.lane.b32.xlu0 %v6660_v36, %s10126_s12  ;;  %v6286_v21 = vld [vmem:[#allocation3 + $0x172] sm:$0xff] }
 0x849   :  { %7188 = vrot.lane.b32.xlu1 %v15110_v58, %s10127_s18 }
 0x84a   :  { %v6430_v7 = vpop.permute.xlu0 %6429 }
 0x84b   :  { %v6432_v41 = vpop.permute.xlu1 %6431  ;;  %6600 = vst.msk [vmem:[#allocation2 + $0xb0] sm:$0xff] %vm6577_vm3, %v6430_v7 }
 0x84c   :  { %6601 = vst.msk [vmem:[#allocation2 + $0xb8] sm:$0xff] %vm6577_vm3, %v6432_v41  ;;  %7190 = vrot.lane.b32.xlu0 %v15113_v23, %s10127_s18  ;;  %v6662_v23 = vld [vmem:[#allocation3 + $0x110] sm:$0xff] }
 0x84d   :  { %7573 = vrot.lane.b32.xlu1 %v15292_v4, %s10128_s27  ;;  %v7046_v4 = vld [vmem:[#allocation3 + $0x109] sm:$0xff] }
 0x84e   :  { %v6434_v20 = vpop.permute.xlu0 %6433 }
 0x84f   :  { %v6436_v19 = vpop.permute.xlu1 %6435  ;;  %6602 = vst.msk [vmem:[#allocation2 + $0xc0] sm:$0xff] %vm6577_vm3, %v6434_v20  ;;  %v6672_v20 = vld [vmem:[#allocation3 + $0x188] sm:$0xff] }
 0x850   :  { %6603 = vst.msk [vmem:[#allocation2 + $0xc8] sm:$0xff] %vm6577_vm3, %v6436_v19  ;;  %7575 = vrot.lane.b32.xlu0 %v15295_v10, %s10128_s27  ;;  %v7047_v10 = vld [vmem:[#allocation3 + $0x111] sm:$0xff] }
 0x851   :  { %6807 = vrot.lane.b32.xlu1 %v6661_v8, %s10126_s12 }
 0x852   :  { %v6438_v58 = vpop.permute.xlu0 %6437 }
 0x853   :  { %v6440_v1 = vpop.permute.xlu1 %6439  ;;  %6604 = vst.msk [vmem:[#allocation2 + $0xd0] sm:$0xff] %vm6577_vm3, %v6438_v58  ;;  %v7056_v58 = vld [vmem:[#allocation3 + $0x181] sm:$0xff] }
 0x854   :  { %6605 = vst.msk [vmem:[#allocation2 + $0xd8] sm:$0xff] %vm6577_vm3, %v6440_v1  ;;  %6809 = vrot.lane.b32.xlu0 %v6662_v23, %s10126_s12  ;;  %v7057_v1 = vld [vmem:[#allocation3 + $0x189] sm:$0xff] }
 0x855   :  { %7192 = vrot.lane.b32.xlu1 %v7046_v4, %s10127_s18 }
 0x856   :  { %v6442_v53 = vpop.permute.xlu0 %6441 }
 0x857   :  { %v6772_v50 = vpop.permute.xlu1 %6771  ;;  %6606 = vst.msk [vmem:[#allocation2 + $0xe0] sm:$0xff] %vm6577_vm3, %v6442_v53 }
 0x858   :  { %6964 = vst.msk [vmem:[#allocation2] sm:$0xff] %vm6963_vm4, %v6772_v50  ;;  %7194 = vrot.lane.b32.xlu0 %v7047_v10, %s10127_s18  ;;  %v6287_v50 = vld [vmem:[#allocation3 + $0x182] sm:$0xff] }
 0x859   :  { %7577 = vrot.lane.b32.xlu1 %v15302_v34, %s10128_s27  ;;  %v7048_v34 = vld [vmem:[#allocation3 + $0x121] sm:$0xff] }
 0x85a   :  { %v6774_v16 = vpop.permute.xlu0 %6773 }
 0x85b   :  { %v7157_v42 = vpop.permute.xlu1 %7156  ;;  %6965 = vst.msk [vmem:[#allocation2 + $0x8] sm:$0xff] %vm6963_vm4, %v6774_v16 }
 0x85c   :  { %7349 = vst.msk [vmem:[#allocation2] sm:$0xff] %vm7348_vm5, %v7157_v42  ;;  %7579 = vrot.lane.b32.xlu0 %v15305_v45, %s10128_s27  ;;  %v7049_v45 = vld [vmem:[#allocation3 + $0x129] sm:$0xff] }
 0x85d   :  { %6811 = vrot.lane.b32.xlu1 %v6663_v38, %s10126_s12  ;;  %v6288_v38 = vld [vmem:[#allocation3 + $0x18a] sm:$0xff] }
 0x85e   :  { %v6776_v61 = vpop.permute.xlu0 %6775 }
 0x85f   :  { %v7159_v27 = vpop.permute.xlu1 %7158  ;;  %6966 = vst.msk [vmem:[#allocation2 + $0x10] sm:$0xff] %vm6963_vm4, %v6776_v61  ;;  %v6673_v61 = vld [vmem:[#allocation3 + $0x198] sm:$0xff] }
 0x860   :  { %7350 = vst.msk [vmem:[#allocation2 + $0x8] sm:$0xff] %vm7348_vm5, %v7159_v27  ;;  %6813 = vrot.lane.b32.xlu0 %v6664_v33, %s10126_s12  ;;  %v6674_v33 = vld [vmem:[#allocation3 + $0x1a0] sm:$0xff] }
 0x861   :  { %7196 = vrot.lane.b32.xlu1 %v7048_v34, %s10127_s18 }
 0x862   :  { %v7542_v14 = vpop.permute.xlu0 %7541 }
 0x863   :  { %v6778_v56 = vpop.permute.xlu1 %6777  ;;  %7734 = vst.msk [vmem:[#allocation2] sm:$0xff] %vm7733_vm6, %v7542_v14  ;;  %v7058_v14 = vld [vmem:[#allocation3 + $0x199] sm:$0xff] }
 0x864   :  { %6967 = vst.msk [vmem:[#allocation2 + $0x18] sm:$0xff] %vm6963_vm4, %v6778_v56  ;;  %7198 = vrot.lane.b32.xlu0 %v7049_v45, %s10127_s18  ;;  %v7059_v45 = vld [vmem:[#allocation3 + $0x1a1] sm:$0xff] }
 0x865   :  { %7581 = vrot.lane.b32.xlu1 %v15312_v3, %s10128_s27  ;;  %v6666_v3 = vld [vmem:[#allocation3 + $0x140] sm:$0xff] }
 0x866   :  { %v7161_v11 = vpop.permute.xlu0 %7160 }
 0x867   :  { %v7544_v26 = vpop.permute.xlu1 %7543  ;;  %7351 = vst.msk [vmem:[#allocation2 + $0x10] sm:$0xff] %vm7348_vm5, %v7161_v11 }
 0x868   :  { %7735 = vst.msk [vmem:[#allocation2 + $0x8] sm:$0xff] %vm7733_vm6, %v7544_v26  ;;  %7583 = vrot.lane.b32.xlu0 %v15315_v22, %s10128_s27 }
 0x869   :  { %6815 = vrot.lane.b32.xlu1 %v6665_v15, %s10126_s12  ;;  %v7443_v15 = vld [vmem:[#allocation3 + $0x19a] sm:$0xff] }
 0x86a   :  { %v7163_v44 = vpop.permute.xlu0 %7162  ;;  %v7798_v24 = vld [vmem:[#allocation2] sm:$0xff] }
 0x86b   :  { %v7546_v18 = vpop.permute.xlu1 %7545  ;;  %7352 = vst.msk [vmem:[#allocation2 + $0x18] sm:$0xff] %vm7348_vm5, %v7163_v44  ;;  %9969 = vmatprep.mubr.msk.f32.mxu0 %vm7871_vm7, %v7798_v24 }
 0x86c   :  { %7736 = vst.msk [vmem:[#allocation2 + $0x10] sm:$0xff] %vm7733_vm6, %v7546_v18  ;;  %6817 = vrot.lane.b32.xlu0 %v6666_v3, %s10126_s12  ;;  %v6289_v3 = vld [vmem:[#allocation3 + $0x1ca] sm:$0xff] }
 0x86d   :  { %7200 = vrot.lane.b32.xlu1 %v7050_v5, %s10127_s18  ;;  %v7444_v5 = vld [vmem:[#allocation3 + $0x1a2] sm:$0xff] }
 0x86e   :  { %v7548_v40 = vpop.permute.xlu0 %7547 }
 0x86f   :  { %v6780_v22 = vpop.permute.xlu1 %6779  ;;  %7737 = vst.msk [vmem:[#allocation2 + $0x18] sm:$0xff] %vm7733_vm6, %v7548_v40  ;;  %v7799_v17 = vld [vmem:[#allocation2 + $0x8] sm:$0xff] }
 0x870   :  { %6968 = vst.msk [vmem:[#allocation2 + $0x20] sm:$0xff] %vm6963_vm4, %v6780_v22  ;;  %9970 = vmatmul.mubr.msk.f32.vlgmr.msra.gmra.mrb[64].mxu0 %vm7871_vm7, %v7799_v17  ;;  %7202 = vrot.lane.b32.xlu0 %v7051_v46, %s10127_s18  ;;  %v6290_v17 = vld [vmem:[#allocation3 + $0x1d2] sm:$0xff] }
 0x871   :  { %7585 = vrot.lane.b32.xlu1 %v15322_v54, %s10128_s27  ;;  %v6668_v54 = vld [vmem:[#allocation3 + $0x158] sm:$0xff] }
 0x872   :  { %v6782_v2 = vpop.permute.xlu0 %6781 }
 0x873   :  { %v7165_v60 = vpop.permute.xlu1 %7164  ;;  %6969 = vst.msk [vmem:[#allocation2 + $0x28] sm:$0xff] %vm6963_vm4, %v6782_v2  ;;  %v7800_v31 = vld [vmem:[#allocation2 + $0x10] sm:$0xff] }
 0x874   :  { %7353 = vst.msk [vmem:[#allocation2 + $0x20] sm:$0xff] %vm7348_vm5, %v7165_v60  ;;  %9972 = vmatprep.mubr.msk.f32.mxu1 %vm7871_vm7, %v7800_v31  ;;  %7587 = vrot.lane.b32.xlu0 %v15325_v13, %s10128_s27  ;;  %v7053_v13 = vld [vmem:[#allocation3 + $0x159] sm:$0xff] }
 0x875   :  { %6819 = vrot.lane.b32.xlu1 %v6667_v28, %s10126_s12  ;;  %v6675_v31 = vld [vmem:[#allocation3 + $0x1e0] sm:$0xff]  ;;  %v6676_v28 = vld [vmem:[#allocation3 + $0x1e8] sm:$0xff] }
 0x876   :  { %v7167_v12 = vpop.permute.xlu0 %7166  ;;  %v7801_v63 = vld [vmem:[#allocation2 + $0x18] sm:$0xff] }
 0x877   :  { %v7550_v59 = vpop.permute.xlu1 %7549  ;;  %7354 = vst.msk [vmem:[#allocation2 + $0x28] sm:$0xff] %vm7348_vm5, %v7167_v12  ;;  %9973 = vmatmul.mubr.msk.f32.vlgmr.msra.gmra.mrb[0].mxu1 %vm7871_vm7, %v7801_v63 }
 0x878   :  { %7738 = vst.msk [vmem:[#allocation2 + $0x20] sm:$0xff] %vm7733_vm6, %v7550_v59  ;;  %6821 = vrot.lane.b32.xlu0 %v6668_v54, %s10126_s12  ;;  %v7060_v54 = vld [vmem:[#allocation3 + $0x1e1] sm:$0xff] }
 0x879   :  { %7204 = vrot.lane.b32.xlu1 %v7052_v9, %s10127_s18  ;;  %v7061_v9 = vld [vmem:[#allocation3 + $0x1e9] sm:$0xff] }
 0x87a   :  { %v7552_v6 = vpop.permute.xlu0 %7551 }
 0x87b   :  { %v6784_v48 = vpop.permute.xlu1 %6783  ;;  %7739 = vst.msk [vmem:[#allocation2 + $0x28] sm:$0xff] %vm7733_vm6, %v7552_v6 }
 0x87c   :  { %6970 = vst.msk [vmem:[#allocation2 + $0x30] sm:$0xff] %vm6963_vm4, %v6784_v48  ;;  %7206 = vrot.lane.b32.xlu0 %v7053_v13, %s10127_s18  ;;  %v6291_v13 = vld [vmem:[#allocation3 + $0x1e2] sm:$0xff] }
 0x87d   :  { %7589 = vrot.lane.b32.xlu1 %v15338_v62, %s10128_s27  ;;  %v6670_v62 = vld [vmem:[#allocation3 + $0x170] sm:$0xff] }
 0x87e   :  { %v6786_v32 = vpop.permute.xlu0 %6785 }
 0x87f   :  { %v7169_v43 = vpop.permute.xlu1 %7168  ;;  %6971 = vst.msk [vmem:[#allocation2 + $0x38] sm:$0xff] %vm6963_vm4, %v6786_v32  ;;  %v7802_v55 = vld [vmem:[#allocation2 + $0x20] sm:$0xff] }
 0x880   :  { %7355 = vst.msk [vmem:[#allocation2 + $0x30] sm:$0xff] %vm7348_vm5, %v7169_v43  ;;  %9975 = vmatprep.mubr.msk.f32.mxu1 %vm7871_vm7, %v7802_v55  ;;  %7591 = vrot.lane.b32.xlu0 %v15341_v35, %s10128_s27  ;;  %v7055_v35 = vld [vmem:[#allocation3 + $0x171] sm:$0xff] }
 0x881   :  { %6823 = vrot.lane.b32.xlu1 %v6669_v51, %s10126_s12  ;;  %v6292_v51 = vld [vmem:[#allocation3 + $0x1ea] sm:$0xff] }
 0x882   :  { %v7171_v52 = vpop.permute.xlu0 %7170  ;;  %v7803_v57 = vld [vmem:[#allocation2 + $0x28] sm:$0xff] }
 0x883   :  { %v7554_v39 = vpop.permute.xlu1 %7553  ;;  %7356 = vst.msk [vmem:[#allocation2 + $0x38] sm:$0xff] %vm7348_vm5, %v7171_v52  ;;  %9976 = vmatmul.mubr.msk.f32.gmra.mrb[2].mxu1 %vm7871_vm7, %v7803_v57 }
 0x884   :  { %7740 = vst.msk [vmem:[#allocation2 + $0x30] sm:$0xff] %vm7733_vm6, %v7554_v39  ;;  %6825 = vrot.lane.b32.xlu0 %v6670_v62, %s10126_s12  ;;  %v6677_v62 = vld [vmem:[#allocation3 + $0x1f8] sm:$0xff] }
 0x885   :  { %7208 = vrot.lane.b32.xlu1 %v7054_v37, %s10127_s18  ;;  %v6678_v37 = vld [vmem:[#allocation3 + $0x200] sm:$0xff] }
 0x886   :  { %v7556_v49 = vpop.permute.xlu0 %7555 }
 0x887   :  { %v6788_v29 = vpop.permute.xlu1 %6787  ;;  %7741 = vst.msk [vmem:[#allocation2 + $0x38] sm:$0xff] %vm7733_vm6, %v7556_v49 }
 0x888   :  { %6972 = vst.msk [vmem:[#allocation2 + $0x40] sm:$0xff] %vm6963_vm4, %v6788_v29  ;;  %7210 = vrot.lane.b32.xlu0 %v7055_v35, %s10127_s18  ;;  %v7062_v35 = vld [vmem:[#allocation3 + $0x1f9] sm:$0xff] }
 0x889   :  { %7593 = vrot.lane.b32.xlu1 %v15354_v25, %s10128_s27  ;;  %v6671_v25 = vld [vmem:[#allocation3 + $0x180] sm:$0xff] }
 0x88a   :  { %v6790_v47 = vpop.permute.xlu0 %6789 }
 0x88b   :  { %v7173_v0 = vpop.permute.xlu1 %7172  ;;  %6973 = vst.msk [vmem:[#allocation2 + $0x48] sm:$0xff] %vm6963_vm4, %v6790_v47  ;;  %v7804_v30 = vld [vmem:[#allocation2 + $0x30] sm:$0xff]  ;;  %v7063_v47 = vld [vmem:[#allocation3 + $0x201] sm:$0xff] }
 0x88c   :  { %7357 = vst.msk [vmem:[#allocation2 + $0x40] sm:$0xff] %vm7348_vm5, %v7173_v0  ;;  %9978 = vmatprep.mubr.msk.f32.mxu1 %vm7871_vm7, %v7804_v30  ;;  %7595 = vrot.lane.b32.xlu0 %v6286_v21, %s10128_s27 }
 0x88d   :  { %6443 = vrot.lane.b32.xlu1 %v6286_v21, %s10125_s3 }
 0x88e   :  { %v7175_v36 = vpop.permute.xlu0 %7174  ;;  %v7805_v7 = vld [vmem:[#allocation2 + $0x38] sm:$0xff] }
 0x88f   :  { %v7558_v41 = vpop.permute.xlu1 %7557  ;;  %7358 = vst.msk [vmem:[#allocation2 + $0x48] sm:$0xff] %vm7348_vm5, %v7175_v36  ;;  %9979 = vmatmul.mubr.msk.f32.gmra.mrb[4].mxu1 %vm7871_vm7, %v7805_v7  ;;  %v6293_v36 = vld [vmem:[#allocation3 + $0x1fa] sm:$0xff] }
 0x890   :  { %7742 = vst.msk [vmem:[#allocation2 + $0x40] sm:$0xff] %vm7733_vm6, %v7558_v41  ;;  %6827 = vrot.lane.b32.xlu0 %v6671_v25, %s10126_s12 }
 0x891   :  { %6829 = vrot.lane.b32.xlu1 %v6672_v20, %s10126_s12  ;;  %v6294_v20 = vld [vmem:[#allocation3 + $0x202] sm:$0xff] }
 0x892   :  { %v7560_v19 = vpop.permute.xlu0 %7559 }
 0x893   :  { %v6792_v8 = vpop.permute.xlu1 %6791  ;;  %7743 = vst.msk [vmem:[#allocation2 + $0x48] sm:$0xff] %vm7733_vm6, %v7560_v19 }
 0x894   :  { %6974 = vst.msk [vmem:[#allocation2 + $0x50] sm:$0xff] %vm6963_vm4, %v6792_v8  ;;  %7212 = vrot.lane.b32.xlu0 %v7056_v58, %s10127_s18  ;;  %v6679_v58 = vld [vmem:[#allocation3 + $0x210] sm:$0xff] }
 0x895   :  { %7214 = vrot.lane.b32.xlu1 %v7057_v1, %s10127_s18  ;;  %v6680_v1 = vld [vmem:[#allocation3 + $0x218] sm:$0xff] }
 0x896   :  { %v6794_v23 = vpop.permute.xlu0 %6793 }
 0x897   :  { %v7177_v4 = vpop.permute.xlu1 %7176  ;;  %6975 = vst.msk [vmem:[#allocation2 + $0x58] sm:$0xff] %vm6963_vm4, %v6794_v23  ;;  %v7806_v53 = vld [vmem:[#allocation2 + $0x40] sm:$0xff] }
 0x898   :  { %7359 = vst.msk [vmem:[#allocation2 + $0x50] sm:$0xff] %vm7348_vm5, %v7177_v4  ;;  %9981 = vmatprep.mubr.msk.f32.mxu1 %vm7871_vm7, %v7806_v53  ;;  %7597 = vrot.lane.b32.xlu0 %v6287_v50, %s10128_s27 }
 0x899   :  { %6445 = vrot.lane.b32.xlu1 %v6287_v50, %s10125_s3  ;;  %v7064_v50 = vld [vmem:[#allocation3 + $0x211] sm:$0xff] }
 0x89a   :  { %v7179_v10 = vpop.permute.xlu0 %7178  ;;  %v7807_v16 = vld [vmem:[#allocation2 + $0x48] sm:$0xff] }
 0x89b   :  { %v7562_v42 = vpop.permute.xlu1 %7561  ;;  %7360 = vst.msk [vmem:[#allocation2 + $0x58] sm:$0xff] %vm7348_vm5, %v7179_v10  ;;  %9982 = vmatmul.mubr.msk.f32.gmra.mrb[6].mxu1 %vm7871_vm7, %v7807_v16  ;;  %v7065_v10 = vld [vmem:[#allocation3 + $0x219] sm:$0xff] }
 0x89c   :  { %7744 = vst.msk [vmem:[#allocation2 + $0x50] sm:$0xff] %vm7733_vm6, %v7562_v42  ;;  %7599 = vrot.lane.b32.xlu0 %v6288_v38, %s10128_s27 }
 0x89d   :  { %6447 = vrot.lane.b32.xlu1 %v6288_v38, %s10125_s3 }
 0x89e   :  { %v7564_v27 = vpop.permute.xlu0 %7563 }
 0x89f   :  { %v6796_v34 = vpop.permute.xlu1 %6795  ;;  %7745 = vst.msk [vmem:[#allocation2 + $0x58] sm:$0xff] %vm7733_vm6, %v7564_v27 }
 0x8a0   :  { %6976 = vst.msk [vmem:[#allocation2 + $0x60] sm:$0xff] %vm6963_vm4, %v6796_v34  ;;  %6831 = vrot.lane.b32.xlu0 %v6673_v61, %s10126_s12  ;;  %v6295_v61 = vld [vmem:[#allocation3 + $0x212] sm:$0xff]  ;;  %v6296_v34 = vld [vmem:[#allocation3 + $0x21a] sm:$0xff] }
 0x8a1   :  { %6833 = vrot.lane.b32.xlu1 %v6674_v33, %s10126_s12 }
 0x8a2   :  { %v6798_v56 = vpop.permute.xlu0 %6797 }
 0x8a3   :  { %v7181_v11 = vpop.permute.xlu1 %7180  ;;  %6977 = vst.msk [vmem:[#allocation2 + $0x68] sm:$0xff] %vm6963_vm4, %v6798_v56  ;;  %v7808_v26 = vld [vmem:[#allocation2 + $0x50] sm:$0xff] }
 0x8a4   :  { %7361 = vst.msk [vmem:[#allocation2 + $0x60] sm:$0xff] %vm7348_vm5, %v7181_v11  ;;  %9984 = vmatprep.mubr.msk.f32.mxu1 %vm7871_vm7, %v7808_v26  ;;  %7216 = vrot.lane.b32.xlu0 %v7058_v14, %s10127_s18  ;;  %v6681_v11 = vld [vmem:[#allocation3 + $0x228] sm:$0xff]  ;;  %v6682_v26 = vld [vmem:[#allocation3 + $0x230] sm:$0xff] }
 0x8a5   :  { %7218 = vrot.lane.b32.xlu1 %v7059_v45, %s10127_s18 }
 0x8a6   :  { %v7183_v44 = vpop.permute.xlu0 %7182  ;;  %v7809_v24 = vld [vmem:[#allocation2 + $0x58] sm:$0xff] }
 0x8a7   :  { %v7566_v18 = vpop.permute.xlu1 %7565  ;;  %7362 = vst.msk [vmem:[#allocation2 + $0x68] sm:$0xff] %vm7348_vm5, %v7183_v44  ;;  %9985 = vmatmul.mubr.msk.f32.gmra.mrb[8].mxu1 %vm7871_vm7, %v7809_v24 }
 0x8a8   :  { %7746 = vst.msk [vmem:[#allocation2 + $0x60] sm:$0xff] %vm7733_vm6, %v7566_v18  ;;  %7601 = vrot.lane.b32.xlu0 %v7443_v15, %s10128_s27  ;;  %v7066_v18 = vld [vmem:[#allocation3 + $0x229] sm:$0xff] }
 0x8a9   :  { %6449 = vrot.lane.b32.xlu1 %v6289_v3, %s10125_s3  ;;  %v7067_v3 = vld [vmem:[#allocation3 + $0x231] sm:$0xff] }
 0x8aa   :  { %v7568_v40 = vpop.permute.xlu0 %7567 }
 0x8ab   :  { %v6800_v22 = vpop.permute.xlu1 %6799  ;;  %7747 = vst.msk [vmem:[#allocation2 + $0x68] sm:$0xff] %vm7733_vm6, %v7568_v40 }
 0x8ac   :  { %6978 = vst.msk [vmem:[#allocation2 + $0x70] sm:$0xff] %vm6963_vm4, %v6800_v22  ;;  %7603 = vrot.lane.b32.xlu0 %v7444_v5, %s10128_s27  ;;  %v6297_v22 = vld [vmem:[#allocation3 + $0x22a] sm:$0xff] }
 0x8ad   :  { %6451 = vrot.lane.b32.xlu1 %v6290_v17, %s10125_s3 }
 0x8ae   :  { %v6802_v46 = vpop.permute.xlu0 %6801 }
 0x8af   :  { %v7185_v2 = vpop.permute.xlu1 %7184  ;;  %6979 = vst.msk [vmem:[#allocation2 + $0x78] sm:$0xff] %vm6963_vm4, %v6802_v46  ;;  %v7810_v60 = vld [vmem:[#allocation2 + $0x60] sm:$0xff] }
 0x8b0   :  { %7363 = vst.msk [vmem:[#allocation2 + $0x70] sm:$0xff] %vm7348_vm5, %v7185_v2  ;;  %9987 = vmatprep.mubr.msk.f32.mxu1 %vm7871_vm7, %v7810_v60  ;;  %6835 = vrot.lane.b32.xlu0 %v6675_v31, %s10126_s12  ;;  %v6298_v60 = vld [vmem:[#allocation3 + $0x232] sm:$0xff] }
 0x8b1   :  { %6837 = vrot.lane.b32.xlu1 %v6676_v28, %s10126_s12 }
 0x8b2   :  { %v7187_v12 = vpop.permute.xlu0 %7186  ;;  %v7811_v63 = vld [vmem:[#allocation2 + $0x68] sm:$0xff] }
 0x8b3   :  { %v7570_v59 = vpop.permute.xlu1 %7569  ;;  %7364 = vst.msk [vmem:[#allocation2 + $0x78] sm:$0xff] %vm7348_vm5, %v7187_v12  ;;  %9988 = vmatmul.mubr.msk.f32.gmra.mrb[10].mxu1 %vm7871_vm7, %v7811_v63  ;;  %v6683_v63 = vld [vmem:[#allocation3 + $0x240] sm:$0xff] }
 0x8b4   :  { %7748 = vst.msk [vmem:[#allocation2 + $0x70] sm:$0xff] %vm7733_vm6, %v7570_v59  ;;  %7220 = vrot.lane.b32.xlu0 %v7060_v54, %s10127_s18  ;;  %v6684_v59 = vld [vmem:[#allocation3 + $0x248] sm:$0xff] }
 0x8b5   :  { %7222 = vrot.lane.b32.xlu1 %v7061_v9, %s10127_s18 }
 0x8b6   :  { %v7572_v6 = vpop.permute.xlu0 %7571 }
 0x8b7   :  { %v6804_v48 = vpop.permute.xlu1 %6803  ;;  %7749 = vst.msk [vmem:[#allocation2 + $0x78] sm:$0xff] %vm7733_vm6, %v7572_v6  ;;  %v7068_v6 = vld [vmem:[#allocation3 + $0x241] sm:$0xff] }
 0x8b8   :  { %6980 = vst.msk [vmem:[#allocation2 + $0x80] sm:$0xff] %vm6963_vm4, %v6804_v48  ;;  %7605 = vrot.lane.b32.xlu0 %v6291_v13, %s10128_s27  ;;  %v7069_v48 = vld [vmem:[#allocation3 + $0x249] sm:$0xff] }
 0x8b9   :  { %6453 = vrot.lane.b32.xlu1 %v6291_v13, %s10125_s3 }
 0x8ba   :  { %v6806_v32 = vpop.permute.xlu0 %6805 }
 0x8bb   :  { %v7189_v43 = vpop.permute.xlu1 %7188  ;;  %6981 = vst.msk [vmem:[#allocation2 + $0x88] sm:$0xff] %vm6963_vm4, %v6806_v32  ;;  %v7812_v55 = vld [vmem:[#allocation2 + $0x70] sm:$0xff] }
 0x8bc   :  { %7365 = vst.msk [vmem:[#allocation2 + $0x80] sm:$0xff] %vm7348_vm5, %v7189_v43  ;;  %9990 = vmatprep.mubr.msk.f32.mxu1 %vm7871_vm7, %v7812_v55  ;;  %7607 = vrot.lane.b32.xlu0 %v6292_v51, %s10128_s27  ;;  %v6299_v55 = vld [vmem:[#allocation3 + $0x242] sm:$0xff] }
 0x8bd   :  { %6455 = vrot.lane.b32.xlu1 %v6292_v51, %s10125_s3 }
 0x8be   :  { %v7191_v52 = vpop.permute.xlu0 %7190  ;;  %v7813_v57 = vld [vmem:[#allocation2 + $0x78] sm:$0xff] }
 0x8bf   :  { %v7574_v39 = vpop.permute.xlu1 %7573  ;;  %7366 = vst.msk [vmem:[#allocation2 + $0x88] sm:$0xff] %vm7348_vm5, %v7191_v52  ;;  %9991 = vmatmul.mubr.msk.f32.gmra.mrb[12].mxu1 %vm7871_vm7, %v7813_v57 }
 0x8c0   :  { %7750 = vst.msk [vmem:[#allocation2 + $0x80] sm:$0xff] %vm7733_vm6, %v7574_v39  ;;  %6839 = vrot.lane.b32.xlu0 %v6677_v62, %s10126_s12  ;;  %v6300_v39 = vld [vmem:[#allocation3 + $0x24a] sm:$0xff] }
 0x8c1   :  { %6841 = vrot.lane.b32.xlu1 %v6678_v37, %s10126_s12 }
 0x8c2   :  { %v7576_v49 = vpop.permute.xlu0 %7575 }
 0x8c3   :  { %v6808_v29 = vpop.permute.xlu1 %6807  ;;  %7751 = vst.msk [vmem:[#allocation2 + $0x88] sm:$0xff] %vm7733_vm6, %v7576_v49  ;;  %v6685_v49 = vld [vmem:[#allocation3 + $0x258] sm:$0xff] }
 0x8c4   :  { %6982 = vst.msk [vmem:[#allocation2 + $0x90] sm:$0xff] %vm6963_vm4, %v6808_v29  ;;  %7224 = vrot.lane.b32.xlu0 %v7062_v35, %s10127_s18  ;;  %v6686_v29 = vld [vmem:[#allocation3 + $0x260] sm:$0xff] }
 0x8c5   :  { %7226 = vrot.lane.b32.xlu1 %v7063_v47, %s10127_s18 }
 0x8c6   :  { %v6810_v0 = vpop.permute.xlu0 %6809 }
 0x8c7   :  { %v7193_v30 = vpop.permute.xlu1 %7192  ;;  %6983 = vst.msk [vmem:[#allocation2 + $0x98] sm:$0xff] %vm6963_vm4, %v6810_v0  ;;  %v7814_v21 = vld [vmem:[#allocation2 + $0x80] sm:$0xff] }
 0x8c8   :  { %7367 = vst.msk [vmem:[#allocation2 + $0x90] sm:$0xff] %vm7348_vm5, %v7193_v30  ;;  %9993 = vmatprep.mubr.msk.f32.mxu1 %vm7871_vm7, %v7814_v21  ;;  %7609 = vrot.lane.b32.xlu0 %v6293_v36, %s10128_s27  ;;  %v7070_v30 = vld [vmem:[#allocation3 + $0x259] sm:$0xff]  ;;  %v7071_v21 = vld [vmem:[#allocation3 + $0x261] sm:$0xff] }
 0x8c9   :  { %6457 = vrot.lane.b32.xlu1 %v6293_v36, %s10125_s3 }
 0x8ca   :  { %v7195_v7 = vpop.permute.xlu0 %7194  ;;  %v7815_v41 = vld [vmem:[#allocation2 + $0x88] sm:$0xff] }
 0x8cb   :  { %v7578_v25 = vpop.permute.xlu1 %7577  ;;  %7368 = vst.msk [vmem:[#allocation2 + $0x98] sm:$0xff] %vm7348_vm5, %v7195_v7  ;;  %9994 = vmatmul.mubr.msk.f32.gmra.mrb[14].mxu1 %vm7871_vm7, %v7815_v41 }
 0x8cc   :  { %7752 = vst.msk [vmem:[#allocation2 + $0x90] sm:$0xff] %vm7733_vm6, %v7578_v25  ;;  %7611 = vrot.lane.b32.xlu0 %v6294_v20, %s10128_s27  ;;  %v6301_v25 = vld [vmem:[#allocation3 + $0x25a] sm:$0xff] }
 0x8cd   :  { %6459 = vrot.lane.b32.xlu1 %v6294_v20, %s10125_s3 }
 0x8ce   :  { %v7580_v19 = vpop.permute.xlu0 %7579 }
 0x8cf   :  { %v6812_v8 = vpop.permute.xlu1 %6811  ;;  %7753 = vst.msk [vmem:[#allocation2 + $0x98] sm:$0xff] %vm7733_vm6, %v7580_v19 }
 0x8d0   :  { %6984 = vst.msk [vmem:[#allocation2 + $0xa0] sm:$0xff] %vm6963_vm4, %v6812_v8  ;;  %6843 = vrot.lane.b32.xlu0 %v6679_v58, %s10126_s12  ;;  %v6302_v8 = vld [vmem:[#allocation3 + $0x262] sm:$0xff] }
 0x8d1   :  { %6845 = vrot.lane.b32.xlu1 %v6680_v1, %s10126_s12 }
 0x8d2   :  { %v6814_v23 = vpop.permute.xlu0 %6813 }
 0x8d3   :  { %v7197_v4 = vpop.permute.xlu1 %7196  ;;  %6985 = vst.msk [vmem:[#allocation2 + $0xa8] sm:$0xff] %vm6963_vm4, %v6814_v23  ;;  %v7816_v53 = vld [vmem:[#allocation2 + $0x90] sm:$0xff] }
 0x8d4   :  { %7369 = vst.msk [vmem:[#allocation2 + $0xa0] sm:$0xff] %vm7348_vm5, %v7197_v4  ;;  %9996 = vmatprep.mubr.msk.f32.mxu1 %vm7871_vm7, %v7816_v53  ;;  %7228 = vrot.lane.b32.xlu0 %v7064_v50, %s10127_s18  ;;  %v6687_v23 = vld [vmem:[#allocation3 + $0x270] sm:$0xff]  ;;  %v6688_v4 = vld [vmem:[#allocation3 + $0x278] sm:$0xff] }
 0x8d5   :  { %7230 = vrot.lane.b32.xlu1 %v7065_v10, %s10127_s18 }
 0x8d6   :  { %v7199_v16 = vpop.permute.xlu0 %7198  ;;  %v7817_v42 = vld [vmem:[#allocation2 + $0x98] sm:$0xff] }
 0x8d7   :  { %v7582_v38 = vpop.permute.xlu1 %7581  ;;  %7370 = vst.msk [vmem:[#allocation2 + $0xa8] sm:$0xff] %vm7348_vm5, %v7199_v16  ;;  %9997 = vmatmul.mubr.msk.f32.gmra.mrb[16].mxu1 %vm7871_vm7, %v7817_v42  ;;  %v7072_v16 = vld [vmem:[#allocation3 + $0x271] sm:$0xff]  ;;  %v7073_v42 = vld [vmem:[#allocation3 + $0x279] sm:$0xff] }
 0x8d8   :  { %7754 = vst.msk [vmem:[#allocation2 + $0xa0] sm:$0xff] %vm7733_vm6, %v7582_v38  ;;  %7613 = vrot.lane.b32.xlu0 %v6295_v61, %s10128_s27 }
 0x8d9   :  { %6461 = vrot.lane.b32.xlu1 %v6295_v61, %s10125_s3 }
 0x8da   :  { %v7584_v27 = vpop.permute.xlu0 %7583 }
 0x8db   :  { %v6816_v33 = vpop.permute.xlu1 %6815  ;;  %7755 = vst.msk [vmem:[#allocation2 + $0xa8] sm:$0xff] %vm7733_vm6, %v7584_v27 }
 0x8dc   :  { %6986 = vst.msk [vmem:[#allocation2 + $0xb0] sm:$0xff] %vm6963_vm4, %v6816_v33  ;;  %7615 = vrot.lane.b32.xlu0 %v6296_v34, %s10128_s27  ;;  %v6303_v33 = vld [vmem:[#allocation3 + $0x272] sm:$0xff] }
 0x8dd   :  { %6463 = vrot.lane.b32.xlu1 %v6296_v34, %s10125_s3 }
 0x8de   :  { %v6818_v14 = vpop.permute.xlu0 %6817 }
 0x8df   :  { %v7201_v56 = vpop.permute.xlu1 %7200  ;;  %6987 = vst.msk [vmem:[#allocation2 + $0xb8] sm:$0xff] %vm6963_vm4, %v6818_v14  ;;  %v7818_v45 = vld [vmem:[#allocation2 + $0xa0] sm:$0xff] }
 0x8e0   :  { %7371 = vst.msk [vmem:[#allocation2 + $0xb0] sm:$0xff] %vm7348_vm5, %v7201_v56  ;;  %9999 = vmatprep.mubr.msk.f32.mxu1 %vm7871_vm7, %v7818_v45  ;;  %6847 = vrot.lane.b32.xlu0 %v6681_v11, %s10126_s12  ;;  %v6304_v56 = vld [vmem:[#allocation3 + $0x27a] sm:$0xff] }
 0x8e1   :  { %6849 = vrot.lane.b32.xlu1 %v6682_v26, %s10126_s12  ;;  %v6689_v26 = vld [vmem:[#allocation3 + $0x288] sm:$0xff] }
 0x8e2   :  { %v7203_v15 = vpop.permute.xlu0 %7202  ;;  %v7819_v44 = vld [vmem:[#allocation2 + $0xa8] sm:$0xff] }
 0x8e3   :  { %v7586_v24 = vpop.permute.xlu1 %7585  ;;  %7372 = vst.msk [vmem:[#allocation2 + $0xb8] sm:$0xff] %vm7348_vm5, %v7203_v15  ;;  %10000 = vmatmul.mubr.msk.f32.gmra.mrb[18].mxu1 %vm7871_vm7, %v7819_v44  ;;  %v6690_v15 = vld [vmem:[#allocation3 + $0x290] sm:$0xff] }
 0x8e4   :  { %7756 = vst.msk [vmem:[#allocation2 + $0xb0] sm:$0xff] %vm7733_vm6, %v7586_v24  ;;  %7232 = vrot.lane.b32.xlu0 %v7066_v18, %s10127_s18 }
 0x8e5   :  { %7234 = vrot.lane.b32.xlu1 %v7067_v3, %s10127_s18  ;;  %v7074_v3 = vld [vmem:[#allocation3 + $0x289] sm:$0xff] }
 0x8e6   :  { %v7588_v5 = vpop.permute.xlu0 %7587 }
 0x8e7   :  { %v6820_v40 = vpop.permute.xlu1 %6819  ;;  %7757 = vst.msk [vmem:[#allocation2 + $0xb8] sm:$0xff] %vm7733_vm6, %v7588_v5  ;;  %v7075_v5 = vld [vmem:[#allocation3 + $0x291] sm:$0xff] }
 0x8e8   :  { %6988 = vst.msk [vmem:[#allocation2 + $0xc0] sm:$0xff] %vm6963_vm4, %v6820_v40  ;;  %7617 = vrot.lane.b32.xlu0 %v6297_v22, %s10128_s27 }
 0x8e9   :  { %6465 = vrot.lane.b32.xlu1 %v6297_v22, %s10125_s3 }
 0x8ea   :  { %v6822_v17 = vpop.permute.xlu0 %6821 }
 0x8eb   :  { %v7205_v46 = vpop.permute.xlu1 %7204  ;;  %6989 = vst.msk [vmem:[#allocation2 + $0xc8] sm:$0xff] %vm6963_vm4, %v6822_v17  ;;  %v7820_v2 = vld [vmem:[#allocation2 + $0xb0] sm:$0xff] }
 0x8ec   :  { %7373 = vst.msk [vmem:[#allocation2 + $0xc0] sm:$0xff] %vm7348_vm5, %v7205_v46  ;;  %10002 = vmatprep.mubr.msk.f32.mxu1 %vm7871_vm7, %v7820_v2  ;;  %7619 = vrot.lane.b32.xlu0 %v6298_v60, %s10128_s27  ;;  %v6305_v46 = vld [vmem:[#allocation3 + $0x28a] sm:$0xff] }
 0x8ed   :  { %6467 = vrot.lane.b32.xlu1 %v6298_v60, %s10125_s3 }
 0x8ee   :  { %v7207_v31 = vpop.permute.xlu0 %7206  ;;  %v7821_v28 = vld [vmem:[#allocation2 + $0xb8] sm:$0xff] }
 0x8ef   :  { %v7590_v12 = vpop.permute.xlu1 %7589  ;;  %7374 = vst.msk [vmem:[#allocation2 + $0xc8] sm:$0xff] %vm7348_vm5, %v7207_v31  ;;  %10003 = vmatmul.mubr.msk.f32.gmra.mrb[20].mxu1 %vm7871_vm7, %v7821_v28  ;;  %v6306_v31 = vld [vmem:[#allocation3 + $0x292] sm:$0xff] }
 0x8f0   :  { %7758 = vst.msk [vmem:[#allocation2 + $0xc0] sm:$0xff] %vm7733_vm6, %v7590_v12  ;;  %6851 = vrot.lane.b32.xlu0 %v6683_v63, %s10126_s12  ;;  %v6691_v63 = vld [vmem:[#allocation3 + $0x2a0] sm:$0xff] }
 0x8f1   :  { %6853 = vrot.lane.b32.xlu1 %v6684_v59, %s10126_s12  ;;  %v6692_v59 = vld [vmem:[#allocation3 + $0x2a8] sm:$0xff] }
 0x8f2   :  { %v7592_v54 = vpop.permute.xlu0 %7591 }
 0x8f3   :  { %v6824_v9 = vpop.permute.xlu1 %6823  ;;  %7759 = vst.msk [vmem:[#allocation2 + $0xc8] sm:$0xff] %vm7733_vm6, %v7592_v54 }
 0x8f4   :  { %6990 = vst.msk [vmem:[#allocation2 + $0xd0] sm:$0xff] %vm6963_vm4, %v6824_v9  ;;  %7236 = vrot.lane.b32.xlu0 %v7068_v6, %s10127_s18 }
 0x8f5   :  { %7238 = vrot.lane.b32.xlu1 %v7069_v48, %s10127_s18  ;;  %v7076_v48 = vld [vmem:[#allocation3 + $0x2a1] sm:$0xff] }
 0x8f6   :  { %v6826_v13 = vpop.permute.xlu0 %6825 }
 0x8f7   :  { %v7209_v32 = vpop.permute.xlu1 %7208  ;;  %6991 = vst.msk [vmem:[#allocation2 + $0xd8] sm:$0xff] %vm6963_vm4, %v6826_v13  ;;  %v7822_v43 = vld [vmem:[#allocation2 + $0xc0] sm:$0xff]  ;;  %v7077_v13 = vld [vmem:[#allocation3 + $0x2a9] sm:$0xff] }
 0x8f8   :  { %7375 = vst.msk [vmem:[#allocation2 + $0xd0] sm:$0xff] %vm7348_vm5, %v7209_v32  ;;  %10005 = vmatprep.mubr.msk.f32.mxu1 %vm7871_vm7, %v7822_v43  ;;  %7621 = vrot.lane.b32.xlu0 %v6299_v55, %s10128_s27 }
 0x8f9   :  { %6469 = vrot.lane.b32.xlu1 %v6299_v55, %s10125_s3 }
 0x8fa   :  { %v7211_v51 = vpop.permute.xlu0 %7210  ;;  %v7823_v52 = vld [vmem:[#allocation2 + $0xc8] sm:$0xff] }
 0x8fb   :  { %v7594_v57 = vpop.permute.xlu1 %7593  ;;  %7376 = vst.msk [vmem:[#allocation2 + $0xd8] sm:$0xff] %vm7348_vm5, %v7211_v51  ;;  %10006 = vmatmul.mubr.msk.f32.gmra.mrb[22].mxu1 %vm7871_vm7, %v7823_v52  ;;  %v6307_v51 = vld [vmem:[#allocation3 + $0x2a2] sm:$0xff] }
 0x8fc   :  { %7760 = vst.msk [vmem:[#allocation2 + $0xd0] sm:$0xff] %vm7733_vm6, %v7594_v57  ;;  %7623 = vrot.lane.b32.xlu0 %v6300_v39, %s10128_s27 }
 0x8fd   :  { %6471 = vrot.lane.b32.xlu1 %v6300_v39, %s10125_s3  ;;  %v6308_v39 = vld [vmem:[#allocation3 + $0x2aa] sm:$0xff] }
 0x8fe   :  { %v7596_v62 = vpop.permute.xlu0 %7595 }
 0x8ff   :  { %v6444_v37 = vpop.permute.xlu1 %6443  ;;  %7761 = vst.msk [vmem:[#allocation2 + $0xd8] sm:$0xff] %vm7733_vm6, %v7596_v62 }
 0x900   :  { %6607 = vst.msk [vmem:[#allocation2 + $0xe8] sm:$0xff] %vm6577_vm3, %v6444_v37  ;;  %6855 = vrot.lane.b32.xlu0 %v6685_v49, %s10126_s12  ;;  %v6693_v49 = vld [vmem:[#allocation3 + $0x2b8] sm:$0xff] }
 0x901   :  { %6857 = vrot.lane.b32.xlu1 %v6686_v29, %s10126_s12  ;;  %v6694_v29 = vld [vmem:[#allocation3 + $0x2c0] sm:$0xff] }
 0x902   :  { %v6828_v35 = vpop.permute.xlu0 %6827 }
 0x903   :  { %v6830_v47 = vpop.permute.xlu1 %6829  ;;  %6992 = vst.msk [vmem:[#allocation2 + $0xe0] sm:$0xff] %vm6963_vm4, %v6828_v35  ;;  %v7824_v0 = vld [vmem:[#allocation2 + $0xd0] sm:$0xff] }
 0x904   :  { %6993 = vst.msk [vmem:[#allocation2 + $0xe8] sm:$0xff] %vm6963_vm4, %v6830_v47  ;;  %10008 = vmatprep.mubr.msk.f32.mxu1 %vm7871_vm7, %v7824_v0  ;;  %7240 = vrot.lane.b32.xlu0 %v7070_v30, %s10127_s18 }
 0x905   :  { %7242 = vrot.lane.b32.xlu1 %v7071_v21, %s10127_s18  ;;  %v7078_v21 = vld [vmem:[#allocation3 + $0x2b9] sm:$0xff] }
 0x906   :  { %v7213_v36 = vpop.permute.xlu0 %7212  ;;  %v7825_v7 = vld [vmem:[#allocation2 + $0xd8] sm:$0xff] }
 0x907   :  { %v7215_v41 = vpop.permute.xlu1 %7214  ;;  %7377 = vst.msk [vmem:[#allocation2 + $0xe0] sm:$0xff] %vm7348_vm5, %v7213_v36  ;;  %10009 = vmatmul.mubr.msk.f32.gmra.mrb[24].mxu1 %vm7871_vm7, %v7825_v7 }
 0x908   :  { %7378 = vst.msk [vmem:[#allocation2 + $0xe8] sm:$0xff] %vm7348_vm5, %v7215_v41  ;;  %7625 = vrot.lane.b32.xlu0 %v6301_v25, %s10128_s27 }
 0x909   :  { %6473 = vrot.lane.b32.xlu1 %v6301_v25, %s10125_s3  ;;  %v7079_v25 = vld [vmem:[#allocation3 + $0x2c1] sm:$0xff] }
 0x90a   :  { %v7598_v20 = vpop.permute.xlu0 %7597 }
 0x90b   :  { %v6446_v19 = vpop.permute.xlu1 %6445  ;;  %7762 = vst.msk [vmem:[#allocation2 + $0xe0] sm:$0xff] %vm7733_vm6, %v7598_v20 }
 0x90c   :  { %6608 = vst.msk [vmem:[#allocation2 + $0xf0] sm:$0xff] %vm6577_vm3, %v6446_v19  ;;  %7627 = vrot.lane.b32.xlu0 %v6302_v8, %s10128_s27 }
 0x90d   :  { %6475 = vrot.lane.b32.xlu1 %v6302_v8, %s10125_s3 }
 0x90e   :  { %v7600_v58 = vpop.permute.xlu0 %7599 }
 0x90f   :  { %v6448_v1 = vpop.permute.xlu1 %6447  ;;  %7763 = vst.msk [vmem:[#allocation2 + $0xe8] sm:$0xff] %vm7733_vm6, %v7600_v58 }
 0x910   :  { %6609 = vst.msk [vmem:[#allocation2 + $0xf8] sm:$0xff] %vm6577_vm3, %v6448_v1  ;;  %6859 = vrot.lane.b32.xlu0 %v6687_v23, %s10126_s12 }
 0x911   :  { %6861 = vrot.lane.b32.xlu1 %v6688_v4, %s10126_s12 }
 0x912   :  { %v6832_v53 = vpop.permute.xlu0 %6831  ;;  %v7826_v50 = vld [vmem:[#allocation2 + $0xe0] sm:$0xff] }
 0x913   :  { %v6834_v10 = vpop.permute.xlu1 %6833  ;;  %6994 = vst.msk [vmem:[#allocation2 + $0xf0] sm:$0xff] %vm6963_vm4, %v6832_v53  ;;  %10011 = vmatprep.mubr.msk.f32.mxu1 %vm7871_vm7, %v7826_v50  ;;  %v6309_v50 = vld [vmem:[#allocation3 + $0x2ba] sm:$0xff] }
 0x914   :  { %6995 = vst.msk [vmem:[#allocation2 + $0xf8] sm:$0xff] %vm6963_vm4, %v6834_v10  ;;  %7244 = vrot.lane.b32.xlu0 %v7072_v16, %s10127_s18 }
 0x915   :  { %7246 = vrot.lane.b32.xlu1 %v7073_v42, %s10127_s18 }
 0x916   :  { %v7217_v38 = vpop.permute.xlu0 %7216  ;;  %v7827_v61 = vld [vmem:[#allocation2 + $0xe8] sm:$0xff] }
 0x917   :  { %v7219_v27 = vpop.permute.xlu1 %7218  ;;  %7379 = vst.msk [vmem:[#allocation2 + $0xf0] sm:$0xff] %vm7348_vm5, %v7217_v38  ;;  %10012 = vmatmul.mubr.msk.f32.gmra.mrb[26].mxu1 %vm7871_vm7, %v7827_v61 }
 0x918   :  { %7380 = vst.msk [vmem:[#allocation2 + $0xf8] sm:$0xff] %vm7348_vm5, %v7219_v27  ;;  %7629 = vrot.lane.b32.xlu0 %v6303_v33, %s10128_s27  ;;  %v6310_v27 = vld [vmem:[#allocation3 + $0x2c2] sm:$0xff] }
 0x919   :  { %6477 = vrot.lane.b32.xlu1 %v6303_v33, %s10125_s3 }
 0x91a   :  { %v7602_v34 = vpop.permute.xlu0 %7601 }
 0x91b   :  { %v6450_v14 = vpop.permute.xlu1 %6449  ;;  %7764 = vst.msk [vmem:[#allocation2 + $0xf0] sm:$0xff] %vm7733_vm6, %v7602_v34 }
 0x91c   :  { %6610 = vst.msk [vmem:[#allocation2 + $0x100] sm:$0xff] %vm6577_vm3, %v6450_v14  ;;  %7631 = vrot.lane.b32.xlu0 %v6304_v56, %s10128_s27 }
 0x91d   :  { %6479 = vrot.lane.b32.xlu1 %v6304_v56, %s10125_s3 }
 0x91e   :  { %v7604_v45 = vpop.permute.xlu0 %7603 }
 0x91f   :  { %v6452_v11 = vpop.permute.xlu1 %6451  ;;  %7765 = vst.msk [vmem:[#allocation2 + $0xf8] sm:$0xff] %vm7733_vm6, %v7604_v45 }
 0x920   :  { %6611 = vst.msk [vmem:[#allocation2 + $0x108] sm:$0xff] %vm6577_vm3, %v6452_v11  ;;  %6863 = vrot.lane.b32.xlu0 %v6689_v26, %s10126_s12 }
 0x921   :  { %6865 = vrot.lane.b32.xlu1 %v6690_v15, %s10126_s12 }
 0x922   :  { %v6836_v44 = vpop.permute.xlu0 %6835  ;;  %v7828_v24 = vld [vmem:[#allocation2 + $0xf0] sm:$0xff] }
 0x923   :  { %v6838_v18 = vpop.permute.xlu1 %6837  ;;  %6996 = vst.msk [vmem:[#allocation2 + $0x100] sm:$0xff] %vm6963_vm4, %v6836_v44  ;;  %10014 = vmatprep.mubr.msk.f32.mxu1 %vm7871_vm7, %v7828_v24 }
 0x924   :  { %6997 = vst.msk [vmem:[#allocation2 + $0x108] sm:$0xff] %vm6963_vm4, %v6838_v18  ;;  %7248 = vrot.lane.b32.xlu0 %v7074_v3, %s10127_s18  ;;  %v6695_v18 = vld [vmem:[#allocation3 + $0x2d0] sm:$0xff] }
 0x925   :  { %7250 = vrot.lane.b32.xlu1 %v7075_v5, %s10127_s18  ;;  %v6696_v5 = vld [vmem:[#allocation3 + $0x2d8] sm:$0xff] }
 0x926   :  { %v7221_v40 = vpop.permute.xlu0 %7220  ;;  %v7829_v22 = vld [vmem:[#allocation2 + $0xf8] sm:$0xff] }
 0x927   :  { %v7223_v17 = vpop.permute.xlu1 %7222  ;;  %7381 = vst.msk [vmem:[#allocation2 + $0x100] sm:$0xff] %vm7348_vm5, %v7221_v40  ;;  %10015 = vmatmul.mubr.msk.f32.gmra.mrb[28].mxu1 %vm7871_vm7, %v7829_v22 }
 0x928   :  { %7382 = vst.msk [vmem:[#allocation2 + $0x108] sm:$0xff] %vm7348_vm5, %v7223_v17  ;;  %7633 = vrot.lane.b32.xlu0 %v6305_v46, %s10128_s27 }
 0x929   :  { %6481 = vrot.lane.b32.xlu1 %v6305_v46, %s10125_s3 }
 0x92a   :  { %v7606_v2 = vpop.permute.xlu0 %7605 }
 0x92b   :  { %v6454_v60 = vpop.permute.xlu1 %6453  ;;  %7766 = vst.msk [vmem:[#allocation2 + $0x100] sm:$0xff] %vm7733_vm6, %v7606_v2  ;;  %v7080_v2 = vld [vmem:[#allocation3 + $0x2d1] sm:$0xff] }
 0x92c   :  { %6612 = vst.msk [vmem:[#allocation2 + $0x110] sm:$0xff] %vm6577_vm3, %v6454_v60  ;;  %7635 = vrot.lane.b32.xlu0 %v6306_v31, %s10128_s27  ;;  %v7081_v60 = vld [vmem:[#allocation3 + $0x2d9] sm:$0xff] }
 0x92d   :  { %6483 = vrot.lane.b32.xlu1 %v6306_v31, %s10125_s3 }
 0x92e   :  { %v7608_v28 = vpop.permute.xlu0 %7607 }
 0x92f   :  { %v6456_v12 = vpop.permute.xlu1 %6455  ;;  %7767 = vst.msk [vmem:[#allocation2 + $0x108] sm:$0xff] %vm7733_vm6, %v7608_v28 }
 0x930   :  { %6613 = vst.msk [vmem:[#allocation2 + $0x118] sm:$0xff] %vm6577_vm3, %v6456_v12  ;;  %6867 = vrot.lane.b32.xlu0 %v6691_v63, %s10126_s12 }
 0x931   :  { %6869 = vrot.lane.b32.xlu1 %v6692_v59, %s10126_s12 }
 0x932   :  { %v6840_v54 = vpop.permute.xlu0 %6839  ;;  %v7830_v9 = vld [vmem:[#allocation2 + $0x100] sm:$0xff] }
 0x933   :  { %v6842_v6 = vpop.permute.xlu1 %6841  ;;  %6998 = vst.msk [vmem:[#allocation2 + $0x110] sm:$0xff] %vm6963_vm4, %v6840_v54  ;;  %10017 = vmatprep.mubr.msk.f32.mxu1 %vm7871_vm7, %v7830_v9  ;;  %v6311_v54 = vld [vmem:[#allocation3 + $0x2d2] sm:$0xff] }
 0x934   :  { %6999 = vst.msk [vmem:[#allocation2 + $0x118] sm:$0xff] %vm6963_vm4, %v6842_v6  ;;  %7252 = vrot.lane.b32.xlu0 %v7076_v48, %s10127_s18 }
 0x935   :  { %7254 = vrot.lane.b32.xlu1 %v7077_v13, %s10127_s18 }
 0x936   :  { %v7225_v32 = vpop.permute.xlu0 %7224  ;;  %v7831_v43 = vld [vmem:[#allocation2 + $0x108] sm:$0xff] }
 0x937   :  { %v7227_v55 = vpop.permute.xlu1 %7226  ;;  %7383 = vst.msk [vmem:[#allocation2 + $0x110] sm:$0xff] %vm7348_vm5, %v7225_v32  ;;  %10018 = vmatmul.mubr.msk.f32.gmra.mrb[30].mxu1 %vm7871_vm7, %v7831_v43 }
 0x938   :  { %7384 = vst.msk [vmem:[#allocation2 + $0x118] sm:$0xff] %vm7348_vm5, %v7227_v55  ;;  %7637 = vrot.lane.b32.xlu0 %v6307_v51, %s10128_s27 }
 0x939   :  { %6485 = vrot.lane.b32.xlu1 %v6307_v51, %s10125_s3 }
 0x93a   :  { %v7610_v52 = vpop.permute.xlu0 %7609 }
 0x93b   :  { %v6458_v57 = vpop.permute.xlu1 %6457  ;;  %7768 = vst.msk [vmem:[#allocation2 + $0x110] sm:$0xff] %vm7733_vm6, %v7610_v52 }
 0x93c   :  { %6614 = vst.msk [vmem:[#allocation2 + $0x120] sm:$0xff] %vm6577_vm3, %v6458_v57  ;;  %7639 = vrot.lane.b32.xlu0 %v6308_v39, %s10128_s27  ;;  %v6312_v57 = vld [vmem:[#allocation3 + $0x2da] sm:$0xff] }
 0x93d   :  { %6487 = vrot.lane.b32.xlu1 %v6308_v39, %s10125_s3 }
 0x93e   :  { %v7612_v62 = vpop.permute.xlu0 %7611 }
 0x93f   :  { %v6460_v37 = vpop.permute.xlu1 %6459  ;;  %7769 = vst.msk [vmem:[#allocation2 + $0x118] sm:$0xff] %vm7733_vm6, %v7612_v62 }
 0x940   :  { %6615 = vst.msk [vmem:[#allocation2 + $0x128] sm:$0xff] %vm6577_vm3, %v6460_v37  ;;  %6871 = vrot.lane.b32.xlu0 %v6693_v49, %s10126_s12 }
 0x941   :  { %6873 = vrot.lane.b32.xlu1 %v6694_v29, %s10126_s12 }
 0x942   :  { %v6844_v35 = vpop.permute.xlu0 %6843  ;;  %v7832_v47 = vld [vmem:[#allocation2 + $0x110] sm:$0xff] }
 0x943   :  { %v6846_v0 = vpop.permute.xlu1 %6845  ;;  %v15802_v30 = vpop.f32.mrb[64].mxu0  ;;  %7000 = vst.msk [vmem:[#allocation2 + $0x120] sm:$0xff] %vm6963_vm4, %v6844_v35  ;;  %10020 = vmatprep.mubr.msk.f32.mxu1 %vm7871_vm7, %v7832_v47  ;;  %v6697_v35 = vld [vmem:[#allocation3 + $0x2e8] sm:$0xff]  ;;  %v6698_v47 = vld [vmem:[#allocation3 + $0x2f0] sm:$0xff] }
 0x944   :  { %7001 = vst.msk [vmem:[#allocation2 + $0x128] sm:$0xff] %vm6963_vm4, %v6846_v0  ;;  %v8450_v36 = vsel %vm93_vm0, %v15802_v30, 0.0  ;;  %v8583_v7 = vmul.f32 %v15802_v30, %v15802_v30  ;;  %v15811_v41 = vpop.f32.mrb[65].mxu0  ;;  %7256 = vrot.lane.b32.xlu0 %v7078_v21, %s10127_s18 }
 0x945   :  { %v8449_v20 = vsel %vm93_vm0, %v15811_v41, 0.0  ;;  %v8582_v19 = vmul.f32 %v15811_v41, %v15811_v41  ;;  %7258 = vrot.lane.b32.xlu1 %v7079_v25, %s10127_s18 }
 0x946   :  { %v8647_v8 = vsel %vm93_vm0, %v8583_v7, 0.0  ;;  %v8451_v58 = vadd.f32 %v8450_v36, %v8449_v20  ;;  %v7229_v1 = vpop.permute.xlu0 %7228  ;;  %v7833_v23 = vld [vmem:[#allocation2 + $0x118] sm:$0xff]  ;;  %v7082_v20 = vld [vmem:[#allocation3 + $0x2e9] sm:$0xff] }
 0x947   :  { %v8646_v4 = vsel %vm93_vm0, %v8582_v19, 0.0  ;;  %v7231_v53 = vpop.permute.xlu1 %7230  ;;  %7385 = vst.msk [vmem:[#allocation2 + $0x120] sm:$0xff] %vm7348_vm5, %v7229_v1  ;;  %10021 = vmatmul.mubr.msk.f32.gmra.mrb[32].mxu1 %vm7871_vm7, %v7833_v23  ;;  %v7083_v1 = vld [vmem:[#allocation3 + $0x2f1] sm:$0xff] }
 0x948   :  { %v8648_v10 = vadd.f32 %v8647_v8, %v8646_v4  ;;  %7386 = vst.msk [vmem:[#allocation2 + $0x128] sm:$0xff] %vm7348_vm5, %v7231_v53  ;;  %7641 = vrot.lane.b32.xlu0 %v6309_v50, %s10128_s27 }
 0x949   :  { %6489 = vrot.lane.b32.xlu1 %v6309_v50, %s10125_s3 }
 0x94a   :  { %v7614_v16 = vpop.permute.xlu0 %7613  ;;  %v15826_v42 = vpop.f32.mrb[0].mxu1 }
 0x94b   :  { %v6462_v38 = vpop.permute.xlu1 %6461  ;;  %7770 = vst.msk [vmem:[#allocation2 + $0x120] sm:$0xff] %vm7733_vm6, %v7614_v16  ;;  %v15829_v61 = vpop.f32.mrb[1].mxu1  ;;  %v8585_v33 = vmul.f32 %v15826_v42, %v15826_v42  ;;  %v8454_v45 = vsel %vm93_vm0, %v15826_v42, 0.0 }
 0x94c   :  { %6616 = vst.msk [vmem:[#allocation2 + $0x130] sm:$0xff] %vm6577_vm3, %v6462_v38  ;;  %v8452_v34 = vsel %vm93_vm0, %v15829_v61, 0.0  ;;  %v8584_v14 = vmul.f32 %v15829_v61, %v15829_v61  ;;  %7643 = vrot.lane.b32.xlu0 %v6310_v27, %s10128_s27 }
 0x94d   :  { %v8453_v56 = vadd.f32 %v8452_v34, %v8451_v58  ;;  %6491 = vrot.lane.b32.xlu1 %v6310_v27, %s10125_s3  ;;  %v8651_v3 = vsel %vm93_vm0, %v8585_v33, 0.0  ;;  %v6313_v27 = vld [vmem:[#allocation3 + $0x2ea] sm:$0xff] }
 0x94e   :  { %v8649_v11 = vsel %vm93_vm0, %v8584_v14, 0.0  ;;  %v7616_v26 = vpop.permute.xlu0 %7615 }
 0x94f   :  { %v8455_v15 = vadd.f32 %v8454_v45, %v8453_v56  ;;  %v8650_v44 = vadd.f32 %v8649_v11, %v8648_v10  ;;  %v6464_v24 = vpop.permute.xlu1 %6463  ;;  %7771 = vst.msk [vmem:[#allocation2 + $0x128] sm:$0xff] %vm7733_vm6, %v7616_v26  ;;  %v6314_v11 = vld [vmem:[#allocation3 + $0x2f2] sm:$0xff] }
 0x950   :  { %6617 = vst.msk [vmem:[#allocation2 + $0x138] sm:$0xff] %vm6577_vm3, %v6464_v24  ;;  %6875 = vrot.lane.b32.xlu0 %v6695_v18, %s10126_s12  ;;  %v6699_v18 = vld [vmem:[#allocation3 + $0x300] sm:$0xff] }
 0x951   :  { %v8652_v40 = vadd.f32 %v8651_v3, %v8650_v44  ;;  %6877 = vrot.lane.b32.xlu1 %v6696_v5, %s10126_s12 }
 0x952   :  { %v6848_v22 = vpop.permute.xlu0 %6847  ;;  %v7834_v17 = vld [vmem:[#allocation2 + $0x120] sm:$0xff] }
 0x953   :  { %v6850_v46 = vpop.permute.xlu1 %6849  ;;  %7002 = vst.msk [vmem:[#allocation2 + $0x130] sm:$0xff] %vm6963_vm4, %v6848_v22  ;;  %10023 = vmatprep.mubr.msk.f32.mxu1 %vm7871_vm7, %v7834_v17  ;;  %v6700_v22 = vld [vmem:[#allocation3 + $0x308] sm:$0xff] }
 0x954   :  { %7003 = vst.msk [vmem:[#allocation2 + $0x138] sm:$0xff] %vm6963_vm4, %v6850_v46  ;;  %7260 = vrot.lane.b32.xlu0 %v7080_v2, %s10127_s18 }
 0x955   :  { %7262 = vrot.lane.b32.xlu1 %v7081_v60, %s10127_s18 }
 0x956   :  { %v7233_v31 = vpop.permute.xlu0 %7232  ;;  %v15853_v28 = vpop.f32.mrb[2].mxu1  ;;  %v7835_v12 = vld [vmem:[#allocation2 + $0x128] sm:$0xff] }
 0x957   :  { %v7235_v63 = vpop.permute.xlu1 %7234  ;;  %7387 = vst.msk [vmem:[#allocation2 + $0x130] sm:$0xff] %vm7348_vm5, %v7233_v31  ;;  %v15856_v59 = vpop.f32.mrb[3].mxu1  ;;  %10024 = vmatmul.mubr.msk.f32.gmra.mrb[34].mxu1 %vm7871_vm7, %v7835_v12  ;;  %v8587_v9 = vmul.f32 %v15853_v28, %v15853_v28  ;;  %v8458_v32 = vsel %vm93_vm0, %v15853_v28, 0.0 }
 0x958   :  { %7388 = vst.msk [vmem:[#allocation2 + $0x138] sm:$0xff] %vm7348_vm5, %v7235_v63  ;;  %v8456_v6 = vsel %vm93_vm0, %v15856_v59, 0.0  ;;  %v8586_v48 = vmul.f32 %v15856_v59, %v15856_v59  ;;  %7645 = vrot.lane.b32.xlu0 %v6311_v54, %s10128_s27 }
 0x959   :  { %v8457_v13 = vadd.f32 %v8456_v6, %v8455_v15  ;;  %6493 = vrot.lane.b32.xlu1 %v6311_v54, %s10125_s3  ;;  %v8655_v62 = vsel %vm93_vm0, %v8587_v9, 0.0  ;;  %v7084_v54 = vld [vmem:[#allocation3 + $0x301] sm:$0xff] }
 0x95a   :  { %v8653_v43 = vsel %vm93_vm0, %v8586_v48, 0.0  ;;  %v7618_v55 = vpop.permute.xlu0 %7617  ;;  %v7085_v48 = vld [vmem:[#allocation3 + $0x309] sm:$0xff] }
 0x95b   :  { %v8654_v51 = vadd.f32 %v8653_v43, %v8652_v40  ;;  %v6466_v52 = vpop.permute.xlu1 %6465  ;;  %7772 = vst.msk [vmem:[#allocation2 + $0x130] sm:$0xff] %vm7733_vm6, %v7618_v55  ;;  %v8459_v39 = vadd.f32 %v8458_v32, %v8457_v13 }
 0x95c   :  { %6618 = vst.msk [vmem:[#allocation2 + $0x140] sm:$0xff] %vm6577_vm3, %v6466_v52  ;;  %7647 = vrot.lane.b32.xlu0 %v6312_v57, %s10128_s27 }
 0x95d   :  { %6495 = vrot.lane.b32.xlu1 %v6312_v57, %s10125_s3  ;;  %v8656_v37 = vadd.f32 %v8655_v62, %v8654_v51  ;;  %v6315_v51 = vld [vmem:[#allocation3 + $0x302] sm:$0xff] }
 0x95e   :  { %v7620_v49 = vpop.permute.xlu0 %7619 }
 0x95f   :  { %v6468_v29 = vpop.permute.xlu1 %6467  ;;  %7773 = vst.msk [vmem:[#allocation2 + $0x138] sm:$0xff] %vm7733_vm6, %v7620_v49 }
 0x960   :  { %6619 = vst.msk [vmem:[#allocation2 + $0x148] sm:$0xff] %vm6577_vm3, %v6468_v29  ;;  %6879 = vrot.lane.b32.xlu0 %v6697_v35, %s10126_s12 }
 0x961   :  { %6881 = vrot.lane.b32.xlu1 %v6698_v47, %s10126_s12 }
 0x962   :  { %v6852_v0 = vpop.permute.xlu0 %6851  ;;  %v15880_v21 = vpop.f32.mrb[4].mxu1  ;;  %v7836_v36 = vld [vmem:[#allocation2 + $0x130] sm:$0xff] }
 0x963   :  { %v6854_v7 = vpop.permute.xlu1 %6853  ;;  %7004 = vst.msk [vmem:[#allocation2 + $0x140] sm:$0xff] %vm6963_vm4, %v6852_v0  ;;  %v15883_v25 = vpop.f32.mrb[5].mxu1  ;;  %10026 = vmatprep.mubr.msk.f32.mxu1 %vm7871_vm7, %v7836_v36  ;;  %v8589_v19 = vmul.f32 %v15880_v21, %v15880_v21  ;;  %v8462_v4 = vsel %vm93_vm0, %v15880_v21, 0.0 }
 0x964   :  { %7005 = vst.msk [vmem:[#allocation2 + $0x148] sm:$0xff] %vm6963_vm4, %v6854_v7  ;;  %v8460_v8 = vsel %vm93_vm0, %v15883_v25, 0.0  ;;  %v8588_v58 = vmul.f32 %v15883_v25, %v15883_v25  ;;  %7264 = vrot.lane.b32.xlu0 %v7082_v20, %s10127_s18 }
 0x965   :  { %v8461_v23 = vadd.f32 %v8460_v8, %v8459_v39  ;;  %7266 = vrot.lane.b32.xlu1 %v7083_v1, %s10127_s18  ;;  %v8659_v34 = vsel %vm93_vm0, %v8589_v19, 0.0  ;;  %v6701_v8 = vld [vmem:[#allocation3 + $0x318] sm:$0xff] }
 0x966   :  { %v8657_v53 = vsel %vm93_vm0, %v8588_v58, 0.0  ;;  %v7237_v50 = vpop.permute.xlu0 %7236  ;;  %v7837_v10 = vld [vmem:[#allocation2 + $0x138] sm:$0xff] }
 0x967   :  { %v8658_v16 = vadd.f32 %v8657_v53, %v8656_v37  ;;  %v7239_v38 = vpop.permute.xlu1 %7238  ;;  %7389 = vst.msk [vmem:[#allocation2 + $0x140] sm:$0xff] %vm7348_vm5, %v7237_v50  ;;  %10027 = vmatmul.mubr.msk.f32.gmra.mrb[36].mxu1 %vm7871_vm7, %v7837_v10  ;;  %v8463_v33 = vadd.f32 %v8462_v4, %v8461_v23  ;;  %v6316_v37 = vld [vmem:[#allocation3 + $0x30a] sm:$0xff]  ;;  %v6702_v23 = vld [vmem:[#allocation3 + $0x320] sm:$0xff] }
 0x968   :  { %7390 = vst.msk [vmem:[#allocation2 + $0x148] sm:$0xff] %vm7348_vm5, %v7239_v38  ;;  %7649 = vrot.lane.b32.xlu0 %v6313_v27, %s10128_s27  ;;  %v7087_v38 = vld [vmem:[#allocation3 + $0x321] sm:$0xff] }
 0x969   :  { %6497 = vrot.lane.b32.xlu1 %v6313_v27, %s10125_s3  ;;  %v8660_v14 = vadd.f32 %v8659_v34, %v8658_v16  ;;  %v7086_v16 = vld [vmem:[#allocation3 + $0x319] sm:$0xff] }
 0x96a   :  { %v7622_v56 = vpop.permute.xlu0 %7621 }
 0x96b   :  { %v6470_v45 = vpop.permute.xlu1 %6469  ;;  %7774 = vst.msk [vmem:[#allocation2 + $0x140] sm:$0xff] %vm7733_vm6, %v7622_v56 }
 0x96c   :  { %6620 = vst.msk [vmem:[#allocation2 + $0x150] sm:$0xff] %vm6577_vm3, %v6470_v45  ;;  %7651 = vrot.lane.b32.xlu0 %v6314_v11, %s10128_s27  ;;  %v6317_v45 = vld [vmem:[#allocation3 + $0x31a] sm:$0xff] }
 0x96d   :  { %6499 = vrot.lane.b32.xlu1 %v6314_v11, %s10125_s3 }
 0x96e   :  { %v7624_v26 = vpop.permute.xlu0 %7623  ;;  %v15908_v15 = vpop.f32.mrb[6].mxu1 }
 0x96f   :  { %v6472_v44 = vpop.permute.xlu1 %6471  ;;  %7775 = vst.msk [vmem:[#allocation2 + $0x148] sm:$0xff] %vm7733_vm6, %v7624_v26  ;;  %v15911_v24 = vpop.f32.mrb[7].mxu1  ;;  %v8591_v3 = vmul.f32 %v15908_v15, %v15908_v15  ;;  %v8466_v46 = vsel %vm93_vm0, %v15908_v15, 0.0 }
 0x970   :  { %6621 = vst.msk [vmem:[#allocation2 + $0x158] sm:$0xff] %vm6577_vm3, %v6472_v44  ;;  %v8464_v5 = vsel %vm93_vm0, %v15911_v24, 0.0  ;;  %v8590_v40 = vmul.f32 %v15911_v24, %v15911_v24  ;;  %6883 = vrot.lane.b32.xlu0 %v6699_v18, %s10126_s12 }
 0x971   :  { %v8465_v17 = vadd.f32 %v8464_v5, %v8463_v33  ;;  %6885 = vrot.lane.b32.xlu1 %v6700_v22, %s10126_s12  ;;  %v8663_v6 = vsel %vm93_vm0, %v8591_v3, 0.0 }
 0x972   :  { %v8661_v2 = vsel %vm93_vm0, %v8590_v40, 0.0  ;;  %v6856_v60 = vpop.permute.xlu0 %6855  ;;  %v7838_v31 = vld [vmem:[#allocation2 + $0x140] sm:$0xff] }
 0x973   :  { %v8662_v12 = vadd.f32 %v8661_v2, %v8660_v14  ;;  %v6858_v63 = vpop.permute.xlu1 %6857  ;;  %7006 = vst.msk [vmem:[#allocation2 + $0x150] sm:$0xff] %vm6963_vm4, %v6856_v60  ;;  %10029 = vmatprep.mubr.msk.f32.mxu1 %vm7871_vm7, %v7838_v31  ;;  %v8467_v9 = vadd.f32 %v8466_v46, %v8465_v17  ;;  %v6318_v46 = vld [vmem:[#allocation3 + $0x322] sm:$0xff] }
 0x974   :  { %7007 = vst.msk [vmem:[#allocation2 + $0x158] sm:$0xff] %vm6963_vm4, %v6858_v63  ;;  %7268 = vrot.lane.b32.xlu0 %v7084_v54, %s10127_s18  ;;  %v6703_v54 = vld [vmem:[#allocation3 + $0x330] sm:$0xff] }
 0x975   :  { %7270 = vrot.lane.b32.xlu1 %v7085_v48, %s10127_s18  ;;  %v8664_v13 = vadd.f32 %v8663_v6, %v8662_v12 }
 0x976   :  { %v7241_v32 = vpop.permute.xlu0 %7240  ;;  %v7839_v43 = vld [vmem:[#allocation2 + $0x148] sm:$0xff] }
 0x977   :  { %v7243_v55 = vpop.permute.xlu1 %7242  ;;  %7391 = vst.msk [vmem:[#allocation2 + $0x150] sm:$0xff] %vm7348_vm5, %v7241_v32  ;;  %10030 = vmatmul.mubr.msk.f32.gmra.mrb[38].mxu1 %vm7871_vm7, %v7839_v43 }
 0x978   :  { %7392 = vst.msk [vmem:[#allocation2 + $0x158] sm:$0xff] %vm7348_vm5, %v7243_v55  ;;  %7653 = vrot.lane.b32.xlu0 %v6315_v51, %s10128_s27  ;;  %v7088_v55 = vld [vmem:[#allocation3 + $0x331] sm:$0xff] }
 0x979   :  { %6501 = vrot.lane.b32.xlu1 %v6315_v51, %s10125_s3 }
 0x97a   :  { %v7626_v52 = vpop.permute.xlu0 %7625  ;;  %v15936_v57 = vpop.f32.mrb[8].mxu1 }
 0x97b   :  { %v6474_v39 = vpop.permute.xlu1 %6473  ;;  %7776 = vst.msk [vmem:[#allocation2 + $0x150] sm:$0xff] %vm7733_vm6, %v7626_v52  ;;  %v15939_v62 = vpop.f32.mrb[9].mxu1  ;;  %v8593_v49 = vmul.f32 %v15936_v57, %v15936_v57  ;;  %v8470_v0 = vsel %vm93_vm0, %v15936_v57, 0.0 }
 0x97c   :  { %6622 = vst.msk [vmem:[#allocation2 + $0x160] sm:$0xff] %vm6577_vm3, %v6474_v39  ;;  %v8468_v29 = vsel %vm93_vm0, %v15939_v62, 0.0  ;;  %v8592_v35 = vmul.f32 %v15939_v62, %v15939_v62  ;;  %7655 = vrot.lane.b32.xlu0 %v6316_v37, %s10128_s27 }
 0x97d   :  { %v8469_v47 = vadd.f32 %v8468_v29, %v8467_v9  ;;  %6503 = vrot.lane.b32.xlu1 %v6316_v37, %s10125_s3  ;;  %v8667_v1 = vsel %vm93_vm0, %v8593_v49, 0.0  ;;  %v6704_v9 = vld [vmem:[#allocation3 + $0x338] sm:$0xff] }
 0x97e   :  { %v8665_v36 = vsel %vm93_vm0, %v8592_v35, 0.0  ;;  %v7628_v7 = vpop.permute.xlu0 %7627  ;;  %v7089_v37 = vld [vmem:[#allocation3 + $0x339] sm:$0xff] }
 0x97f   :  { %v8666_v20 = vadd.f32 %v8665_v36, %v8664_v13  ;;  %v6476_v19 = vpop.permute.xlu1 %6475  ;;  %7777 = vst.msk [vmem:[#allocation2 + $0x158] sm:$0xff] %vm7733_vm6, %v7628_v7  ;;  %v8471_v58 = vadd.f32 %v8470_v0, %v8469_v47 }
 0x980   :  { %6623 = vst.msk [vmem:[#allocation2 + $0x168] sm:$0xff] %vm6577_vm3, %v6476_v19  ;;  %6887 = vrot.lane.b32.xlu0 %v6701_v8, %s10126_s12 }
 0x981   :  { %6889 = vrot.lane.b32.xlu1 %v6702_v23, %s10126_s12  ;;  %v8668_v4 = vadd.f32 %v8667_v1, %v8666_v20  ;;  %v6319_v20 = vld [vmem:[#allocation3 + $0x332] sm:$0xff] }
 0x982   :  { %v6860_v53 = vpop.permute.xlu0 %6859  ;;  %v7840_v50 = vld [vmem:[#allocation2 + $0x150] sm:$0xff] }
 0x983   :  { %v6862_v10 = vpop.permute.xlu1 %6861  ;;  %7008 = vst.msk [vmem:[#allocation2 + $0x160] sm:$0xff] %vm6963_vm4, %v6860_v53  ;;  %10032 = vmatprep.mubr.msk.f32.mxu1 %vm7871_vm7, %v7840_v50  ;;  %v6705_v53 = vld [vmem:[#allocation3 + $0x348] sm:$0xff] }
 0x984   :  { %7009 = vst.msk [vmem:[#allocation2 + $0x168] sm:$0xff] %vm6963_vm4, %v6862_v10  ;;  %7272 = vrot.lane.b32.xlu0 %v7086_v16, %s10127_s18  ;;  %v6706_v16 = vld [vmem:[#allocation3 + $0x350] sm:$0xff] }
 0x985   :  { %7274 = vrot.lane.b32.xlu1 %v7087_v38, %s10127_s18 }
 0x986   :  { %v7245_v27 = vpop.permute.xlu0 %7244  ;;  %v15963_v33 = vpop.f32.mrb[10].mxu1  ;;  %v7841_v34 = vld [vmem:[#allocation2 + $0x158] sm:$0xff] }
 0x987   :  { %v7247_v14 = vpop.permute.xlu1 %7246  ;;  %7393 = vst.msk [vmem:[#allocation2 + $0x160] sm:$0xff] %vm7348_vm5, %v7245_v27  ;;  %v15966_v56 = vpop.f32.mrb[11].mxu1  ;;  %10033 = vmatmul.mubr.msk.f32.gmra.mrb[40].mxu1 %vm7871_vm7, %v7841_v34  ;;  %v8595_v11 = vmul.f32 %v15963_v33, %v15963_v33  ;;  %v8474_v3 = vsel %vm93_vm0, %v15963_v33, 0.0 }
 0x988   :  { %7394 = vst.msk [vmem:[#allocation2 + $0x168] sm:$0xff] %vm7348_vm5, %v7247_v14  ;;  %v8472_v26 = vsel %vm93_vm0, %v15966_v56, 0.0  ;;  %v8594_v44 = vmul.f32 %v15966_v56, %v15966_v56  ;;  %7657 = vrot.lane.b32.xlu0 %v6317_v45, %s10128_s27 }
 0x989   :  { %v8473_v18 = vadd.f32 %v8472_v26, %v8471_v58  ;;  %6505 = vrot.lane.b32.xlu1 %v6317_v45, %s10125_s3  ;;  %v8671_v60 = vsel %vm93_vm0, %v8595_v11, 0.0  ;;  %v7090_v26 = vld [vmem:[#allocation3 + $0x349] sm:$0xff] }
 0x98a   :  { %v8669_v5 = vsel %vm93_vm0, %v8594_v44, 0.0  ;;  %v7630_v40 = vpop.permute.xlu0 %7629 }
 0x98b   :  { %v8670_v22 = vadd.f32 %v8669_v5, %v8668_v4  ;;  %v6478_v17 = vpop.permute.xlu1 %6477  ;;  %7778 = vst.msk [vmem:[#allocation2 + $0x160] sm:$0xff] %vm7733_vm6, %v7630_v40  ;;  %v8475_v2 = vadd.f32 %v8474_v3, %v8473_v18  ;;  %v6320_v4 = vld [vmem:[#allocation3 + $0x33a] sm:$0xff]  ;;  %v7091_v40 = vld [vmem:[#allocation3 + $0x351] sm:$0xff] }
 0x98c   :  { %6624 = vst.msk [vmem:[#allocation2 + $0x170] sm:$0xff] %vm6577_vm3, %v6478_v17  ;;  %7659 = vrot.lane.b32.xlu0 %v6318_v46, %s10128_s27 }
 0x98d   :  { %6507 = vrot.lane.b32.xlu1 %v6318_v46, %s10125_s3  ;;  %v8672_v31 = vadd.f32 %v8671_v60, %v8670_v22  ;;  %v7475_v60 = vld [vmem:[#allocation3 + $0x34a] sm:$0xff] }
 0x98e   :  { %v7632_v12 = vpop.permute.xlu0 %7631 }
 0x98f   :  { %v6480_v63 = vpop.permute.xlu1 %6479  ;;  %7779 = vst.msk [vmem:[#allocation2 + $0x168] sm:$0xff] %vm7733_vm6, %v7632_v12 }
 0x990   :  { %6625 = vst.msk [vmem:[#allocation2 + $0x178] sm:$0xff] %vm6577_vm3, %v6480_v63  ;;  %6891 = vrot.lane.b32.xlu0 %v6703_v54, %s10126_s12  ;;  %v7476_v54 = vld [vmem:[#allocation3 + $0x352] sm:$0xff] }
 0x991   :  { %6893 = vrot.lane.b32.xlu1 %v6704_v9, %s10126_s12 }
 0x992   :  { %v6864_v6 = vpop.permute.xlu0 %6863  ;;  %v15990_v48 = vpop.f32.mrb[12].mxu1  ;;  %v7842_v13 = vld [vmem:[#allocation2 + $0x160] sm:$0xff] }
 0x993   :  { %v6866_v32 = vpop.permute.xlu1 %6865  ;;  %7010 = vst.msk [vmem:[#allocation2 + $0x170] sm:$0xff] %vm6963_vm4, %v6864_v6  ;;  %v15993_v43 = vpop.f32.mrb[13].mxu1  ;;  %10035 = vmatprep.mubr.msk.f32.mxu1 %vm7871_vm7, %v7842_v13  ;;  %v8597_v51 = vmul.f32 %v15990_v48, %v15990_v48  ;;  %v8478_v29 = vsel %vm93_vm0, %v15990_v48, 0.0 }
 0x994   :  { %7011 = vst.msk [vmem:[#allocation2 + $0x178] sm:$0xff] %vm6963_vm4, %v6866_v32  ;;  %v8476_v52 = vsel %vm93_vm0, %v15993_v43, 0.0  ;;  %v8596_v39 = vmul.f32 %v15993_v43, %v15993_v43  ;;  %7276 = vrot.lane.b32.xlu0 %v7088_v55, %s10127_s18 }
 0x995   :  { %v8477_v49 = vadd.f32 %v8476_v52, %v8475_v2  ;;  %7278 = vrot.lane.b32.xlu1 %v7089_v37, %s10127_s18  ;;  %v8675_v8 = vsel %vm93_vm0, %v8597_v51, 0.0 }
 0x996   :  { %v8673_v35 = vsel %vm93_vm0, %v8596_v39, 0.0  ;;  %v7249_v47 = vpop.permute.xlu0 %7248  ;;  %v7843_v0 = vld [vmem:[#allocation2 + $0x168] sm:$0xff] }
 0x997   :  { %v8674_v36 = vadd.f32 %v8673_v35, %v8672_v31  ;;  %v7251_v7 = vpop.permute.xlu1 %7250  ;;  %7395 = vst.msk [vmem:[#allocation2 + $0x170] sm:$0xff] %vm7348_vm5, %v7249_v47  ;;  %10036 = vmatmul.mubr.msk.f32.gmra.mrb[42].mxu1 %vm7871_vm7, %v7843_v0  ;;  %v8479_v19 = vadd.f32 %v8478_v29, %v8477_v49 }
 0x998   :  { %7396 = vst.msk [vmem:[#allocation2 + $0x178] sm:$0xff] %vm7348_vm5, %v7251_v7  ;;  %7661 = vrot.lane.b32.xlu0 %v6319_v20, %s10128_s27 }
 0x999   :  { %6509 = vrot.lane.b32.xlu1 %v6319_v20, %s10125_s3  ;;  %v8676_v58 = vadd.f32 %v8675_v8, %v8674_v36 }
 0x99a   :  { %v7634_v1 = vpop.permute.xlu0 %7633 }
 0x99b   :  { %v6482_v23 = vpop.permute.xlu1 %6481  ;;  %7780 = vst.msk [vmem:[#allocation2 + $0x170] sm:$0xff] %vm7733_vm6, %v7634_v1 }
 0x99c   :  { %6626 = vst.msk [vmem:[#allocation2 + $0x180] sm:$0xff] %vm6577_vm3, %v6482_v23  ;;  %7663 = vrot.lane.b32.xlu0 %v6320_v4, %s10128_s27 }
 0x99d   :  { %6511 = vrot.lane.b32.xlu1 %v6320_v4, %s10125_s3 }
 0x99e   :  { %v7636_v50 = vpop.permute.xlu0 %7635  ;;  %v16018_v10 = vpop.f32.mrb[14].mxu1 }
 0x99f   :  { %v6484_v38 = vpop.permute.xlu1 %6483  ;;  %7781 = vst.msk [vmem:[#allocation2 + $0x178] sm:$0xff] %vm7733_vm6, %v7636_v50  ;;  %v16021_v27 = vpop.f32.mrb[15].mxu1  ;;  %v8599_v34 = vmul.f32 %v16018_v10, %v16018_v10  ;;  %v8482_v44 = vsel %vm93_vm0, %v16018_v10, 0.0 }
 0x9a0   :  { %6627 = vst.msk [vmem:[#allocation2 + $0x188] sm:$0xff] %vm6577_vm3, %v6484_v38  ;;  %v8480_v14 = vsel %vm93_vm0, %v16021_v27, 0.0  ;;  %v8598_v45 = vmul.f32 %v16021_v27, %v16021_v27  ;;  %6895 = vrot.lane.b32.xlu0 %v6705_v53, %s10126_s12 }
 0x9a1   :  { %v8481_v11 = vadd.f32 %v8480_v14, %v8479_v19  ;;  %6897 = vrot.lane.b32.xlu1 %v6706_v16, %s10126_s12  ;;  %v8679_v2 = vsel %vm93_vm0, %v8599_v34, 0.0 }
 0x9a2   :  { %v8677_v18 = vsel %vm93_vm0, %v8598_v45, 0.0  ;;  %v6868_v3 = vpop.permute.xlu0 %6867  ;;  %v7844_v5 = vld [vmem:[#allocation2 + $0x170] sm:$0xff] }
 0x9a3   :  { %v8678_v22 = vadd.f32 %v8677_v18, %v8676_v58  ;;  %v6870_v17 = vpop.permute.xlu1 %6869  ;;  %7012 = vst.msk [vmem:[#allocation2 + $0x180] sm:$0xff] %vm6963_vm4, %v6868_v3  ;;  %10038 = vmatprep.mubr.msk.f32.mxu1 %vm7871_vm7, %v7844_v5  ;;  %v8483_v46 = vadd.f32 %v8482_v44, %v8481_v11 }
 0x9a4   :  { %7013 = vst.msk [vmem:[#allocation2 + $0x188] sm:$0xff] %vm6963_vm4, %v6870_v17  ;;  %7280 = vrot.lane.b32.xlu0 %v7090_v26, %s10127_s18 }
 0x9a5   :  { %7282 = vrot.lane.b32.xlu1 %v7091_v40, %s10127_s18  ;;  %v8680_v31 = vadd.f32 %v8679_v2, %v8678_v22 }
 0x9a6   :  { %v7253_v12 = vpop.permute.xlu0 %7252  ;;  %v7845_v63 = vld [vmem:[#allocation2 + $0x178] sm:$0xff] }
 0x9a7   :  { %v7255_v9 = vpop.permute.xlu1 %7254  ;;  %7397 = vst.msk [vmem:[#allocation2 + $0x180] sm:$0xff] %vm7348_vm5, %v7253_v12  ;;  %10039 = vmatmul.mubr.msk.f32.gmra.mrb[44].mxu1 %vm7871_vm7, %v7845_v63 }
 0x9a8   :  { %7398 = vst.msk [vmem:[#allocation2 + $0x188] sm:$0xff] %vm7348_vm5, %v7255_v9  ;;  %7665 = vrot.lane.b32.xlu0 %v7475_v60, %s10128_s27 }
 0x9a9   :  { %7667 = vrot.lane.b32.xlu1 %v7476_v54, %s10128_s27 }
 0x9aa   :  { %v7638_v6 = vpop.permute.xlu0 %7637  ;;  %v16046_v13 = vpop.f32.mrb[16].mxu1 }
 0x9ab   :  { %v6486_v32 = vpop.permute.xlu1 %6485  ;;  %7782 = vst.msk [vmem:[#allocation2 + $0x180] sm:$0xff] %vm7733_vm6, %v7638_v6  ;;  %v16049_v55 = vpop.f32.mrb[17].mxu1  ;;  %v8601_v51 = vmul.f32 %v16046_v13, %v16046_v13  ;;  %v8486_v49 = vsel %vm93_vm0, %v16046_v13, 0.0 }
 0x9ac   :  { %6628 = vst.msk [vmem:[#allocation2 + $0x190] sm:$0xff] %vm6577_vm3, %v6486_v32  ;;  %v8484_v52 = vsel %vm93_vm0, %v16049_v55, 0.0  ;;  %v8600_v39 = vmul.f32 %v16049_v55, %v16049_v55 }
 0x9ad   :  { %v8485_v37 = vadd.f32 %v8484_v52, %v8483_v46  ;;  %v8683_v7 = vsel %vm93_vm0, %v8601_v51, 0.0 }
 0x9ae   :  { %v8681_v29 = vsel %vm93_vm0, %v8600_v39, 0.0  ;;  %v7640_v35 = vpop.permute.xlu0 %7639 }
 0x9af   :  { %v8682_v47 = vadd.f32 %v8681_v29, %v8680_v31  ;;  %v6488_v0 = vpop.permute.xlu1 %6487  ;;  %7783 = vst.msk [vmem:[#allocation2 + $0x188] sm:$0xff] %vm7733_vm6, %v7640_v35  ;;  %v8487_v36 = vadd.f32 %v8486_v49, %v8485_v37 }
 0x9b0   :  { %6629 = vst.msk [vmem:[#allocation2 + $0x198] sm:$0xff] %vm6577_vm3, %v6488_v0 }
 0x9b1   :  { %v8684_v20 = vadd.f32 %v8683_v7, %v8682_v47 }
 0x9b2   :  { %v6872_v19 = vpop.permute.xlu0 %6871  ;;  %v7846_v8 = vld [vmem:[#allocation2 + $0x180] sm:$0xff] }
 0x9b3   :  { %v6874_v58 = vpop.permute.xlu1 %6873  ;;  %7014 = vst.msk [vmem:[#allocation2 + $0x190] sm:$0xff] %vm6963_vm4, %v6872_v19  ;;  %10041 = vmatprep.mubr.msk.f32.mxu1 %vm7871_vm7, %v7846_v8 }
 0x9b4   :  { %7015 = vst.msk [vmem:[#allocation2 + $0x198] sm:$0xff] %vm6963_vm4, %v6874_v58 }
 0x9b6   :  { %v7257_v1 = vpop.permute.xlu0 %7256  ;;  %v16067_v23 = vpop.f32.mrb[18].mxu1  ;;  %v7847_v4 = vld [vmem:[#allocation2 + $0x188] sm:$0xff] }
 0x9b7   :  { %v7259_v53 = vpop.permute.xlu1 %7258  ;;  %7399 = vst.msk [vmem:[#allocation2 + $0x190] sm:$0xff] %vm7348_vm5, %v7257_v1  ;;  %v16070_v50 = vpop.f32.mrb[19].mxu1  ;;  %10042 = vmatmul.mubr.msk.f32.gmra.mrb[46].mxu1 %vm7871_vm7, %v7847_v4  ;;  %v8603_v16 = vmul.f32 %v16067_v23, %v16067_v23  ;;  %v8490_v45 = vsel %vm93_vm0, %v16067_v23, 0.0 }
 0x9b8   :  { %7400 = vst.msk [vmem:[#allocation2 + $0x198] sm:$0xff] %vm7348_vm5, %v7259_v53  ;;  %v8488_v38 = vsel %vm93_vm0, %v16070_v50, 0.0  ;;  %v8602_v34 = vmul.f32 %v16070_v50, %v16070_v50 }
 0x9b9   :  { %v8489_v14 = vadd.f32 %v8488_v38, %v8487_v36  ;;  %v8687_v5 = vsel %vm93_vm0, %v8603_v16, 0.0 }
 0x9ba   :  { %v8685_v11 = vsel %vm93_vm0, %v8602_v34, 0.0  ;;  %v7642_v26 = vpop.permute.xlu0 %7641 }
 0x9bb   :  { %v8686_v44 = vadd.f32 %v8685_v11, %v8684_v20  ;;  %v6490_v18 = vpop.permute.xlu1 %6489  ;;  %7784 = vst.msk [vmem:[#allocation2 + $0x190] sm:$0xff] %vm7733_vm6, %v7642_v26  ;;  %v8491_v3 = vadd.f32 %v8490_v45, %v8489_v14 }
 0x9bc   :  { %6630 = vst.msk [vmem:[#allocation2 + $0x1a0] sm:$0xff] %vm6577_vm3, %v6490_v18 }
 0x9bd   :  { %v8688_v40 = vadd.f32 %v8687_v5, %v8686_v44 }
 0x9be   :  { %v7644_v22 = vpop.permute.xlu0 %7643 }
 0x9bf   :  { %v6492_v17 = vpop.permute.xlu1 %6491  ;;  %7785 = vst.msk [vmem:[#allocation2 + $0x198] sm:$0xff] %vm7733_vm6, %v7644_v22 }
 0x9c0   :  { %6631 = vst.msk [vmem:[#allocation2 + $0x1a8] sm:$0xff] %vm6577_vm3, %v6492_v17 }
 0x9c2   :  { %v6876_v46 = vpop.permute.xlu0 %6875  ;;  %v16088_v2 = vpop.f32.mrb[20].mxu1  ;;  %v7848_v60 = vld [vmem:[#allocation2 + $0x190] sm:$0xff] }
 0x9c3   :  { %v6878_v31 = vpop.permute.xlu1 %6877  ;;  %7016 = vst.msk [vmem:[#allocation2 + $0x1a0] sm:$0xff] %vm6963_vm4, %v6876_v46  ;;  %v16091_v12 = vpop.f32.mrb[21].mxu1  ;;  %10044 = vmatprep.mubr.msk.f32.mxu1 %vm7871_vm7, %v7848_v60  ;;  %v8605_v63 = vmul.f32 %v16088_v2, %v16088_v2  ;;  %v8494_v32 = vsel %vm93_vm0, %v16088_v2, 0.0 }
 0x9c4   :  { %7017 = vst.msk [vmem:[#allocation2 + $0x1a8] sm:$0xff] %vm6963_vm4, %v6878_v31  ;;  %v8492_v54 = vsel %vm93_vm0, %v16091_v12, 0.0  ;;  %v8604_v9 = vmul.f32 %v16091_v12, %v16091_v12 }
 0x9c5   :  { %v8493_v6 = vadd.f32 %v8492_v54, %v8491_v3  ;;  %v8691_v35 = vsel %vm93_vm0, %v8605_v63, 0.0 }
 0x9c6   :  { %v8689_v51 = vsel %vm93_vm0, %v8604_v9, 0.0  ;;  %v7261_v52 = vpop.permute.xlu0 %7260  ;;  %v7849_v39 = vld [vmem:[#allocation2 + $0x198] sm:$0xff] }
 0x9c7   :  { %v8690_v37 = vadd.f32 %v8689_v51, %v8688_v40  ;;  %v7263_v49 = vpop.permute.xlu1 %7262  ;;  %7401 = vst.msk [vmem:[#allocation2 + $0x1a0] sm:$0xff] %vm7348_vm5, %v7261_v52  ;;  %10045 = vmatmul.mubr.msk.f32.gmra.mrb[48].mxu1 %vm7871_vm7, %v7849_v39  ;;  %v8495_v29 = vadd.f32 %v8494_v32, %v8493_v6 }
 0x9c8   :  { %7402 = vst.msk [vmem:[#allocation2 + $0x1a8] sm:$0xff] %vm7348_vm5, %v7263_v49 }
 0x9c9   :  { %v8692_v47 = vadd.f32 %v8691_v35, %v8690_v37 }
 0x9ca   :  { %v7646_v0 = vpop.permute.xlu0 %7645 }
 0x9cb   :  { %v6494_v36 = vpop.permute.xlu1 %6493  ;;  %7786 = vst.msk [vmem:[#allocation2 + $0x1a0] sm:$0xff] %vm7733_vm6, %v7646_v0 }
 0x9cc   :  { %6632 = vst.msk [vmem:[#allocation2 + $0x1b0] sm:$0xff] %vm6577_vm3, %v6494_v36 }
 0x9ce   :  { %v7648_v7 = vpop.permute.xlu0 %7647  ;;  %v16110_v20 = vpop.f32.mrb[22].mxu1 }
 0x9cf   :  { %v6496_v19 = vpop.permute.xlu1 %6495  ;;  %7787 = vst.msk [vmem:[#allocation2 + $0x1a8] sm:$0xff] %vm7733_vm6, %v7648_v7  ;;  %v16113_v8 = vpop.f32.mrb[23].mxu1  ;;  %v8607_v58 = vmul.f32 %v16110_v20, %v16110_v20  ;;  %v8498_v16 = vsel %vm93_vm0, %v16110_v20, 0.0 }
 0x9d0   :  { %6633 = vst.msk [vmem:[#allocation2 + $0x1b8] sm:$0xff] %vm6577_vm3, %v6496_v19  ;;  %v8496_v1 = vsel %vm93_vm0, %v16113_v8, 0.0  ;;  %v8606_v4 = vmul.f32 %v16113_v8, %v16113_v8 }
 0x9d1   :  { %v8497_v53 = vadd.f32 %v8496_v1, %v8495_v29  ;;  %v8695_v44 = vsel %vm93_vm0, %v8607_v58, 0.0 }
 0x9d2   :  { %v8693_v38 = vsel %vm93_vm0, %v8606_v4, 0.0  ;;  %v6880_v34 = vpop.permute.xlu0 %6879  ;;  %v7850_v14 = vld [vmem:[#allocation2 + $0x1a0] sm:$0xff] }
 0x9d3   :  { %v8694_v45 = vadd.f32 %v8693_v38, %v8692_v47  ;;  %v6882_v11 = vpop.permute.xlu1 %6881  ;;  %7018 = vst.msk [vmem:[#allocation2 + $0x1b0] sm:$0xff] %vm6963_vm4, %v6880_v34  ;;  %10047 = vmatprep.mubr.msk.f32.mxu1 %vm7871_vm7, %v7850_v14  ;;  %v8499_v26 = vadd.f32 %v8498_v16, %v8497_v53 }
 0x9d4   :  { %7019 = vst.msk [vmem:[#allocation2 + $0x1b8] sm:$0xff] %vm6963_vm4, %v6882_v11 }
 0x9d5   :  { %v8696_v18 = vadd.f32 %v8695_v44, %v8694_v45 }
 0x9d6   :  { %v7265_v3 = vpop.permute.xlu0 %7264  ;;  %v7851_v5 = vld [vmem:[#allocation2 + $0x1a8] sm:$0xff] }
 0x9d7   :  { %v7267_v40 = vpop.permute.xlu1 %7266  ;;  %7403 = vst.msk [vmem:[#allocation2 + $0x1b0] sm:$0xff] %vm7348_vm5, %v7265_v3  ;;  %10048 = vmatmul.mubr.msk.f32.gmra.mrb[50].mxu1 %vm7871_vm7, %v7851_v5 }
 0x9d8   :  { %7404 = vst.msk [vmem:[#allocation2 + $0x1b8] sm:$0xff] %vm7348_vm5, %v7267_v40 }
 0x9da   :  { %v7650_v22 = vpop.permute.xlu0 %7649  ;;  %v16132_v17 = vpop.f32.mrb[24].mxu1 }
 0x9db   :  { %v6498_v46 = vpop.permute.xlu1 %6497  ;;  %7788 = vst.msk [vmem:[#allocation2 + $0x1b0] sm:$0xff] %vm7733_vm6, %v7650_v22  ;;  %v16135_v60 = vpop.f32.mrb[25].mxu1  ;;  %v8609_v31 = vmul.f32 %v16132_v17, %v16132_v17  ;;  %v8502_v6 = vsel %vm93_vm0, %v16132_v17, 0.0 }
 0x9dc   :  { %6634 = vst.msk [vmem:[#allocation2 + $0x1c0] sm:$0xff] %vm6577_vm3, %v6498_v46  ;;  %v8500_v63 = vsel %vm93_vm0, %v16135_v60, 0.0  ;;  %v8608_v54 = vmul.f32 %v16135_v60, %v16135_v60 }
 0x9dd   :  { %v8501_v9 = vadd.f32 %v8500_v63, %v8499_v26  ;;  %v8699_v49 = vsel %vm93_vm0, %v8609_v31, 0.0 }
 0x9de   :  { %v8697_v32 = vsel %vm93_vm0, %v8608_v54, 0.0  ;;  %v7652_v51 = vpop.permute.xlu0 %7651 }
 0x9df   :  { %v8698_v52 = vadd.f32 %v8697_v32, %v8696_v18  ;;  %v6500_v39 = vpop.permute.xlu1 %6499  ;;  %7789 = vst.msk [vmem:[#allocation2 + $0x1b8] sm:$0xff] %vm7733_vm6, %v7652_v51  ;;  %v8503_v37 = vadd.f32 %v8502_v6, %v8501_v9 }
 0x9e0   :  { %6635 = vst.msk [vmem:[#allocation2 + $0x1c8] sm:$0xff] %vm6577_vm3, %v6500_v39 }
 0x9e1   :  { %v8700_v29 = vadd.f32 %v8699_v49, %v8698_v52 }
 0x9e2   :  { %v6884_v35 = vpop.permute.xlu0 %6883  ;;  %v7852_v47 = vld [vmem:[#allocation2 + $0x1b0] sm:$0xff] }
 0x9e3   :  { %v6886_v0 = vpop.permute.xlu1 %6885  ;;  %7020 = vst.msk [vmem:[#allocation2 + $0x1c0] sm:$0xff] %vm6963_vm4, %v6884_v35  ;;  %10050 = vmatprep.mubr.msk.f32.mxu1 %vm7871_vm7, %v7852_v47 }
 0x9e4   :  { %7021 = vst.msk [vmem:[#allocation2 + $0x1c8] sm:$0xff] %vm6963_vm4, %v6886_v0 }
 0x9e6   :  { %v7269_v36 = vpop.permute.xlu0 %7268  ;;  %v7853_v7 = vld [vmem:[#allocation2 + $0x1b8] sm:$0xff] }
 0x9e7   :  { %v7271_v19 = vpop.permute.xlu1 %7270  ;;  %7405 = vst.msk [vmem:[#allocation2 + $0x1c0] sm:$0xff] %vm7348_vm5, %v7269_v36  ;;  %10051 = vmatmul.mubr.msk.f32.gmra.mrb[52].mxu1 %vm7871_vm7, %v7853_v7 }
 0x9e8   :  { %7406 = vst.msk [vmem:[#allocation2 + $0x1c8] sm:$0xff] %vm7348_vm5, %v7271_v19 }
 0x9ea   :  { %v7654_v58 = vpop.permute.xlu0 %7653  ;;  %v16156_v1 = vpop.f32.mrb[26].mxu1 }
 0x9eb   :  { %v6502_v4 = vpop.permute.xlu1 %6501  ;;  %7790 = vst.msk [vmem:[#allocation2 + $0x1c0] sm:$0xff] %vm7733_vm6, %v7654_v58  ;;  %v16159_v53 = vpop.f32.mrb[27].mxu1  ;;  %v8611_v16 = vmul.f32 %v16156_v1, %v16156_v1  ;;  %v8506_v45 = vsel %vm93_vm0, %v16156_v1, 0.0 }
 0x9ec   :  { %6636 = vst.msk [vmem:[#allocation2 + $0x1d0] sm:$0xff] %vm6577_vm3, %v6502_v4  ;;  %v8504_v38 = vsel %vm93_vm0, %v16159_v53, 0.0  ;;  %v8610_v34 = vmul.f32 %v16159_v53, %v16159_v53 }
 0x9ed   :  { %v8505_v14 = vadd.f32 %v8504_v38, %v8503_v37  ;;  %v8703_v5 = vsel %vm93_vm0, %v8611_v16, 0.0 }
 0x9ee   :  { %v8701_v11 = vsel %vm93_vm0, %v8610_v34, 0.0  ;;  %v7656_v26 = vpop.permute.xlu0 %7655 }
 0x9ef   :  { %v8702_v44 = vadd.f32 %v8701_v11, %v8700_v29  ;;  %v6504_v18 = vpop.permute.xlu1 %6503  ;;  %7791 = vst.msk [vmem:[#allocation2 + $0x1c8] sm:$0xff] %vm7733_vm6, %v7656_v26  ;;  %v8507_v3 = vadd.f32 %v8506_v45, %v8505_v14 }
 0x9f0   :  { %6637 = vst.msk [vmem:[#allocation2 + $0x1d8] sm:$0xff] %vm6577_vm3, %v6504_v18 }
 0x9f1   :  { %v8704_v40 = vadd.f32 %v8703_v5, %v8702_v44 }
 0x9f2   :  { %v6888_v22 = vpop.permute.xlu0 %6887  ;;  %v7854_v46 = vld [vmem:[#allocation2 + $0x1c0] sm:$0xff] }
 0x9f3   :  { %v6890_v31 = vpop.permute.xlu1 %6889  ;;  %7022 = vst.msk [vmem:[#allocation2 + $0x1d0] sm:$0xff] %vm6963_vm4, %v6888_v22  ;;  %10053 = vmatprep.mubr.msk.f32.mxu1 %vm7871_vm7, %v7854_v46 }
 0x9f4   :  { %7023 = vst.msk [vmem:[#allocation2 + $0x1d8] sm:$0xff] %vm6963_vm4, %v6890_v31 }
 0x9f6   :  { %v7273_v63 = vpop.permute.xlu0 %7272  ;;  %v7855_v54 = vld [vmem:[#allocation2 + $0x1c8] sm:$0xff] }
 0x9f7   :  { %v7275_v9 = vpop.permute.xlu1 %7274  ;;  %7407 = vst.msk [vmem:[#allocation2 + $0x1d0] sm:$0xff] %vm7348_vm5, %v7273_v63  ;;  %10054 = vmatmul.mubr.msk.f32.gmra.mrb[54].mxu1 %vm7871_vm7, %v7855_v54 }
 0x9f8   :  { %7408 = vst.msk [vmem:[#allocation2 + $0x1d8] sm:$0xff] %vm7348_vm5, %v7275_v9 }
 0x9fa   :  { %v7658_v6 = vpop.permute.xlu0 %7657  ;;  %v16180_v32 = vpop.f32.mrb[28].mxu1 }
 0x9fb   :  { %v6506_v51 = vpop.permute.xlu1 %6505  ;;  %7792 = vst.msk [vmem:[#allocation2 + $0x1d0] sm:$0xff] %vm7733_vm6, %v7658_v6  ;;  %v16183_v52 = vpop.f32.mrb[29].mxu1  ;;  %v8613_v39 = vmul.f32 %v16180_v32, %v16180_v32  ;;  %v8510_v35 = vsel %vm93_vm0, %v16180_v32, 0.0 }
 0x9fc   :  { %6638 = vst.msk [vmem:[#allocation2 + $0x1e0] sm:$0xff] %vm6577_vm3, %v6506_v51  ;;  %v8508_v37 = vsel %vm93_vm0, %v16183_v52, 0.0  ;;  %v8612_v49 = vmul.f32 %v16183_v52, %v16183_v52 }
 0x9fd   :  { %v8509_v29 = vadd.f32 %v8508_v37, %v8507_v3  ;;  %v8707_v58 = vsel %vm93_vm0, %v8613_v39, 0.0 }
 0x9fe   :  { %v8705_v47 = vsel %vm93_vm0, %v8612_v49, 0.0  ;;  %v7660_v0 = vpop.permute.xlu0 %7659 }
 0x9ff   :  { %v8706_v36 = vadd.f32 %v8705_v47, %v8704_v40  ;;  %v6508_v7 = vpop.permute.xlu1 %6507  ;;  %7793 = vst.msk [vmem:[#allocation2 + $0x1d8] sm:$0xff] %vm7733_vm6, %v7660_v0  ;;  %v8511_v19 = vadd.f32 %v8510_v35, %v8509_v29 }
 0xa00   :  { %6639 = vst.msk [vmem:[#allocation2 + $0x1e8] sm:$0xff] %vm6577_vm3, %v6508_v7 }
 0xa01   :  { %v8708_v4 = vadd.f32 %v8707_v58, %v8706_v36 }
 0xa02   :  { %v6892_v16 = vpop.permute.xlu0 %6891  ;;  %v7856_v38 = vld [vmem:[#allocation2 + $0x1d0] sm:$0xff] }
 0xa03   :  { %v6894_v34 = vpop.permute.xlu1 %6893  ;;  %7024 = vst.msk [vmem:[#allocation2 + $0x1e0] sm:$0xff] %vm6963_vm4, %v6892_v16  ;;  %10056 = vmatprep.mubr.msk.f32.mxu1 %vm7871_vm7, %v7856_v38 }
 0xa04   :  { %7025 = vst.msk [vmem:[#allocation2 + $0x1e8] sm:$0xff] %vm6963_vm4, %v6894_v34 }
 0xa06   :  { %v7277_v14 = vpop.permute.xlu0 %7276  ;;  %v7857_v45 = vld [vmem:[#allocation2 + $0x1d8] sm:$0xff] }
 0xa07   :  { %v7279_v11 = vpop.permute.xlu1 %7278  ;;  %7409 = vst.msk [vmem:[#allocation2 + $0x1e0] sm:$0xff] %vm7348_vm5, %v7277_v14  ;;  %10057 = vmatmul.mubr.msk.f32.gmra.mrb[56].mxu1 %vm7871_vm7, %v7857_v45 }
 0xa08   :  { %7410 = vst.msk [vmem:[#allocation2 + $0x1e8] sm:$0xff] %vm7348_vm5, %v7279_v11 }
 0xa0a   :  { %v7662_v26 = vpop.permute.xlu0 %7661  ;;  %v16204_v44 = vpop.f32.mrb[30].mxu1 }
 0xa0b   :  { %v6510_v18 = vpop.permute.xlu1 %6509  ;;  %7794 = vst.msk [vmem:[#allocation2 + $0x1e0] sm:$0xff] %vm7733_vm6, %v7662_v26  ;;  %v16207_v3 = vpop.f32.mrb[31].mxu1  ;;  %v8615_v5 = vmul.f32 %v16204_v44, %v16204_v44  ;;  %v8514_v31 = vsel %vm93_vm0, %v16204_v44, 0.0 }
 0xa0c   :  { %6640 = vst.msk [vmem:[#allocation2 + $0x1f0] sm:$0xff] %vm6577_vm3, %v6510_v18  ;;  %v8512_v40 = vsel %vm93_vm0, %v16207_v3, 0.0  ;;  %v8614_v22 = vmul.f32 %v16207_v3, %v16207_v3 }
 0xa0d   :  { %v8513_v46 = vadd.f32 %v8512_v40, %v8511_v19  ;;  %v8711_v39 = vsel %vm93_vm0, %v8615_v5, 0.0 }
 0xa0e   :  { %v8709_v63 = vsel %vm93_vm0, %v8614_v22, 0.0  ;;  %v7664_v54 = vpop.permute.xlu0 %7663 }
 0xa0f   :  { %v8710_v9 = vadd.f32 %v8709_v63, %v8708_v4  ;;  %v6512_v6 = vpop.permute.xlu1 %6511  ;;  %7795 = vst.msk [vmem:[#allocation2 + $0x1e8] sm:$0xff] %vm7733_vm6, %v7664_v54  ;;  %v8515_v51 = vadd.f32 %v8514_v31, %v8513_v46 }
 0xa10   :  { %6641 = vst.msk [vmem:[#allocation2 + $0x1f8] sm:$0xff] %vm6577_vm3, %v6512_v6 }
 0xa11   :  { %v8712_v37 = vadd.f32 %v8711_v39, %v8710_v9 }
 0xa12   :  { %v6896_v49 = vpop.permute.xlu0 %6895  ;;  %v7858_v29 = vld [vmem:[#allocation2 + $0x1e0] sm:$0xff] }
 0xa13   :  { %7026 = vst.msk [vmem:[#allocation2 + $0x1f0] sm:$0xff] %vm6963_vm4, %v6896_v49  ;;  %v6898_v35 = vpop.permute.xlu1 %6897  ;;  %10059 = vmatprep.mubr.msk.f32.mxu1 %vm7871_vm7, %v7858_v29 }
 0xa14   :  { %7027 = vst.msk [vmem:[#allocation2 + $0x1f8] sm:$0xff] %vm6963_vm4, %v6898_v35 }
 0xa16   :  { %v7281_v47 = vpop.permute.xlu0 %7280  ;;  %v7859_v0 = vld [vmem:[#allocation2 + $0x1e8] sm:$0xff] }
 0xa17   :  { %7411 = vst.msk [vmem:[#allocation2 + $0x1f0] sm:$0xff] %vm7348_vm5, %v7281_v47  ;;  %v7283_v36 = vpop.permute.xlu1 %7282  ;;  %10060 = vmatmul.mubr.msk.f32.gmra.mrb[58].mxu1 %vm7871_vm7, %v7859_v0 }
 0xa18   :  { %7412 = vst.msk [vmem:[#allocation2 + $0x1f8] sm:$0xff] %vm7348_vm5, %v7283_v36 }
 0xa1a   :  { %v7666_v7 = vpop.permute.xlu0 %7665  ;;  %v16228_v19 = vpop.f32.mrb[32].mxu1 }
 0xa1b   :  { %7796 = vst.msk [vmem:[#allocation2 + $0x1f0] sm:$0xff] %vm7733_vm6, %v7666_v7  ;;  %v7668_v58 = vpop.permute.xlu1 %7667  ;;  %v16231_v4 = vpop.f32.mrb[33].mxu1  ;;  %v8617_v16 = vmul.f32 %v16228_v19, %v16228_v19  ;;  %v8518_v45 = vsel %vm93_vm0, %v16228_v19, 0.0 }
 0xa1c   :  { %7797 = vst.msk [vmem:[#allocation2 + $0x1f8] sm:$0xff] %vm7733_vm6, %v7668_v58  ;;  %v8516_v38 = vsel %vm93_vm0, %v16231_v4, 0.0  ;;  %v8616_v34 = vmul.f32 %v16231_v4, %v16231_v4 }
 0xa1d   :  { %v8517_v14 = vadd.f32 %v8516_v38, %v8515_v51  ;;  %v8715_v5 = vsel %vm93_vm0, %v8617_v16, 0.0 }
 0xa1e   :  { %v8713_v11 = vsel %vm93_vm0, %v8616_v34, 0.0 }
 0xa1f   :  { %v8714_v26 = vadd.f32 %v8713_v11, %v8712_v37  ;;  %v8519_v18 = vadd.f32 %v8518_v45, %v8517_v14 }
 0xa21   :  { %v8716_v40 = vadd.f32 %v8715_v5, %v8714_v26 }
 0xa22   :  { %v7860_v22 = vld [vmem:[#allocation2 + $0x1f0] sm:$0xff] }
 0xa23   :  { %10062 = vmatprep.mubr.msk.f32.mxu1 %vm7871_vm7, %v7860_v22  ;;  %v7861_v46 = vld [vmem:[#allocation2 + $0x1f8] sm:$0xff] }
 0xa24   :  { %10063 = vmatmul.mubr.msk.f32.gmra.mrb[60].mxu1 %vm7871_vm7, %v7861_v46 }
 0xa2a   :  { %v16246_v31 = vpop.f32.mrb[34].mxu1 }
 0xa2b   :  { %v16248_v63 = vpop.f32.mrb[35].mxu1  ;;  %v8619_v54 = vmul.f32 %v16246_v31, %v16246_v31  ;;  %v8522_v39 = vsel %vm93_vm0, %v16246_v31, 0.0 }
 0xa2c   :  { %v8520_v9 = vsel %vm93_vm0, %v16248_v63, 0.0  ;;  %v8618_v6 = vmul.f32 %v16248_v63, %v16248_v63 }
 0xa2d   :  { %v8521_v51 = vadd.f32 %v8520_v9, %v8519_v18  ;;  %v8719_v35 = vsel %vm93_vm0, %v8619_v54, 0.0 }
 0xa2e   :  { %v8717_v37 = vsel %vm93_vm0, %v8618_v6, 0.0 }
 0xa2f   :  { %v8718_v49 = vadd.f32 %v8717_v37, %v8716_v40  ;;  %v8523_v29 = vadd.f32 %v8522_v39, %v8521_v51 }
 0xa31   :  { %v8720_v47 = vadd.f32 %v8719_v35, %v8718_v49 }
 0xa3a   :  { %v16260_v0 = vpop.f32.mrb[36].mxu1 }
 0xa3b   :  { %v16262_v36 = vpop.f32.mrb[37].mxu1  ;;  %v8621_v7 = vmul.f32 %v16260_v0, %v16260_v0  ;;  %v8526_v34 = vsel %vm93_vm0, %v16260_v0, 0.0 }
 0xa3c   :  { %v8524_v58 = vsel %vm93_vm0, %v16262_v36, 0.0  ;;  %v8620_v16 = vmul.f32 %v16262_v36, %v16262_v36 }
 0xa3d   :  { %v8525_v38 = vadd.f32 %v8524_v58, %v8523_v29  ;;  %v8723_v26 = vsel %vm93_vm0, %v8621_v7, 0.0 }
 0xa3e   :  { %v8721_v14 = vsel %vm93_vm0, %v8620_v16, 0.0 }
 0xa3f   :  { %v8722_v45 = vadd.f32 %v8721_v14, %v8720_v47  ;;  %v8527_v11 = vadd.f32 %v8526_v34, %v8525_v38 }
 0xa41   :  { %v8724_v18 = vadd.f32 %v8723_v26, %v8722_v45 }
 0xa4a   :  { %v16274_v5 = vpop.f32.mrb[38].mxu1 }
 0xa4b   :  { %17849 = vst [vmem:[#allocation25_spill] sm:$0xff] %v16274_v5  ;;  %v16276_v40 = vpop.f32.mrb[39].mxu1  ;;  %v8623_v22 = vmul.f32 %v16274_v5, %v16274_v5  ;;  %v8530_v6 = vsel %vm93_vm0, %v16274_v5, 0.0 }
 0xa4c   :  { %17850 = vst [vmem:[#allocation27_spill] sm:$0xff] %v16276_v40  ;;  %v8528_v46 = vsel %vm93_vm0, %v16276_v40, 0.0  ;;  %v8622_v54 = vmul.f32 %v16276_v40, %v16276_v40 }
 0xa4d   :  { %v8529_v9 = vadd.f32 %v8528_v46, %v8527_v11  ;;  %v8727_v49 = vsel %vm93_vm0, %v8623_v22, 0.0 }
 0xa4e   :  { %v8725_v51 = vsel %vm93_vm0, %v8622_v54, 0.0 }
 0xa4f   :  { %v8726_v39 = vadd.f32 %v8725_v51, %v8724_v18  ;;  %v8531_v37 = vadd.f32 %v8530_v6, %v8529_v9 }
 0xa51   :  { %v8728_v29 = vadd.f32 %v8727_v49, %v8726_v39 }
 0xa5a   :  { %v16288_v35 = vpop.f32.mrb[40].mxu1 }
 0xa5b   :  { %17851 = vst [vmem:[#allocation4_spill] sm:$0xff] %v16288_v35  ;;  %v16290_v47 = vpop.f32.mrb[41].mxu1  ;;  %v8625_v7 = vmul.f32 %v16288_v35, %v16288_v35  ;;  %v8534_v34 = vsel %vm93_vm0, %v16288_v35, 0.0 }
 0xa5c   :  { %17852 = vst [vmem:[#allocation6_spill] sm:$0xff] %v16290_v47  ;;  %v8532_v58 = vsel %vm93_vm0, %v16290_v47, 0.0  ;;  %v8624_v16 = vmul.f32 %v16290_v47, %v16290_v47 }
 0xa5d   :  { %v8533_v38 = vadd.f32 %v8532_v58, %v8531_v37  ;;  %v8731_v26 = vsel %vm93_vm0, %v8625_v7, 0.0 }
 0xa5e   :  { %v8729_v14 = vsel %vm93_vm0, %v8624_v16, 0.0 }
 0xa5f   :  { %v8730_v45 = vadd.f32 %v8729_v14, %v8728_v29  ;;  %v8535_v11 = vadd.f32 %v8534_v34, %v8533_v38 }
 0xa61   :  { %v8732_v18 = vadd.f32 %v8731_v26, %v8730_v45 }
 0xa6a   :  { %v16302_v22 = vpop.f32.mrb[42].mxu1 }
 0xa6b   :  { %17853 = vst [vmem:[#allocation5_spill] sm:$0xff] %v16302_v22  ;;  %v16304_v46 = vpop.f32.mrb[43].mxu1  ;;  %v8627_v54 = vmul.f32 %v16302_v22, %v16302_v22  ;;  %v8538_v39 = vsel %vm93_vm0, %v16302_v22, 0.0 }
 0xa6c   :  { %17854 = vst [vmem:[#allocation8_spill] sm:$0xff] %v16304_v46  ;;  %v8536_v9 = vsel %vm93_vm0, %v16304_v46, 0.0  ;;  %v8626_v6 = vmul.f32 %v16304_v46, %v16304_v46 }
 0xa6d   :  { %v8537_v51 = vadd.f32 %v8536_v9, %v8535_v11  ;;  %v8735_v7 = vsel %vm93_vm0, %v8627_v54, 0.0 }
 0xa6e   :  { %v8733_v37 = vsel %vm93_vm0, %v8626_v6, 0.0 }
 0xa6f   :  { %v8734_v49 = vadd.f32 %v8733_v37, %v8732_v18  ;;  %v8539_v29 = vadd.f32 %v8538_v39, %v8537_v51 }
 0xa71   :  { %v8736_v58 = vadd.f32 %v8735_v7, %v8734_v49 }
 0xa7a   :  { %v16316_v16 = vpop.f32.mrb[44].mxu1 }
 0xa7b   :  { %17855 = vst [vmem:[#allocation7_spill] sm:$0xff] %v16316_v16  ;;  %v16318_v38 = vpop.f32.mrb[45].mxu1  ;;  %v8629_v34 = vmul.f32 %v16316_v16, %v16316_v16  ;;  %v8542_v26 = vsel %vm93_vm0, %v16316_v16, 0.0 }
 0xa7c   :  { %17856 = vst [vmem:[#allocation10_spill] sm:$0xff] %v16318_v38  ;;  %v8540_v14 = vsel %vm93_vm0, %v16318_v38, 0.0  ;;  %v8628_v45 = vmul.f32 %v16318_v38, %v16318_v38 }
 0xa7d   :  { %v8541_v11 = vadd.f32 %v8540_v14, %v8539_v29  ;;  %v8739_v6 = vsel %vm93_vm0, %v8629_v34, 0.0 }
 0xa7e   :  { %v8737_v18 = vsel %vm93_vm0, %v8628_v45, 0.0 }
 0xa7f   :  { %v8738_v54 = vadd.f32 %v8737_v18, %v8736_v58  ;;  %v8543_v9 = vadd.f32 %v8542_v26, %v8541_v11 }
 0xa81   :  { %v8740_v51 = vadd.f32 %v8739_v6, %v8738_v54 }
 0xa8a   :  { %v16330_v39 = vpop.f32.mrb[46].mxu1 }
 0xa8b   :  { %17857 = vst [vmem:[#allocation9_spill] sm:$0xff] %v16330_v39  ;;  %v16332_v37 = vpop.f32.mrb[47].mxu1  ;;  %v8631_v49 = vmul.f32 %v16330_v39, %v16330_v39  ;;  %v8546_v58 = vsel %vm93_vm0, %v16330_v39, 0.0 }
 0xa8c   :  { %17858 = vst [vmem:[#allocation12_spill] sm:$0xff] %v16332_v37  ;;  %v8544_v29 = vsel %vm93_vm0, %v16332_v37, 0.0  ;;  %v8630_v7 = vmul.f32 %v16332_v37, %v16332_v37 }
 0xa8d   :  { %v8545_v14 = vadd.f32 %v8544_v29, %v8543_v9  ;;  %v8743_v26 = vsel %vm93_vm0, %v8631_v49, 0.0 }
 0xa8e   :  { %v8741_v34 = vsel %vm93_vm0, %v8630_v7, 0.0 }
 0xa8f   :  { %v8742_v45 = vadd.f32 %v8741_v34, %v8740_v51  ;;  %v8547_v11 = vadd.f32 %v8546_v58, %v8545_v14 }
 0xa91   :  { %v8744_v18 = vadd.f32 %v8743_v26, %v8742_v45 }
 0xa9a   :  { %v16344_v54 = vpop.f32.mrb[48].mxu1 }
 0xa9b   :  { %17859 = vst [vmem:[#allocation11_spill] sm:$0xff] %v16344_v54  ;;  %v16346_v6 = vpop.f32.mrb[49].mxu1  ;;  %v8633_v16 = vmul.f32 %v16344_v54, %v16344_v54  ;;  %v8550_v51 = vsel %vm93_vm0, %v16344_v54, 0.0 }
 0xa9c   :  { %17860 = vst [vmem:[#allocation14_spill] sm:$0xff] %v16346_v6  ;;  %v8548_v9 = vsel %vm93_vm0, %v16346_v6, 0.0  ;;  %v8632_v29 = vmul.f32 %v16346_v6, %v16346_v6 }
 0xa9d   :  { %v8549_v39 = vadd.f32 %v8548_v9, %v8547_v11  ;;  %v8747_v58 = vsel %vm93_vm0, %v8633_v16, 0.0 }
 0xa9e   :  { %v8745_v49 = vsel %vm93_vm0, %v8632_v29, 0.0 }
 0xa9f   :  { %v8746_v7 = vadd.f32 %v8745_v49, %v8744_v18  ;;  %v8551_v14 = vadd.f32 %v8550_v51, %v8549_v39 }
 0xaa1   :  { %v8748_v34 = vadd.f32 %v8747_v58, %v8746_v7 }
 0xaaa   :  { %v16358_v45 = vpop.f32.mrb[50].mxu1 }
 0xaab   :  { %17861 = vst [vmem:[#allocation13_spill] sm:$0xff] %v16358_v45  ;;  %v16360_v26 = vpop.f32.mrb[51].mxu1  ;;  %v8635_v37 = vmul.f32 %v16358_v45, %v16358_v45  ;;  %v8554_v39 = vsel %vm93_vm0, %v16358_v45, 0.0 }
 0xaac   :  { %17862 = vst [vmem:[#allocation16_spill] sm:$0xff] %v16360_v26  ;;  %v8552_v11 = vsel %vm93_vm0, %v16360_v26, 0.0  ;;  %v8634_v9 = vmul.f32 %v16360_v26, %v16360_v26 }
 0xaad   :  { %v8553_v54 = vadd.f32 %v8552_v11, %v8551_v14  ;;  %v8751_v51 = vsel %vm93_vm0, %v8635_v37, 0.0 }
 0xaae   :  { %v8749_v16 = vsel %vm93_vm0, %v8634_v9, 0.0 }
 0xaaf   :  { %v8750_v18 = vadd.f32 %v8749_v16, %v8748_v34  ;;  %v8555_v29 = vadd.f32 %v8554_v39, %v8553_v54 }
 0xab1   :  { %v8752_v49 = vadd.f32 %v8751_v51, %v8750_v18 }
 0xaba   :  { %v16372_v7 = vpop.f32.mrb[52].mxu1 }
 0xabb   :  { %17863 = vst [vmem:[#allocation15_spill] sm:$0xff] %v16372_v7  ;;  %v16374_v58 = vpop.f32.mrb[53].mxu1  ;;  %v8637_v6 = vmul.f32 %v16372_v7, %v16372_v7  ;;  %v8558_v54 = vsel %vm93_vm0, %v16372_v7, 0.0 }
 0xabc   :  { %17864 = vst [vmem:[#allocation18_spill] sm:$0xff] %v16374_v58  ;;  %v8556_v14 = vsel %vm93_vm0, %v16374_v58, 0.0  ;;  %v8636_v11 = vmul.f32 %v16374_v58, %v16374_v58 }
 0xabd   :  { %v8557_v45 = vadd.f32 %v8556_v14, %v8555_v29  ;;  %v8755_v39 = vsel %vm93_vm0, %v8637_v6, 0.0 }
 0xabe   :  { %v8753_v37 = vsel %vm93_vm0, %v8636_v11, 0.0 }
 0xabf   :  { %v8754_v34 = vadd.f32 %v8753_v37, %v8752_v49  ;;  %v8559_v9 = vadd.f32 %v8558_v54, %v8557_v45 }
 0xac1   :  { %v8756_v16 = vadd.f32 %v8755_v39, %v8754_v34 }
 0xaca   :  { %v16386_v18 = vpop.f32.mrb[54].mxu1 }
 0xacb   :  { %17865 = vst [vmem:[#allocation17_spill] sm:$0xff] %v16386_v18  ;;  %v16388_v51 = vpop.f32.mrb[55].mxu1  ;;  %v8639_v26 = vmul.f32 %v16386_v18, %v16386_v18  ;;  %v8562_v45 = vsel %vm93_vm0, %v16386_v18, 0.0 }
 0xacc   :  { %17866 = vst [vmem:[#allocation20_spill] sm:$0xff] %v16388_v51  ;;  %v8560_v29 = vsel %vm93_vm0, %v16388_v51, 0.0  ;;  %v8638_v14 = vmul.f32 %v16388_v51, %v16388_v51 }
 0xacd   :  { %v8561_v7 = vadd.f32 %v8560_v29, %v8559_v9  ;;  %v8759_v54 = vsel %vm93_vm0, %v8639_v26, 0.0 }
 0xace   :  { %v8757_v6 = vsel %vm93_vm0, %v8638_v14, 0.0 }
 0xacf   :  { %v8758_v49 = vadd.f32 %v8757_v6, %v8756_v16  ;;  %v8563_v11 = vadd.f32 %v8562_v45, %v8561_v7 }
 0xad1   :  { %v8760_v37 = vadd.f32 %v8759_v54, %v8758_v49 }
 0xada   :  { %v16400_v34 = vpop.f32.mrb[56].mxu1 }
 0xadb   :  { %17867 = vst [vmem:[#allocation22_spill] sm:$0xff] %v16400_v34  ;;  %v16402_v39 = vpop.f32.mrb[57].mxu1  ;;  %v8641_v58 = vmul.f32 %v16400_v34, %v16400_v34  ;;  %v8566_v7 = vsel %vm93_vm0, %v16400_v34, 0.0 }
 0xadc   :  { %17868 = vst [vmem:[#allocation19_spill] sm:$0xff] %v16402_v39  ;;  %v8564_v9 = vsel %vm93_vm0, %v16402_v39, 0.0  ;;  %v8640_v29 = vmul.f32 %v16402_v39, %v16402_v39 }
 0xadd   :  { %v8565_v18 = vadd.f32 %v8564_v9, %v8563_v11  ;;  %v8763_v45 = vsel %vm93_vm0, %v8641_v58, 0.0 }
 0xade   :  { %v8761_v26 = vsel %vm93_vm0, %v8640_v29, 0.0 }
 0xadf   :  { %v8762_v16 = vadd.f32 %v8761_v26, %v8760_v37  ;;  %v8567_v14 = vadd.f32 %v8566_v7, %v8565_v18 }
 0xae1   :  { %v8764_v6 = vadd.f32 %v8763_v45, %v8762_v16 }
 0xaea   :  { %v16414_v49 = vpop.f32.mrb[58].mxu1 }
 0xaeb   :  { %17869 = vst [vmem:[#allocation24_spill] sm:$0xff] %v16414_v49  ;;  %v16416_v54 = vpop.f32.mrb[59].mxu1  ;;  %v8643_v51 = vmul.f32 %v16414_v49, %v16414_v49  ;;  %v8570_v18 = vsel %vm93_vm0, %v16414_v49, 0.0 }
 0xaec   :  { %17870 = vst [vmem:[#allocation21_spill] sm:$0xff] %v16416_v54  ;;  %v8568_v11 = vsel %vm93_vm0, %v16416_v54, 0.0  ;;  %v8642_v9 = vmul.f32 %v16416_v54, %v16416_v54 }
 0xaed   :  { %v8569_v34 = vadd.f32 %v8568_v11, %v8567_v14  ;;  %v8767_v7 = vsel %vm93_vm0, %v8643_v51, 0.0 }
 0xaee   :  { %v8765_v58 = vsel %vm93_vm0, %v8642_v9, 0.0 }
 0xaef   :  { %v8766_v37 = vadd.f32 %v8765_v58, %v8764_v6  ;;  %v8571_v29 = vadd.f32 %v8570_v18, %v8569_v34 }
 0xaf1   :  { %v8768_v26 = vadd.f32 %v8767_v7, %v8766_v37 }
 0xaf7   :  { %v16428_v16 = vpop.f32.mrb[60].mxu1 }
 0xaf8   :  { %17871 = vst [vmem:[#allocation26_spill] sm:$0xff] %v16428_v16  ;;  %v16430_v45 = vpop.f32.mrb[61].mxu1  ;;  %v8645_v39 = vmul.f32 %v16428_v16, %v16428_v16  ;;  %v8574_v34 = vsel %vm93_vm0, %v16428_v16, 0.0 }
 0xaf9   :  { %17872 = vst [vmem:[#allocation23_spill] sm:$0xff] %v16430_v45  ;;  %v8572_v14 = vsel %vm93_vm0, %v16430_v45, 0.0  ;;  %v8644_v11 = vmul.f32 %v16430_v45, %v16430_v45 }
 0xafa   :  { %v8573_v49 = vadd.f32 %v8572_v14, %v8571_v29  ;;  %v8771_v18 = vsel %vm93_vm0, %v8645_v39, 0.0  ;;  %v8783_v39 = vld [vmem:[%s17684_s6] sm:$0x1] }
 0xafb   :  { %v8769_v51 = vsel %vm93_vm0, %v8644_v11, 0.0 }
 0xafc   :  { %v8575_v6 = vadd.f32 %v8574_v34, %v8573_v49  ;;  %v8770_v9 = vadd.f32 %v8769_v51, %v8768_v26 }
 0xafe   :  { %v8576_v58 = vrot.slane %v8575_v6, 4  ;;  %v8772_v37 = vadd.f32 %v8771_v18, %v8770_v9  ;;  %v17875_v9 = vld [vmem:[#allocation25_spill] sm:$0xff]  ;;  %v17876_v18 = vld [vmem:[#allocation6_spill] sm:$0xff] }
 0xb00   :  { %v8577_v7 = vadd.f32 %v8576_v58, %v8575_v6  ;;  %v8773_v54 = vrot.slane %v8772_v37, 4  ;;  %v17874_v6 = vld [vmem:[#allocation27_spill] sm:$0xff]  ;;  %v17877_v58 = vld [vmem:[#allocation4_spill] sm:$0xff] }
 0xb02   :  { %v8578_v38 = vrot.slane %v8577_v7, 2  ;;  %v8774_v22 = vadd.f32 %v8773_v54, %v8772_v37  ;;  %v17878_v37 = vld [vmem:[#allocation8_spill] sm:$0xff] }
 0xb04   :  { %v8579_v46 = vadd.f32 %v8578_v38, %v8577_v7  ;;  %v8775_v35 = vrot.slane %v8774_v22, 2  ;;  %v16448_v38 = vld [vmem:[%s17685_s7] sm:$0x1]  ;;  %v17879_v7 = vld [vmem:[#allocation5_spill] sm:$0xff] }
 0xb06   :  { %v8580_v47 = vrot.slane %v8579_v46, 1  ;;  %v8776_v45 = vadd.f32 %v8775_v35, %v8774_v22 }
 0xb08   :  { %v8581_v29 = vadd.f32 %v8580_v47, %v8579_v46  ;;  %v8777_v14 = vrot.slane %v8776_v45, 1  ;;  %v17873_v47 = vld [vmem:[#allocation28_spill] sm:$0xff] }
 0xb0a   :  { %v8778_v5 = vadd.f32 %v8777_v14, %v8776_v45  ;;  %v8779_v16 = vmul.f32 0.001953125, %v8581_v29  ;;  %v17880_v14 = vld [vmem:[#allocation10_spill] sm:$0xff] }
 0xb0c   :  { %v8780_v40 = vmul.f32 0.001953125, %v8778_v5  ;;  %v8781_v11 = vmul.f32 %v8779_v16, %v8779_v16  ;;  %v17893_v5 = vld [vmem:[#allocation18_spill] sm:$0xff] }
 0xb0e   :  { %v8782_v49 = vsub.f32 %v8780_v40, %v8781_v11 }
 0xb10   :  { %v8784_v26 = vadd.f32 1e-05, %v8782_v49  ;;  %v17881_v49 = vld [vmem:[#allocation7_spill] sm:$0xff] }
 0xb12   :  { %10114 = vrsqrt.f32 %v8784_v26 }
 0xb1c   :  { %v10115_v34 = vpop.eup %10114 }
 0xb1d   :  { %v8786_v51 = vmul.f32 %v10115_v34, %v8783_v39  ;;  %v17882_v39 = vld [vmem:[#allocation12_spill] sm:$0xff] }
 0xb1f   :  { %v16450_v35 = vmul.f32 %v8786_v51, %v8779_v16  ;;  %v16453_v22 = vrot.slane %v8786_v51, %v17873_v47  ;;  %v17883_v51 = vld [vmem:[#allocation9_spill] sm:$0xff] }
 0xb21   :  { %v16459_v40 = vmul.f32 %v16453_v22, %v15811_v41  ;;  %v16463_v46 = vmul.f32 %v15802_v30, %v16453_v22  ;;  %v16467_v54 = vmul.f32 %v16453_v22, %v15829_v61  ;;  %v16471_v16 = vmul.f32 %v15826_v42, %v16453_v22 }
 0xb22   :  { %v16475_v45 = vmul.f32 %v16453_v22, %v15856_v59  ;;  %v16479_v41 = vmul.f32 %v15853_v28, %v16453_v22  ;;  %v16483_v30 = vmul.f32 %v16453_v22, %v15883_v25  ;;  %v16487_v61 = vmul.f32 %v15880_v21, %v16453_v22 }
 0xb23   :  { %v16491_v42 = vmul.f32 %v16453_v22, %v15911_v24  ;;  %v16495_v59 = vmul.f32 %v15908_v15, %v16453_v22  ;;  %v16499_v28 = vmul.f32 %v16453_v22, %v15939_v62  ;;  %v16503_v25 = vmul.f32 %v15936_v57, %v16453_v22 }
 0xb24   :  { %v16507_v21 = vmul.f32 %v16453_v22, %v15966_v56  ;;  %v16511_v24 = vmul.f32 %v15963_v33, %v16453_v22  ;;  %v16515_v15 = vmul.f32 %v16453_v22, %v15993_v43  ;;  %v16519_v62 = vmul.f32 %v15990_v48, %v16453_v22 }
 0xb25   :  { %v16523_v57 = vmul.f32 %v16453_v22, %v16021_v27  ;;  %v16527_v56 = vmul.f32 %v16018_v10, %v16453_v22  ;;  %v16531_v33 = vmul.f32 %v16453_v22, %v16049_v55  ;;  %v16535_v43 = vmul.f32 %v16046_v13, %v16453_v22 }
 0xb26   :  { %v16539_v48 = vmul.f32 %v16453_v22, %v16070_v50  ;;  %v16543_v27 = vmul.f32 %v16067_v23, %v16453_v22  ;;  %v16547_v10 = vmul.f32 %v16453_v22, %v16091_v12  ;;  %v16551_v55 = vmul.f32 %v16088_v2, %v16453_v22 }
 0xb27   :  { %v16555_v13 = vmul.f32 %v16453_v22, %v16113_v8  ;;  %v16559_v50 = vmul.f32 %v16110_v20, %v16453_v22  ;;  %v16563_v23 = vmul.f32 %v16453_v22, %v16135_v60  ;;  %v16567_v12 = vmul.f32 %v16132_v17, %v16453_v22 }
 0xb28   :  { %v16571_v2 = vmul.f32 %v16453_v22, %v16159_v53  ;;  %v16575_v8 = vmul.f32 %v16156_v1, %v16453_v22  ;;  %v16579_v20 = vmul.f32 %v16453_v22, %v16183_v52  ;;  %v16583_v60 = vmul.f32 %v16180_v32, %v16453_v22 }
 0xb29   :  { %v16587_v17 = vmul.f32 %v16453_v22, %v16207_v3  ;;  %v16591_v53 = vmul.f32 %v16204_v44, %v16453_v22  ;;  %v16595_v1 = vmul.f32 %v16453_v22, %v16231_v4  ;;  %v16599_v52 = vmul.f32 %v16228_v19, %v16453_v22 }
 0xb2a   :  { %v16603_v32 = vmul.f32 %v16453_v22, %v16248_v63  ;;  %v16607_v3 = vmul.f32 %v16246_v31, %v16453_v22  ;;  %v16611_v44 = vmul.f32 %v16453_v22, %v16262_v36  ;;  %v16615_v4 = vmul.f32 %v16260_v0, %v16453_v22 }
 0xb2b   :  { %v16619_v19 = vmul.f32 %v16453_v22, %v17874_v6  ;;  %v16623_v63 = vmul.f32 %v17875_v9, %v16453_v22  ;;  %v16627_v31 = vmul.f32 %v16453_v22, %v17876_v18  ;;  %v16631_v36 = vmul.f32 %v17877_v58, %v16453_v22  ;;  %v17885_v9 = vld [vmem:[#allocation14_spill] sm:$0xff]  ;;  %v17887_v58 = vld [vmem:[#allocation11_spill] sm:$0xff] }
 0xb2c   :  { %v16635_v0 = vmul.f32 %v16453_v22, %v17878_v37  ;;  %v16639_v29 = vmul.f32 %v17879_v7, %v16453_v22  ;;  %v16643_v11 = vmul.f32 %v16453_v22, %v17880_v14  ;;  %v16647_v26 = vmul.f32 %v17881_v49, %v16453_v22  ;;  %v17889_v7 = vld [vmem:[#allocation16_spill] sm:$0xff]  ;;  %v17891_v49 = vld [vmem:[#allocation13_spill] sm:$0xff] }
 0xb2d   :  { %v16651_v34 = vmul.f32 %v16453_v22, %v17882_v39  ;;  %v16655_v6 = vmul.f32 %v17883_v51, %v16453_v22  ;;  %v16659_v18 = vmul.f32 %v16453_v22, %v17885_v9  ;;  %v16663_v37 = vmul.f32 %v17887_v58, %v16453_v22 }
 0xb2e   :  { %v16667_v14 = vmul.f32 %v16453_v22, %v17889_v7  ;;  %v16671_v39 = vmul.f32 %v17891_v49, %v16453_v22  ;;  %v16675_v51 = vmul.f32 %v16453_v22, %v17893_v5 }
 0xb2f   :  { %17884 = vst [vmem:[#allocation28_spill] sm:$0xff] %v16655_v6  ;;  %17886 = vst [vmem:[#allocation27_spill] sm:$0xff] %v16659_v18  ;;  %v17895_v6 = vld [vmem:[#allocation15_spill] sm:$0xff]  ;;  %v17897_v18 = vld [vmem:[#allocation20_spill] sm:$0xff] }
 0xb30   :  { %17888 = vst [vmem:[#allocation25_spill] sm:$0xff] %v16663_v37  ;;  %17890 = vst [vmem:[#allocation6_spill] sm:$0xff] %v16667_v14  ;;  %v16679_v9 = vmul.f32 %v17895_v6, %v16453_v22  ;;  %v16683_v58 = vmul.f32 %v16453_v22, %v17897_v18  ;;  %v17899_v37 = vld [vmem:[#allocation17_spill] sm:$0xff]  ;;  %v17901_v14 = vld [vmem:[#allocation19_spill] sm:$0xff] }
 0xb31   :  { %17892 = vst [vmem:[#allocation4_spill] sm:$0xff] %v16671_v39  ;;  %17894 = vst [vmem:[#allocation8_spill] sm:$0xff] %v16675_v51  ;;  %v16687_v7 = vmul.f32 %v17899_v37, %v16453_v22  ;;  %v16691_v49 = vmul.f32 %v16453_v22, %v17901_v14  ;;  %v17902_v39 = vld [vmem:[#allocation22_spill] sm:$0xff]  ;;  %v17904_v51 = vld [vmem:[#allocation21_spill] sm:$0xff] }
 0xb32   :  { %17896 = vst [vmem:[#allocation5_spill] sm:$0xff] %v16679_v9  ;;  %17898 = vst [vmem:[#allocation10_spill] sm:$0xff] %v16683_v58  ;;  %v16695_v5 = vmul.f32 %v17902_v39, %v16453_v22  ;;  %v16699_v6 = vmul.f32 %v16453_v22, %v17904_v51  ;;  %v17905_v9 = vld [vmem:[#allocation24_spill] sm:$0xff]  ;;  %v17906_v58 = vld [vmem:[#allocation23_spill] sm:$0xff]  ;;  %v17908_v39 = vsub.f32 %v16448_v38, %v16450_v35 }
 0xb33   :  { %17900 = vst [vmem:[#allocation7_spill] sm:$0xff] %v16687_v7  ;;  %v16703_v18 = vmul.f32 %v17905_v9, %v16453_v22  ;;  %v16707_v37 = vmul.f32 %v16453_v22, %v17906_v58  ;;  %v17907_v7 = vld [vmem:[#allocation26_spill] sm:$0xff] }
 0xb34   :  { %17903 = vst [vmem:[#allocation12_spill] sm:$0xff] %v16695_v5  ;;  %v16711_v14 = vmul.f32 %v17907_v7, %v16453_v22  ;;  %v16717_v5 = vrot.slane %v17908_v39, %v17873_v47 }
 0xb36   :  { %v16721_v51 = vadd.f32 %v16717_v5, %v16459_v40  ;;  %v16725_v9 = vadd.f32 %v16717_v5, %v16463_v46  ;;  %v16729_v58 = vadd.f32 %v16717_v5, %v16467_v54  ;;  %v16733_v22 = vadd.f32 %v16717_v5, %v16471_v16  ;;  %v17926_v7 = vld [vmem:[#allocation27_spill] sm:$0xff] }
 0xb37   :  { %v16737_v38 = vadd.f32 %v16717_v5, %v16475_v45  ;;  %v16741_v35 = vadd.f32 %v16717_v5, %v16479_v41  ;;  %v16745_v47 = vadd.f32 %v16717_v5, %v16483_v30  ;;  %v16749_v40 = vadd.f32 %v16717_v5, %v16487_v61 }
 0xb38   :  { %v16753_v46 = vadd.f32 %v16717_v5, %v16491_v42  ;;  %v16757_v54 = vadd.f32 %v16717_v5, %v16495_v59  ;;  %v16761_v16 = vadd.f32 %v16717_v5, %v16499_v28  ;;  %v16765_v45 = vadd.f32 %v16717_v5, %v16503_v25 }
 0xb39   :  { %v16769_v41 = vadd.f32 %v16717_v5, %v16507_v21  ;;  %v16773_v30 = vadd.f32 %v16717_v5, %v16511_v24  ;;  %v16777_v61 = vadd.f32 %v16717_v5, %v16515_v15  ;;  %v16781_v42 = vadd.f32 %v16717_v5, %v16519_v62 }
 0xb3a   :  { %v16785_v59 = vadd.f32 %v16717_v5, %v16523_v57  ;;  %v16789_v28 = vadd.f32 %v16717_v5, %v16527_v56  ;;  %v16793_v25 = vadd.f32 %v16717_v5, %v16531_v33  ;;  %v16797_v21 = vadd.f32 %v16717_v5, %v16535_v43 }
 0xb3b   :  { %v16801_v24 = vadd.f32 %v16717_v5, %v16539_v48  ;;  %v16805_v15 = vadd.f32 %v16717_v5, %v16543_v27  ;;  %v16809_v62 = vadd.f32 %v16717_v5, %v16547_v10  ;;  %v16813_v57 = vadd.f32 %v16717_v5, %v16551_v55 }
 0xb3c   :  { %v16817_v56 = vadd.f32 %v16717_v5, %v16555_v13  ;;  %v16821_v33 = vadd.f32 %v16717_v5, %v16559_v50  ;;  %v16825_v43 = vadd.f32 %v16717_v5, %v16563_v23  ;;  %v16829_v48 = vadd.f32 %v16717_v5, %v16567_v12 }
 0xb3d   :  { %v16833_v27 = vadd.f32 %v16717_v5, %v16571_v2  ;;  %v16837_v10 = vadd.f32 %v16717_v5, %v16575_v8  ;;  %v16841_v55 = vadd.f32 %v16717_v5, %v16579_v20  ;;  %v16845_v13 = vadd.f32 %v16717_v5, %v16583_v60 }
 0xb3e   :  { %v16849_v50 = vadd.f32 %v16717_v5, %v16587_v17  ;;  %v16853_v23 = vadd.f32 %v16717_v5, %v16591_v53  ;;  %v16857_v12 = vadd.f32 %v16717_v5, %v16595_v1  ;;  %v16861_v2 = vadd.f32 %v16717_v5, %v16599_v52 }
 0xb3f   :  { %v16865_v8 = vadd.f32 %v16717_v5, %v16603_v32  ;;  %v16869_v20 = vadd.f32 %v16717_v5, %v16607_v3  ;;  %v16873_v60 = vadd.f32 %v16717_v5, %v16611_v44  ;;  %v16877_v17 = vadd.f32 %v16717_v5, %v16615_v4 }
 0xb40   :  { %17909 = vst [vmem:[#allocation9_spill] sm:$0xff] %v16857_v12  ;;  %17910 = vst [vmem:[#allocation14_spill] sm:$0xff] %v16861_v2  ;;  %v16881_v53 = vadd.f32 %v16717_v5, %v16619_v19  ;;  %v16885_v1 = vadd.f32 %v16717_v5, %v16623_v63  ;;  %v16889_v52 = vadd.f32 %v16717_v5, %v16627_v31  ;;  %v8930_v63 = vld [vmem:[%s17686_s1] sm:$0xff]  ;;  %v8931_v31 = vld [vmem:[%s17686_s1 + $0x8] sm:$0xff] }
 0xb41   :  { %17911 = vst [vmem:[#allocation11_spill] sm:$0xff] %v16865_v8  ;;  %17912 = vst [vmem:[#allocation16_spill] sm:$0xff] %v16869_v20  ;;  %v16893_v32 = vadd.f32 %v16717_v5, %v16631_v36  ;;  %v16897_v3 = vadd.f32 %v16717_v5, %v16635_v0  ;;  %v16901_v44 = vadd.f32 %v16717_v5, %v16639_v29  ;;  %v8932_v36 = vld [vmem:[%s17686_s1 + $0x10] sm:$0xff]  ;;  %v8933_v0 = vld [vmem:[%s17686_s1 + $0x18] sm:$0xff] }
 0xb42   :  { %17913 = vst [vmem:[#allocation13_spill] sm:$0xff] %v16873_v60  ;;  %17914 = vst [vmem:[#allocation18_spill] sm:$0xff] %v16877_v17  ;;  %v16905_v4 = vadd.f32 %v16717_v5, %v16643_v11  ;;  %v16909_v19 = vadd.f32 %v16717_v5, %v16647_v26  ;;  %v16925_v29 = vadd.f32 %v16717_v5, %v16651_v34  ;;  %v17924_v11 = vld [vmem:[#allocation28_spill] sm:$0xff]  ;;  %v8935_v34 = vld [vmem:[%s17686_s1 + $0x28] sm:$0xff] }
 0xb43   :  { %17915 = vst [vmem:[#allocation15_spill] sm:$0xff] %v16881_v53  ;;  %17916 = vst [vmem:[#allocation20_spill] sm:$0xff] %v16885_v1  ;;  %v16929_v26 = vadd.f32 %v16717_v5, %v17924_v11  ;;  %v16933_v39 = vadd.f32 %v16717_v5, %v17926_v7  ;;  %v8936_v11 = vld [vmem:[%s17686_s1 + $0x30] sm:$0xff]  ;;  %v8937_v7 = vld [vmem:[%s17686_s1 + $0x38] sm:$0xff]  ;;  %v17054_v20 = vadd.f32 %v8932_v36, %v16729_v58 }
 0xb44   :  { %17917 = vst [vmem:[#allocation17_spill] sm:$0xff] %v16889_v52  ;;  %17918 = vst [vmem:[#allocation19_spill] sm:$0xff] %v16893_v32  ;;  %v17936_v32 = vld [vmem:[#allocation5_spill] sm:$0xff]  ;;  %v8938_v1 = vld [vmem:[%s17686_s1 + $0x40] sm:$0xff]  ;;  %v17057_v8 = vadd.f32 %v8933_v0, %v16733_v22  ;;  %v17075_v22 = vadd.f32 %v8935_v34, %v16741_v35 }
 0xb45   :  { %17919 = vst [vmem:[#allocation22_spill] sm:$0xff] %v16897_v3  ;;  %17920 = vst [vmem:[#allocation21_spill] sm:$0xff] %v16901_v44  ;;  %v8934_v44 = vld [vmem:[%s17686_s1 + $0x20] sm:$0xff]  ;;  %v16965_v52 = vadd.f32 %v16717_v5, %v17936_v32  ;;  %v8955_v12 = vld [vmem:[%s17686_s1 + $0xc8] sm:$0xff] }
 0xb46   :  { %17921 = vst [vmem:[#allocation24_spill] sm:$0xff] %v16905_v4  ;;  %17922 = vst [vmem:[#allocation23_spill] sm:$0xff] %v16909_v19  ;;  %v17928_v19 = vld [vmem:[#allocation25_spill] sm:$0xff]  ;;  %v17943_v53 = vld [vmem:[#allocation12_spill] sm:$0xff]  ;;  %v17072_v58 = vadd.f32 %v8934_v44, %v16737_v38 }
 0xb47   :  { %17923 = vst [vmem:[#allocation26_spill] sm:$0xff] %v16925_v29  ;;  %17925 = vst [vmem:[#allocation28_spill] sm:$0xff] %v16929_v26  ;;  %v16937_v4 = vadd.f32 %v16717_v5, %v17928_v19  ;;  %v17934_v29 = vld [vmem:[#allocation8_spill] sm:$0xff]  ;;  %v16993_v17 = vadd.f32 %v16717_v5, %v17943_v53  ;;  %v17009_v53 = vadd.f32 %v16717_v5, %v16699_v6  ;;  %v8947_v6 = vld [vmem:[%s17686_s1 + $0x88] sm:$0xff] }
 0xb48   :  { %17927 = vst [vmem:[#allocation27_spill] sm:$0xff] %v16933_v39  ;;  %v17930_v39 = vld [vmem:[#allocation6_spill] sm:$0xff]  ;;  %v16961_v3 = vadd.f32 %v16717_v5, %v17934_v29  ;;  %17937 = vst [vmem:[#allocation5_spill] sm:$0xff] %v16965_v52  ;;  %v8941_v29 = vld [vmem:[%s17686_s1 + $0x58] sm:$0xff] }
 0xb49   :  { %17929 = vst [vmem:[#allocation25_spill] sm:$0xff] %v16937_v4  ;;  %v16953_v19 = vadd.f32 %v16717_v5, %v17930_v39  ;;  %v17932_v4 = vld [vmem:[#allocation4_spill] sm:$0xff]  ;;  %v8939_v39 = vld [vmem:[%s17686_s1 + $0x48] sm:$0xff]  ;;  %v17940_v52 = vld [vmem:[#allocation7_spill] sm:$0xff]  ;;  %v17105_v34 = vadd.f32 %v8941_v29, %v16765_v45 }
 0xb4a   :  { %v16957_v26 = vadd.f32 %v16717_v5, %v17932_v4  ;;  %17935 = vst [vmem:[#allocation8_spill] sm:$0xff] %v16961_v3  ;;  %v8940_v4 = vld [vmem:[%s17686_s1 + $0x50] sm:$0xff]  ;;  %17944 = vst [vmem:[#allocation12_spill] sm:$0xff] %v16993_v17  ;;  %v8942_v60 = vld [vmem:[%s17686_s1 + $0x60] sm:$0xff]  ;;  %v17013_v17 = vadd.f32 %v16717_v5, %v16703_v18 }
 0xb4b   :  { %17931 = vst [vmem:[#allocation6_spill] sm:$0xff] %v16953_v19  ;;  %v17938_v3 = vld [vmem:[#allocation10_spill] sm:$0xff]  ;;  %v16989_v19 = vadd.f32 %v16717_v5, %v16691_v49  ;;  %v8945_v49 = vld [vmem:[%s17686_s1 + $0x78] sm:$0xff]  ;;  %17945 = vst [vmem:[#allocation30_spill] sm:$0xff] %v17009_v53  ;;  %v17051_v53 = vadd.f32 %v8931_v31, %v16725_v9  ;;  %v17081_v31 = vadd.f32 %v8937_v7, %v16749_v40 }
 0xb4c   :  { %17933 = vst [vmem:[#allocation4_spill] sm:$0xff] %v16957_v26  ;;  %v16981_v32 = vadd.f32 %v16717_v5, %v17938_v3  ;;  %v16985_v26 = vadd.f32 %v16717_v5, %v17940_v52  ;;  %v8943_v3 = vld [vmem:[%s17686_s1 + $0x68] sm:$0xff]  ;;  %v8944_v52 = vld [vmem:[%s17686_s1 + $0x70] sm:$0xff]  ;;  %17946 = vst [vmem:[#allocation31_spill] sm:$0xff] %v17013_v17  ;;  %v17048_v17 = vadd.f32 %v8930_v63, %v16721_v51 }
 0xb4d   :  { %17942 = vst [vmem:[#allocation29_spill] sm:$0xff] %v16989_v19  ;;  %v17017_v19 = vadd.f32 %v16717_v5, %v16707_v37  ;;  %v8948_v18 = vld [vmem:[%s17686_s1 + $0x90] sm:$0xff]  ;;  %v8949_v37 = vld [vmem:[%s17686_s1 + $0x98] sm:$0xff]  ;;  %v8954_v2 = vld [vmem:[%s17686_s1 + $0xc0] sm:$0xff]  ;;  %v17078_v63 = vadd.f32 %v8936_v11, %v16745_v47  ;;  %v17096_v47 = vadd.f32 %v8938_v1, %v16753_v46  ;;  %v17099_v40 = vadd.f32 %v8939_v39, %v16757_v54 }
 0xb4e   :  { %17939 = vst [vmem:[#allocation10_spill] sm:$0xff] %v16981_v32  ;;  %17941 = vst [vmem:[#allocation7_spill] sm:$0xff] %v16985_v26  ;;  %v17021_v26 = vadd.f32 %v16717_v5, %v16711_v14  ;;  %v8946_v32 = vld [vmem:[%s17686_s1 + $0x80] sm:$0xff]  ;;  %v8951_v14 = vld [vmem:[%s17686_s1 + $0xa8] sm:$0xff]  ;;  %v17102_v44 = vadd.f32 %v8940_v4, %v16761_v16  ;;  %v17120_v16 = vadd.f32 %v8942_v60, %v16769_v41 }
 0xb4f   :  { %17947 = vst [vmem:[#allocation32_spill] sm:$0xff] %v17017_v19  ;;  %v8950_v5 = vld [vmem:[%s17686_s1 + $0xa0] sm:$0xff]  ;;  %v8953_v19 = vld [vmem:[%s17686_s1 + $0xb8] sm:$0xff]  ;;  %v8956_v51 = vld [vmem:[%s17686_s1 + $0xd0] sm:$0xff]  ;;  %v17123_v45 = vadd.f32 %v8943_v3, %v16773_v30  ;;  %v17126_v1 = vadd.f32 %v8944_v52, %v16777_v61  ;;  %v17129_v39 = vadd.f32 %v8945_v49, %v16781_v42  ;;  %v17144_v61 = vadd.f32 %v8946_v32, %v16785_v59 }
 0xb50   :  { %17948 = vst [vmem:[#allocation33_spill] sm:$0xff] %v17021_v26  ;;  %v8952_v26 = vld [vmem:[%s17686_s1 + $0xb0] sm:$0xff]  ;;  %v8957_v9 = vld [vmem:[%s17686_s1 + $0xd8] sm:$0xff]  ;;  %v8958_v36 = vld [vmem:[%s17686_s1 + $0xe0] sm:$0xff]  ;;  %v17147_v42 = vadd.f32 %v8947_v6, %v16789_v28  ;;  %v17150_v60 = vadd.f32 %v8948_v18, %v16793_v25  ;;  %v17153_v3 = vadd.f32 %v8949_v37, %v16797_v21  ;;  %v17165_v28 = vadd.f32 %v8950_v5, %v16801_v24 }
 0xb51   :  { %v8959_v0 = vld [vmem:[%s17686_s1 + $0xe8] sm:$0xff]  ;;  %v8960_v38 = vld [vmem:[%s17686_s1 + $0xf0] sm:$0xff]  ;;  %v8961_v35 = vld [vmem:[%s17686_s1 + $0xf8] sm:$0xff]  ;;  %v17168_v25 = vadd.f32 %v8951_v14, %v16805_v15  ;;  %v17171_v21 = vadd.f32 %v8952_v26, %v16809_v62  ;;  %v17174_v32 = vadd.f32 %v8953_v19, %v16813_v57  ;;  %v17186_v15 = vadd.f32 %v8954_v2, %v16817_v56 }
 0xb52   :  { %v8962_v11 = vld [vmem:[%s17686_s1 + $0x100] sm:$0xff]  ;;  %v8963_v7 = vld [vmem:[%s17686_s1 + $0x108] sm:$0xff]  ;;  %v8964_v46 = vld [vmem:[%s17686_s1 + $0x110] sm:$0xff]  ;;  %v17189_v62 = vadd.f32 %v8955_v12, %v16821_v33  ;;  %v17192_v57 = vadd.f32 %v8956_v51, %v16825_v43  ;;  %v17195_v26 = vadd.f32 %v8957_v9, %v16829_v48  ;;  %v17207_v33 = vadd.f32 %v8958_v36, %v16833_v27 }
 0xb53   :  { %v8965_v54 = vld [vmem:[%s17686_s1 + $0x118] sm:$0xff]  ;;  %v8966_v4 = vld [vmem:[%s17686_s1 + $0x120] sm:$0xff]  ;;  %v8967_v29 = vld [vmem:[%s17686_s1 + $0x128] sm:$0xff]  ;;  %v17210_v43 = vadd.f32 %v8959_v0, %v16837_v10  ;;  %v17213_v48 = vadd.f32 %v8960_v38, %v16841_v55  ;;  %v17216_v12 = vadd.f32 %v8961_v35, %v16845_v13  ;;  %v17228_v10 = vadd.f32 %v8962_v11, %v16849_v50 }
 0xb54   :  { %v8968_v41 = vld [vmem:[%s17686_s1 + $0x130] sm:$0xff]  ;;  %v8969_v30 = vld [vmem:[%s17686_s1 + $0x138] sm:$0xff]  ;;  %v8970_v52 = vld [vmem:[%s17686_s1 + $0x140] sm:$0xff]  ;;  %v17231_v55 = vadd.f32 %v8963_v7, %v16853_v23 }
 0xb55   :  { %v8971_v49 = vld [vmem:[%s17686_s1 + $0x148] sm:$0xff]  ;;  %v8972_v59 = vld [vmem:[%s17686_s1 + $0x150] sm:$0xff]  ;;  %v8973_v6 = vld [vmem:[%s17686_s1 + $0x158] sm:$0xff] }
 0xb56   :  { %v8974_v18 = vld [vmem:[%s17686_s1 + $0x160] sm:$0xff]  ;;  %v8975_v24 = vld [vmem:[%s17686_s1 + $0x168] sm:$0xff]  ;;  %v8976_v19 = vld [vmem:[%s17686_s1 + $0x170] sm:$0xff] }
 0xb57   :  { %v8977_v37 = vld [vmem:[%s17686_s1 + $0x178] sm:$0xff]  ;;  %v8978_v56 = vld [vmem:[%s17686_s1 + $0x180] sm:$0xff]  ;;  %v8979_v2 = vld [vmem:[%s17686_s1 + $0x188] sm:$0xff] }
 0xb58   :  { %v8980_v5 = vld [vmem:[%s17686_s1 + $0x190] sm:$0xff]  ;;  %v8981_v27 = vld [vmem:[%s17686_s1 + $0x198] sm:$0xff]  ;;  %v17949_v13 = vld [vmem:[#allocation9_spill] sm:$0xff] }
 0xb59   :  { %v17234_v14 = vadd.f32 %v8964_v46, %v17949_v13  ;;  %v17951_v51 = vld [vmem:[#allocation14_spill] sm:$0xff]  ;;  %v8982_v36 = vld [vmem:[%s17686_s1 + $0x1a0] sm:$0xff]  ;;  %v8983_v0 = vld [vmem:[%s17686_s1 + $0x1a8] sm:$0xff] }
 0xb5a   :  { %v17237_v9 = vadd.f32 %v8965_v54, %v17951_v51  ;;  %v8984_v50 = vld [vmem:[%s17686_s1 + $0x1b0] sm:$0xff]  ;;  %v17953_v23 = vld [vmem:[#allocation11_spill] sm:$0xff]  ;;  %v17955_v35 = vld [vmem:[#allocation16_spill] sm:$0xff] }
 0xb5b   :  { %17950 = vst [vmem:[#allocation9_spill] sm:$0xff] %v17234_v14  ;;  %v17249_v38 = vadd.f32 %v8966_v4, %v17953_v23  ;;  %v17252_v11 = vadd.f32 %v8967_v29, %v17955_v35  ;;  %v17957_v7 = vld [vmem:[#allocation13_spill] sm:$0xff]  ;;  %v17959_v54 = vld [vmem:[#allocation18_spill] sm:$0xff]  ;;  %v8985_v51 = vld [vmem:[%s17686_s1 + $0x1b8] sm:$0xff] }
 0xb5c   :  { %17952 = vst [vmem:[#allocation14_spill] sm:$0xff] %v17237_v9  ;;  %v17255_v46 = vadd.f32 %v8968_v41, %v17957_v7  ;;  %v17258_v13 = vadd.f32 %v8969_v30, %v17959_v54  ;;  %v8986_v9 = vld [vmem:[%s17686_s1 + $0x1c0] sm:$0xff]  ;;  %v8987_v4 = vld [vmem:[%s17686_s1 + $0x1c8] sm:$0xff]  ;;  %v17961_v29 = vld [vmem:[#allocation15_spill] sm:$0xff] }
 0xb5d   :  { %17954 = vst [vmem:[#allocation11_spill] sm:$0xff] %v17249_v38  ;;  %17956 = vst [vmem:[#allocation16_spill] sm:$0xff] %v17252_v11  ;;  %v17270_v23 = vadd.f32 %v8970_v52, %v17961_v29  ;;  %v17963_v41 = vld [vmem:[#allocation20_spill] sm:$0xff]  ;;  %v17965_v30 = vld [vmem:[#allocation17_spill] sm:$0xff] }
 0xb5e   :  { %17958 = vst [vmem:[#allocation13_spill] sm:$0xff] %v17255_v46  ;;  %17960 = vst [vmem:[#allocation18_spill] sm:$0xff] %v17258_v13  ;;  %v17273_v35 = vadd.f32 %v8971_v49, %v17963_v41  ;;  %v17276_v7 = vadd.f32 %v8972_v59, %v17965_v30  ;;  %v17967_v54 = vld [vmem:[#allocation19_spill] sm:$0xff]  ;;  %v8988_v46 = vld [vmem:[%s17686_s1 + $0x1d0] sm:$0xff] }
 0xb5f   :  { %17962 = vst [vmem:[#allocation15_spill] sm:$0xff] %v17270_v23  ;;  %v17279_v13 = vadd.f32 %v8973_v6, %v17967_v54  ;;  %v8989_v11 = vld [vmem:[%s17686_s1 + $0x1d8] sm:$0xff]  ;;  %v8990_v52 = vld [vmem:[%s17686_s1 + $0x1e0] sm:$0xff]  ;;  %v17969_v49 = vld [vmem:[#allocation22_spill] sm:$0xff] }
 0xb60   :  { %17964 = vst [vmem:[#allocation20_spill] sm:$0xff] %v17273_v35  ;;  %17966 = vst [vmem:[#allocation17_spill] sm:$0xff] %v17276_v7  ;;  %v17291_v29 = vadd.f32 %v8974_v18, %v17969_v49  ;;  %v17971_v59 = vld [vmem:[#allocation21_spill] sm:$0xff]  ;;  %v17973_v6 = vld [vmem:[#allocation24_spill] sm:$0xff] }
 0xb61   :  { %17968 = vst [vmem:[#allocation19_spill] sm:$0xff] %v17279_v13  ;;  %v17294_v41 = vadd.f32 %v8975_v24, %v17971_v59  ;;  %v17297_v30 = vadd.f32 %v8976_v19, %v17973_v6  ;;  %v17975_v54 = vld [vmem:[#allocation23_spill] sm:$0xff]  ;;  %v8991_v7 = vld [vmem:[%s17686_s1 + $0x1e8] sm:$0xff]  ;;  %v8992_v35 = vld [vmem:[%s17686_s1 + $0x1f0] sm:$0xff] }
 0xb62   :  { %17970 = vst [vmem:[#allocation22_spill] sm:$0xff] %v17291_v29  ;;  %v17300_v13 = vadd.f32 %v8977_v37, %v17975_v54  ;;  %v8993_v18 = vld [vmem:[%s17686_s1 + $0x1f8] sm:$0xff]  ;;  %v17977_v24 = vld [vmem:[#allocation26_spill] sm:$0xff]  ;;  %v17978_v19 = vld [vmem:[#allocation28_spill] sm:$0xff] }
 0xb63   :  { %17972 = vst [vmem:[#allocation21_spill] sm:$0xff] %v17294_v41  ;;  %17974 = vst [vmem:[#allocation24_spill] sm:$0xff] %v17297_v30  ;;  %v17312_v49 = vadd.f32 %v8978_v56, %v17977_v24  ;;  %v17315_v59 = vadd.f32 %v8979_v2, %v17978_v19  ;;  %v17979_v37 = vld [vmem:[#allocation27_spill] sm:$0xff]  ;;  %v17980_v54 = vld [vmem:[#allocation25_spill] sm:$0xff] }
 0xb64   :  { %17976 = vst [vmem:[#allocation23_spill] sm:$0xff] %v17300_v13  ;;  %v17318_v6 = vadd.f32 %v8980_v5, %v17979_v37  ;;  %v17321_v13 = vadd.f32 %v8981_v27, %v17980_v54  ;;  %v17981_v30 = vld [vmem:[#allocation6_spill] sm:$0xff]  ;;  %v17982_v29 = vld [vmem:[#allocation4_spill] sm:$0xff]  ;;  %v17984_v56 = vld [vmem:[#allocation5_spill] sm:$0xff] }
 0xb65   :  { %v17324_v41 = vadd.f32 %v8982_v36, %v17981_v30  ;;  %v17327_v23 = vadd.f32 %v8983_v0, %v17982_v29  ;;  %v17983_v38 = vld [vmem:[#allocation8_spill] sm:$0xff]  ;;  %v17333_v24 = vadd.f32 %v8985_v51, %v17984_v56  ;;  %v17985_v2 = vld [vmem:[#allocation10_spill] sm:$0xff]  ;;  %v17986_v5 = vld [vmem:[#allocation7_spill] sm:$0xff] }
 0xb66   :  { %v17330_v14 = vadd.f32 %v8984_v50, %v17983_v38  ;;  %v17336_v19 = vadd.f32 %v8986_v9, %v17985_v2  ;;  %v17339_v37 = vadd.f32 %v8987_v4, %v17986_v5  ;;  %v17987_v27 = vld [vmem:[#allocation29_spill] sm:$0xff]  ;;  %v17988_v36 = vld [vmem:[#allocation12_spill] sm:$0xff]  ;;  %v17989_v0 = vld [vmem:[#allocation30_spill] sm:$0xff]  ;;  %v9058_v4 = vmax.f32 %v17048_v17, 0.0 }
 0xb67   :  { %v17342_v54 = vadd.f32 %v8988_v46, %v17987_v27  ;;  %v17345_v30 = vadd.f32 %v8989_v11, %v17988_v36  ;;  %v17348_v29 = vadd.f32 %v8990_v52, %v17989_v0  ;;  %v17990_v50 = vld [vmem:[#allocation31_spill] sm:$0xff]  ;;  %v17991_v51 = vld [vmem:[#allocation32_spill] sm:$0xff]  ;;  %v17992_v9 = vld [vmem:[#allocation33_spill] sm:$0xff]  ;;  %v9059_v46 = vmax.f32 %v17051_v53, 0.0 }
 0xb68   :  { %v17351_v38 = vadd.f32 %v8991_v7, %v17990_v50  ;;  %v17354_v56 = vadd.f32 %v8992_v35, %v17991_v51  ;;  %v17357_v2 = vadd.f32 %v8993_v18, %v17992_v9  ;;  %v9060_v5 = vmax.f32 %v17054_v20, 0.0  ;;  %9122 = vst.msk [vmem:[%s17687_s8] sm:$0xff] %vm93_vm0, %v9058_v4  ;;  %v17998_v0 = vld [vmem:[#allocation18_spill] sm:$0xff]  ;;  %v17999_v51 = vld [vmem:[#allocation15_spill] sm:$0xff]  ;;  %v18000_v4 = vld [vmem:[#allocation20_spill] sm:$0xff] }
 0xb69   :  { %v9061_v11 = vmax.f32 %v17057_v8, 0.0  ;;  %v9062_v52 = vmax.f32 %v17072_v58, 0.0  ;;  %v9063_v27 = vmax.f32 %v17075_v22, 0.0  ;;  %v9064_v7 = vmax.f32 %v17078_v63, 0.0  ;;  %9123 = vst.msk [vmem:[%s17687_s8 + $0x8] sm:$0xff] %vm93_vm0, %v9059_v46 }
 0xb6a   :  { %v9065_v35 = vmax.f32 %v17081_v31, 0.0  ;;  %v9066_v36 = vmax.f32 %v17096_v47, 0.0  ;;  %v9067_v18 = vmax.f32 %v17099_v40, 0.0  ;;  %v9068_v17 = vmax.f32 %v17102_v44, 0.0  ;;  %9124 = vst.msk [vmem:[%s17687_s8 + $0x10] sm:$0xff] %vm93_vm0, %v9060_v5  ;;  %v18001_v5 = vld [vmem:[#allocation17_spill] sm:$0xff] }
 0xb6b   :  { %v9069_v53 = vmax.f32 %v17105_v34, 0.0  ;;  %9125 = vst.msk [vmem:[%s17687_s8 + $0x18] sm:$0xff] %vm93_vm0, %v9061_v11  ;;  %v9070_v8 = vmax.f32 %v17120_v16, 0.0  ;;  %v9071_v20 = vmax.f32 %v17123_v45, 0.0  ;;  %v9072_v58 = vmax.f32 %v17126_v1, 0.0  ;;  %9126 = vst.msk [vmem:[%s17687_s8 + $0x20] sm:$0xff] %vm93_vm0, %v9062_v52 }
 0xb6c   :  { %v9073_v22 = vmax.f32 %v17129_v39, 0.0  ;;  %9127 = vst.msk [vmem:[%s17687_s8 + $0x28] sm:$0xff] %vm93_vm0, %v9063_v27  ;;  %9128 = vst.msk [vmem:[%s17687_s8 + $0x30] sm:$0xff] %vm93_vm0, %v9064_v7  ;;  %v9074_v63 = vmax.f32 %v17144_v61, 0.0  ;;  %v9075_v31 = vmax.f32 %v17147_v42, 0.0  ;;  %v9076_v47 = vmax.f32 %v17150_v60, 0.0 }
 0xb6d   :  { %9129 = vst.msk [vmem:[%s17687_s8 + $0x38] sm:$0xff] %vm93_vm0, %v9065_v35  ;;  %v9077_v40 = vmax.f32 %v17153_v3, 0.0  ;;  %9130 = vst.msk [vmem:[%s17687_s8 + $0x40] sm:$0xff] %vm93_vm0, %v9066_v36  ;;  %v9078_v44 = vmax.f32 %v17165_v28, 0.0  ;;  %v9079_v34 = vmax.f32 %v17168_v25, 0.0  ;;  %v9080_v16 = vmax.f32 %v17171_v21, 0.0 }
 0xb6e   :  { %9131 = vst.msk [vmem:[%s17687_s8 + $0x48] sm:$0xff] %vm93_vm0, %v9067_v18  ;;  %9132 = vst.msk [vmem:[%s17687_s8 + $0x50] sm:$0xff] %vm93_vm0, %v9068_v17  ;;  %v9081_v45 = vmax.f32 %v17174_v32, 0.0  ;;  %v9082_v1 = vmax.f32 %v17186_v15, 0.0  ;;  %v9083_v39 = vmax.f32 %v17189_v62, 0.0  ;;  %v9084_v61 = vmax.f32 %v17192_v57, 0.0 }
 0xb6f   :  { %9133 = vst.msk [vmem:[%s17687_s8 + $0x58] sm:$0xff] %vm93_vm0, %v9069_v53  ;;  %9134 = vst.msk [vmem:[%s17687_s8 + $0x60] sm:$0xff] %vm93_vm0, %v9070_v8  ;;  %v9085_v42 = vmax.f32 %v17195_v26, 0.0  ;;  %v9086_v60 = vmax.f32 %v17207_v33, 0.0  ;;  %v9087_v3 = vmax.f32 %v17210_v43, 0.0  ;;  %v9088_v28 = vmax.f32 %v17213_v48, 0.0 }
 0xb70   :  { %9135 = vst.msk [vmem:[%s17687_s8 + $0x68] sm:$0xff] %vm93_vm0, %v9071_v20  ;;  %9136 = vst.msk [vmem:[%s17687_s8 + $0x70] sm:$0xff] %vm93_vm0, %v9072_v58  ;;  %v9089_v25 = vmax.f32 %v17216_v12, 0.0  ;;  %v9090_v21 = vmax.f32 %v17228_v10, 0.0  ;;  %v9091_v32 = vmax.f32 %v17231_v55, 0.0  ;;  %v17993_v15 = vld [vmem:[#allocation9_spill] sm:$0xff] }
 0xb71   :  { %9137 = vst.msk [vmem:[%s17687_s8 + $0x78] sm:$0xff] %vm93_vm0, %v9073_v22  ;;  %9138 = vst.msk [vmem:[%s17687_s8 + $0x80] sm:$0xff] %vm93_vm0, %v9074_v63  ;;  %v9092_v62 = vmax.f32 %v17993_v15, 0.0  ;;  %v17994_v57 = vld [vmem:[#allocation14_spill] sm:$0xff]  ;;  %v17995_v33 = vld [vmem:[#allocation11_spill] sm:$0xff]  ;;  %v9097_v50 = vmax.f32 %v17998_v0, 0.0 }
 0xb72   :  { %9139 = vst.msk [vmem:[%s17687_s8 + $0x88] sm:$0xff] %vm93_vm0, %v9075_v31  ;;  %9140 = vst.msk [vmem:[%s17687_s8 + $0x90] sm:$0xff] %vm93_vm0, %v9076_v47  ;;  %v9093_v26 = vmax.f32 %v17994_v57, 0.0  ;;  %v9094_v43 = vmax.f32 %v17995_v33, 0.0  ;;  %v17996_v48 = vld [vmem:[#allocation16_spill] sm:$0xff]  ;;  %v17997_v10 = vld [vmem:[#allocation13_spill] sm:$0xff] }
 0xb73   :  { %9141 = vst.msk [vmem:[%s17687_s8 + $0x98] sm:$0xff] %vm93_vm0, %v9077_v40  ;;  %9142 = vst.msk [vmem:[%s17687_s8 + $0xa0] sm:$0xff] %vm93_vm0, %v9078_v44  ;;  %v9095_v12 = vmax.f32 %v17996_v48, 0.0  ;;  %v9096_v55 = vmax.f32 %v17997_v10, 0.0  ;;  %v9098_v9 = vmax.f32 %v17999_v51, 0.0  ;;  %v9099_v46 = vmax.f32 %v18000_v4, 0.0 }
 0xb74   :  { %9143 = vst.msk [vmem:[%s17687_s8 + $0xa8] sm:$0xff] %vm93_vm0, %v9079_v34  ;;  %9144 = vst.msk [vmem:[%s17687_s8 + $0xb0] sm:$0xff] %vm93_vm0, %v9080_v16  ;;  %v9100_v11 = vmax.f32 %v18001_v5, 0.0  ;;  %v18002_v52 = vld [vmem:[#allocation19_spill] sm:$0xff]  ;;  %v18003_v7 = vld [vmem:[#allocation22_spill] sm:$0xff]  ;;  %v9106_v58 = vmax.f32 %v17312_v49, 0.0 }
 0xb75   :  { %9145 = vst.msk [vmem:[%s17687_s8 + $0xb8] sm:$0xff] %vm93_vm0, %v9081_v45  ;;  %9146 = vst.msk [vmem:[%s17687_s8 + $0xc0] sm:$0xff] %vm93_vm0, %v9082_v1  ;;  %v9101_v27 = vmax.f32 %v18002_v52, 0.0  ;;  %v9102_v35 = vmax.f32 %v18003_v7, 0.0  ;;  %v18004_v36 = vld [vmem:[#allocation21_spill] sm:$0xff]  ;;  %v18005_v17 = vld [vmem:[#allocation24_spill] sm:$0xff] }
 0xb76   :  { %9147 = vst.msk [vmem:[%s17687_s8 + $0xc8] sm:$0xff] %vm93_vm0, %v9083_v39  ;;  %9148 = vst.msk [vmem:[%s17687_s8 + $0xd0] sm:$0xff] %vm93_vm0, %v9084_v61  ;;  %v9103_v18 = vmax.f32 %v18004_v36, 0.0  ;;  %v9104_v53 = vmax.f32 %v18005_v17, 0.0  ;;  %v18006_v8 = vld [vmem:[#allocation23_spill] sm:$0xff]  ;;  %v9107_v22 = vmax.f32 %v17315_v59, 0.0 }
 0xb77   :  { %9149 = vst.msk [vmem:[%s17687_s8 + $0xd8] sm:$0xff] %vm93_vm0, %v9085_v42  ;;  %9150 = vst.msk [vmem:[%s17687_s8 + $0xe0] sm:$0xff] %vm93_vm0, %v9086_v60  ;;  %v9105_v20 = vmax.f32 %v18006_v8, 0.0  ;;  %v9108_v63 = vmax.f32 %v17318_v6, 0.0  ;;  %v9109_v31 = vmax.f32 %v17321_v13, 0.0  ;;  %v9110_v13 = vmax.f32 %v17324_v41, 0.0 }
 0xb78   :  { %9151 = vst.msk [vmem:[%s17687_s8 + $0xe8] sm:$0xff] %vm93_vm0, %v9087_v3  ;;  %9152 = vst.msk [vmem:[%s17687_s8 + $0xf0] sm:$0xff] %vm93_vm0, %v9088_v28  ;;  %v9111_v49 = vmax.f32 %v17327_v23, 0.0  ;;  %v9112_v59 = vmax.f32 %v17330_v14, 0.0  ;;  %v9113_v6 = vmax.f32 %v17333_v24, 0.0  ;;  %v9114_v14 = vmax.f32 %v17336_v19, 0.0 }
 0xb79   :  { %9153 = vst.msk [vmem:[%s17687_s8 + $0xf8] sm:$0xff] %vm93_vm0, %v9089_v25  ;;  %9154 = vst.msk [vmem:[%s17687_s8 + $0x100] sm:$0xff] %vm93_vm0, %v9090_v21  ;;  %v9115_v23 = vmax.f32 %v17339_v37, 0.0  ;;  %v9116_v41 = vmax.f32 %v17342_v54, 0.0  ;;  %v9117_v24 = vmax.f32 %v17345_v30, 0.0  ;;  %v9118_v19 = vmax.f32 %v17348_v29, 0.0 }
 0xb7a   :  { %9155 = vst.msk [vmem:[%s17687_s8 + $0x108] sm:$0xff] %vm93_vm0, %v9091_v32  ;;  %9156 = vst.msk [vmem:[%s17687_s8 + $0x110] sm:$0xff] %vm93_vm0, %v9092_v62  ;;  %v9119_v37 = vmax.f32 %v17351_v38, 0.0  ;;  %v9120_v54 = vmax.f32 %v17354_v56, 0.0  ;;  %v9121_v30 = vmax.f32 %v17357_v2, 0.0 }
 0xb7b   :  { %9157 = vst.msk [vmem:[%s17687_s8 + $0x118] sm:$0xff] %vm93_vm0, %v9093_v26  ;;  %9158 = vst.msk [vmem:[%s17687_s8 + $0x120] sm:$0xff] %vm93_vm0, %v9094_v43 }
 0xb7c   :  { %9159 = vst.msk [vmem:[%s17687_s8 + $0x128] sm:$0xff] %vm93_vm0, %v9095_v12  ;;  %9160 = vst.msk [vmem:[%s17687_s8 + $0x130] sm:$0xff] %vm93_vm0, %v9096_v55 }
 0xb7d   :  { %9161 = vst.msk [vmem:[%s17687_s8 + $0x138] sm:$0xff] %vm93_vm0, %v9097_v50  ;;  %9162 = vst.msk [vmem:[%s17687_s8 + $0x140] sm:$0xff] %vm93_vm0, %v9098_v9 }
 0xb7e   :  { %9163 = vst.msk [vmem:[%s17687_s8 + $0x148] sm:$0xff] %vm93_vm0, %v9099_v46  ;;  %9164 = vst.msk [vmem:[%s17687_s8 + $0x150] sm:$0xff] %vm93_vm0, %v9100_v11 }
 0xb7f   :  { %9165 = vst.msk [vmem:[%s17687_s8 + $0x158] sm:$0xff] %vm93_vm0, %v9101_v27  ;;  %9166 = vst.msk [vmem:[%s17687_s8 + $0x160] sm:$0xff] %vm93_vm0, %v9102_v35 }
 0xb80   :  { %9167 = vst.msk [vmem:[%s17687_s8 + $0x168] sm:$0xff] %vm93_vm0, %v9103_v18  ;;  %9168 = vst.msk [vmem:[%s17687_s8 + $0x170] sm:$0xff] %vm93_vm0, %v9104_v53 }
 0xb81   :  { %9169 = vst.msk [vmem:[%s17687_s8 + $0x178] sm:$0xff] %vm93_vm0, %v9105_v20  ;;  %9170 = vst.msk [vmem:[%s17687_s8 + $0x180] sm:$0xff] %vm93_vm0, %v9106_v58 }
 0xb82   :  { %9171 = vst.msk [vmem:[%s17687_s8 + $0x188] sm:$0xff] %vm93_vm0, %v9107_v22  ;;  %9172 = vst.msk [vmem:[%s17687_s8 + $0x190] sm:$0xff] %vm93_vm0, %v9108_v63 }
 0xb83   :  { %9173 = vst.msk [vmem:[%s17687_s8 + $0x198] sm:$0xff] %vm93_vm0, %v9109_v31  ;;  %9174 = vst.msk [vmem:[%s17687_s8 + $0x1a0] sm:$0xff] %vm93_vm0, %v9110_v13 }
 0xb84   :  { %9175 = vst.msk [vmem:[%s17687_s8 + $0x1a8] sm:$0xff] %vm93_vm0, %v9111_v49  ;;  %9176 = vst.msk [vmem:[%s17687_s8 + $0x1b0] sm:$0xff] %vm93_vm0, %v9112_v59 }
 0xb85   :  { %9177 = vst.msk [vmem:[%s17687_s8 + $0x1b8] sm:$0xff] %vm93_vm0, %v9113_v6  ;;  %9178 = vst.msk [vmem:[%s17687_s8 + $0x1c0] sm:$0xff] %vm93_vm0, %v9114_v14 }
 0xb86   :  { %9179 = vst.msk [vmem:[%s17687_s8 + $0x1c8] sm:$0xff] %vm93_vm0, %v9115_v23  ;;  %9180 = vst.msk [vmem:[%s17687_s8 + $0x1d0] sm:$0xff] %vm93_vm0, %v9116_v41 }
 0xb87   :  { %9181 = vst.msk [vmem:[%s17687_s8 + $0x1d8] sm:$0xff] %vm93_vm0, %v9117_v24  ;;  %9182 = vst.msk [vmem:[%s17687_s8 + $0x1e0] sm:$0xff] %vm93_vm0, %v9118_v19 }
 0xb88   :  { %9183 = vst.msk [vmem:[%s17687_s8 + $0x1e8] sm:$0xff] %vm93_vm0, %v9119_v37  ;;  %9184 = vst.msk [vmem:[%s17687_s8 + $0x1f0] sm:$0xff] %vm93_vm0, %v9120_v54 }
 0xb89   :  { %9185 = vst.msk [vmem:[%s17687_s8 + $0x1f8] sm:$0xff] %vm93_vm0, %v9121_v30 }

</bundles_post_ra>
